<compile_context>
chip_gen: v7x
topology: tpu7x:2x2x1
jax: 0.10.0
libtpu: 0.0.40
codegen_flags: <defaults>
</compile_context>

<pallas_src>
import functools

import jax
import jax.numpy as jnp
from jax.experimental import pallas as pl
from jax.experimental.pallas import tpu as pltpu


# ----------------------------------------------------------------------------
# Fused kernel
# ----------------------------------------------------------------------------
def _fused_cnn_kernel(x_ref,
                      w1_ref, b1_ref, w2_ref, bss2_ref, m1_ref, sel1_ref,
                      w3_ref, b3_ref, w4_ref, bss4_ref, m2_ref, sel2_ref,
                      w5_ref, b5_ref, w6_ref, bss6_ref, m3_ref, sel3_ref,
                      wfc_ref, bfc_ref,
                      o_ref,
                      h1a, h1b, t1, h2a, h2b, t2, h3a, h3b, t3,
                      *, BB):
  """One grid step = one batch chunk of BB images, fully resident in VMEM.

  x_ref:    (1, BB*576)      input images, lane = b*H*W + h*W + w
  wX_ref:   (Cout, 9*Cin)    conv weights, col = (ky*3+kx)*Cin + ci
  bX_ref:   (Cout, 1)        conv bias (convs without BN)
  bssX_ref: (Cout, 3)        packed [bias, bn_scale, bn_shift] (convs with BN)
  mK_ref:   (9, BB*H*W)      zero-padding validity masks per tap (0/1 f32)
  selK_ref: (H*W, Ho*Wo)     0/1 stride-2 subsample selection matrix
  wfc_ref:  (N, 576)         FC weights, col = p*64 + c   (p = pooled h*3+w)
  bfc_ref:  (N, 1)
  o_ref:    (N, BB)          logits for this chunk
  h*/t*:    VMEM scratch (halo-padded conv inputs / pre-subsample pool slabs)
  """
  H1 = W1 = 24
  H2 = W2 = 12
  H3 = W3 = 6
  L1, L2, L3 = BB * H1 * W1, BB * H2 * W2, BB * H3 * W3
  P1, P2, P3 = W1 + 1, W2 + 1, W3 + 1

  def conv3x3(halo, x_val, w_ref, m_ref, cin, L, W, pad):
    # Stage the input in a zero-halo scratch so every tap is a plain
    # contiguous shifted load; build the (9*cin, L) im2col slab and do a
    # single MXU matmul.
    halo[:, :pad] = jnp.zeros((cin, pad), jnp.float32)
    halo[:, pad + L:] = jnp.zeros((cin, pad), jnp.float32)
    halo[:, pad:pad + L] = x_val
    parts = []
    for t in range(9):
      dy, dx = t // 3 - 1, t % 3 - 1
      s = dy * W + dx                                # static lane offset
      xs = halo[:, pl.ds(pad + s, L)]                # (cin, L)
      parts.append(xs * m_ref[pl.ds(t, 1), :])       # zero-pad ("same") mask
    slab = jnp.concatenate(parts, axis=0)            # (9*cin, L)
    return jax.lax.dot_general(
        w_ref[...], slab, (((1,), (0,)), ((), ())),
        preferred_element_type=jnp.float32)          # (cout, L)

  def maxpool2x2(tp, y, sel_ref, C, H, W):
    # 2x2 window max via shifted reads, then stride-2 subsample via a
    # precomputed 0/1 selection matmul (per image of the chunk).
    L = BB * H * W
    tp[:, :L] = y
    tp[:, L:] = jnp.zeros((C, W + 1), jnp.float32)   # keep shifted reads finite
    m = jnp.maximum(jnp.maximum(y, tp[:, pl.ds(1, L)]),
                    jnp.maximum(tp[:, pl.ds(W, L)], tp[:, pl.ds(W + 1, L)]))
    sel = sel_ref[...]                               # (H*W, Ho*Wo)
    outs = []
    for b in range(BB):
      mb = m[:, b * H * W:(b + 1) * H * W] if BB > 1 else m
      outs.append(jax.lax.dot_general(
          mb, sel, (((1,), (0,)), ((), ())),
          preferred_element_type=jnp.float32))       # (C, Ho*Wo)
    return outs[0] if BB == 1 else jnp.concatenate(outs, axis=1)

  x0 = x_ref[...]                                    # (1, L1)

  # ---- block 1: 1 -> 16 -> 16, 24x24 -> 12x12 ----
  a = conv3x3(h1a, x0, w1_ref, m1_ref, 1, L1, W1, P1)
  a = jnp.maximum(a + b1_ref[...], 0.0)
  a = conv3x3(h1b, a, w2_ref, m1_ref, 16, L1, W1, P1)
  bs = bss2_ref[...]
  a = jnp.maximum(a + bs[:, 0:1], 0.0) * bs[:, 1:2] + bs[:, 2:3]
  a = maxpool2x2(t1, a, sel1_ref, 16, H1, W1)        # (16, L2)

  # ---- block 2: 16 -> 32 -> 32, 12x12 -> 6x6 ----
  a = conv3x3(h2a, a, w3_ref, m2_ref, 16, L2, W2, P2)
  a = jnp.maximum(a + b3_ref[...], 0.0)
  a = conv3x3(h2b, a, w4_ref, m2_ref, 32, L2, W2, P2)
  bs = bss4_ref[...]
  a = jnp.maximum(a + bs[:, 0:1], 0.0) * bs[:, 1:2] + bs[:, 2:3]
  a = maxpool2x2(t2, a, sel2_ref, 32, H2, W2)        # (32, L3)

  # ---- block 3: 32 -> 64 -> 64, 6x6 -> 3x3 ----
  a = conv3x3(h3a, a, w5_ref, m3_ref, 32, L3, W3, P3)
  a = jnp.maximum(a + b5_ref[...], 0.0)
  a = conv3x3(h3b, a, w6_ref, m3_ref, 64, L3, W3, P3)
  bs = bss6_ref[...]
  a = jnp.maximum(a + bs[:, 0:1], 0.0) * bs[:, 1:2] + bs[:, 2:3]
  a = maxpool2x2(t3, a, sel3_ref, 64, H3, W3)        # (64, BB*9)

  # ---- FC head (fused) ----
  cols = []
  for b in range(BB):
    pb = a[:, b * 9:(b + 1) * 9] if BB > 1 else a    # (64, 9)
    # flatten (c, p) -> row p*64 + c to match the reordered FC weight
    fb = jnp.concatenate([pb[:, p:p + 1] for p in range(9)], axis=0)  # (576, 1)
    cols.append(fb)
  feat = cols[0] if BB == 1 else jnp.concatenate(cols, axis=1)        # (576, BB)
  logits = jax.lax.dot_general(
      wfc_ref[...], feat, (((1,), (0,)), ((), ())),
      preferred_element_type=jnp.float32) + bfc_ref[...]              # (N, BB)
  o_ref[...] = logits.astype(o_ref.dtype)


# ----------------------------------------------------------------------------
# Host-side parameter / constant reordering (pure layout glue)
# ----------------------------------------------------------------------------
def _conv_w2d(w):
  # (Cout, Cin, 3, 3) -> (Cout, 9*Cin), col = (ky*3+kx)*Cin + ci
  co, ci = w.shape[0], w.shape[1]
  return jnp.transpose(w, (0, 2, 3, 1)).reshape(co, 9 * ci)


def _fc_w9(w_fc):
  # torch flatten order is c*9 + p; kernel feature order is p*64 + c.
  n = w_fc.shape[0]
  return jnp.transpose(w_fc.reshape(n, 64, 9), (0, 2, 1)).reshape(n, 64 * 9)


def _make_masks(H, W, BB):
  # (9, BB*H*W) 0/1 "same"-padding validity masks, periodic per image.
  pos = jnp.arange(BB * H * W) % (H * W)
  hh, ww = pos // W, pos % W
  rows = []
  for t in range(9):
    dy, dx = t // 3 - 1, t % 3 - 1
    rows.append((hh + dy >= 0) & (hh + dy < H) & (ww + dx >= 0) & (ww + dx < W))
  return jnp.stack(rows, 0).astype(jnp.float32)


def _make_pool_sel(H, W):
  # (H*W, Ho*Wo) 0/1 matrix selecting lane 2p*W + 2q for pooled position (p, q).
  Ho, Wo = H // 2, W // 2
  src = jnp.arange(H * W)
  cols = jnp.arange(Ho * Wo)
  tgt = 2 * (cols // Wo) * W + 2 * (cols % Wo)
  return (src[:, None] == tgt[None, :]).astype(jnp.float32)


# ----------------------------------------------------------------------------
# Wrapper
# ----------------------------------------------------------------------------
def baseline_cnn_forward(x_nchw, params):
  """Equivalent of BaselineCNNClassifier.forward (inference semantics)."""
  B, C, H, W = x_nchw.shape
  assert (C, H, W) == (1, 24, 24), "encoder expects 1x24x24 inputs"
  num_classes = params["fc"][1].shape[0]

  # Split the batch over a short "parallel" grid axis (keeps both v7x TCs busy);
  # within a chunk the images are folded into the lane axis.
  G = 2 if (B >= 2 and B % 2 == 0) else 1
  BB = B // G
  L1, L2, L3 = BB * 576, BB * 144, BB * 36
  x3d = x_nchw.astype(jnp.float32).reshape(G, 1, L1)

  spatial = [(24, 24), (12, 12), (6, 6)]
  inputs = [x3d]
  in_specs = [pl.BlockSpec((None, 1, L1), lambda i: (i, 0, 0))]

  def const_spec(shape):
    return pl.BlockSpec(shape, lambda i: (0, 0))

  for k in range(3):
    (wA, bA), (wB, bB), (scale, shift) = params["blocks"][k]
    Hk, Wk = spatial[k]
    wA2, wB2 = _conv_w2d(wA), _conv_w2d(wB)
    packed = jnp.stack([bB, scale, shift], axis=1)        # (CoutB, 3)
    mask = _make_masks(Hk, Wk, BB)
    sel = _make_pool_sel(Hk, Wk)
    for arr in (wA2, bA.reshape(-1, 1), wB2, packed, mask, sel):
      inputs.append(arr)
      in_specs.append(const_spec(arr.shape))

  w_fc, b_fc = params["fc"]
  for arr in (_fc_w9(w_fc), b_fc.reshape(-1, 1)):
    inputs.append(arr)
    in_specs.append(const_spec(arr.shape))

  kernel = functools.partial(_fused_cnn_kernel, BB=BB)
  out = pl.pallas_call(
      kernel,
      out_shape=jax.ShapeDtypeStruct((G, num_classes, BB), jnp.float32),
      grid=(G,),
      in_specs=in_specs,
      out_specs=pl.BlockSpec((None, num_classes, BB), lambda i: (i, 0, 0)),
      scratch_shapes=[
          pltpu.VMEM((1, L1 + 2 * 25), jnp.float32),   # conv1 halo input
          pltpu.VMEM((16, L1 + 2 * 25), jnp.float32),  # conv2 halo input
          pltpu.VMEM((16, L1 + 25), jnp.float32),      # block1 pool slab
          pltpu.VMEM((16, L2 + 2 * 13), jnp.float32),  # conv3 halo input
          pltpu.VMEM((32, L2 + 2 * 13), jnp.float32),  # conv4 halo input
          pltpu.VMEM((32, L2 + 13), jnp.float32),      # block2 pool slab
          pltpu.VMEM((32, L3 + 2 * 7), jnp.float32),   # conv5 halo input
          pltpu.VMEM((64, L3 + 2 * 7), jnp.float32),   # conv6 halo input
          pltpu.VMEM((64, L3 + 7), jnp.float32),       # block3 pool slab
      ],
      compiler_params=pltpu.CompilerParams(
          dimension_semantics=("parallel",)),
  )(*inputs)
  # (G, N, BB) -> (B, N): pure layout glue outside the kernel.
  return jnp.transpose(out, (0, 2, 1)).reshape(B, num_classes)


# ----------------------------------------------------------------------------
# Deterministic parameter construction + pure-JAX reference
# ----------------------------------------------------------------------------
def _make_conv(key, cin, cout):
  k1, k2 = jax.random.split(key)
  std = (2.0 / (cin * 9)) ** 0.5
  w = jax.random.normal(k1, (cout, cin, 3, 3), jnp.float32) * std
  b = jax.random.normal(k2, (cout,), jnp.float32) * 0.01
  return w, b


def _make_bn(key, c, eps=1e-5):
  k1, k2, k3, k4 = jax.random.split(key, 4)
  gamma = 1.0 + 0.1 * jax.random.normal(k1, (c,), jnp.float32)
  beta = 0.1 * jax.random.normal(k2, (c,), jnp.float32)
  mean = 0.1 * jax.random.normal(k3, (c,), jnp.float32)
  var = 1.0 + 0.1 * jax.random.uniform(k4, (c,), jnp.float32)
  scale = gamma / jnp.sqrt(var + eps)
  shift = beta - mean * scale
  return scale, shift


def init_params(key, num_classes):
  keys = jax.random.split(key, 12)
  chans = [(1, 16), (16, 16), (16, 32), (32, 32), (32, 64), (64, 64)]
  convs = [_make_conv(keys[i], ci, co) for i, (ci, co) in enumerate(chans)]
  bns = [_make_bn(keys[6 + i], c) for i, c in enumerate([16, 32, 64])]
  blocks = [(convs[0], convs[1], bns[0]),
            (convs[2], convs[3], bns[1]),
            (convs[4], convs[5], bns[2])]
  feat_dim = 64 * 3 * 3
  w_fc = jax.random.normal(keys[9], (num_classes, feat_dim),
                           jnp.float32) * (1.0 / feat_dim) ** 0.5
  b_fc = jax.random.normal(keys[10], (num_classes,), jnp.float32) * 0.01
  return {"blocks": blocks, "fc": (w_fc, b_fc)}


def reference_forward(x, params):
  """Pure-JAX reference (NCHW), used only as a numerical sanity check."""
  def conv(x, w, b):
    y = jax.lax.conv_general_dilated(
        x, w, window_strides=(1, 1), padding="SAME",
        dimension_numbers=("NCHW", "OIHW", "NCHW"),
        precision=jax.lax.Precision.HIGHEST)
    return y + b[None, :, None, None]

  def pool(x):
    return jax.lax.reduce_window(x, -jnp.inf, jax.lax.max,
                                 (1, 1, 2, 2), (1, 1, 2, 2), "VALID")

  for blk in range(3):
    (w1, b1), (w2, b2), (scale, shift) = params["blocks"][blk]
    x = jax.nn.relu(conv(x, w1, b1))
    x = jax.nn.relu(conv(x, w2, b2))
    x = x * scale[None, :, None, None] + shift[None, :, None, None]
    x = pool(x)
  feat = x.reshape(x.shape[0], -1)
  w_fc, b_fc = params["fc"]
  return feat @ w_fc.T + b_fc


# ----------------------------------------------------------------------------
if __name__ == "__main__":
  num_classes = 10
  k_params, k_x = jax.random.split(jax.random.PRNGKey(0))
  params = init_params(k_params, num_classes)

  # NCHW input, 24x24 so that three 2x2 pools give 3x3 (64*3*3 feature dim).
  x = jax.random.normal(k_x, (2, 1, 24, 24), jnp.float32)

  fwd = jax.jit(baseline_cnn_forward)
  out = jax.block_until_ready(fwd(x, params))
  assert out.shape == (2, num_classes)

  ref = reference_forward(x, params)
  max_err = float(jnp.max(jnp.abs(out - ref)))
  assert jnp.allclose(out, ref, atol=2e-3, rtol=2e-3), (
      "max abs diff vs reference: %g" % max_err)

  print("KERNEL_OK")
</pallas_src>

<mosaic_0001>
module attributes {stable_mosaic.version = 11 : i64} {
  func.func @_fused_cnn_kernel(%arg0: i32, %arg1: memref<1x1x576xf32, #tpu.memory_space<vmem>>, %arg2: memref<16x9xf32, #tpu.memory_space<vmem>>, %arg3: memref<16x1xf32, #tpu.memory_space<vmem>>, %arg4: memref<16x144xf32, #tpu.memory_space<vmem>>, %arg5: memref<16x3xf32, #tpu.memory_space<vmem>>, %arg6: memref<9x576xf32, #tpu.memory_space<vmem>>, %arg7: memref<576x144xf32, #tpu.memory_space<vmem>>, %arg8: memref<32x144xf32, #tpu.memory_space<vmem>>, %arg9: memref<32x1xf32, #tpu.memory_space<vmem>>, %arg10: memref<32x288xf32, #tpu.memory_space<vmem>>, %arg11: memref<32x3xf32, #tpu.memory_space<vmem>>, %arg12: memref<9x144xf32, #tpu.memory_space<vmem>>, %arg13: memref<144x36xf32, #tpu.memory_space<vmem>>, %arg14: memref<64x288xf32, #tpu.memory_space<vmem>>, %arg15: memref<64x1xf32, #tpu.memory_space<vmem>>, %arg16: memref<64x576xf32, #tpu.memory_space<vmem>>, %arg17: memref<64x3xf32, #tpu.memory_space<vmem>>, %arg18: memref<9x36xf32, #tpu.memory_space<vmem>>, %arg19: memref<36x9xf32, #tpu.memory_space<vmem>>, %arg20: memref<10x576xf32, #tpu.memory_space<vmem>>, %arg21: memref<10x1xf32, #tpu.memory_space<vmem>>, %arg22: memref<1x10x1xf32, #tpu.memory_space<vmem>>, %arg23: memref<1x626xf32, #tpu.memory_space<vmem>>, %arg24: memref<16x626xf32, #tpu.memory_space<vmem>>, %arg25: memref<16x601xf32, #tpu.memory_space<vmem>>, %arg26: memref<16x170xf32, #tpu.memory_space<vmem>>, %arg27: memref<32x170xf32, #tpu.memory_space<vmem>>, %arg28: memref<32x157xf32, #tpu.memory_space<vmem>>, %arg29: memref<32x50xf32, #tpu.memory_space<vmem>>, %arg30: memref<64x50xf32, #tpu.memory_space<vmem>>, %arg31: memref<64x43xf32, #tpu.memory_space<vmem>>) attributes {dimension_semantics = [#tpu.dimension_semantics<parallel>], iteration_bounds = array<i64: 2>, scalar_prefetch = 0 : i64, scratch_operands = 9 : i64, tpu.core_type = #tpu.core_type<tc>, window_params = [{transform_indices = @transform_0, window_bounds = array<i64: 1, 1, 576>}, {pipeline_mode = #tpu.pipeline_mode<synchronous>, transform_indices = @transform_1, window_bounds = array<i64: 16, 9>}, {pipeline_mode = #tpu.pipeline_mode<synchronous>, transform_indices = @transform_2, window_bounds = array<i64: 16, 1>}, {pipeline_mode = #tpu.pipeline_mode<synchronous>, transform_indices = @transform_3, window_bounds = array<i64: 16, 144>}, {pipeline_mode = #tpu.pipeline_mode<synchronous>, transform_indices = @transform_4, window_bounds = array<i64: 16, 3>}, {pipeline_mode = #tpu.pipeline_mode<synchronous>, transform_indices = @transform_5, window_bounds = array<i64: 9, 576>}, {pipeline_mode = #tpu.pipeline_mode<synchronous>, transform_indices = @transform_6, window_bounds = array<i64: 576, 144>}, {pipeline_mode = #tpu.pipeline_mode<synchronous>, transform_indices = @transform_7, window_bounds = array<i64: 32, 144>}, {pipeline_mode = #tpu.pipeline_mode<synchronous>, transform_indices = @transform_8, window_bounds = array<i64: 32, 1>}, {pipeline_mode = #tpu.pipeline_mode<synchronous>, transform_indices = @transform_9, window_bounds = array<i64: 32, 288>}, {pipeline_mode = #tpu.pipeline_mode<synchronous>, transform_indices = @transform_10, window_bounds = array<i64: 32, 3>}, {pipeline_mode = #tpu.pipeline_mode<synchronous>, transform_indices = @transform_11, window_bounds = array<i64: 9, 144>}, {pipeline_mode = #tpu.pipeline_mode<synchronous>, transform_indices = @transform_12, window_bounds = array<i64: 144, 36>}, {pipeline_mode = #tpu.pipeline_mode<synchronous>, transform_indices = @transform_13, window_bounds = array<i64: 64, 288>}, {pipeline_mode = #tpu.pipeline_mode<synchronous>, transform_indices = @transform_14, window_bounds = array<i64: 64, 1>}, {pipeline_mode = #tpu.pipeline_mode<synchronous>, transform_indices = @transform_15, window_bounds = array<i64: 64, 576>}, {pipeline_mode = #tpu.pipeline_mode<synchronous>, transform_indices = @transform_16, window_bounds = array<i64: 64, 3>}, {pipeline_mode = #tpu.pipeline_mode<synchronous>, transform_indices = @transform_17, window_bounds = array<i64: 9, 36>}, {pipeline_mode = #tpu.pipeline_mode<synchronous>, transform_indices = @transform_18, window_bounds = array<i64: 36, 9>}, {pipeline_mode = #tpu.pipeline_mode<synchronous>, transform_indices = @transform_19, window_bounds = array<i64: 10, 576>}, {pipeline_mode = #tpu.pipeline_mode<synchronous>, transform_indices = @transform_20, window_bounds = array<i64: 10, 1>}, {transform_indices = @transform_21, window_bounds = array<i64: 1, 10, 1>}]} {
    %c0 = arith.constant 0 : index
    %c0_0 = arith.constant 0 : index
    %c0_1 = arith.constant 0 : index
    %0 = vector.load %arg1[%c0, %c0_0, %c0_1] : memref<1x1x576xf32, #tpu.memory_space<vmem>>, vector<1x1x576xf32>
    %1 = vector.shape_cast %0 : vector<1x1x576xf32> to vector<1x576xf32>
    %cst = arith.constant 0.000000e+00 : f32
    %2 = vector.broadcast %cst : f32 to vector<1x25xf32>
    %c0_2 = arith.constant 0 : index
    %c0_3 = arith.constant 0 : index
    %3 = vector.load %arg23[%c0_2, %c0_3] : memref<1x626xf32, #tpu.memory_space<vmem>>, vector<1x25xf32>
    tpu.vector_store %arg23[%c0_2, %c0_3], %2 {strides = array<i32>} : memref<1x626xf32, #tpu.memory_space<vmem>>, vector<1x25xf32>,
    %cst_4 = arith.constant 0.000000e+00 : f32
    %4 = vector.broadcast %cst_4 : f32 to vector<1x25xf32>
    %c0_5 = arith.constant 0 : index
    %c601 = arith.constant 601 : index
    %5 = vector.load %arg23[%c0_5, %c601] : memref<1x626xf32, #tpu.memory_space<vmem>>, vector<1x25xf32>
    tpu.vector_store %arg23[%c0_5, %c601], %4 {strides = array<i32>} : memref<1x626xf32, #tpu.memory_space<vmem>>, vector<1x25xf32>,
    %c0_6 = arith.constant 0 : index
    %c25 = arith.constant 25 : index
    %6 = vector.load %arg23[%c0_6, %c25] : memref<1x626xf32, #tpu.memory_space<vmem>>, vector<1x576xf32>
    tpu.vector_store %arg23[%c0_6, %c25], %1 {strides = array<i32>} : memref<1x626xf32, #tpu.memory_space<vmem>>, vector<1x576xf32>,
    %c0_7 = arith.constant 0 : index
    %c0_8 = arith.constant 0 : index
    %7 = vector.load %arg23[%c0_7, %c0_8] : memref<1x626xf32, #tpu.memory_space<vmem>>, vector<1x576xf32>
    %c0_9 = arith.constant 0 : index
    %c0_10 = arith.constant 0 : index
    %8 = vector.load %arg6[%c0_9, %c0_10] : memref<9x576xf32, #tpu.memory_space<vmem>>, vector<1x576xf32>
    %9 = arith.mulf %7, %8 : vector<1x576xf32>
    %c0_11 = arith.constant 0 : index
    %c1 = arith.constant 1 : index
    %10 = vector.load %arg23[%c0_11, %c1] : memref<1x626xf32, #tpu.memory_space<vmem>>, vector<1x576xf32>
    %c1_12 = arith.constant 1 : index
    %c0_13 = arith.constant 0 : index
    %11 = vector.load %arg6[%c1_12, %c0_13] : memref<9x576xf32, #tpu.memory_space<vmem>>, vector<1x576xf32>
    %12 = arith.mulf %10, %11 : vector<1x576xf32>
    %c0_14 = arith.constant 0 : index
    %c2 = arith.constant 2 : index
    %13 = vector.load %arg23[%c0_14, %c2] : memref<1x626xf32, #tpu.memory_space<vmem>>, vector<1x576xf32>
    %c2_15 = arith.constant 2 : index
    %c0_16 = arith.constant 0 : index
    %14 = vector.load %arg6[%c2_15, %c0_16] : memref<9x576xf32, #tpu.memory_space<vmem>>, vector<1x576xf32>
    %15 = arith.mulf %13, %14 : vector<1x576xf32>
    %c0_17 = arith.constant 0 : index
    %c24 = arith.constant 24 : index
    %16 = vector.load %arg23[%c0_17, %c24] : memref<1x626xf32, #tpu.memory_space<vmem>>, vector<1x576xf32>
    %c3 = arith.constant 3 : index
    %c0_18 = arith.constant 0 : index
    %17 = vector.load %arg6[%c3, %c0_18] : memref<9x576xf32, #tpu.memory_space<vmem>>, vector<1x576xf32>
    %18 = arith.mulf %16, %17 : vector<1x576xf32>
    %c0_19 = arith.constant 0 : index
    %c25_20 = arith.constant 25 : index
    %19 = vector.load %arg23[%c0_19, %c25_20] : memref<1x626xf32, #tpu.memory_space<vmem>>, vector<1x576xf32>
    %c4 = arith.constant 4 : index
    %c0_21 = arith.constant 0 : index
    %20 = vector.load %arg6[%c4, %c0_21] : memref<9x576xf32, #tpu.memory_space<vmem>>, vector<1x576xf32>
    %21 = arith.mulf %19, %20 : vector<1x576xf32>
    %c0_22 = arith.constant 0 : index
    %c26 = arith.constant 26 : index
    %22 = vector.load %arg23[%c0_22, %c26] : memref<1x626xf32, #tpu.memory_space<vmem>>, vector<1x576xf32>
    %c5 = arith.constant 5 : index
    %c0_23 = arith.constant 0 : index
    %23 = vector.load %arg6[%c5, %c0_23] : memref<9x576xf32, #tpu.memory_space<vmem>>, vector<1x576xf32>
    %24 = arith.mulf %22, %23 : vector<1x576xf32>
    %c0_24 = arith.constant 0 : index
    %c48 = arith.constant 48 : index
    %25 = vector.load %arg23[%c0_24, %c48] : memref<1x626xf32, #tpu.memory_space<vmem>>, vector<1x576xf32>
    %c6 = arith.constant 6 : index
    %c0_25 = arith.constant 0 : index
    %26 = vector.load %arg6[%c6, %c0_25] : memref<9x576xf32, #tpu.memory_space<vmem>>, vector<1x576xf32>
    %27 = arith.mulf %25, %26 : vector<1x576xf32>
    %c0_26 = arith.constant 0 : index
    %c49 = arith.constant 49 : index
    %28 = vector.load %arg23[%c0_26, %c49] : memref<1x626xf32, #tpu.memory_space<vmem>>, vector<1x576xf32>
    %c7 = arith.constant 7 : index
    %c0_27 = arith.constant 0 : index
    %29 = vector.load %arg6[%c7, %c0_27] : memref<9x576xf32, #tpu.memory_space<vmem>>, vector<1x576xf32>
    %30 = arith.mulf %28, %29 : vector<1x576xf32>
    %c0_28 = arith.constant 0 : index
    %c50 = arith.constant 50 : index
    %31 = vector.load %arg23[%c0_28, %c50] : memref<1x626xf32, #tpu.memory_space<vmem>>, vector<1x576xf32>
    %c8 = arith.constant 8 : index
    %c0_29 = arith.constant 0 : index
    %32 = vector.load %arg6[%c8, %c0_29] : memref<9x576xf32, #tpu.memory_space<vmem>>, vector<1x576xf32>
    %33 = arith.mulf %31, %32 : vector<1x576xf32>
    %34 = tpu.concatenate %9, %12, %15, %18, %21, %24, %27, %30, %33 in 0 : vector<1x576xf32>, vector<1x576xf32>, vector<1x576xf32>, vector<1x576xf32>, vector<1x576xf32>, vector<1x576xf32>, vector<1x576xf32>, vector<1x576xf32>, vector<1x576xf32> -> vector<9x576xf32>
    %c0_30 = arith.constant 0 : index
    %c0_31 = arith.constant 0 : index
    %35 = vector.load %arg2[%c0_30, %c0_31] : memref<16x9xf32, #tpu.memory_space<vmem>>, vector<16x9xf32>
    %cst_32 = arith.constant dense<0.000000e+00> : vector<16x576xf32>
    %36 = tpu.matmul %35, %34, %cst_32 {dimension_numbers = #tpu.dot_dimension_numbers<[1], [0], [0], [1], [0, 0, 1, 1], [], []>} : vector<16x9xf32>, vector<9x576xf32>, vector<16x576xf32> -> vector<16x576xf32>
    %c0_33 = arith.constant 0 : index
    %c0_34 = arith.constant 0 : index
    %37 = vector.load %arg3[%c0_33, %c0_34] : memref<16x1xf32, #tpu.memory_space<vmem>>, vector<16x1xf32>
    %38 = vector.broadcast %37 : vector<16x1xf32> to vector<16x576xf32>
    %39 = arith.addf %36, %38 : vector<16x576xf32>
    %cst_35 = arith.constant 0.000000e+00 : f32
    %40 = vector.broadcast %cst_35 : f32 to vector<16x576xf32>
    %41 = arith.maximumf %39, %40 : vector<16x576xf32>
    %cst_36 = arith.constant 0.000000e+00 : f32
    %42 = vector.broadcast %cst_36 : f32 to vector<16x25xf32>
    %c0_37 = arith.constant 0 : index
    %c0_38 = arith.constant 0 : index
    %43 = vector.load %arg24[%c0_37, %c0_38] : memref<16x626xf32, #tpu.memory_space<vmem>>, vector<16x25xf32>
    tpu.vector_store %arg24[%c0_37, %c0_38], %42 {strides = array<i32>} : memref<16x626xf32, #tpu.memory_space<vmem>>, vector<16x25xf32>,
    %cst_39 = arith.constant 0.000000e+00 : f32
    %44 = vector.broadcast %cst_39 : f32 to vector<16x25xf32>
    %c0_40 = arith.constant 0 : index
    %c601_41 = arith.constant 601 : index
    %45 = vector.load %arg24[%c0_40, %c601_41] : memref<16x626xf32, #tpu.memory_space<vmem>>, vector<16x25xf32>
    tpu.vector_store %arg24[%c0_40, %c601_41], %44 {strides = array<i32>} : memref<16x626xf32, #tpu.memory_space<vmem>>, vector<16x25xf32>,
    %c0_42 = arith.constant 0 : index
    %c25_43 = arith.constant 25 : index
    %46 = vector.load %arg24[%c0_42, %c25_43] : memref<16x626xf32, #tpu.memory_space<vmem>>, vector<16x576xf32>
    tpu.vector_store %arg24[%c0_42, %c25_43], %41 {strides = array<i32>} : memref<16x626xf32, #tpu.memory_space<vmem>>, vector<16x576xf32>,
    %c0_44 = arith.constant 0 : index
    %c0_45 = arith.constant 0 : index
    %47 = vector.load %arg24[%c0_44, %c0_45] : memref<16x626xf32, #tpu.memory_space<vmem>>, vector<16x576xf32>
    %c0_46 = arith.constant 0 : index
    %c0_47 = arith.constant 0 : index
    %48 = vector.load %arg6[%c0_46, %c0_47] : memref<9x576xf32, #tpu.memory_space<vmem>>, vector<1x576xf32>
    %49 = vector.broadcast %48 : vector<1x576xf32> to vector<16x576xf32>
    %50 = arith.mulf %47, %49 : vector<16x576xf32>
    %c0_48 = arith.constant 0 : index
    %c1_49 = arith.constant 1 : index
    %51 = vector.load %arg24[%c0_48, %c1_49] : memref<16x626xf32, #tpu.memory_space<vmem>>, vector<16x576xf32>
    %c1_50 = arith.constant 1 : index
    %c0_51 = arith.constant 0 : index
    %52 = vector.load %arg6[%c1_50, %c0_51] : memref<9x576xf32, #tpu.memory_space<vmem>>, vector<1x576xf32>
    %53 = vector.broadcast %52 : vector<1x576xf32> to vector<16x576xf32>
    %54 = arith.mulf %51, %53 : vector<16x576xf32>
    %c0_52 = arith.constant 0 : index
    %c2_53 = arith.constant 2 : index
    %55 = vector.load %arg24[%c0_52, %c2_53] : memref<16x626xf32, #tpu.memory_space<vmem>>, vector<16x576xf32>
    %c2_54 = arith.constant 2 : index
    %c0_55 = arith.constant 0 : index
    %56 = vector.load %arg6[%c2_54, %c0_55] : memref<9x576xf32, #tpu.memory_space<vmem>>, vector<1x576xf32>
    %57 = vector.broadcast %56 : vector<1x576xf32> to vector<16x576xf32>
    %58 = arith.mulf %55, %57 : vector<16x576xf32>
    %c0_56 = arith.constant 0 : index
    %c24_57 = arith.constant 24 : index
    %59 = vector.load %arg24[%c0_56, %c24_57] : memref<16x626xf32, #tpu.memory_space<vmem>>, vector<16x576xf32>
    %c3_58 = arith.constant 3 : index
    %c0_59 = arith.constant 0 : index
    %60 = vector.load %arg6[%c3_58, %c0_59] : memref<9x576xf32, #tpu.memory_space<vmem>>, vector<1x576xf32>
    %61 = vector.broadcast %60 : vector<1x576xf32> to vector<16x576xf32>
    %62 = arith.mulf %59, %61 : vector<16x576xf32>
    %c0_60 = arith.constant 0 : index
    %c25_61 = arith.constant 25 : index
    %63 = vector.load %arg24[%c0_60, %c25_61] : memref<16x626xf32, #tpu.memory_space<vmem>>, vector<16x576xf32>
    %c4_62 = arith.constant 4 : index
    %c0_63 = arith.constant 0 : index
    %64 = vector.load %arg6[%c4_62, %c0_63] : memref<9x576xf32, #tpu.memory_space<vmem>>, vector<1x576xf32>
    %65 = vector.broadcast %64 : vector<1x576xf32> to vector<16x576xf32>
    %66 = arith.mulf %63, %65 : vector<16x576xf32>
    %c0_64 = arith.constant 0 : index
    %c26_65 = arith.constant 26 : index
    %67 = vector.load %arg24[%c0_64, %c26_65] : memref<16x626xf32, #tpu.memory_space<vmem>>, vector<16x576xf32>
    %c5_66 = arith.constant 5 : index
    %c0_67 = arith.constant 0 : index
    %68 = vector.load %arg6[%c5_66, %c0_67] : memref<9x576xf32, #tpu.memory_space<vmem>>, vector<1x576xf32>
    %69 = vector.broadcast %68 : vector<1x576xf32> to vector<16x576xf32>
    %70 = arith.mulf %67, %69 : vector<16x576xf32>
    %c0_68 = arith.constant 0 : index
    %c48_69 = arith.constant 48 : index
    %71 = vector.load %arg24[%c0_68, %c48_69] : memref<16x626xf32, #tpu.memory_space<vmem>>, vector<16x576xf32>
    %c6_70 = arith.constant 6 : index
    %c0_71 = arith.constant 0 : index
    %72 = vector.load %arg6[%c6_70, %c0_71] : memref<9x576xf32, #tpu.memory_space<vmem>>, vector<1x576xf32>
    %73 = vector.broadcast %72 : vector<1x576xf32> to vector<16x576xf32>
    %74 = arith.mulf %71, %73 : vector<16x576xf32>
    %c0_72 = arith.constant 0 : index
    %c49_73 = arith.constant 49 : index
    %75 = vector.load %arg24[%c0_72, %c49_73] : memref<16x626xf32, #tpu.memory_space<vmem>>, vector<16x576xf32>
    %c7_74 = arith.constant 7 : index
    %c0_75 = arith.constant 0 : index
    %76 = vector.load %arg6[%c7_74, %c0_75] : memref<9x576xf32, #tpu.memory_space<vmem>>, vector<1x576xf32>
    %77 = vector.broadcast %76 : vector<1x576xf32> to vector<16x576xf32>
    %78 = arith.mulf %75, %77 : vector<16x576xf32>
    %c0_76 = arith.constant 0 : index
    %c50_77 = arith.constant 50 : index
    %79 = vector.load %arg24[%c0_76, %c50_77] : memref<16x626xf32, #tpu.memory_space<vmem>>, vector<16x576xf32>
    %c8_78 = arith.constant 8 : index
    %c0_79 = arith.constant 0 : index
    %80 = vector.load %arg6[%c8_78, %c0_79] : memref<9x576xf32, #tpu.memory_space<vmem>>, vector<1x576xf32>
    %81 = vector.broadcast %80 : vector<1x576xf32> to vector<16x576xf32>
    %82 = arith.mulf %79, %81 : vector<16x576xf32>
    %83 = tpu.concatenate %50, %54, %58, %62, %66, %70, %74, %78, %82 in 0 : vector<16x576xf32>, vector<16x576xf32>, vector<16x576xf32>, vector<16x576xf32>, vector<16x576xf32>, vector<16x576xf32>, vector<16x576xf32>, vector<16x576xf32>, vector<16x576xf32> -> vector<144x576xf32>
    %c0_80 = arith.constant 0 : index
    %c0_81 = arith.constant 0 : index
    %84 = vector.load %arg4[%c0_80, %c0_81] : memref<16x144xf32, #tpu.memory_space<vmem>>, vector<16x144xf32>
    %cst_82 = arith.constant dense<0.000000e+00> : vector<16x576xf32>
    %85 = tpu.matmul %84, %83, %cst_82 {dimension_numbers = #tpu.dot_dimension_numbers<[1], [0], [0], [1], [0, 0, 1, 1], [], []>} : vector<16x144xf32>, vector<144x576xf32>, vector<16x576xf32> -> vector<16x576xf32>
    %c0_83 = arith.constant 0 : index
    %c0_84 = arith.constant 0 : index
    %86 = vector.load %arg5[%c0_83, %c0_84] : memref<16x3xf32, #tpu.memory_space<vmem>>, vector<16x3xf32>
    %87 = vector.extract_strided_slice %86 {offsets = [0, 0], sizes = [16, 1], strides = [1, 1]} : vector<16x3xf32> to vector<16x1xf32>
    %88 = vector.broadcast %87 : vector<16x1xf32> to vector<16x576xf32>
    %89 = arith.addf %85, %88 : vector<16x576xf32>
    %cst_85 = arith.constant 0.000000e+00 : f32
    %90 = vector.broadcast %cst_85 : f32 to vector<16x576xf32>
    %91 = arith.maximumf %89, %90 : vector<16x576xf32>
    %92 = vector.extract_strided_slice %86 {offsets = [0, 1], sizes = [16, 1], strides = [1, 1]} : vector<16x3xf32> to vector<16x1xf32>
    %93 = vector.broadcast %92 : vector<16x1xf32> to vector<16x576xf32>
    %94 = arith.mulf %91, %93 : vector<16x576xf32>
    %95 = vector.extract_strided_slice %86 {offsets = [0, 2], sizes = [16, 1], strides = [1, 1]} : vector<16x3xf32> to vector<16x1xf32>
    %96 = vector.broadcast %95 : vector<16x1xf32> to vector<16x576xf32>
    %97 = arith.addf %94, %96 : vector<16x576xf32>
    %c0_86 = arith.constant 0 : index
    %c0_87 = arith.constant 0 : index
    %98 = vector.load %arg25[%c0_86, %c0_87] : memref<16x601xf32, #tpu.memory_space<vmem>>, vector<16x576xf32>
    tpu.vector_store %arg25[%c0_86, %c0_87], %97 {strides = array<i32>} : memref<16x601xf32, #tpu.memory_space<vmem>>, vector<16x576xf32>,
    %cst_88 = arith.constant 0.000000e+00 : f32
    %99 = vector.broadcast %cst_88 : f32 to vector<16x25xf32>
    %c0_89 = arith.constant 0 : index
    %c576 = arith.constant 576 : index
    %100 = vector.load %arg25[%c0_89, %c576] : memref<16x601xf32, #tpu.memory_space<vmem>>, vector<16x25xf32>
    tpu.vector_store %arg25[%c0_89, %c576], %99 {strides = array<i32>} : memref<16x601xf32, #tpu.memory_space<vmem>>, vector<16x25xf32>,
    %c0_90 = arith.constant 0 : index
    %c1_91 = arith.constant 1 : index
    %101 = vector.load %arg25[%c0_90, %c1_91] : memref<16x601xf32, #tpu.memory_space<vmem>>, vector<16x576xf32>
    %102 = arith.maximumf %97, %101 : vector<16x576xf32>
    %c0_92 = arith.constant 0 : index
    %c24_93 = arith.constant 24 : index
    %103 = vector.load %arg25[%c0_92, %c24_93] : memref<16x601xf32, #tpu.memory_space<vmem>>, vector<16x576xf32>
    %c0_94 = arith.constant 0 : index
    %c25_95 = arith.constant 25 : index
    %104 = vector.load %arg25[%c0_94, %c25_95] : memref<16x601xf32, #tpu.memory_space<vmem>>, vector<16x576xf32>
    %105 = arith.maximumf %103, %104 : vector<16x576xf32>
    %106 = arith.maximumf %102, %105 : vector<16x576xf32>
    %c0_96 = arith.constant 0 : index
    %c0_97 = arith.constant 0 : index
    %107 = vector.load %arg7[%c0_96, %c0_97] : memref<576x144xf32, #tpu.memory_space<vmem>>, vector<576x144xf32>
    %cst_98 = arith.constant dense<0.000000e+00> : vector<16x144xf32>
    %108 = tpu.matmul %106, %107, %cst_98 {dimension_numbers = #tpu.dot_dimension_numbers<[1], [0], [0], [1], [0, 0, 1, 1], [], []>} : vector<16x576xf32>, vector<576x144xf32>, vector<16x144xf32> -> vector<16x144xf32>
    %cst_99 = arith.constant 0.000000e+00 : f32
    %109 = vector.broadcast %cst_99 : f32 to vector<16x13xf32>
    %c0_100 = arith.constant 0 : index
    %c0_101 = arith.constant 0 : index
    %110 = vector.load %arg26[%c0_100, %c0_101] : memref<16x170xf32, #tpu.memory_space<vmem>>, vector<16x13xf32>
    tpu.vector_store %arg26[%c0_100, %c0_101], %109 {strides = array<i32>} : memref<16x170xf32, #tpu.memory_space<vmem>>, vector<16x13xf32>,
    %cst_102 = arith.constant 0.000000e+00 : f32
    %111 = vector.broadcast %cst_102 : f32 to vector<16x13xf32>
    %c0_103 = arith.constant 0 : index
    %c157 = arith.constant 157 : index
    %112 = vector.load %arg26[%c0_103, %c157] : memref<16x170xf32, #tpu.memory_space<vmem>>, vector<16x13xf32>
    tpu.vector_store %arg26[%c0_103, %c157], %111 {strides = array<i32>} : memref<16x170xf32, #tpu.memory_space<vmem>>, vector<16x13xf32>,
    %c0_104 = arith.constant 0 : index
    %c13 = arith.constant 13 : index
    %113 = vector.load %arg26[%c0_104, %c13] : memref<16x170xf32, #tpu.memory_space<vmem>>, vector<16x144xf32>
    tpu.vector_store %arg26[%c0_104, %c13], %108 {strides = array<i32>} : memref<16x170xf32, #tpu.memory_space<vmem>>, vector<16x144xf32>,
    %c0_105 = arith.constant 0 : index
    %c0_106 = arith.constant 0 : index
    %114 = vector.load %arg26[%c0_105, %c0_106] : memref<16x170xf32, #tpu.memory_space<vmem>>, vector<16x144xf32>
    %c0_107 = arith.constant 0 : index
    %c0_108 = arith.constant 0 : index
    %115 = vector.load %arg12[%c0_107, %c0_108] : memref<9x144xf32, #tpu.memory_space<vmem>>, vector<1x144xf32>
    %116 = vector.broadcast %115 : vector<1x144xf32> to vector<16x144xf32>
    %117 = arith.mulf %114, %116 : vector<16x144xf32>
    %c0_109 = arith.constant 0 : index
    %c1_110 = arith.constant 1 : index
    %118 = vector.load %arg26[%c0_109, %c1_110] : memref<16x170xf32, #tpu.memory_space<vmem>>, vector<16x144xf32>
    %c1_111 = arith.constant 1 : index
    %c0_112 = arith.constant 0 : index
    %119 = vector.load %arg12[%c1_111, %c0_112] : memref<9x144xf32, #tpu.memory_space<vmem>>, vector<1x144xf32>
    %120 = vector.broadcast %119 : vector<1x144xf32> to vector<16x144xf32>
    %121 = arith.mulf %118, %120 : vector<16x144xf32>
    %c0_113 = arith.constant 0 : index
    %c2_114 = arith.constant 2 : index
    %122 = vector.load %arg26[%c0_113, %c2_114] : memref<16x170xf32, #tpu.memory_space<vmem>>, vector<16x144xf32>
    %c2_115 = arith.constant 2 : index
    %c0_116 = arith.constant 0 : index
    %123 = vector.load %arg12[%c2_115, %c0_116] : memref<9x144xf32, #tpu.memory_space<vmem>>, vector<1x144xf32>
    %124 = vector.broadcast %123 : vector<1x144xf32> to vector<16x144xf32>
    %125 = arith.mulf %122, %124 : vector<16x144xf32>
    %c0_117 = arith.constant 0 : index
    %c12 = arith.constant 12 : index
    %126 = vector.load %arg26[%c0_117, %c12] : memref<16x170xf32, #tpu.memory_space<vmem>>, vector<16x144xf32>
    %c3_118 = arith.constant 3 : index
    %c0_119 = arith.constant 0 : index
    %127 = vector.load %arg12[%c3_118, %c0_119] : memref<9x144xf32, #tpu.memory_space<vmem>>, vector<1x144xf32>
    %128 = vector.broadcast %127 : vector<1x144xf32> to vector<16x144xf32>
    %129 = arith.mulf %126, %128 : vector<16x144xf32>
    %c0_120 = arith.constant 0 : index
    %c13_121 = arith.constant 13 : index
    %130 = vector.load %arg26[%c0_120, %c13_121] : memref<16x170xf32, #tpu.memory_space<vmem>>, vector<16x144xf32>
    %c4_122 = arith.constant 4 : index
    %c0_123 = arith.constant 0 : index
    %131 = vector.load %arg12[%c4_122, %c0_123] : memref<9x144xf32, #tpu.memory_space<vmem>>, vector<1x144xf32>
    %132 = vector.broadcast %131 : vector<1x144xf32> to vector<16x144xf32>
    %133 = arith.mulf %130, %132 : vector<16x144xf32>
    %c0_124 = arith.constant 0 : index
    %c14 = arith.constant 14 : index
    %134 = vector.load %arg26[%c0_124, %c14] : memref<16x170xf32, #tpu.memory_space<vmem>>, vector<16x144xf32>
    %c5_125 = arith.constant 5 : index
    %c0_126 = arith.constant 0 : index
    %135 = vector.load %arg12[%c5_125, %c0_126] : memref<9x144xf32, #tpu.memory_space<vmem>>, vector<1x144xf32>
    %136 = vector.broadcast %135 : vector<1x144xf32> to vector<16x144xf32>
    %137 = arith.mulf %134, %136 : vector<16x144xf32>
    %c0_127 = arith.constant 0 : index
    %c24_128 = arith.constant 24 : index
    %138 = vector.load %arg26[%c0_127, %c24_128] : memref<16x170xf32, #tpu.memory_space<vmem>>, vector<16x144xf32>
    %c6_129 = arith.constant 6 : index
    %c0_130 = arith.constant 0 : index
    %139 = vector.load %arg12[%c6_129, %c0_130] : memref<9x144xf32, #tpu.memory_space<vmem>>, vector<1x144xf32>
    %140 = vector.broadcast %139 : vector<1x144xf32> to vector<16x144xf32>
    %141 = arith.mulf %138, %140 : vector<16x144xf32>
    %c0_131 = arith.constant 0 : index
    %c25_132 = arith.constant 25 : index
    %142 = vector.load %arg26[%c0_131, %c25_132] : memref<16x170xf32, #tpu.memory_space<vmem>>, vector<16x144xf32>
    %c7_133 = arith.constant 7 : index
    %c0_134 = arith.constant 0 : index
    %143 = vector.load %arg12[%c7_133, %c0_134] : memref<9x144xf32, #tpu.memory_space<vmem>>, vector<1x144xf32>
    %144 = vector.broadcast %143 : vector<1x144xf32> to vector<16x144xf32>
    %145 = arith.mulf %142, %144 : vector<16x144xf32>
    %c0_135 = arith.constant 0 : index
    %c26_136 = arith.constant 26 : index
    %146 = vector.load %arg26[%c0_135, %c26_136] : memref<16x170xf32, #tpu.memory_space<vmem>>, vector<16x144xf32>
    %c8_137 = arith.constant 8 : index
    %c0_138 = arith.constant 0 : index
    %147 = vector.load %arg12[%c8_137, %c0_138] : memref<9x144xf32, #tpu.memory_space<vmem>>, vector<1x144xf32>
    %148 = vector.broadcast %147 : vector<1x144xf32> to vector<16x144xf32>
    %149 = arith.mulf %146, %148 : vector<16x144xf32>
    %150 = tpu.concatenate %117, %121, %125, %129, %133, %137, %141, %145, %149 in 0 : vector<16x144xf32>, vector<16x144xf32>, vector<16x144xf32>, vector<16x144xf32>, vector<16x144xf32>, vector<16x144xf32>, vector<16x144xf32>, vector<16x144xf32>, vector<16x144xf32> -> vector<144x144xf32>
    %c0_139 = arith.constant 0 : index
    %c0_140 = arith.constant 0 : index
    %151 = vector.load %arg8[%c0_139, %c0_140] : memref<32x144xf32, #tpu.memory_space<vmem>>, vector<32x144xf32>
    %cst_141 = arith.constant dense<0.000000e+00> : vector<32x144xf32>
    %152 = tpu.matmul %151, %150, %cst_141 {dimension_numbers = #tpu.dot_dimension_numbers<[1], [0], [0], [1], [0, 0, 1, 1], [], []>} : vector<32x144xf32>, vector<144x144xf32>, vector<32x144xf32> -> vector<32x144xf32>
    %c0_142 = arith.constant 0 : index
    %c0_143 = arith.constant 0 : index
    %153 = vector.load %arg9[%c0_142, %c0_143] : memref<32x1xf32, #tpu.memory_space<vmem>>, vector<32x1xf32>
    %154 = vector.broadcast %153 : vector<32x1xf32> to vector<32x144xf32>
    %155 = arith.addf %152, %154 : vector<32x144xf32>
    %cst_144 = arith.constant 0.000000e+00 : f32
    %156 = vector.broadcast %cst_144 : f32 to vector<32x144xf32>
    %157 = arith.maximumf %155, %156 : vector<32x144xf32>
    %cst_145 = arith.constant 0.000000e+00 : f32
    %158 = vector.broadcast %cst_145 : f32 to vector<32x13xf32>
    %c0_146 = arith.constant 0 : index
    %c0_147 = arith.constant 0 : index
    %159 = vector.load %arg27[%c0_146, %c0_147] : memref<32x170xf32, #tpu.memory_space<vmem>>, vector<32x13xf32>
    tpu.vector_store %arg27[%c0_146, %c0_147], %158 {strides = array<i32>} : memref<32x170xf32, #tpu.memory_space<vmem>>, vector<32x13xf32>,
    %cst_148 = arith.constant 0.000000e+00 : f32
    %160 = vector.broadcast %cst_148 : f32 to vector<32x13xf32>
    %c0_149 = arith.constant 0 : index
    %c157_150 = arith.constant 157 : index
    %161 = vector.load %arg27[%c0_149, %c157_150] : memref<32x170xf32, #tpu.memory_space<vmem>>, vector<32x13xf32>
    tpu.vector_store %arg27[%c0_149, %c157_150], %160 {strides = array<i32>} : memref<32x170xf32, #tpu.memory_space<vmem>>, vector<32x13xf32>,
    %c0_151 = arith.constant 0 : index
    %c13_152 = arith.constant 13 : index
    %162 = vector.load %arg27[%c0_151, %c13_152] : memref<32x170xf32, #tpu.memory_space<vmem>>, vector<32x144xf32>
    tpu.vector_store %arg27[%c0_151, %c13_152], %157 {strides = array<i32>} : memref<32x170xf32, #tpu.memory_space<vmem>>, vector<32x144xf32>,
    %c0_153 = arith.constant 0 : index
    %c0_154 = arith.constant 0 : index
    %163 = vector.load %arg27[%c0_153, %c0_154] : memref<32x170xf32, #tpu.memory_space<vmem>>, vector<32x144xf32>
    %c0_155 = arith.constant 0 : index
    %c0_156 = arith.constant 0 : index
    %164 = vector.load %arg12[%c0_155, %c0_156] : memref<9x144xf32, #tpu.memory_space<vmem>>, vector<1x144xf32>
    %165 = vector.broadcast %164 : vector<1x144xf32> to vector<32x144xf32>
    %166 = arith.mulf %163, %165 : vector<32x144xf32>
    %c0_157 = arith.constant 0 : index
    %c1_158 = arith.constant 1 : index
    %167 = vector.load %arg27[%c0_157, %c1_158] : memref<32x170xf32, #tpu.memory_space<vmem>>, vector<32x144xf32>
    %c1_159 = arith.constant 1 : index
    %c0_160 = arith.constant 0 : index
    %168 = vector.load %arg12[%c1_159, %c0_160] : memref<9x144xf32, #tpu.memory_space<vmem>>, vector<1x144xf32>
    %169 = vector.broadcast %168 : vector<1x144xf32> to vector<32x144xf32>
    %170 = arith.mulf %167, %169 : vector<32x144xf32>
    %c0_161 = arith.constant 0 : index
    %c2_162 = arith.constant 2 : index
    %171 = vector.load %arg27[%c0_161, %c2_162] : memref<32x170xf32, #tpu.memory_space<vmem>>, vector<32x144xf32>
    %c2_163 = arith.constant 2 : index
    %c0_164 = arith.constant 0 : index
    %172 = vector.load %arg12[%c2_163, %c0_164] : memref<9x144xf32, #tpu.memory_space<vmem>>, vector<1x144xf32>
    %173 = vector.broadcast %172 : vector<1x144xf32> to vector<32x144xf32>
    %174 = arith.mulf %171, %173 : vector<32x144xf32>
    %c0_165 = arith.constant 0 : index
    %c12_166 = arith.constant 12 : index
    %175 = vector.load %arg27[%c0_165, %c12_166] : memref<32x170xf32, #tpu.memory_space<vmem>>, vector<32x144xf32>
    %c3_167 = arith.constant 3 : index
    %c0_168 = arith.constant 0 : index
    %176 = vector.load %arg12[%c3_167, %c0_168] : memref<9x144xf32, #tpu.memory_space<vmem>>, vector<1x144xf32>
    %177 = vector.broadcast %176 : vector<1x144xf32> to vector<32x144xf32>
    %178 = arith.mulf %175, %177 : vector<32x144xf32>
    %c0_169 = arith.constant 0 : index
    %c13_170 = arith.constant 13 : index
    %179 = vector.load %arg27[%c0_169, %c13_170] : memref<32x170xf32, #tpu.memory_space<vmem>>, vector<32x144xf32>
    %c4_171 = arith.constant 4 : index
    %c0_172 = arith.constant 0 : index
    %180 = vector.load %arg12[%c4_171, %c0_172] : memref<9x144xf32, #tpu.memory_space<vmem>>, vector<1x144xf32>
    %181 = vector.broadcast %180 : vector<1x144xf32> to vector<32x144xf32>
    %182 = arith.mulf %179, %181 : vector<32x144xf32>
    %c0_173 = arith.constant 0 : index
    %c14_174 = arith.constant 14 : index
    %183 = vector.load %arg27[%c0_173, %c14_174] : memref<32x170xf32, #tpu.memory_space<vmem>>, vector<32x144xf32>
    %c5_175 = arith.constant 5 : index
    %c0_176 = arith.constant 0 : index
    %184 = vector.load %arg12[%c5_175, %c0_176] : memref<9x144xf32, #tpu.memory_space<vmem>>, vector<1x144xf32>
    %185 = vector.broadcast %184 : vector<1x144xf32> to vector<32x144xf32>
    %186 = arith.mulf %183, %185 : vector<32x144xf32>
    %c0_177 = arith.constant 0 : index
    %c24_178 = arith.constant 24 : index
    %187 = vector.load %arg27[%c0_177, %c24_178] : memref<32x170xf32, #tpu.memory_space<vmem>>, vector<32x144xf32>
    %c6_179 = arith.constant 6 : index
    %c0_180 = arith.constant 0 : index
    %188 = vector.load %arg12[%c6_179, %c0_180] : memref<9x144xf32, #tpu.memory_space<vmem>>, vector<1x144xf32>
    %189 = vector.broadcast %188 : vector<1x144xf32> to vector<32x144xf32>
    %190 = arith.mulf %187, %189 : vector<32x144xf32>
    %c0_181 = arith.constant 0 : index
    %c25_182 = arith.constant 25 : index
    %191 = vector.load %arg27[%c0_181, %c25_182] : memref<32x170xf32, #tpu.memory_space<vmem>>, vector<32x144xf32>
    %c7_183 = arith.constant 7 : index
    %c0_184 = arith.constant 0 : index
    %192 = vector.load %arg12[%c7_183, %c0_184] : memref<9x144xf32, #tpu.memory_space<vmem>>, vector<1x144xf32>
    %193 = vector.broadcast %192 : vector<1x144xf32> to vector<32x144xf32>
    %194 = arith.mulf %191, %193 : vector<32x144xf32>
    %c0_185 = arith.constant 0 : index
    %c26_186 = arith.constant 26 : index
    %195 = vector.load %arg27[%c0_185, %c26_186] : memref<32x170xf32, #tpu.memory_space<vmem>>, vector<32x144xf32>
    %c8_187 = arith.constant 8 : index
    %c0_188 = arith.constant 0 : index
    %196 = vector.load %arg12[%c8_187, %c0_188] : memref<9x144xf32, #tpu.memory_space<vmem>>, vector<1x144xf32>
    %197 = vector.broadcast %196 : vector<1x144xf32> to vector<32x144xf32>
    %198 = arith.mulf %195, %197 : vector<32x144xf32>
    %199 = tpu.concatenate %166, %170, %174, %178, %182, %186, %190, %194, %198 in 0 : vector<32x144xf32>, vector<32x144xf32>, vector<32x144xf32>, vector<32x144xf32>, vector<32x144xf32>, vector<32x144xf32>, vector<32x144xf32>, vector<32x144xf32>, vector<32x144xf32> -> vector<288x144xf32>
    %c0_189 = arith.constant 0 : index
    %c0_190 = arith.constant 0 : index
    %200 = vector.load %arg10[%c0_189, %c0_190] : memref<32x288xf32, #tpu.memory_space<vmem>>, vector<32x288xf32>
    %cst_191 = arith.constant dense<0.000000e+00> : vector<32x144xf32>
    %201 = tpu.matmul %200, %199, %cst_191 {dimension_numbers = #tpu.dot_dimension_numbers<[1], [0], [0], [1], [0, 0, 1, 1], [], []>} : vector<32x288xf32>, vector<288x144xf32>, vector<32x144xf32> -> vector<32x144xf32>
    %c0_192 = arith.constant 0 : index
    %c0_193 = arith.constant 0 : index
    %202 = vector.load %arg11[%c0_192, %c0_193] : memref<32x3xf32, #tpu.memory_space<vmem>>, vector<32x3xf32>
    %203 = vector.extract_strided_slice %202 {offsets = [0, 0], sizes = [32, 1], strides = [1, 1]} : vector<32x3xf32> to vector<32x1xf32>
    %204 = vector.broadcast %203 : vector<32x1xf32> to vector<32x144xf32>
    %205 = arith.addf %201, %204 : vector<32x144xf32>
    %cst_194 = arith.constant 0.000000e+00 : f32
    %206 = vector.broadcast %cst_194 : f32 to vector<32x144xf32>
    %207 = arith.maximumf %205, %206 : vector<32x144xf32>
    %208 = vector.extract_strided_slice %202 {offsets = [0, 1], sizes = [32, 1], strides = [1, 1]} : vector<32x3xf32> to vector<32x1xf32>
    %209 = vector.broadcast %208 : vector<32x1xf32> to vector<32x144xf32>
    %210 = arith.mulf %207, %209 : vector<32x144xf32>
    %211 = vector.extract_strided_slice %202 {offsets = [0, 2], sizes = [32, 1], strides = [1, 1]} : vector<32x3xf32> to vector<32x1xf32>
    %212 = vector.broadcast %211 : vector<32x1xf32> to vector<32x144xf32>
    %213 = arith.addf %210, %212 : vector<32x144xf32>
    %c0_195 = arith.constant 0 : index
    %c0_196 = arith.constant 0 : index
    %214 = vector.load %arg28[%c0_195, %c0_196] : memref<32x157xf32, #tpu.memory_space<vmem>>, vector<32x144xf32>
    tpu.vector_store %arg28[%c0_195, %c0_196], %213 {strides = array<i32>} : memref<32x157xf32, #tpu.memory_space<vmem>>, vector<32x144xf32>,
    %cst_197 = arith.constant 0.000000e+00 : f32
    %215 = vector.broadcast %cst_197 : f32 to vector<32x13xf32>
    %c0_198 = arith.constant 0 : index
    %c144 = arith.constant 144 : index
    %216 = vector.load %arg28[%c0_198, %c144] : memref<32x157xf32, #tpu.memory_space<vmem>>, vector<32x13xf32>
    tpu.vector_store %arg28[%c0_198, %c144], %215 {strides = array<i32>} : memref<32x157xf32, #tpu.memory_space<vmem>>, vector<32x13xf32>,
    %c0_199 = arith.constant 0 : index
    %c1_200 = arith.constant 1 : index
    %217 = vector.load %arg28[%c0_199, %c1_200] : memref<32x157xf32, #tpu.memory_space<vmem>>, vector<32x144xf32>
    %218 = arith.maximumf %213, %217 : vector<32x144xf32>
    %c0_201 = arith.constant 0 : index
    %c12_202 = arith.constant 12 : index
    %219 = vector.load %arg28[%c0_201, %c12_202] : memref<32x157xf32, #tpu.memory_space<vmem>>, vector<32x144xf32>
    %c0_203 = arith.constant 0 : index
    %c13_204 = arith.constant 13 : index
    %220 = vector.load %arg28[%c0_203, %c13_204] : memref<32x157xf32, #tpu.memory_space<vmem>>, vector<32x144xf32>
    %221 = arith.maximumf %219, %220 : vector<32x144xf32>
    %222 = arith.maximumf %218, %221 : vector<32x144xf32>
    %c0_205 = arith.constant 0 : index
    %c0_206 = arith.constant 0 : index
    %223 = vector.load %arg13[%c0_205, %c0_206] : memref<144x36xf32, #tpu.memory_space<vmem>>, vector<144x36xf32>
    %cst_207 = arith.constant dense<0.000000e+00> : vector<32x36xf32>
    %224 = tpu.matmul %222, %223, %cst_207 {dimension_numbers = #tpu.dot_dimension_numbers<[1], [0], [0], [1], [0, 0, 1, 1], [], []>} : vector<32x144xf32>, vector<144x36xf32>, vector<32x36xf32> -> vector<32x36xf32>
    %cst_208 = arith.constant 0.000000e+00 : f32
    %225 = vector.broadcast %cst_208 : f32 to vector<32x7xf32>
    %c0_209 = arith.constant 0 : index
    %c0_210 = arith.constant 0 : index
    %226 = vector.load %arg29[%c0_209, %c0_210] : memref<32x50xf32, #tpu.memory_space<vmem>>, vector<32x7xf32>
    tpu.vector_store %arg29[%c0_209, %c0_210], %225 {strides = array<i32>} : memref<32x50xf32, #tpu.memory_space<vmem>>, vector<32x7xf32>,
    %cst_211 = arith.constant 0.000000e+00 : f32
    %227 = vector.broadcast %cst_211 : f32 to vector<32x7xf32>
    %c0_212 = arith.constant 0 : index
    %c43 = arith.constant 43 : index
    %228 = vector.load %arg29[%c0_212, %c43] : memref<32x50xf32, #tpu.memory_space<vmem>>, vector<32x7xf32>
    tpu.vector_store %arg29[%c0_212, %c43], %227 {strides = array<i32>} : memref<32x50xf32, #tpu.memory_space<vmem>>, vector<32x7xf32>,
    %c0_213 = arith.constant 0 : index
    %c7_214 = arith.constant 7 : index
    %229 = vector.load %arg29[%c0_213, %c7_214] : memref<32x50xf32, #tpu.memory_space<vmem>>, vector<32x36xf32>
    tpu.vector_store %arg29[%c0_213, %c7_214], %224 {strides = array<i32>} : memref<32x50xf32, #tpu.memory_space<vmem>>, vector<32x36xf32>,
    %c0_215 = arith.constant 0 : index
    %c0_216 = arith.constant 0 : index
    %230 = vector.load %arg29[%c0_215, %c0_216] : memref<32x50xf32, #tpu.memory_space<vmem>>, vector<32x36xf32>
    %c0_217 = arith.constant 0 : index
    %c0_218 = arith.constant 0 : index
    %231 = vector.load %arg18[%c0_217, %c0_218] : memref<9x36xf32, #tpu.memory_space<vmem>>, vector<1x36xf32>
    %232 = vector.broadcast %231 : vector<1x36xf32> to vector<32x36xf32>
    %233 = arith.mulf %230, %232 : vector<32x36xf32>
    %c0_219 = arith.constant 0 : index
    %c1_220 = arith.constant 1 : index
    %234 = vector.load %arg29[%c0_219, %c1_220] : memref<32x50xf32, #tpu.memory_space<vmem>>, vector<32x36xf32>
    %c1_221 = arith.constant 1 : index
    %c0_222 = arith.constant 0 : index
    %235 = vector.load %arg18[%c1_221, %c0_222] : memref<9x36xf32, #tpu.memory_space<vmem>>, vector<1x36xf32>
    %236 = vector.broadcast %235 : vector<1x36xf32> to vector<32x36xf32>
    %237 = arith.mulf %234, %236 : vector<32x36xf32>
    %c0_223 = arith.constant 0 : index
    %c2_224 = arith.constant 2 : index
    %238 = vector.load %arg29[%c0_223, %c2_224] : memref<32x50xf32, #tpu.memory_space<vmem>>, vector<32x36xf32>
    %c2_225 = arith.constant 2 : index
    %c0_226 = arith.constant 0 : index
    %239 = vector.load %arg18[%c2_225, %c0_226] : memref<9x36xf32, #tpu.memory_space<vmem>>, vector<1x36xf32>
    %240 = vector.broadcast %239 : vector<1x36xf32> to vector<32x36xf32>
    %241 = arith.mulf %238, %240 : vector<32x36xf32>
    %c0_227 = arith.constant 0 : index
    %c6_228 = arith.constant 6 : index
    %242 = vector.load %arg29[%c0_227, %c6_228] : memref<32x50xf32, #tpu.memory_space<vmem>>, vector<32x36xf32>
    %c3_229 = arith.constant 3 : index
    %c0_230 = arith.constant 0 : index
    %243 = vector.load %arg18[%c3_229, %c0_230] : memref<9x36xf32, #tpu.memory_space<vmem>>, vector<1x36xf32>
    %244 = vector.broadcast %243 : vector<1x36xf32> to vector<32x36xf32>
    %245 = arith.mulf %242, %244 : vector<32x36xf32>
    %c0_231 = arith.constant 0 : index
    %c7_232 = arith.constant 7 : index
    %246 = vector.load %arg29[%c0_231, %c7_232] : memref<32x50xf32, #tpu.memory_space<vmem>>, vector<32x36xf32>
    %c4_233 = arith.constant 4 : index
    %c0_234 = arith.constant 0 : index
    %247 = vector.load %arg18[%c4_233, %c0_234] : memref<9x36xf32, #tpu.memory_space<vmem>>, vector<1x36xf32>
    %248 = vector.broadcast %247 : vector<1x36xf32> to vector<32x36xf32>
    %249 = arith.mulf %246, %248 : vector<32x36xf32>
    %c0_235 = arith.constant 0 : index
    %c8_236 = arith.constant 8 : index
    %250 = vector.load %arg29[%c0_235, %c8_236] : memref<32x50xf32, #tpu.memory_space<vmem>>, vector<32x36xf32>
    %c5_237 = arith.constant 5 : index
    %c0_238 = arith.constant 0 : index
    %251 = vector.load %arg18[%c5_237, %c0_238] : memref<9x36xf32, #tpu.memory_space<vmem>>, vector<1x36xf32>
    %252 = vector.broadcast %251 : vector<1x36xf32> to vector<32x36xf32>
    %253 = arith.mulf %250, %252 : vector<32x36xf32>
    %c0_239 = arith.constant 0 : index
    %c12_240 = arith.constant 12 : index
    %254 = vector.load %arg29[%c0_239, %c12_240] : memref<32x50xf32, #tpu.memory_space<vmem>>, vector<32x36xf32>
    %c6_241 = arith.constant 6 : index
    %c0_242 = arith.constant 0 : index
    %255 = vector.load %arg18[%c6_241, %c0_242] : memref<9x36xf32, #tpu.memory_space<vmem>>, vector<1x36xf32>
    %256 = vector.broadcast %255 : vector<1x36xf32> to vector<32x36xf32>
    %257 = arith.mulf %254, %256 : vector<32x36xf32>
    %c0_243 = arith.constant 0 : index
    %c13_244 = arith.constant 13 : index
    %258 = vector.load %arg29[%c0_243, %c13_244] : memref<32x50xf32, #tpu.memory_space<vmem>>, vector<32x36xf32>
    %c7_245 = arith.constant 7 : index
    %c0_246 = arith.constant 0 : index
    %259 = vector.load %arg18[%c7_245, %c0_246] : memref<9x36xf32, #tpu.memory_space<vmem>>, vector<1x36xf32>
    %260 = vector.broadcast %259 : vector<1x36xf32> to vector<32x36xf32>
    %261 = arith.mulf %258, %260 : vector<32x36xf32>
    %c0_247 = arith.constant 0 : index
    %c14_248 = arith.constant 14 : index
    %262 = vector.load %arg29[%c0_247, %c14_248] : memref<32x50xf32, #tpu.memory_space<vmem>>, vector<32x36xf32>
    %c8_249 = arith.constant 8 : index
    %c0_250 = arith.constant 0 : index
    %263 = vector.load %arg18[%c8_249, %c0_250] : memref<9x36xf32, #tpu.memory_space<vmem>>, vector<1x36xf32>
    %264 = vector.broadcast %263 : vector<1x36xf32> to vector<32x36xf32>
    %265 = arith.mulf %262, %264 : vector<32x36xf32>
    %266 = tpu.concatenate %233, %237, %241, %245, %249, %253, %257, %261, %265 in 0 : vector<32x36xf32>, vector<32x36xf32>, vector<32x36xf32>, vector<32x36xf32>, vector<32x36xf32>, vector<32x36xf32>, vector<32x36xf32>, vector<32x36xf32>, vector<32x36xf32> -> vector<288x36xf32>
    %c0_251 = arith.constant 0 : index
    %c0_252 = arith.constant 0 : index
    %267 = vector.load %arg14[%c0_251, %c0_252] : memref<64x288xf32, #tpu.memory_space<vmem>>, vector<64x288xf32>
    %cst_253 = arith.constant dense<0.000000e+00> : vector<64x36xf32>
    %268 = tpu.matmul %267, %266, %cst_253 {dimension_numbers = #tpu.dot_dimension_numbers<[1], [0], [0], [1], [0, 0, 1, 1], [], []>} : vector<64x288xf32>, vector<288x36xf32>, vector<64x36xf32> -> vector<64x36xf32>
    %c0_254 = arith.constant 0 : index
    %c0_255 = arith.constant 0 : index
    %269 = vector.load %arg15[%c0_254, %c0_255] : memref<64x1xf32, #tpu.memory_space<vmem>>, vector<64x1xf32>
    %270 = vector.broadcast %269 : vector<64x1xf32> to vector<64x36xf32>
    %271 = arith.addf %268, %270 : vector<64x36xf32>
    %cst_256 = arith.constant 0.000000e+00 : f32
    %272 = vector.broadcast %cst_256 : f32 to vector<64x36xf32>
    %273 = arith.maximumf %271, %272 : vector<64x36xf32>
    %cst_257 = arith.constant 0.000000e+00 : f32
    %274 = vector.broadcast %cst_257 : f32 to vector<64x7xf32>
    %c0_258 = arith.constant 0 : index
    %c0_259 = arith.constant 0 : index
    %275 = vector.load %arg30[%c0_258, %c0_259] : memref<64x50xf32, #tpu.memory_space<vmem>>, vector<64x7xf32>
    tpu.vector_store %arg30[%c0_258, %c0_259], %274 {strides = array<i32>} : memref<64x50xf32, #tpu.memory_space<vmem>>, vector<64x7xf32>,
    %cst_260 = arith.constant 0.000000e+00 : f32
    %276 = vector.broadcast %cst_260 : f32 to vector<64x7xf32>
    %c0_261 = arith.constant 0 : index
    %c43_262 = arith.constant 43 : index
    %277 = vector.load %arg30[%c0_261, %c43_262] : memref<64x50xf32, #tpu.memory_space<vmem>>, vector<64x7xf32>
    tpu.vector_store %arg30[%c0_261, %c43_262], %276 {strides = array<i32>} : memref<64x50xf32, #tpu.memory_space<vmem>>, vector<64x7xf32>,
    %c0_263 = arith.constant 0 : index
    %c7_264 = arith.constant 7 : index
    %278 = vector.load %arg30[%c0_263, %c7_264] : memref<64x50xf32, #tpu.memory_space<vmem>>, vector<64x36xf32>
    tpu.vector_store %arg30[%c0_263, %c7_264], %273 {strides = array<i32>} : memref<64x50xf32, #tpu.memory_space<vmem>>, vector<64x36xf32>,
    %c0_265 = arith.constant 0 : index
    %c0_266 = arith.constant 0 : index
    %279 = vector.load %arg30[%c0_265, %c0_266] : memref<64x50xf32, #tpu.memory_space<vmem>>, vector<64x36xf32>
    %c0_267 = arith.constant 0 : index
    %c0_268 = arith.constant 0 : index
    %280 = vector.load %arg18[%c0_267, %c0_268] : memref<9x36xf32, #tpu.memory_space<vmem>>, vector<1x36xf32>
    %281 = vector.broadcast %280 : vector<1x36xf32> to vector<64x36xf32>
    %282 = arith.mulf %279, %281 : vector<64x36xf32>
    %c0_269 = arith.constant 0 : index
    %c1_270 = arith.constant 1 : index
    %283 = vector.load %arg30[%c0_269, %c1_270] : memref<64x50xf32, #tpu.memory_space<vmem>>, vector<64x36xf32>
    %c1_271 = arith.constant 1 : index
    %c0_272 = arith.constant 0 : index
    %284 = vector.load %arg18[%c1_271, %c0_272] : memref<9x36xf32, #tpu.memory_space<vmem>>, vector<1x36xf32>
    %285 = vector.broadcast %284 : vector<1x36xf32> to vector<64x36xf32>
    %286 = arith.mulf %283, %285 : vector<64x36xf32>
    %c0_273 = arith.constant 0 : index
    %c2_274 = arith.constant 2 : index
    %287 = vector.load %arg30[%c0_273, %c2_274] : memref<64x50xf32, #tpu.memory_space<vmem>>, vector<64x36xf32>
    %c2_275 = arith.constant 2 : index
    %c0_276 = arith.constant 0 : index
    %288 = vector.load %arg18[%c2_275, %c0_276] : memref<9x36xf32, #tpu.memory_space<vmem>>, vector<1x36xf32>
    %289 = vector.broadcast %288 : vector<1x36xf32> to vector<64x36xf32>
    %290 = arith.mulf %287, %289 : vector<64x36xf32>
    %c0_277 = arith.constant 0 : index
    %c6_278 = arith.constant 6 : index
    %291 = vector.load %arg30[%c0_277, %c6_278] : memref<64x50xf32, #tpu.memory_space<vmem>>, vector<64x36xf32>
    %c3_279 = arith.constant 3 : index
    %c0_280 = arith.constant 0 : index
    %292 = vector.load %arg18[%c3_279, %c0_280] : memref<9x36xf32, #tpu.memory_space<vmem>>, vector<1x36xf32>
    %293 = vector.broadcast %292 : vector<1x36xf32> to vector<64x36xf32>
    %294 = arith.mulf %291, %293 : vector<64x36xf32>
    %c0_281 = arith.constant 0 : index
    %c7_282 = arith.constant 7 : index
    %295 = vector.load %arg30[%c0_281, %c7_282] : memref<64x50xf32, #tpu.memory_space<vmem>>, vector<64x36xf32>
    %c4_283 = arith.constant 4 : index
    %c0_284 = arith.constant 0 : index
    %296 = vector.load %arg18[%c4_283, %c0_284] : memref<9x36xf32, #tpu.memory_space<vmem>>, vector<1x36xf32>
    %297 = vector.broadcast %296 : vector<1x36xf32> to vector<64x36xf32>
    %298 = arith.mulf %295, %297 : vector<64x36xf32>
    %c0_285 = arith.constant 0 : index
    %c8_286 = arith.constant 8 : index
    %299 = vector.load %arg30[%c0_285, %c8_286] : memref<64x50xf32, #tpu.memory_space<vmem>>, vector<64x36xf32>
    %c5_287 = arith.constant 5 : index
    %c0_288 = arith.constant 0 : index
    %300 = vector.load %arg18[%c5_287, %c0_288] : memref<9x36xf32, #tpu.memory_space<vmem>>, vector<1x36xf32>
    %301 = vector.broadcast %300 : vector<1x36xf32> to vector<64x36xf32>
    %302 = arith.mulf %299, %301 : vector<64x36xf32>
    %c0_289 = arith.constant 0 : index
    %c12_290 = arith.constant 12 : index
    %303 = vector.load %arg30[%c0_289, %c12_290] : memref<64x50xf32, #tpu.memory_space<vmem>>, vector<64x36xf32>
    %c6_291 = arith.constant 6 : index
    %c0_292 = arith.constant 0 : index
    %304 = vector.load %arg18[%c6_291, %c0_292] : memref<9x36xf32, #tpu.memory_space<vmem>>, vector<1x36xf32>
    %305 = vector.broadcast %304 : vector<1x36xf32> to vector<64x36xf32>
    %306 = arith.mulf %303, %305 : vector<64x36xf32>
    %c0_293 = arith.constant 0 : index
    %c13_294 = arith.constant 13 : index
    %307 = vector.load %arg30[%c0_293, %c13_294] : memref<64x50xf32, #tpu.memory_space<vmem>>, vector<64x36xf32>
    %c7_295 = arith.constant 7 : index
    %c0_296 = arith.constant 0 : index
    %308 = vector.load %arg18[%c7_295, %c0_296] : memref<9x36xf32, #tpu.memory_space<vmem>>, vector<1x36xf32>
    %309 = vector.broadcast %308 : vector<1x36xf32> to vector<64x36xf32>
    %310 = arith.mulf %307, %309 : vector<64x36xf32>
    %c0_297 = arith.constant 0 : index
    %c14_298 = arith.constant 14 : index
    %311 = vector.load %arg30[%c0_297, %c14_298] : memref<64x50xf32, #tpu.memory_space<vmem>>, vector<64x36xf32>
    %c8_299 = arith.constant 8 : index
    %c0_300 = arith.constant 0 : index
    %312 = vector.load %arg18[%c8_299, %c0_300] : memref<9x36xf32, #tpu.memory_space<vmem>>, vector<1x36xf32>
    %313 = vector.broadcast %312 : vector<1x36xf32> to vector<64x36xf32>
    %314 = arith.mulf %311, %313 : vector<64x36xf32>
    %315 = tpu.concatenate %282, %286, %290, %294, %298, %302, %306, %310, %314 in 0 : vector<64x36xf32>, vector<64x36xf32>, vector<64x36xf32>, vector<64x36xf32>, vector<64x36xf32>, vector<64x36xf32>, vector<64x36xf32>, vector<64x36xf32>, vector<64x36xf32> -> vector<576x36xf32>
    %c0_301 = arith.constant 0 : index
    %c0_302 = arith.constant 0 : index
    %316 = vector.load %arg16[%c0_301, %c0_302] : memref<64x576xf32, #tpu.memory_space<vmem>>, vector<64x576xf32>
    %cst_303 = arith.constant dense<0.000000e+00> : vector<64x36xf32>
    %317 = tpu.matmul %316, %315, %cst_303 {dimension_numbers = #tpu.dot_dimension_numbers<[1], [0], [0], [1], [0, 0, 1, 1], [], []>} : vector<64x576xf32>, vector<576x36xf32>, vector<64x36xf32> -> vector<64x36xf32>
    %c0_304 = arith.constant 0 : index
    %c0_305 = arith.constant 0 : index
    %318 = vector.load %arg17[%c0_304, %c0_305] : memref<64x3xf32, #tpu.memory_space<vmem>>, vector<64x3xf32>
    %319 = vector.extract_strided_slice %318 {offsets = [0, 0], sizes = [64, 1], strides = [1, 1]} : vector<64x3xf32> to vector<64x1xf32>
    %320 = vector.broadcast %319 : vector<64x1xf32> to vector<64x36xf32>
    %321 = arith.addf %317, %320 : vector<64x36xf32>
    %cst_306 = arith.constant 0.000000e+00 : f32
    %322 = vector.broadcast %cst_306 : f32 to vector<64x36xf32>
    %323 = arith.maximumf %321, %322 : vector<64x36xf32>
    %324 = vector.extract_strided_slice %318 {offsets = [0, 1], sizes = [64, 1], strides = [1, 1]} : vector<64x3xf32> to vector<64x1xf32>
    %325 = vector.broadcast %324 : vector<64x1xf32> to vector<64x36xf32>
    %326 = arith.mulf %323, %325 : vector<64x36xf32>
    %327 = vector.extract_strided_slice %318 {offsets = [0, 2], sizes = [64, 1], strides = [1, 1]} : vector<64x3xf32> to vector<64x1xf32>
    %328 = vector.broadcast %327 : vector<64x1xf32> to vector<64x36xf32>
    %329 = arith.addf %326, %328 : vector<64x36xf32>
    %c0_307 = arith.constant 0 : index
    %c0_308 = arith.constant 0 : index
    %330 = vector.load %arg31[%c0_307, %c0_308] : memref<64x43xf32, #tpu.memory_space<vmem>>, vector<64x36xf32>
    tpu.vector_store %arg31[%c0_307, %c0_308], %329 {strides = array<i32>} : memref<64x43xf32, #tpu.memory_space<vmem>>, vector<64x36xf32>,
    %cst_309 = arith.constant 0.000000e+00 : f32
    %331 = vector.broadcast %cst_309 : f32 to vector<64x7xf32>
    %c0_310 = arith.constant 0 : index
    %c36 = arith.constant 36 : index
    %332 = vector.load %arg31[%c0_310, %c36] : memref<64x43xf32, #tpu.memory_space<vmem>>, vector<64x7xf32>
    tpu.vector_store %arg31[%c0_310, %c36], %331 {strides = array<i32>} : memref<64x43xf32, #tpu.memory_space<vmem>>, vector<64x7xf32>,
    %c0_311 = arith.constant 0 : index
    %c1_312 = arith.constant 1 : index
    %333 = vector.load %arg31[%c0_311, %c1_312] : memref<64x43xf32, #tpu.memory_space<vmem>>, vector<64x36xf32>
    %334 = arith.maximumf %329, %333 : vector<64x36xf32>
    %c0_313 = arith.constant 0 : index
    %c6_314 = arith.constant 6 : index
    %335 = vector.load %arg31[%c0_313, %c6_314] : memref<64x43xf32, #tpu.memory_space<vmem>>, vector<64x36xf32>
    %c0_315 = arith.constant 0 : index
    %c7_316 = arith.constant 7 : index
    %336 = vector.load %arg31[%c0_315, %c7_316] : memref<64x43xf32, #tpu.memory_space<vmem>>, vector<64x36xf32>
    %337 = arith.maximumf %335, %336 : vector<64x36xf32>
    %338 = arith.maximumf %334, %337 : vector<64x36xf32>
    %c0_317 = arith.constant 0 : index
    %c0_318 = arith.constant 0 : index
    %339 = vector.load %arg19[%c0_317, %c0_318] : memref<36x9xf32, #tpu.memory_space<vmem>>, vector<36x9xf32>
    %cst_319 = arith.constant dense<0.000000e+00> : vector<64x9xf32>
    %340 = tpu.matmul %338, %339, %cst_319 {dimension_numbers = #tpu.dot_dimension_numbers<[1], [0], [0], [1], [0, 0, 1, 1], [], []>} : vector<64x36xf32>, vector<36x9xf32>, vector<64x9xf32> -> vector<64x9xf32>
    %341 = vector.extract_strided_slice %340 {offsets = [0, 0], sizes = [64, 1], strides = [1, 1]} : vector<64x9xf32> to vector<64x1xf32>
    %342 = vector.extract_strided_slice %340 {offsets = [0, 1], sizes = [64, 1], strides = [1, 1]} : vector<64x9xf32> to vector<64x1xf32>
    %343 = vector.extract_strided_slice %340 {offsets = [0, 2], sizes = [64, 1], strides = [1, 1]} : vector<64x9xf32> to vector<64x1xf32>
    %344 = vector.extract_strided_slice %340 {offsets = [0, 3], sizes = [64, 1], strides = [1, 1]} : vector<64x9xf32> to vector<64x1xf32>
    %345 = vector.extract_strided_slice %340 {offsets = [0, 4], sizes = [64, 1], strides = [1, 1]} : vector<64x9xf32> to vector<64x1xf32>
    %346 = vector.extract_strided_slice %340 {offsets = [0, 5], sizes = [64, 1], strides = [1, 1]} : vector<64x9xf32> to vector<64x1xf32>
    %347 = vector.extract_strided_slice %340 {offsets = [0, 6], sizes = [64, 1], strides = [1, 1]} : vector<64x9xf32> to vector<64x1xf32>
    %348 = vector.extract_strided_slice %340 {offsets = [0, 7], sizes = [64, 1], strides = [1, 1]} : vector<64x9xf32> to vector<64x1xf32>
    %349 = vector.extract_strided_slice %340 {offsets = [0, 8], sizes = [64, 1], strides = [1, 1]} : vector<64x9xf32> to vector<64x1xf32>
    %350 = tpu.concatenate %341, %342, %343, %344, %345, %346, %347, %348, %349 in 0 : vector<64x1xf32>, vector<64x1xf32>, vector<64x1xf32>, vector<64x1xf32>, vector<64x1xf32>, vector<64x1xf32>, vector<64x1xf32>, vector<64x1xf32>, vector<64x1xf32> -> vector<576x1xf32>
    %c0_320 = arith.constant 0 : index
    %c0_321 = arith.constant 0 : index
    %351 = vector.load %arg20[%c0_320, %c0_321] : memref<10x576xf32, #tpu.memory_space<vmem>>, vector<10x576xf32>
    %cst_322 = arith.constant dense<0.000000e+00> : vector<10x1xf32>
    %352 = tpu.matmul %351, %350, %cst_322 {dimension_numbers = #tpu.dot_dimension_numbers<[1], [0], [0], [1], [0, 0, 1, 1], [], []>} : vector<10x576xf32>, vector<576x1xf32>, vector<10x1xf32> -> vector<10x1xf32>
    %c0_323 = arith.constant 0 : index
    %c0_324 = arith.constant 0 : index
    %353 = vector.load %arg21[%c0_323, %c0_324] : memref<10x1xf32, #tpu.memory_space<vmem>>, vector<10x1xf32>
    %354 = arith.addf %352, %353 : vector<10x1xf32>
    %c0_325 = arith.constant 0 : index
    %c0_326 = arith.constant 0 : index
    %c0_327 = arith.constant 0 : index
    %355 = vector.load %arg22[%c0_325, %c0_326, %c0_327] : memref<1x10x1xf32, #tpu.memory_space<vmem>>, vector<1x10x1xf32>
    %356 = vector.shape_cast %355 : vector<1x10x1xf32> to vector<10x1xf32>
    %357 = vector.shape_cast %354 : vector<10x1xf32> to vector<1x10x1xf32>
    tpu.vector_store %arg22[%c0_325, %c0_326, %c0_327], %357 {strides = array<i32>} : memref<1x10x1xf32, #tpu.memory_space<vmem>>, vector<1x10x1xf32>,
    return
  }
  func.func @transform_0(%arg0: i32) -> (i32, i32, i32) {
    %c0_i32 = arith.constant 0 : i32
    %c0_i32_0 = arith.constant 0 : i32
    %c0_i32_1 = arith.constant 0 : i32
    return %arg0, %c0_i32, %c0_i32_0 : i32, i32, i32
  }
  func.func @transform_1(%arg0: i32) -> (i32, i32) {
    %c0_i32 = arith.constant 0 : i32
    %c0_i32_0 = arith.constant 0 : i32
    %c0_i32_1 = arith.constant 0 : i32
    return %c0_i32, %c0_i32_0 : i32, i32
  }
  func.func @transform_2(%arg0: i32) -> (i32, i32) {
    %c0_i32 = arith.constant 0 : i32
    %c0_i32_0 = arith.constant 0 : i32
    %c0_i32_1 = arith.constant 0 : i32
    return %c0_i32, %c0_i32_0 : i32, i32
  }
  func.func @transform_3(%arg0: i32) -> (i32, i32) {
    %c0_i32 = arith.constant 0 : i32
    %c0_i32_0 = arith.constant 0 : i32
    %c0_i32_1 = arith.constant 0 : i32
    return %c0_i32, %c0_i32_0 : i32, i32
  }
  func.func @transform_4(%arg0: i32) -> (i32, i32) {
    %c0_i32 = arith.constant 0 : i32
    %c0_i32_0 = arith.constant 0 : i32
    %c0_i32_1 = arith.constant 0 : i32
    return %c0_i32, %c0_i32_0 : i32, i32
  }
  func.func @transform_5(%arg0: i32) -> (i32, i32) {
    %c0_i32 = arith.constant 0 : i32
    %c0_i32_0 = arith.constant 0 : i32
    %c0_i32_1 = arith.constant 0 : i32
    return %c0_i32, %c0_i32_0 : i32, i32
  }
  func.func @transform_6(%arg0: i32) -> (i32, i32) {
    %c0_i32 = arith.constant 0 : i32
    %c0_i32_0 = arith.constant 0 : i32
    %c0_i32_1 = arith.constant 0 : i32
    return %c0_i32, %c0_i32_0 : i32, i32
  }
  func.func @transform_7(%arg0: i32) -> (i32, i32) {
    %c0_i32 = arith.constant 0 : i32
    %c0_i32_0 = arith.constant 0 : i32
    %c0_i32_1 = arith.constant 0 : i32
    return %c0_i32, %c0_i32_0 : i32, i32
  }
  func.func @transform_8(%arg0: i32) -> (i32, i32) {
    %c0_i32 = arith.constant 0 : i32
    %c0_i32_0 = arith.constant 0 : i32
    %c0_i32_1 = arith.constant 0 : i32
    return %c0_i32, %c0_i32_0 : i32, i32
  }
  func.func @transform_9(%arg0: i32) -> (i32, i32) {
    %c0_i32 = arith.constant 0 : i32
    %c0_i32_0 = arith.constant 0 : i32
    %c0_i32_1 = arith.constant 0 : i32
    return %c0_i32, %c0_i32_0 : i32, i32
  }
  func.func @transform_10(%arg0: i32) -> (i32, i32) {
    %c0_i32 = arith.constant 0 : i32
    %c0_i32_0 = arith.constant 0 : i32
    %c0_i32_1 = arith.constant 0 : i32
    return %c0_i32, %c0_i32_0 : i32, i32
  }
  func.func @transform_11(%arg0: i32) -> (i32, i32) {
    %c0_i32 = arith.constant 0 : i32
    %c0_i32_0 = arith.constant 0 : i32
    %c0_i32_1 = arith.constant 0 : i32
    return %c0_i32, %c0_i32_0 : i32, i32
  }
  func.func @transform_12(%arg0: i32) -> (i32, i32) {
    %c0_i32 = arith.constant 0 : i32
    %c0_i32_0 = arith.constant 0 : i32
    %c0_i32_1 = arith.constant 0 : i32
    return %c0_i32, %c0_i32_0 : i32, i32
  }
  func.func @transform_13(%arg0: i32) -> (i32, i32) {
    %c0_i32 = arith.constant 0 : i32
    %c0_i32_0 = arith.constant 0 : i32
    %c0_i32_1 = arith.constant 0 : i32
    return %c0_i32, %c0_i32_0 : i32, i32
  }
  func.func @transform_14(%arg0: i32) -> (i32, i32) {
    %c0_i32 = arith.constant 0 : i32
    %c0_i32_0 = arith.constant 0 : i32
    %c0_i32_1 = arith.constant 0 : i32
    return %c0_i32, %c0_i32_0 : i32, i32
  }
  func.func @transform_15(%arg0: i32) -> (i32, i32) {
    %c0_i32 = arith.constant 0 : i32
    %c0_i32_0 = arith.constant 0 : i32
    %c0_i32_1 = arith.constant 0 : i32
    return %c0_i32, %c0_i32_0 : i32, i32
  }
  func.func @transform_16(%arg0: i32) -> (i32, i32) {
    %c0_i32 = arith.constant 0 : i32
    %c0_i32_0 = arith.constant 0 : i32
    %c0_i32_1 = arith.constant 0 : i32
    return %c0_i32, %c0_i32_0 : i32, i32
  }
  func.func @transform_17(%arg0: i32) -> (i32, i32) {
    %c0_i32 = arith.constant 0 : i32
    %c0_i32_0 = arith.constant 0 : i32
    %c0_i32_1 = arith.constant 0 : i32
    return %c0_i32, %c0_i32_0 : i32, i32
  }
  func.func @transform_18(%arg0: i32) -> (i32, i32) {
    %c0_i32 = arith.constant 0 : i32
    %c0_i32_0 = arith.constant 0 : i32
    %c0_i32_1 = arith.constant 0 : i32
    return %c0_i32, %c0_i32_0 : i32, i32
  }
  func.func @transform_19(%arg0: i32) -> (i32, i32) {
    %c0_i32 = arith.constant 0 : i32
    %c0_i32_0 = arith.constant 0 : i32
    %c0_i32_1 = arith.constant 0 : i32
    return %c0_i32, %c0_i32_0 : i32, i32
  }
  func.func @transform_20(%arg0: i32) -> (i32, i32) {
    %c0_i32 = arith.constant 0 : i32
    %c0_i32_0 = arith.constant 0 : i32
    %c0_i32_1 = arith.constant 0 : i32
    return %c0_i32, %c0_i32_0 : i32, i32
  }
  func.func @transform_21(%arg0: i32) -> (i32, i32, i32) {
    %c0_i32 = arith.constant 0 : i32
    %c0_i32_0 = arith.constant 0 : i32
    %c0_i32_1 = arith.constant 0 : i32
    return %arg0, %c0_i32, %c0_i32_0 : i32, i32, i32
  }
}

</mosaic_0001>

<bundles_post_ra>
// kernel: baseline_cnn_forward.1
= control target key start
LH: loop header
LB: loop body
LE: loop exit
PB: predicated region body
PF: predicated region fallthrough
CT: control target
= control target key end

     0   :  { %s13094_s0 = inlined_call_operand.vmem [shape: f32[2,1,576], index: 0, kind: input, shape index: {}]   ;;  %s13095_s1 = inlined_call_operand.vmem [shape: f32[16,9], index: 1, kind: input, shape index: {}]   ;;  %s13096_s2 = inlined_call_operand.vmem [shape: f32[16,1], index: 2, kind: input, shape index: {}]   ;;  %s13097_s3 = inlined_call_operand.vmem [shape: f32[16,144], index: 3, kind: input, shape index: {}]   ;;  %s13098_s4 = inlined_call_operand.vmem [shape: f32[16,3], index: 4, kind: input, shape index: {}]   ;;  %s13099_s5 = inlined_call_operand.vmem [shape: f32[9,576], index: 5, kind: input, shape index: {}]   ;;  %s13100_s6 = inlined_call_operand.vmem [shape: f32[576,144], index: 6, kind: input, shape index: {}]   ;;  %s13101_s7 = inlined_call_operand.vmem [shape: f32[32,144], index: 7, kind: input, shape index: {}]   ;;  %s13102_s8 = inlined_call_operand.vmem [shape: f32[32,1], index: 8, kind: input, shape index: {}]   ;;  %s13103_s9 = inlined_call_operand.vmem [shape: f32[32,288], index: 9, kind: input, shape index: {}]   ;;  %s13104_s10 = inlined_call_operand.vmem [shape: f32[32,3], index: 10, kind: input, shape index: {}]   ;;  %s13105_s11 = inlined_call_operand.vmem [shape: f32[9,144], index: 11, kind: input, shape index: {}]   ;;  %s13106_s12 = inlined_call_operand.vmem [shape: f32[144,36], index: 12, kind: input, shape index: {}]   ;;  %s13107_s13 = inlined_call_operand.vmem [shape: f32[64,288], index: 13, kind: input, shape index: {}]   ;;  %s13108_s14 = inlined_call_operand.vmem [shape: f32[64,1], index: 14, kind: input, shape index: {}]   ;;  %s13109_s15 = inlined_call_operand.vmem [shape: f32[64,576], index: 15, kind: input, shape index: {}]   ;;  %s13110_s16 = inlined_call_operand.vmem [shape: f32[64,3], index: 16, kind: input, shape index: {}]   ;;  %s13111_s17 = inlined_call_operand.vmem [shape: f32[9,36], index: 17, kind: input, shape index: {}]   ;;  %s13112_s18 = inlined_call_operand.vmem [shape: f32[36,9], index: 18, kind: input, shape index: {}]   ;;  %s13113_s19 = inlined_call_operand.vmem [shape: f32[10,576], index: 19, kind: input, shape index: {}]   ;;  %s13114_s20 = inlined_call_operand.vmem [shape: f32[10,1], index: 20, kind: input, shape index: {}]   ;;  %s13115_s21 = inlined_call_operand.vmem [shape: f32[2,10,1], index: 21, kind: output, shape index: {}]  }
   0x1   :  { %13202 = sst [smem:[#allocation14_spill]] %s13094_s0 }
   0x2   :  { %13203 = sst [smem:[#allocation15_spill]] %s13095_s1 }
   0x3   :  { %13204 = sst [smem:[#allocation16_spill]] %s13096_s2  ;;  %s9454_s2 = smov 0  }
   0x4   :  { %13205 = sst [smem:[#allocation17_spill]] %s13097_s3 }
   0x5   :  { %13206 = sst [smem:[#allocation18_spill]] %s13098_s4 }
   0x6   :  { %13207 = sst [smem:[#allocation19_spill]] %s13099_s5 }
   0x7   :  { %13208 = sst [smem:[#allocation20_spill]] %s13100_s6 }
   0x8   :  { %13209 = sst [smem:[#allocation21_spill]] %s13101_s7 }
   0x9   :  { %13210 = sst [smem:[#allocation22_spill]] %s13113_s19 }
   0xa   :  { %13211 = sst [smem:[#allocation23_spill]] %s13114_s20 }
   0xb   :  { %13212 = sst [smem:[#allocation24_spill]] %s13115_s21 }
   0xc LB: > { %13213 = sst [smem:[#allocation11_spill]] %s9305_s2  ;;  %s7112_s25 = sadd.s32 4294967295, %s9305_s2   ;;  %s9305_s2 = sphi %s9454_s2, %s31_s2  }
   0xd   : > { %p7116_p0 = scmp.ge.s32.totalorder %s9305_s2, 1  ;;  %p586_p1 = scmp.lt.s32.totalorder %s9305_s2, 3 }
   0xf   : > { %p587_p2 = pnand %p7116_p0, %p586_p1 }
  0x11   : > { %590 = sbr.rel (%p587_p2) target bundleno = 5131 (0x140b), region = 104 }
  0x18   : > { %s13214_s3 = sld [smem:[#allocation19_spill]]  ;;  %v655_v2 = vlaneseq  ;;  %p645_p3 = scmp.lt.s32.totalorder %s7112_s25, 1  ;;  %v13157_v9 = vmov 0.0   ;;  %vm668_vm4 = vcmask 203776   ;;  %vm13152_vm8 = vcmask 15360  }
  0x19   : > { %s13121_s22 = smov 2   ;;  %1261 = vmatprep.mubr.f32.mxu0 %v13157_v9  ;;  %1267 = vmatprep.mubr.f32.mxu1 %v13157_v9  ;;  %s13155_s0 = smov 24   ;;  %1436 = vst.msk [vmem:[#allocation3] sm:$0xff] %vm668_vm4, %v13157_v9  ;;  %1437 = vst.msk [vmem:[#allocation3 + $0x28] sm:$0xff] %vm668_vm4, %v13157_v9  ;;  %vm13153_vm9 = vcmask 7168   ;;  %vm13151_vm10 = vcmask 195584  }
  0x1a   : > { %s13331_s25 = smov (!%p645_p3, %s7112_s25), 1  ;;  %vm657_vm0 = vcmp.lt.s32.totalorder %v655_v2, 25  ;;  %vm9486_vm1 = vcmp.ge.s32.totalorder %v655_v2, 89  ;;  %vm661_vm2 = vcmp.lt.s32.totalorder %v655_v2, 114  ;;  %s13218_s1 = sld [smem:[#allocation14_spill]]  ;;  %vm671_vm5 = vcmp.ge.s32.totalorder %v655_v2, 25 }
  0x1b   : > { %13215 = sst [smem:[#allocation12_spill]] %s13331_s25  ;;  %659 = vst.msk [vmem:[#allocation2] sm:$0x1] %vm657_vm0, %v13157_v9  ;;  %s8271_s27 = smul.u32 5, %s13331_s25  ;;  %vm662_vm3 = vmand %vm9486_vm1, %vm661_vm2  ;;  %vm672_vm6 = vcmp.lt.s32.totalorder %v655_v2, 601  ;;  %v777_v33 = vshrl.u32 %v655_v2, 7 }
  0x1c   : > { %663 = vst.msk [vmem:[#allocation2 + $0x4] sm:$0x1] %vm662_vm3, %v13157_v9  ;;  %s13145_s4 = smov 25   ;;  %s13137_s26 = smov 50   ;;  %vm673_vm7 = vmand %vm671_vm5, %vm672_vm6  ;;  %vm13149_vm11 = vcmask 211968   ;;  %vm13150_vm12 = vcmask 392192  }
  0x1d   : > { %v9546_v39 = vsub.s32 0, %v777_v33  ;;  %v9549_v41 = vsub.s32 1, %v777_v33  ;;  %v9551_v42 = vsub.s32 2, %v777_v33  ;;  %v9553_v43 = vsub.s32 3, %v777_v33  ;;  %s13135_s28 = smov 126   ;;  %s13127_s29 = smov 104  }
  0x1e   : > { %v7121_v0 = vld [vmem:[%s13214_s3 + $0x2] ss:$8 sm:$0xf]  ;;  %v7123_v4 = vld [vmem:[%s13214_s3 + $0x3] ss:$8 sm:$0xf] }
  0x1f   : > { %v7122_v1 = vld [vmem:[%s13214_s3 + $0x2] ss:$8 sm:$0x10]  ;;  %v7124_v5 = vld [vmem:[%s13214_s3 + $0x3] ss:$8 sm:$0x10] }
  0x20   : > { %v695_v3 = vor.u32 %v7122_v1, %v7121_v0  ;;  %v707_v6 = vor.u32 %v7124_v5, %v7123_v4  ;;  %v7127_v7 = vld [vmem:[%s13214_s3 + $0x5] ss:$8 sm:$0xf]  ;;  %v7119_v11 = vld [vmem:[%s13214_s3 + $0x1] ss:$8 sm:$0xf]  ;;  %s648_s24 = scalar_lea.vmem %s13218_s1, %s8271_s27 }
  0x21   : > { %v7128_v8 = vld [vmem:[%s13214_s3 + $0x5] ss:$8 sm:$0x10]  ;;  %v7120_v13 = vld [vmem:[%s13214_s3 + $0x1] ss:$8 sm:$0x10] }
  0x22   : > { %697 = vrot.lane.b32.xlu1 %v695_v3, %s13121_s22  ;;  %v730_v12 = vor.u32 %v7128_v8, %v7127_v7  ;;  %v7131_v14 = vld [vmem:[%s13214_s3 + $0x7] ss:$8 sm:$0xf]  ;;  %v654_v16 = vld [vmem:[%s648_s24] sm:$0x1f]  ;;  %v683_v17 = vor.u32 %v7120_v13, %v7119_v11  ;;  %s13123_s27 = smov 26  }
  0x23   : > { %v7132_v15 = vld [vmem:[%s13214_s3 + $0x7] ss:$8 sm:$0x10]  ;;  %665 = vrot.lane.b32.xlu0 %v654_v16, %s13145_s4  ;;  %v7125_v19 = vld [vmem:[%s13214_s3 + $0x4] ss:$8 sm:$0xf] }
  0x24   : > { %v754_v18 = vor.u32 %v7132_v15, %v7131_v14  ;;  %v7126_v20 = vld [vmem:[%s13214_s3 + $0x4] ss:$8 sm:$0x10]  ;;  %s13163_s1 = smov 1   ;;  %s13125_s24 = smov 49   ;;  %13219 = vst [vmem:[#allocation13_spill] sm:$0xff] %v9549_v41 }
  0x25   : > { %v719_v21 = vor.u32 %v7126_v20, %v7125_v19  ;;  %v7129_v22 = vld [vmem:[%s13214_s3 + $0x6] ss:$8 sm:$0xf]  ;;  %v7133_v25 = vld [vmem:[%s13214_s3 + $0x28] ss:$8 sm:$0xf] }
  0x26   : > { %709 = vrot.lane.b32.xlu1 %v707_v6, %s13155_s0  ;;  %v7130_v23 = vld [vmem:[%s13214_s3 + $0x6] ss:$8 sm:$0x10]  ;;  %v7134_v26 = vld [vmem:[%s13214_s3 + $0x28] ss:$8 sm:$0x10] }
  0x27   : > { %685 = vrot.lane.b32.xlu0 %v683_v17, %s13163_s1  ;;  %v742_v24 = vor.u32 %v7130_v23, %v7129_v22  ;;  %v766_v27 = vor.u32 %v7134_v26, %v7133_v25  ;;  %v9595_v10 = vsub.s32 4, %v777_v33  ;;  %vm13147_vm13 = vcmask 400384   ;;  %s13129_s30 = smov 103   ;;  %s13131_s22 = smov 102  }
  0x28   : > { %vm13148_vm14 = vcmask 408576   ;;  %s13139_s5 = smov 80   ;;  %s9322_s23 = smov 79   ;;  %vm13154_vm15 = vcmask 1039360   ;;  %vm1124_vm0 = vcmask 1040384   ;;  %vm873_vm1 = vcmask 1031168  }
  0x29   : > { %vm914_vm2 = vcmask 850944   ;;  %vm955_vm3 = vcmask 842752   ;;  %vm996_vm5 = vcmask 834560   ;;  %vm1130_vm6 = vcmask 1041408   ;;  %s13266_s2 = sld [smem:[#allocation17_spill]]  ;;  %s13279_s6 = sld [smem:[#allocation20_spill]] }
  0x2a   : > { %732 = vrot.lane.b32.xlu1 %v730_v12, %s13123_s27  ;;  %s13133_s27 = smov 127   ;;  %s13190_s19 = smov 13  }
  0x2b   : > { %721 = vrot.lane.b32.xlu0 %v719_v21, %s13145_s4  ;;  %s13221_s4 = smov 2   ;;  %s13188_s25 = smov 12  }
  0x2c   : > { %s13295_s7 = sld [smem:[#allocation21_spill]]  ;;  %s13306_s20 = smov 114  }
  0x2e   : > { %756 = vrot.lane.b32.xlu1 %v754_v18, %s13125_s24  ;;  %s13141_s24 = smov 48  }
  0x2f   : > { %744 = vrot.lane.b32.xlu0 %v742_v24, %s13141_s24  ;;  %s13240_s24 = smov 102   ;;  %s13267_s21 = smov %s13266_s2 }
  0x33   : > { %768 = vrot.lane.b32.xlu0 %v766_v27, %s13137_s26  ;;  %s13228_s26 = smov 49  }
  0x94   : > { %v698_v28 = vpop.permute.xlu1 %697 }
  0x95   : > { %v666_v29 = vpop.permute.xlu0 %665  ;;  %v699_v34 = vrot.slane %v698_v28, 7 }
  0x96   : > { %v667_v30 = vrot.slane %v666_v29, 7 }
  0x97   : > { %v701_v40 = vsel %vm13152_vm8, %v699_v34, %v698_v28  ;;  %vm1119_vm8 = vcmask 637952  }
  0x98   : > { %v669_v31 = vsel %vm668_vm4, %v667_v30, %v666_v29  ;;  %v710_v35 = vpop.permute.xlu1 %709 }
  0x99   : > { %674 = vst.msk [vmem:[#allocation2] sm:$0x1f] %vm673_vm7, %v669_v31  ;;  %v686_v32 = vpop.permute.xlu0 %685  ;;  %v711_v37 = vrot.slane %v710_v35, 7  ;;  %vm1136_vm7 = vcmask 1042432  }
  0x9a   : > { %v687_v36 = vrot.slane %v686_v32, 7 }
  0x9b   : > { %v713_v47 = vsel %vm13151_vm10, %v711_v37, %v710_v35  ;;  %vm1154_vm10 = vcmask 1045504  }
  0x9c   : > { %v689_v45 = vsel %vm13153_vm9, %v687_v36, %v686_v32  ;;  %v733_v48 = vpop.permute.xlu1 %732  ;;  %vm1160_vm9 = vcmask 1046528  }
  0x9d   : > { %v722_v38 = vpop.permute.xlu0 %721  ;;  %v734_v50 = vrot.slane %v733_v48, 7 }
  0x9e   : > { %v723_v46 = vrot.slane %v722_v38, 7 }
  0x9f   : > { %v736_v0 = vsel %vm13149_vm11, %v734_v50, %v733_v48  ;;  %vm1037_vm11 = vcmask 654336  }
  0xa0   : > { %v9555_v44 = vld [vmem:[#allocation2] sm:$0x1f]  ;;  %v724_v56 = vsel %vm668_vm4, %v723_v46, %v722_v38  ;;  %v757_v13 = vpop.permute.xlu1 %756 }
  0xa1   : > { %v691_v49 = vmul.f32 %v689_v45, %v9555_v44  ;;  %v9561_v51 = vmul.f32 %v701_v40, %v9555_v44  ;;  %v9573_v59 = vmul.f32 %v713_v47, %v9555_v44  ;;  %v9583_v1 = vmul.f32 %v724_v56, %v9555_v44  ;;  %v745_v4 = vpop.permute.xlu0 %744 }
  0xa2   : > { %v9598_v11 = vmul.f32 %v736_v0, %v9555_v44  ;;  %v746_v12 = vrot.slane %v745_v4, 7  ;;  %v758_v18 = vrot.slane %v757_v13, 7 }
  0xa3   : > { %v809_v52 = vrot.slane %v691_v49, %v9549_v41  ;;  %v813_v53 = vrot.slane %v691_v49, %v9551_v42  ;;  %v805_v54 = vrot.slane %v691_v49, %v9546_v39  ;;  %v817_v55 = vrot.slane %v691_v49, %v9553_v43 }
  0xa4   : > { %v850_v57 = vrot.slane %v9561_v51, %v9549_v41  ;;  %v854_v58 = vrot.slane %v9561_v51, %v9551_v42  ;;  %v846_v62 = vrot.slane %v9561_v51, %v9546_v39  ;;  %v858_v63 = vrot.slane %v9561_v51, %v9553_v43 }
  0xa5   : > { %v8317_v60 = vpack.i.bf16 %v813_v53, %v809_v52  ;;  %v8322_v61 = vpack.i.bf16 %v817_v55, %v805_v54  ;;  %v891_v3 = vrot.slane %v9573_v59, %v9549_v41  ;;  %v895_v6 = vrot.slane %v9573_v59, %v9551_v42  ;;  %v769_v28 = vpop.permute.xlu0 %768 }
  0xa6   : > { %v8327_v2 = vpack.i.bf16 %v854_v58, %v850_v57  ;;  %v8332_v5 = vpack.i.bf16 %v858_v63, %v846_v62  ;;  %v887_v7 = vrot.slane %v9573_v59, %v9546_v39  ;;  %v899_v8 = vrot.slane %v9573_v59, %v9553_v43 }
  0xa7   : > { %8318 = vrot.lane.b32.xlu1 %v8317_v60, %s13133_s27  ;;  %8323 = vrot.lane.b32.xlu0 %v8322_v61, %s13133_s27  ;;  %v8337_v14 = vpack.i.bf16 %v895_v6, %v891_v3  ;;  %v932_v16 = vrot.slane %v9583_v1, %v9549_v41  ;;  %v936_v17 = vrot.slane %v9583_v1, %v9551_v42  ;;  %v770_v34 = vrot.slane %v769_v28, 7 }
  0xa8   : > { %v8342_v15 = vpack.i.bf16 %v899_v8, %v887_v7  ;;  %v748_v19 = vsel %vm13150_vm12, %v746_v12, %v745_v4  ;;  %v821_v20 = vrot.slane %v691_v49, %v9595_v10  ;;  %v973_v21 = vrot.slane %v9598_v11, %v9549_v41  ;;  %v7146_v7 = vld [vmem:[%s13214_s3 + $0x1] ss:$8 sm:$0xf] }
  0xa9   : > { %v8347_v22 = vpack.i.bf16 %v936_v17, %v932_v16  ;;  %v977_v23 = vrot.slane %v9598_v11, %v9551_v42  ;;  %v928_v24 = vrot.slane %v9583_v1, %v9546_v39  ;;  %v940_v25 = vrot.slane %v9583_v1, %v9553_v43  ;;  %v7147_v8 = vld [vmem:[%s13214_s3 + $0x1] ss:$8 sm:$0x10] }
  0xaa   : > { %v760_v26 = vsel %vm13147_vm13, %v758_v18, %v757_v13  ;;  %v750_v27 = vmul.f32 %v748_v19, %v9555_v44  ;;  %v969_v31 = vrot.slane %v9598_v11, %v9546_v39  ;;  %v981_v32 = vrot.slane %v9598_v11, %v9553_v43 }
  0xab   : > { %8328 = vrot.lane.b32.xlu1 %v8327_v2, %s13135_s28  ;;  %8333 = vrot.lane.b32.xlu0 %v8332_v5, %s13135_s28  ;;  %v8357_v29 = vpack.i.bf16 %v977_v23, %v973_v21  ;;  %v8352_v30 = vpack.i.bf16 %v940_v25, %v928_v24  ;;  %v762_v33 = vmul.f32 %v760_v26, %v9555_v44  ;;  %v13159_v6 = vmov 0   ;;  %v7150_v23 = vld [vmem:[%s13214_s3 + $0x3] ss:$8 sm:$0xf] }
  0xac   : > { %v8362_v35 = vpack.i.bf16 %v981_v32, %v969_v31  ;;  %v862_v36 = vrot.slane %v9561_v51, %v9595_v10  ;;  %v1014_v37 = vrot.slane %v750_v27, %v9549_v41  ;;  %v1018_v38 = vrot.slane %v750_v27, %v9551_v42  ;;  %8397 = vset.pattern.permute.xlu1 %v13159_v6  ;;  %v7151_v24 = vld [vmem:[%s13214_s3 + $0x3] ss:$8 sm:$0x10]  ;;  %v7153_v31 = vld [vmem:[%s13214_s3 + $0x4] ss:$8 sm:$0x10] }
  0xad   : > { %v772_v40 = vsel %vm13148_vm14, %v770_v34, %v769_v28  ;;  %v903_v45 = vrot.slane %v9573_v59, %v9595_v10  ;;  %v1055_v46 = vrot.slane %v762_v33, %v9549_v41  ;;  %v1059_v48 = vrot.slane %v762_v33, %v9551_v42  ;;  %8398 = vset.pattern.permute.xlu0 %v13159_v6 }
  0xae   : > { %v8367_v47 = vpack.i.bf16 %v1018_v38, %v1014_v37  ;;  %v1010_v49 = vrot.slane %v750_v27, %v9546_v39  ;;  %v1022_v50 = vrot.slane %v750_v27, %v9553_v43  ;;  %v774_v51 = vmul.f32 %v772_v40, %v9555_v44  ;;  %v7154_v40 = vld [vmem:[%s13214_s3 + $0x5] ss:$8 sm:$0xf] }
  0xaf   : > { %8338 = vrot.lane.b32.xlu1 %v8337_v14, %s13127_s29  ;;  %8343 = vrot.lane.b32.xlu0 %v8342_v15, %s13127_s29  ;;  %v8377_v52 = vpack.i.bf16 %v1059_v48, %v1055_v46  ;;  %v1051_v54 = vrot.slane %v762_v33, %v9546_v39  ;;  %v1063_v55 = vrot.slane %v762_v33, %v9553_v43  ;;  %v7148_v14 = vld [vmem:[%s13214_s3 + $0x2] ss:$8 sm:$0xf]  ;;  %vm1142_vm13 = vcmask 1043456  }
  0xb0   : > { %v8372_v53 = vpack.i.bf16 %v1022_v50, %v1010_v49  ;;  %v944_v57 = vrot.slane %v9583_v1, %v9595_v10  ;;  %v1096_v58 = vrot.slane %v774_v51, %v9549_v41  ;;  %v1100_v59 = vrot.slane %v774_v51, %v9551_v42  ;;  %v7149_v15 = vld [vmem:[%s13214_s3 + $0x2] ss:$8 sm:$0x10] }
  0xb1   : > { %v8382_v56 = vpack.i.bf16 %v1063_v55, %v1051_v54  ;;  %v985_v60 = vrot.slane %v9598_v11, %v9595_v10  ;;  %v1092_v62 = vrot.slane %v774_v51, %v9546_v39  ;;  %v1104_v63 = vrot.slane %v774_v51, %v9553_v43 }
  0xb2   : > { %v8387_v61 = vpack.i.bf16 %v1100_v59, %v1096_v58  ;;  %v1026_v0 = vrot.slane %v750_v27, %v9595_v10  ;;  %v1108_v2 = vrot.slane %v774_v51, %v9595_v10  ;;  %v1067_v3 = vrot.slane %v762_v33, %v9595_v10  ;;  %v7156_v51 = vld [vmem:[%s13214_s3 + $0x6] ss:$8 sm:$0xf] }
  0xb3   : > { %830 = vrot.lane.b32.xlu0 %v821_v20, %s13133_s27  ;;  %8348 = vrot.lane.b32.xlu1 %v8347_v22, %s13129_s30  ;;  %v8392_v1 = vpack.i.bf16 %v1104_v63, %v1092_v62  ;;  %s13220_s27 = sld [smem:[#allocation16_spill]]  ;;  %v1552_v11 = vor.u32 %v7147_v8, %v7146_v7  ;;  %v1605_v18 = vor.u32 %v7149_v15, %v7148_v14  ;;  %vm1148_vm14 = vcmask 1044480  }
  0xb4   : > { %v1658_v26 = vor.u32 %v7151_v24, %v7150_v23  ;;  %vm1078_vm12 = vcmask 646144  }
  0xb5   : > { %v1557_v12 = vrot.slane %v1552_v11, %v9546_v39  ;;  %v1561_v13 = vrot.slane %v1552_v11, %v9549_v41  ;;  %v1565_v16 = vrot.slane %v1552_v11, %v9551_v42  ;;  %v1569_v17 = vrot.slane %v1552_v11, %v9553_v43 }
  0xb6   : > { %v1573_v19 = vrot.slane %v1552_v11, %v9595_v10  ;;  %v1610_v20 = vrot.slane %v1605_v18, %v9546_v39  ;;  %v1614_v21 = vrot.slane %v1605_v18, %v9549_v41  ;;  %v1618_v22 = vrot.slane %v1605_v18, %v9551_v42 }
  0xb7   : > { %8358 = vrot.lane.b32.xlu0 %v8357_v29, %s13131_s22  ;;  %8353 = vrot.lane.b32.xlu1 %v8352_v30, %s13129_s30  ;;  %v1622_v25 = vrot.slane %v1605_v18, %v9553_v43  ;;  %v1626_v27 = vrot.slane %v1605_v18, %v9595_v10  ;;  %v1663_v28 = vrot.slane %v1658_v26, %v9546_v39  ;;  %v7152_v30 = vld [vmem:[%s13214_s3 + $0x4] ss:$8 sm:$0xf] }
  0xb8   : > { %v1667_v29 = vrot.slane %v1658_v26, %v9549_v41  ;;  %v1671_v32 = vrot.slane %v1658_v26, %v9551_v42  ;;  %v1675_v33 = vrot.slane %v1658_v26, %v9553_v43  ;;  %v1711_v34 = vor.u32 %v7153_v31, %v7152_v30 }
  0xb9   : > { %v1168_v4 = vld [vmem:[%s13220_s27] sm:$0xff]  ;;  %v1169_v5 = vld [vmem:[%s13220_s27 + $0x8] sm:$0xff]  ;;  %s13268_s27 = sld [smem:[#allocation18_spill]] }
  0xba   : > { %v1720_v37 = vrot.slane %v1711_v34, %v9549_v41  ;;  %v1724_v38 = vrot.slane %v1711_v34, %v9551_v42  ;;  %v1728_v46 = vrot.slane %v1711_v34, %v9553_v43  ;;  %v1732_v48 = vrot.slane %v1711_v34, %v9595_v10 }
  0xbb   : > { %8363 = vrot.lane.b32.xlu0 %v8362_v35, %s13131_s22  ;;  %871 = vrot.lane.b32.xlu1 %v862_v36, %s13135_s28  ;;  %v1679_v35 = vrot.slane %v1658_v26, %v9595_v10  ;;  %v1716_v36 = vrot.slane %v1711_v34, %v9546_v39  ;;  %s13223_s28 = smov 26  }
  0xbf   : > { %912 = vrot.lane.b32.xlu0 %v903_v45, %s13127_s29  ;;  %8368 = vrot.lane.b32.xlu1 %v8367_v47, %s13139_s5  ;;  %s13143_s29 = smov 78   ;;  %v7155_v45 = vld [vmem:[%s13214_s3 + $0x5] ss:$8 sm:$0x10] }
  0xc0   : > { %v1764_v47 = vor.u32 %v7155_v45, %v7154_v40 }
  0xc2   : > { %v1769_v49 = vrot.slane %v1764_v47, %v9546_v39  ;;  %v1773_v50 = vrot.slane %v1764_v47, %v9549_v41  ;;  %v1781_v54 = vrot.slane %v1764_v47, %v9553_v43 }
  0xc3   : > { %8378 = vrot.lane.b32.xlu0 %v8377_v52, %s9322_s23  ;;  %8373 = vrot.lane.b32.xlu1 %v8372_v53, %s13139_s5  ;;  %v7157_v52 = vld [vmem:[%s13214_s3 + $0x6] ss:$8 sm:$0x10]  ;;  %v1777_v53 = vrot.slane %v1764_v47, %v9551_v42 }
  0xc4   : > { %v9756_v55 = vor.u32 %v7157_v52, %v7156_v51 }
  0xc6   : > { %v1826_v58 = vrot.slane %v9756_v55, %v9549_v41  ;;  %v1830_v59 = vrot.slane %v9756_v55, %v9551_v42 }
  0xc7   : > { %8383 = vrot.lane.b32.xlu0 %v8382_v56, %s9322_s23  ;;  %953 = vrot.lane.b32.xlu1 %v944_v57, %s13129_s30  ;;  %v1785_v56 = vrot.slane %v1764_v47, %v9595_v10  ;;  %v1822_v57 = vrot.slane %v9756_v55, %v9546_v39  ;;  %s13224_s30 = smov 48  }
  0xcb   : > { %994 = vrot.lane.b32.xlu0 %v985_v60, %s13131_s22  ;;  %8388 = vrot.lane.b32.xlu1 %v8387_v61, %s13143_s29  ;;  %v1834_v60 = vrot.slane %v9756_v55, %v9553_v43  ;;  %s13237_s22 = smov 104  }
  0xcf   : > { %1035 = vrot.lane.b32.xlu0 %v1026_v0, %s13139_s5  ;;  %8393 = vrot.lane.b32.xlu1 %v8392_v1, %s13143_s29  ;;  %s13227_s5 = sld [smem:[#allocation15_spill]] }
  0xd3   : > { %1117 = vrot.lane.b32.xlu0 %v1108_v2, %s13143_s29  ;;  %1076 = vrot.lane.b32.xlu1 %v1067_v3, %s9322_s23  ;;  %s13222_s29 = smov 25   ;;  %v676_v3 = vld [vmem:[%s13214_s3] ss:$8 sm:$0xf] }
  0xd7   : > { %1172 = vperm.xlu1 %8397, %v1168_v4   ;;  %1177 = vperm.xlu0 %8398, %v1169_v5   ;;  %v677_v4 = vld [vmem:[%s13214_s3] ss:$8 sm:$0x10] }
  0xd8   : > { %v678_v8 = vor.u32 %v677_v4, %v676_v3 }
  0xdb   : > { %1574 = vrot.lane.b32.xlu0 %v1557_v12, %s13163_s1  ;;  %1576 = vrot.lane.b32.xlu1 %v1561_v13, %s13163_s1  ;;  %v9797_v13 = vmul.f32 %v678_v8, %v9555_v44 }
  0xdd   : > { %v783_v23 = vrot.slane %v9797_v13, %v9549_v41  ;;  %v779_v24 = vrot.slane %v9797_v13, %v9546_v39  ;;  %v791_v26 = vrot.slane %v9797_v13, %v9553_v43 }
  0xdf   : > { %1578 = vrot.lane.b32.xlu0 %v1565_v16, %s13163_s1  ;;  %1580 = vrot.lane.b32.xlu1 %v1569_v17, %s13163_s1 }
  0xe3   : > { %1582 = vrot.lane.b32.xlu0 %v1573_v19, %s13163_s1  ;;  %1627 = vrot.lane.b32.xlu1 %v1610_v20, %s13221_s4  ;;  %s13247_s1 = smov 80  }
  0xe7   : > { %1629 = vrot.lane.b32.xlu0 %v1614_v21, %s13221_s4  ;;  %1631 = vrot.lane.b32.xlu1 %v1618_v22, %s13221_s4 }
  0xeb   : > { %1633 = vrot.lane.b32.xlu0 %v1622_v25, %s13221_s4  ;;  %1635 = vrot.lane.b32.xlu1 %v1626_v27, %s13221_s4  ;;  %v787_v25 = vrot.slane %v9797_v13, %v9551_v42  ;;  %v795_v27 = vrot.slane %v9797_v13, %v9595_v10 }
  0xef   : > { %1680 = vrot.lane.b32.xlu0 %v1663_v28, %s13155_s0  ;;  %1682 = vrot.lane.b32.xlu1 %v1667_v29, %s13155_s0 }
  0xf3   : > { %1684 = vrot.lane.b32.xlu0 %v1671_v32, %s13155_s0  ;;  %1686 = vrot.lane.b32.xlu1 %v1675_v33, %s13155_s0 }
  0xf7   : > { %1688 = vrot.lane.b32.xlu0 %v1679_v35, %s13155_s0  ;;  %1733 = vrot.lane.b32.xlu1 %v1716_v36, %s13222_s29  ;;  %s13229_s0 = smov 50  }
  0xfb   : > { %1735 = vrot.lane.b32.xlu0 %v1720_v37, %s13222_s29  ;;  %1737 = vrot.lane.b32.xlu1 %v1724_v38, %s13222_s29 }
  0xff   : > { %1739 = vrot.lane.b32.xlu0 %v1728_v46, %s13222_s29  ;;  %1741 = vrot.lane.b32.xlu1 %v1732_v48, %s13222_s29 }
 0x103   : > { %1786 = vrot.lane.b32.xlu0 %v1769_v49, %s13223_s28  ;;  %1788 = vrot.lane.b32.xlu1 %v1773_v50, %s13223_s28 }
 0x107   : > { %1790 = vrot.lane.b32.xlu0 %v1777_v53, %s13223_s28  ;;  %1792 = vrot.lane.b32.xlu1 %v1781_v54, %s13223_s28 }
 0x10b   : > { %1794 = vrot.lane.b32.xlu0 %v1785_v56, %s13223_s28  ;;  %1839 = vrot.lane.b32.xlu1 %v1822_v57, %s13224_s30 }
 0x10f   : > { %1841 = vrot.lane.b32.xlu0 %v1826_v58, %s13224_s30  ;;  %1843 = vrot.lane.b32.xlu1 %v1830_v59, %s13224_s30 }
 0x113   : > { %1845 = vrot.lane.b32.xlu0 %v1834_v60, %s13224_s30 }
 0x119   : > { %v8319_v61 = vpop.permute.xlu1 %8318  ;;  %v9774_v62 = vpop.permute.xlu0 %8323 }
 0x11a   : > { %v8321_v14 = vunpack.i.h.bf16 %v8319_v61  ;;  %v8320_v15 = vunpack.i.l.bf16 %v8319_v61  ;;  %v8326_v16 = vunpack.i.h.bf16 %v9774_v62  ;;  %v8325_v17 = vunpack.i.l.bf16 %v9774_v62 }
 0x11c   : > { %v834_v28 = vsel %vm13154_vm15, %v8320_v15, %v8321_v14  ;;  %v835_v29 = vsel %vm13154_vm15, %v8321_v14, %v8326_v16  ;;  %v833_v30 = vsel %vm13154_vm15, %v8325_v17, %v8320_v15 }
 0x11d   : > { %v8329_v63 = vpop.permute.xlu1 %8328  ;;  %v9776_v0 = vpop.permute.xlu0 %8333  ;;  %v1126_v50 = vsel %vm1124_vm0, %v783_v23, %v834_v28  ;;  %v1127_v51 = vsel %vm1124_vm0, %v787_v25, %v835_v29  ;;  %v1125_v52 = vsel %vm1124_vm0, %v779_v24, %v833_v30 }
 0x11e   : > { %v8331_v18 = vunpack.i.h.bf16 %v8329_v63  ;;  %v8330_v19 = vunpack.i.l.bf16 %v8329_v63  ;;  %v8336_v20 = vunpack.i.h.bf16 %v9776_v0  ;;  %v8335_v21 = vunpack.i.l.bf16 %v9776_v0 }
 0x120   : > { %v875_v31 = vsel %vm873_vm1, %v8330_v19, %v8331_v18  ;;  %v876_v32 = vsel %vm873_vm1, %v8331_v18, %v8336_v20  ;;  %v874_v33 = vsel %vm873_vm1, %v8335_v21, %v8330_v19 }
 0x121   : > { %v9778_v1 = vpop.permute.xlu1 %8338  ;;  %v9780_v2 = vpop.permute.xlu0 %8343  ;;  %v1131_v53 = vsel %vm1130_vm6, %v1125_v52, %v874_v33  ;;  %v1133_v54 = vsel %vm1130_vm6, %v1127_v51, %v876_v32  ;;  %v1132_v58 = vsel %vm1130_vm6, %v1126_v50, %v875_v31 }
 0x122   : > { %v8341_v34 = vunpack.i.h.bf16 %v9778_v1  ;;  %v8340_v37 = vunpack.i.l.bf16 %v9778_v1  ;;  %v8346_v38 = vunpack.i.h.bf16 %v9780_v2  ;;  %v8345_v40 = vunpack.i.l.bf16 %v9780_v2 }
 0x124   : > { %v916_v59 = vsel %vm914_vm2, %v8340_v37, %v8341_v34  ;;  %v917_v60 = vsel %vm914_vm2, %v8341_v34, %v8346_v38  ;;  %v915_v61 = vsel %vm914_vm2, %v8345_v40, %v8340_v37 }
 0x125   : > { %v9788_v5 = vpop.permute.xlu1 %8348  ;;  %v9790_v7 = vpop.permute.xlu0 %830  ;;  %v1139_v13 = vsel %vm1136_vm7, %v1133_v54, %v917_v60  ;;  %v1138_v18 = vsel %vm1136_vm7, %v1132_v58, %v916_v59  ;;  %v1137_v23 = vsel %vm1136_vm7, %v1131_v53, %v915_v61 }
 0x126   : > { %v8351_v45 = vunpack.i.h.bf16 %v9788_v5  ;;  %v8350_v46 = vunpack.i.l.bf16 %v9788_v5  ;;  %v836_v1 = vsel %vm13154_vm15, %v8326_v16, %v9790_v7  ;;  %v1129_v19 = vsel %vm1124_vm0, %v795_v27, %v9790_v7 }
 0x127   : > { %v1128_v24 = vsel %vm1124_vm0, %v791_v26, %v836_v1 }
 0x128   : > { %v957_v63 = vsel %vm955_vm3, %v8350_v46, %v8351_v45 }
 0x129   : > { %v9792_v11 = vpop.permute.xlu1 %8353  ;;  %v9794_v12 = vpop.permute.xlu0 %8358 }
 0x12a   : > { %v8356_v47 = vunpack.i.h.bf16 %v9792_v11  ;;  %v8361_v48 = vunpack.i.h.bf16 %v9794_v12  ;;  %v8360_v49 = vunpack.i.l.bf16 %v9794_v12  ;;  %v8355_v62 = vunpack.i.l.bf16 %v9792_v11 }
 0x12c   : > { %v958_v2 = vsel %vm955_vm3, %v8351_v45, %v8356_v47  ;;  %v998_v3 = vsel %vm996_vm5, %v8360_v49, %v8361_v48  ;;  %v956_v21 = vsel %vm955_vm3, %v8355_v62, %v8350_v46 }
 0x12d   : > { %v9803_v44 = vpop.permute.xlu1 %871  ;;  %v9805_v22 = vpop.permute.xlu0 %8363  ;;  %v1145_v28 = vsel %vm1142_vm13, %v1139_v13, %v958_v2  ;;  %v1143_v34 = vsel %vm1142_vm13, %v1137_v23, %v956_v21 }
 0x12e   : > { %v8366_v4 = vunpack.i.h.bf16 %v9805_v22  ;;  %v8365_v5 = vunpack.i.l.bf16 %v9805_v22  ;;  %v1144_v22 = vsel %vm1142_vm13, %v1138_v18, %v957_v63  ;;  %v877_v25 = vsel %vm873_vm1, %v8336_v20, %v9803_v44 }
 0x12f   : > { %v1150_v29 = vsel %vm1148_vm14, %v1144_v22, %v998_v3  ;;  %v1135_v26 = vsel %vm1130_vm6, %v1129_v19, %v9803_v44 }
 0x130   : > { %v997_v30 = vsel %vm996_vm5, %v8365_v5, %v8360_v49  ;;  %v999_v7 = vsel %vm996_vm5, %v8361_v48, %v8366_v4 }
 0x131   : > { %v9826_v35 = vpop.permute.xlu1 %8368  ;;  %v9828_v36 = vpop.permute.xlu0 %912  ;;  %v1151_v48 = vsel %vm1148_vm14, %v1145_v28, %v999_v7  ;;  %v1149_v49 = vsel %vm1148_vm14, %v1143_v34, %v997_v30  ;;  %v1166_v28 = vld [vmem:[%s13227_s5] sm:$0xff] }
 0x132   : > { %v8371_v8 = vunpack.i.h.bf16 %v9826_v35  ;;  %v8370_v12 = vunpack.i.l.bf16 %v9826_v35  ;;  %v1134_v35 = vsel %vm1130_vm6, %v1128_v24, %v877_v25  ;;  %v918_v46 = vsel %vm914_vm2, %v8346_v38, %v9828_v36 }
 0x133   : > { %v1141_v50 = vsel %vm1136_vm7, %v1135_v26, %v9828_v36  ;;  %vm9325_vm6 = vmmov 1   ;;  %v1140_v60 = vsel %vm1136_vm7, %v1134_v35, %v918_v46  ;;  %v1838_v26 = vrot.slane %v9756_v55, %v9595_v10 }
 0x134   : > { %v1039_v31 = vsel %vm1037_vm11, %v8370_v12, %v8371_v8  ;;  %vm9903_vm15 = vmpackc.low %vm1124_vm0, %vm9325_vm6  ;;  %vm1494_vm7 = vcmask 728064   ;;  %vm13232_vm6 = vcmask 15360  }
 0x135   : > { %v9843_v56 = vpop.permute.xlu1 %8373  ;;  %v9845_v57 = vpop.permute.xlu0 %8378  ;;  %v1156_v44 = vsel %vm1154_vm10, %v1150_v29, %v1039_v31  ;;  %v1167_v29 = vld [vmem:[%s13227_s5 + $0x8] sm:$0xff]  ;;  %1847 = vrot.lane.b32.xlu1 %v1838_v26, %s13224_s30  ;;  %s13236_s30 = smov 103   ;;  %s13186_s5 = smov 14  }
 0x136   : > { %v8381_v14 = vunpack.i.h.bf16 %v9845_v57  ;;  %v8380_v15 = vunpack.i.l.bf16 %v9845_v57  ;;  %v8375_v27 = vunpack.i.l.bf16 %v9843_v56  ;;  %v8376_v37 = vunpack.i.h.bf16 %v9843_v56 }
 0x138   : > { %v1080_v20 = vsel %vm1078_vm12, %v8380_v15, %v8381_v14  ;;  %v1038_v51 = vsel %vm1037_vm11, %v8375_v27, %v8370_v12  ;;  %v1040_v61 = vsel %vm1037_vm11, %v8371_v8, %v8376_v37 }
 0x139   : > { %v954_v16 = vpop.permute.xlu1 %953  ;;  %v9866_v17 = vpop.permute.xlu0 %8383  ;;  %v1162_v53 = vsel %vm1160_vm9, %v1156_v44, %v1080_v20  ;;  %v1157_v7 = vsel %vm1154_vm10, %v1151_v48, %v1040_v61 }
 0x13a   : > { %v8385_v32 = vunpack.i.l.bf16 %v9866_v17  ;;  %v959_v38 = vsel %vm955_vm3, %v8356_v47, %v954_v16  ;;  %v8386_v56 = vunpack.i.h.bf16 %v9866_v17  ;;  %v1147_v1 = vsel %vm1142_vm13, %v1141_v50, %v954_v16 }
 0x13b   : > { %v1155_v47 = vsel %vm1154_vm10, %v1149_v49, %v1038_v51  ;;  %v1146_v3 = vsel %vm1142_vm13, %v1140_v60, %v959_v38  ;;  %v7159_v60 = vld [vmem:[%s13214_s3 + $0x7] ss:$8 sm:$0x10] }
 0x13c   : > { %v1079_v59 = vsel %vm1078_vm12, %v8385_v32, %v8380_v15  ;;  %v1081_v12 = vsel %vm1078_vm12, %v8381_v14, %v8386_v56 }
 0x13d   : > { %v8389_v0 = vpop.permute.xlu1 %8388  ;;  %v995_v33 = vpop.permute.xlu0 %994  ;;  %v1161_v8 = vsel %vm1160_vm9, %v1155_v47, %v1079_v59  ;;  %v1163_v27 = vsel %vm1160_vm9, %v1157_v7, %v1081_v12 }
 0x13e   : > { %v8391_v40 = vunpack.i.h.bf16 %v8389_v0  ;;  %v8390_v45 = vunpack.i.l.bf16 %v8389_v0  ;;  %v1000_v62 = vsel %vm996_vm5, %v8366_v4, %v995_v33  ;;  %v1153_v5 = vsel %vm1148_vm14, %v1147_v1, %v995_v33 }
 0x13f   : > { %v1152_v13 = vsel %vm1148_vm14, %v1146_v3, %v1000_v62  ;;  %vm1180_vm14 = vcmask 72704  }
 0x140   : > { %v1121_v52 = vsel %vm1119_vm8, %v8390_v45, %v8391_v40 }
 0x141   : > { %v8394_v57 = vpop.permute.xlu1 %8393  ;;  %v1036_v36 = vpop.permute.xlu0 %1035  ;;  %v7641_v58 = vpack.c.bf16 %v1121_v52, %v1162_v53 }
 0x142   : > { %v8395_v63 = vunpack.i.l.bf16 %v8394_v57  ;;  %v8396_v2 = vunpack.i.h.bf16 %v8394_v57  ;;  %v1041_v11 = vsel %vm1037_vm11, %v8376_v37, %v1036_v36  ;;  %v1159_v15 = vsel %vm1154_vm10, %v1153_v5, %v1036_v36  ;;  %v7158_v36 = vld [vmem:[%s13214_s3 + $0x7] ss:$8 sm:$0xf] }
 0x143   : > { %7643 = vmatprep.subr.msk.bf16.mxu0 %vm9903_vm15, %v7641_v58  ;;  %8245 = vmatprep.subr.msk.bf16.mxu1 %vm9903_vm15, %v7641_v58  ;;  %v1158_v19 = vsel %vm1154_vm10, %v1152_v13, %v1041_v11  ;;  %v7161_v13 = vld [vmem:[%s13214_s3 + $0x28] ss:$8 sm:$0x10]  ;;  %vm1489_vm10 = vcmask 1047752  }
 0x144   : > { %v1120_v4 = vsel %vm1119_vm8, %v8395_v63, %v8390_v45  ;;  %v1122_v24 = vsel %vm1119_vm8, %v8391_v40, %v8396_v2  ;;  %v1870_v63 = vor.u32 %v7159_v60, %v7158_v36  ;;  %v1512_v36 = vld [vmem:[%s13214_s3] ss:$8 sm:$0x10] }
 0x145   : > { %v1077_v16 = vpop.permute.xlu1 %1076  ;;  %v1118_v17 = vpop.permute.xlu0 %1117  ;;  %v7644_v18 = vpack.c.bf16 %v1120_v4, %v1161_v8  ;;  %v7650_v31 = vpack.c.bf16 %v1122_v24, %v1163_v27  ;;  %v7160_v8 = vld [vmem:[%s13214_s3 + $0x28] ss:$8 sm:$0xf] }
 0x146   : > { %v1082_v21 = vsel %vm1078_vm12, %v8386_v56, %v1077_v16  ;;  %v1165_v22 = vsel %vm1160_vm9, %v1159_v15, %v1077_v16  ;;  %v1123_v23 = vsel %vm1119_vm8, %v8396_v2, %v1118_v17  ;;  %v1875_v47 = vrot.slane %v1870_v63, %v9546_v39 }
 0x147   : > { %v1164_v25 = vsel %vm1160_vm9, %v1158_v19, %v1082_v21  ;;  %v7653_v14 = vpack.c.bf16 %v1118_v17, %v1165_v22  ;;  %7646 = vmatpush1.bf16.msk.msra.mxu0 %vm9903_vm15, %v7644_v18  ;;  %8246 = vmatpush1.bf16.msk.msra.mxu1 %vm9903_vm15, %v7644_v18  ;;  %vm1438_vm9 = vcmask 933576   ;;  %v1883_v4 = vrot.slane %v1870_v63, %v9551_v42 }
 0x148   : > { %v7647_v30 = vpack.c.bf16 %v1123_v23, %v1164_v25  ;;  %1440 = vst.msk [vmem:[#allocation3 + $0x48] sm:$0xff] %vm1438_vm9, %v13157_v9  ;;  %1439 = vst.msk [vmem:[#allocation3 + $0x20] sm:$0xff] %vm1438_vm9, %v13157_v9  ;;  %v1879_v15 = vrot.slane %v1870_v63, %v9549_v41  ;;  %v1891_v16 = vrot.slane %v1870_v63, %v9595_v10  ;;  %vm13238_vm9 = vcmask 195584  }
 0x149   : > { %7655 = vmatprep.subr.msk.bf16.mxu0 %vm9903_vm15, %v7653_v14  ;;  %v1923_v17 = vor.u32 %v7161_v13, %v7160_v8  ;;  %v1887_v18 = vrot.slane %v1870_v63, %v9553_v43 }
 0x14a   : > { %7137 = vmatmul.mubr.msk.f32.vlgmr.msra.gmra.mrb[0].mxu0 %vm1180_vm14, %v1166_v28  ;;  %7138 = vmatmul.mubr.msk.f32.vlgmr.msra.gmra.mrb[0].mxu1 %vm1180_vm14, %v1167_v29 }
 0x14b   : > { %7649 = vmatprep.subr.msk.bf16.mxu1 %vm9903_vm15, %v7647_v30  ;;  %7658 = vmatpush3.bf16.msk.msra.mxu0 %vm9903_vm15, %v7653_v14  ;;  %v1932_v21 = vrot.slane %v1923_v17, %v9549_v41  ;;  %v1928_v23 = vrot.slane %v1923_v17, %v9546_v39  ;;  %v1940_v24 = vrot.slane %v1923_v17, %v9553_v43 }
 0x14c   : > { %7652 = vmatpush1.bf16.msk.msra.mxu1 %vm9903_vm15, %v7650_v31  ;;  %1338 = vmatprep.mubr.f32.mxu1 %v13157_v9  ;;  %v1936_v14 = vrot.slane %v1923_v17, %v9551_v42  ;;  %vm13230_vm15 = vcmask 7168  }
 0x14d   : > { %7549 = vmatprep.mubr.msk.f32.mxu0 %vm1180_vm14, %v1166_v28  ;;  %vm13231_vm0 = vmmov %vm13230_vm15 }
 0x14e   : > { %7550 = vmatmul.mubr.msk.f32.vlgmr.msra.gmra.mrb[2].mxu0 %vm1180_vm14, %v1167_v29 }
 0x14f   : > { %7141 = vmatmul.mubr.msk.f32.vlgmr.msra.gmra.mrb[2].mxu1 %vm1180_vm14, %v1166_v28 }
 0x150   : > { %1344 = vmatprep.mubr.f32.mxu1 %v13157_v9 }
 0x153   : > { %7142 = vmatmul.mubr.msk.f32.gmra.mrb[4].mxu1 %vm1180_vm14, %v1167_v29  ;;  %v1944_v29 = vrot.slane %v1923_v17, %v9595_v10  ;;  %vm13233_vm14 = vmmov %vm13232_vm6 }
 0x156   : > { %v1173_v32 = vpop.permute.xlu1 %1172  ;;  %v1178_v0 = vpop.permute.xlu0 %1177 }
 0x15a   : > { %v9998_v19 = vpop.permute.xlu1 %1576  ;;  %v10002_v22 = vpop.permute.xlu0 %1574 }
 0x15b   : > { %v10097_v13 = vsel %vm13230_vm15, %v10002_v22, %v9998_v19  ;;  %vm13241_vm15 = vcmask 392192  }
 0x15e   : > { %v10008_v25 = vpop.permute.xlu1 %1580  ;;  %v10013_v28 = vpop.permute.xlu0 %1578 }
 0x162   : > { %v1628_v30 = vpop.permute.xlu1 %1627  ;;  %v10017_v7 = vpop.permute.xlu0 %1582 }
 0x166   : > { %v10020_v27 = vpop.permute.xlu1 %1631  ;;  %v10022_v31 = vpop.permute.xlu0 %1629 }
 0x16a   : > { %v10024_v26 = vpop.permute.xlu1 %1635 }
 0x21d   : > { %v1263_v33 = vpop.f32.mrb[0].mxu0  ;;  %v1269_v20 = vpop.f32.mrb[0].mxu1 }
 0x21e   : > { %v1264_v34 = vadd.f32 %v1263_v33, %v1173_v32  ;;  %v1265_v35 = vpop.f32.mrb[1].mxu0  ;;  %v1271_v37 = vpop.f32.mrb[1].mxu1  ;;  %v1270_v40 = vadd.f32 %v1269_v20, %v1178_v0 }
 0x21f   : > { %v1272_v45 = vadd.f32 %v1271_v37, %v1178_v0  ;;  %v1266_v53 = vadd.f32 %v1265_v35, %v1173_v32 }
 0x220   : > { %v1426_v46 = vmax.f32 %v1264_v34, 0.0  ;;  %v1431_v50 = vmax.f32 %v1270_v40, 0.0 }
 0x221   : > { %v1432_v48 = vmax.f32 %v1272_v45, 0.0  ;;  %v7551_v44 = vpop.f32.mrb[2].mxu0  ;;  %v1427_v58 = vmax.f32 %v1266_v53, 0.0 }
 0x222   : > { %v1340_v55 = vpop.f32.mrb[2].mxu1  ;;  %v1417_v49 = vpop.f32.mrb[3].mxu0  ;;  %1451 = vrot.lane.b32.xlu1 %v1426_v46, %s13222_s29  ;;  %v1423_v59 = vadd.f32 %v7551_v44, %v1178_v0 }
 0x223   : > { %v1341_v51 = vadd.f32 %v1340_v55, %v1173_v32  ;;  %v1342_v52 = vpop.f32.mrb[3].mxu1  ;;  %1463 = vrot.lane.b32.xlu0 %v1432_v48, %s13222_s29  ;;  %v1418_v38 = vadd.f32 %v1417_v49, %v1173_v32 }
 0x224   : > { %v1435_v1 = vmax.f32 %v1423_v59, 0.0  ;;  %v1343_v2 = vadd.f32 %v1342_v52, %v1173_v32  ;;  %v10026_v32 = vpop.permute.xlu0 %1633 }
 0x225   : > { %v1428_v54 = vmax.f32 %v1341_v51, 0.0  ;;  %v1430_v61 = vmax.f32 %v1418_v38, 0.0 }
 0x226   : > { %v1346_v56 = vpop.f32.mrb[4].mxu1  ;;  %1461 = vrot.lane.b32.xlu1 %v1431_v50, %s13222_s29  ;;  %v1429_v3 = vmax.f32 %v1343_v2, 0.0 }
 0x227   : > { %v1348_v57 = vpop.f32.mrb[5].mxu1  ;;  %1455 = vrot.lane.b32.xlu0 %v1428_v54, %s13222_s29  ;;  %v1347_v5 = vadd.f32 %v1346_v56, %v1178_v0 }
 0x228   : > { %v1349_v62 = vadd.f32 %v1348_v57, %v1178_v0  ;;  %v10028_v0 = vpop.permute.xlu1 %1682  ;;  %v10030_v33 = vpop.permute.xlu0 %1680  ;;  %v1511_v57 = vld [vmem:[%s13214_s3] ss:$8 sm:$0xf]  ;;  %s13263_s3 = smov 78  }
 0x229   : > { %v1433_v12 = vmax.f32 %v1347_v5, 0.0  ;;  %v10074_v60 = vor.u32 %v1512_v36, %v1511_v57 }
 0x22a   : > { %1453 = vrot.lane.b32.xlu1 %v1427_v58, %s13222_s29  ;;  %v1434_v11 = vmax.f32 %v1349_v62, 0.0 }
 0x22b   : > { %1459 = vrot.lane.b32.xlu0 %v1430_v61, %s13222_s29 }
 0x22c   : > { %v10032_v20 = vpop.permute.xlu1 %1686  ;;  %v10034_v34 = vpop.permute.xlu0 %1684 }
 0x22e   : > { %1469 = vrot.lane.b32.xlu1 %v1435_v1, %s13222_s29  ;;  %v1522_v1 = vrot.slane %v10074_v60, %v9549_v41 }
 0x22f   : > { %1467 = vrot.lane.b32.xlu0 %v1434_v11, %s13222_s29 }
 0x230   : > { %v1734_v35 = vpop.permute.xlu1 %1733  ;;  %v10036_v37 = vpop.permute.xlu0 %1688 }
 0x232   : > { %1457 = vrot.lane.b32.xlu1 %v1429_v3, %s13222_s29 }
 0x233   : > { %1892 = vrot.lane.b32.xlu0 %v1875_v47, %s13228_s26 }
 0x234   : > { %v10038_v40 = vpop.permute.xlu1 %1737  ;;  %v10040_v45 = vpop.permute.xlu0 %1735 }
 0x236   : > { %1465 = vrot.lane.b32.xlu1 %v1433_v12, %s13222_s29  ;;  %v1518_v12 = vrot.slane %v10074_v60, %v9546_v39 }
 0x237   : > { %1896 = vrot.lane.b32.xlu0 %v1883_v4, %s13228_s26 }
 0x238   : > { %v10042_v46 = vpop.permute.xlu1 %1741  ;;  %v10044_v48 = vpop.permute.xlu0 %1739 }
 0x23a   : > { %1894 = vrot.lane.b32.xlu1 %v1879_v15, %s13228_s26  ;;  %v10102_v15 = vsel %vm13231_vm0, %v9998_v19, %v10013_v28  ;;  %v10114_v19 = vsel %vm13232_vm6, %v1628_v30, %v10022_v31  ;;  %vm13242_vm0 = vmmov %vm13241_vm15 }
 0x23b   : > { %1900 = vrot.lane.b32.xlu0 %v1891_v16, %s13228_s26 }
 0x23c   : > { %v10046_v44 = vpop.permute.xlu1 %1788  ;;  %v10048_v55 = vpop.permute.xlu0 %1786 }
 0x23e   : > { %1898 = vrot.lane.b32.xlu1 %v1887_v18, %s13228_s26  ;;  %s13235_s26 = smov 127  }
 0x23f   : > { %1947 = vrot.lane.b32.xlu0 %v1932_v21, %s13229_s0 }
 0x240   : > { %v10050_v49 = vpop.permute.xlu1 %1792  ;;  %v10052_v50 = vpop.permute.xlu0 %1790 }
 0x242   : > { %1945 = vrot.lane.b32.xlu1 %v1928_v23, %s13229_s0 }
 0x243   : > { %1951 = vrot.lane.b32.xlu0 %v1940_v24, %s13229_s0 }
 0x244   : > { %v10054_v51 = vpop.permute.xlu1 %1839  ;;  %v10056_v52 = vpop.permute.xlu0 %1794 }
 0x246   : > { %1949 = vrot.lane.b32.xlu1 %v1936_v14, %s13229_s0 }
 0x248   : > { %v10058_v53 = vpop.permute.xlu1 %1843  ;;  %v10060_v54 = vpop.permute.xlu0 %1841 }
 0x24a   : > { %1953 = vrot.lane.b32.xlu1 %v1944_v29, %s13229_s0  ;;  %s13234_s0 = smov 126  }
 0x24c   : > { %v10062_v38 = vpop.permute.xlu1 %1847  ;;  %v10064_v56 = vpop.permute.xlu0 %1845 }
 0x294   : > { %v1452_v58 = vpop.permute.xlu1 %1451 }
 0x295   : > { %1490 = vst.msk [vmem:[#allocation3] sm:$0xff] %vm1489_vm10, %v1452_v58  ;;  %v10072_v59 = vpop.permute.xlu0 %1463 }
 0x298   : > { %v1462_v61 = vpop.permute.xlu1 %1461 }
 0x299   : > { %v10078_v62 = vsel %vm668_vm4, %v1462_v61, %v10072_v59  ;;  %1496 = vst.msk [vmem:[#allocation3 + $0x28] sm:$0xff] %vm1489_vm10, %v1462_v61  ;;  %v1456_v63 = vpop.permute.xlu0 %1455  ;;  %vm13239_vm10 = vmmov %vm13238_vm9 }
 0x29a   : > { %v1546_v8 = vmul.f32 %v1522_v1, %v10078_v62  ;;  %v10194_v41 = vsel %vm13239_vm10, %v10028_v0, %v10034_v34  ;;  %vm13248_vm10 = vcmask 15360  }
 0x29c   : > { %v1454_v2 = vpop.permute.xlu1 %1453  ;;  %v10088_v5 = vld [vmem:[#allocation3] sm:$0xff] }
 0x29d   : > { %v10083_v11 = vsel %vm668_vm4, %v1452_v58, %v1454_v2  ;;  %v10086_v47 = vsel %vm668_vm4, %v1454_v2, %v1456_v63  ;;  %v1460_v3 = vpop.permute.xlu0 %1459  ;;  %v1646_v23 = vmul.f32 %v1628_v30, %v10088_v5  ;;  %v1593_v14 = vmul.f32 %v10002_v22, %v10088_v5 }
 0x29e   : > { %v1541_v4 = vmul.f32 %v1522_v1, %v10083_v11  ;;  %v1540_v36 = vmul.f32 %v1518_v12, %v10088_v5 }
 0x2a0   : > { %v1470_v16 = vpop.permute.xlu1 %1469  ;;  %v10104_v17 = vld [vmem:[#allocation3 + $0x28] sm:$0xff]  ;;  %v7659_v18 = vpack.c.bf16 %v1546_v8, %v1541_v4  ;;  %v10130_v4 = vsel %vm668_vm4, %v1734_v35, %v10040_v45 }
 0x2a1   : > { %v1468_v21 = vpop.permute.xlu0 %1467  ;;  %v1651_v24 = vmul.f32 %v1628_v30, %v10104_v17  ;;  %v1598_v29 = vmul.f32 %v10002_v22, %v10104_v17  ;;  %v1545_v58 = vmul.f32 %v1518_v12, %v10104_v17  ;;  %v1757_v2 = vmul.f32 %v1734_v35, %v10104_v17 }
 0x2a2   : > { %v1478_v57 = vsel %vm668_vm4, %v1468_v21, %v1470_v16  ;;  %7660 = vmatprep.subr.bf16.mxu1 %v7659_v18  ;;  %v1704_v22 = vmul.f32 %v10030_v33, %v10104_v17  ;;  %v10126_v30 = vsel %vm13233_vm14, %v10022_v31, %v10020_v27  ;;  %v1752_v12 = vmul.f32 %v1734_v35, %v10088_v5 }
 0x2a3   : > { %1500 = vst.msk [vmem:[#allocation3 + $0x48] sm:$0xff] %vm1494_vm7, %v1478_v57  ;;  %v8404_v61 = vpack.i.bf16 %v1651_v24, %v1646_v23  ;;  %v8399_v1 = vpack.i.bf16 %v1598_v29, %v1593_v14  ;;  %v7661_v16 = vpack.c.bf16 %v1545_v58, %v1540_v36  ;;  %v1699_v31 = vmul.f32 %v10030_v33, %v10088_v5 }
 0x2a4   : > { %v1458_v8 = vpop.permute.xlu1 %1457  ;;  %v10146_v14 = vsel %vm668_vm4, %v10040_v45, %v10038_v40  ;;  %v1647_v35 = vmul.f32 %v10114_v19, %v10083_v11  ;;  %v8414_v29 = vpack.i.bf16 %v1757_v2, %v1752_v12  ;;  %v1810_v36 = vmul.f32 %v10048_v55, %v10104_v17 }
 0x2a5   : > { %v10134_v18 = vsel %vm668_vm4, %v1456_v63, %v1458_v8  ;;  %v1474_v23 = vsel %vm668_vm4, %v1458_v8, %v1460_v3  ;;  %v10137_v24 = vpop.permute.xlu0 %1892  ;;  %8405 = vrot.lane.b32.xlu1 %v8404_v61, %s13234_s0  ;;  %8400 = vrot.lane.b32.xlu0 %v8399_v1, %s13235_s26  ;;  %v1530_v63 = vrot.slane %v10074_v60, %v9553_v43  ;;  %vm13245_vm14 = vcmask 7168  }
 0x2a6   : > { %1495 = vst.msk [vmem:[#allocation3 + $0x20] sm:$0xff] %vm1494_vm7, %v1474_v23  ;;  %7662 = vmatpush1.bf16.msra.mxu1 %v7661_v16  ;;  %v1526_v3 = vrot.slane %v10074_v60, %v9551_v42  ;;  %v8409_v57 = vpack.i.bf16 %v1704_v22, %v1699_v31  ;;  %v1648_v45 = vmul.f32 %v10126_v30, %v10086_v47  ;;  %vm13243_vm7 = vcmask 211968  }
 0x2a7   : > { %v1805_v61 = vmul.f32 %v10048_v55, %v10088_v5  ;;  %v1753_v1 = vmul.f32 %v10130_v4, %v10083_v11  ;;  %v1754_v43 = vmul.f32 %v10146_v14, %v10086_v47  ;;  %v1594_v42 = vmul.f32 %v10097_v13, %v10083_v11  ;;  %vm13244_vm6 = vmmov %vm13243_vm7 }
 0x2a8   : > { %v1466_v58 = vpop.permute.xlu1 %1465  ;;  %v1595_v12 = vmul.f32 %v10102_v15, %v10086_v47  ;;  %v1543_v16 = vmul.f32 %v1530_v63, %v10134_v18  ;;  %v1542_v31 = vmul.f32 %v1526_v3, %v10086_v47 }
 0x2a9   : > { %v10169_v2 = vsel %vm668_vm4, %v10072_v59, %v1466_v58  ;;  %v10172_v22 = vsel %vm668_vm4, %v1466_v58, %v1468_v21  ;;  %8415 = vrot.lane.b32.xlu1 %v8414_v29, %s13236_s30  ;;  %8410 = vrot.lane.b32.xlu0 %v8409_v57, %s13237_s22  ;;  %v10176_v8 = vpop.permute.xlu0 %1896  ;;  %v8419_v9 = vpack.i.bf16 %v1810_v36, %v1805_v61 }
 0x2aa   : > { %v1548_v23 = vmul.f32 %v1530_v63, %v10172_v22  ;;  %v1547_v59 = vmul.f32 %v1526_v3, %v10169_v2  ;;  %v8429_v21 = vpack.i.bf16 %v1648_v45, %v1647_v35  ;;  %v10189_v57 = vsel %vm13238_vm9, %v10030_v33, %v10028_v0  ;;  %vm13246_vm9 = vmmov %vm13245_vm14 }
 0x2ab   : > { %v10201_v35 = vsel %vm13241_vm15, %v10054_v51, %v10060_v54  ;;  %v10206_v63 = vsel %vm13242_vm0, %v10060_v54, %v10058_v53  ;;  %v8439_v3 = vpack.i.bf16 %v1754_v43, %v1753_v1  ;;  %v8424_v36 = vpack.i.bf16 %v1595_v12, %v1594_v42  ;;  %vm13249_vm15 = vmmov %vm13248_vm10 }
 0x2ac   : > { %v10184_v58 = vpop.permute.xlu1 %1894  ;;  %v7695_v29 = vpack.c.bf16 %v1548_v23, %v1543_v16  ;;  %v7697_v6 = vpack.c.bf16 %v1547_v59, %v1542_v31  ;;  %v1860_v0 = vmul.f32 %v10206_v63, %v10086_v47  ;;  %v1700_v45 = vmul.f32 %v10189_v57, %v10083_v11 }
 0x2ad   : > { %8420 = vrot.lane.b32.xlu0 %v8419_v9, %s13240_s24  ;;  %8430 = vrot.lane.b32.xlu1 %v8429_v21, %s13234_s0  ;;  %v10208_v33 = vpop.permute.xlu0 %1900  ;;  %v1859_v9 = vmul.f32 %v10201_v35, %v10083_v11  ;;  %v1701_v61 = vmul.f32 %v10194_v41, %v10086_v47  ;;  %v10218_v54 = vld [vmem:[#allocation3 + $0x20] sm:$0xff]  ;;  %v10225_v1 = vsel %vm13243_vm7, %v10048_v55, %v10046_v44  ;;  %vm13250_vm0 = vcmask 195584  }
 0x2ae   : > { %7696 = vmatprep.subr.bf16.mxu0 %v7695_v29  ;;  %v10230_v43 = vsel %vm13244_vm6, %v10046_v44, %v10052_v50  ;;  %v1806_v42 = vmul.f32 %v10225_v1, %v10083_v11  ;;  %v10248_v31 = vsel %vm13246_vm9, %v10013_v28, %v10008_v25  ;;  %v10257_v29 = vsel %vm13248_vm10, %v10020_v27, %v10026_v32  ;;  %vm13252_vm6 = vmmov %vm13250_vm0 }
 0x2af   : > { %7698 = vmatpush1.bf16.msra.mxu0 %v7697_v6  ;;  %v10237_v6 = vsel %vm13245_vm14, %v10008_v25, %v10017_v7  ;;  %v1807_v55 = vmul.f32 %v10230_v43, %v10086_v47  ;;  %v8449_v12 = vpack.i.bf16 %v1860_v0, %v1859_v9  ;;  %v8434_v23 = vpack.i.bf16 %v1701_v61, %v1700_v45 }
 0x2b0   : > { %v10220_v16 = vpop.permute.xlu1 %1898  ;;  %v1597_v44 = vmul.f32 %v10237_v6, %v10218_v54  ;;  %v1596_v7 = vmul.f32 %v10248_v31, %v10134_v18  ;;  %v10267_v25 = vsel %vm13250_vm0, %v10032_v20, %v10036_v37  ;;  %vm13251_vm7 = vcmask 408576  }
 0x2b1   : > { %8440 = vrot.lane.b32.xlu1 %v8439_v3, %s13236_s30  ;;  %8425 = vrot.lane.b32.xlu0 %v8424_v36, %s13235_s26  ;;  %v1948_v59 = vpop.permute.xlu0 %1947  ;;  %v10262_v3 = vsel %vm13249_vm15, %v10026_v32, %v10024_v26  ;;  %v8444_v28 = vpack.i.bf16 %v1807_v55, %v1806_v42  ;;  %v1703_v27 = vmul.f32 %v10267_v25, %v10218_v54  ;;  %vm13253_vm14 = vcmask 211968   ;;  %vm13254_vm9 = vmmov %vm13251_vm7 }
 0x2b2   : > { %v8454_v9 = vpack.i.bf16 %v1597_v44, %v1596_v7  ;;  %v1650_v0 = vmul.f32 %v10262_v3, %v10218_v54  ;;  %v10279_v26 = vsel %vm13252_vm6, %v10034_v34, %v10032_v20  ;;  %v10284_v32 = vsel %vm668_vm4, %v10038_v40, %v10044_v48  ;;  %vm13255_vm10 = vmmov %vm13253_vm14 }
 0x2b3   : > { %v10289_v37 = vsel %vm668_vm4, %v10044_v48, %v10042_v46  ;;  %v10294_v45 = vsel %vm13253_vm14, %v10050_v49, %v10056_v52  ;;  %v1649_v34 = vmul.f32 %v10257_v29, %v10134_v18  ;;  %v1702_v40 = vmul.f32 %v10279_v26, %v10134_v18 }
 0x2b4   : > { %v1946_v21 = vpop.permute.xlu1 %1945  ;;  %v10310_v46 = vmul.f32 %v10137_v24, %v10088_v5  ;;  %v10314_v48 = vmul.f32 %v10137_v24, %v10104_v17  ;;  %v1809_v44 = vmul.f32 %v10294_v45, %v10218_v54  ;;  %vm13256_vm15 = vcmask 392192  }
 0x2b5   : > { %8450 = vrot.lane.b32.xlu1 %v8449_v12, %s13247_s1  ;;  %8435 = vrot.lane.b32.xlu0 %v8434_v23, %s13237_s22  ;;  %v10270_v36 = vsel %vm13251_vm7, %v1946_v21, %v1948_v59  ;;  %v8459_v55 = vpack.i.bf16 %v1650_v0, %v1649_v34  ;;  %v8464_v12 = vpack.i.bf16 %v1703_v27, %v1702_v40  ;;  %vm13257_vm0 = vmmov %vm13256_vm15  ;;  %vm13258_vm7 = vcmask 400384  }
 0x2b6   : > { %v10318_v52 = vmul.f32 %v10270_v36, %v10083_v11  ;;  %v1756_v23 = vmul.f32 %v10289_v37, %v10218_v54  ;;  %v10341_v0 = vmul.f32 %v1946_v21, %v10104_v17  ;;  %v1653_v27 = vmul.f32 %v10126_v30, %v10169_v2  ;;  %vm13259_vm6 = vmmov %vm13258_vm7 }
 0x2b7   : > { %v1534_v34 = vrot.slane %v10074_v60, %v9595_v10  ;;  %v8554_v7 = vpack.i.bf16 %v10314_v48, %v10310_v46  ;;  %v1652_v30 = vmul.f32 %v10114_v19, %v10078_v62  ;;  %v1759_v19 = vmul.f32 %v10146_v14, %v10169_v2  ;;  %vm13260_vm14 = vmmov %vm13259_vm6 }
 0x2b8   : > { %v10296_v61 = vpop.permute.xlu1 %1949  ;;  %v1865_v14 = vmul.f32 %v10206_v63, %v10169_v2  ;;  %v1903_v63 = vsel %vm13259_vm6, %v10184_v58, %v10176_v8 }
 0x2b9   : > { %v10300_v20 = vsel %vm13254_vm9, %v1948_v59, %v10296_v61  ;;  %8445 = vrot.lane.b32.xlu0 %v8444_v28, %s13240_s24  ;;  %8455 = vrot.lane.b32.xlu1 %v8454_v9, %s13235_s26  ;;  %v10331_v59 = vsel %vm13255_vm10, %v10052_v50, %v10050_v49  ;;  %v1755_v28 = vmul.f32 %v10284_v32, %v10134_v18  ;;  %vm13261_vm9 = vmmov %vm13259_vm6  ;;  %vm13262_vm10 = vcmask 408576  }
 0x2ba   : > { %v10322_v42 = vmul.f32 %v10300_v20, %v10086_v47  ;;  %v10338_v9 = vmul.f32 %v1946_v21, %v10088_v5  ;;  %v1808_v49 = vmul.f32 %v10331_v59, %v10134_v18  ;;  %v10350_v50 = vsel %vm13256_vm15, %v10064_v56, %v10062_v38  ;;  %v10356_v21 = vld [vmem:[#allocation3 + $0x48] sm:$0xff]  ;;  %vm13265_vm15 = vmmov %vm13262_vm10 }
 0x2bb   : > { %v8469_v40 = vpack.i.bf16 %v1756_v23, %v1755_v28  ;;  %v10365_v38 = vsel %vm13257_vm0, %v10058_v53, %v10064_v56  ;;  %v10376_v23 = vmul.f32 %v1534_v34, %v10218_v54  ;;  %v8489_v56 = vpack.i.bf16 %v1653_v27, %v1652_v30 }
 0x2bc   : > { %v1861_v10 = vmul.f32 %v10365_v38, %v10134_v18  ;;  %v8594_v60 = vpack.i.bf16 %v10341_v0, %v10338_v9  ;;  %v1600_v28 = vmul.f32 %v10102_v15, %v10169_v2  ;;  %v1706_v15 = vmul.f32 %v10194_v41, %v10169_v2 }
 0x2bd   : > { %8460 = vrot.lane.b32.xlu0 %v8459_v55, %s13234_s0  ;;  %8465 = vrot.lane.b32.xlu1 %v8464_v12, %s13237_s22  ;;  %v8474_v55 = vpack.i.bf16 %v1809_v44, %v1808_v49  ;;  %v1862_v12 = vmul.f32 %v10350_v50, %v10218_v54  ;;  %v10379_v44 = vmul.f32 %v1534_v34, %v10356_v21  ;;  %vm2374_vm0 = vcmask 130048  }
 0x2be   : > { %v1599_v34 = vmul.f32 %v10097_v13, %v10078_v62  ;;  %v1902_v13 = vsel %vm13258_vm7, %v10137_v24, %v10184_v58  ;;  %v1601_v41 = vmul.f32 %v10248_v31, %v10172_v22  ;;  %v1811_v24 = vmul.f32 %v10225_v1, %v10078_v62 }
 0x2bf   : > { %v8479_v53 = vpack.i.bf16 %v1862_v12, %v1861_v10  ;;  %v7732_v49 = vpack.c.bf16 %v10379_v44, %v10376_v23  ;;  %v1864_v12 = vmul.f32 %v10201_v35, %v10078_v62  ;;  %v1812_v35 = vmul.f32 %v10230_v43, %v10169_v2 }
 0x2c0   : > { %v1913_v58 = vmul.f32 %v1903_v63, %v10086_v47  ;;  %v1858_v43 = vmul.f32 %v10054_v51, %v10088_v5  ;;  %v1904_v1 = vsel %vm13260_vm14, %v10176_v8, %v10220_v16  ;;  %v1707_v47 = vmul.f32 %v10279_v26, %v10172_v22 }
 0x2c1   : > { %8470 = vrot.lane.b32.xlu0 %v8469_v40, %s13236_s30  ;;  %8475 = vrot.lane.b32.xlu1 %v8474_v55, %s13240_s24  ;;  %v1758_v40 = vmul.f32 %v10130_v4, %v10078_v62  ;;  %v8484_v55 = vpack.i.bf16 %v1600_v28, %v1599_v34  ;;  %v1705_v4 = vmul.f32 %v10189_v57, %v10078_v62  ;;  %v13269_v9 = vmov 0  }
 0x2c2   : > { %v8509_v30 = vpack.i.bf16 %v1865_v14, %v1864_v12  ;;  %v1912_v57 = vmul.f32 %v1902_v13, %v10083_v11  ;;  %v1905_v11 = vsel %vm13261_vm9, %v10220_v16, %v10208_v33  ;;  %v1708_v28 = vmul.f32 %v10267_v25, %v10356_v21 }
 0x2c3   : > { %v8499_v27 = vpack.i.bf16 %v1759_v19, %v1758_v40  ;;  %v8494_v10 = vpack.i.bf16 %v1706_v15, %v1705_v4  ;;  %v1863_v19 = vmul.f32 %v10054_v51, %v10104_v17  ;;  %v1654_v40 = vmul.f32 %v10257_v29, %v10172_v22  ;;  %v1954_v4 = vpop.permute.xlu1 %1953 }
 0x2c4   : > { %v1655_v51 = vmul.f32 %v10262_v3, %v10356_v21  ;;  %v1917_v5 = vmul.f32 %v1902_v13, %v10078_v62  ;;  %v1918_v8 = vmul.f32 %v1903_v63, %v10169_v2  ;;  %v1915_v33 = vmul.f32 %v1905_v11, %v10218_v54  ;;  %v1952_v13 = vpop.permute.xlu0 %1951 }
 0x2c5   : > { %8480 = vrot.lane.b32.xlu0 %v8479_v53, %s13247_s1  ;;  %8490 = vrot.lane.b32.xlu1 %v8489_v56, %s13234_s0  ;;  %v1602_v53 = vmul.f32 %v10237_v6, %v10356_v21  ;;  %v8504_v56 = vpack.i.bf16 %v1812_v35, %v1811_v24  ;;  %v8524_v6 = vpack.i.bf16 %v1913_v58, %v1912_v57  ;;  %vm13270_vm7 = vcmask 1039360  }
 0x2c6   : > { %v8519_v17 = vpack.i.bf16 %v1863_v19, %v1858_v43  ;;  %v1914_v16 = vmul.f32 %v1904_v1, %v10134_v18  ;;  %v8534_v26 = vpack.i.bf16 %v1708_v28, %v1707_v47  ;;  %v8529_v25 = vpack.i.bf16 %v1655_v51, %v1654_v40  ;;  %vm13271_vm6 = vmmov %vm13270_vm7 }
 0x2c7   : > { %v8514_v31 = vpack.i.bf16 %v1602_v53, %v1601_v41  ;;  %v8544_v29 = vpack.i.bf16 %v1918_v8, %v1917_v5  ;;  %v1760_v34 = vmul.f32 %v10284_v32, %v10172_v22  ;;  %v1814_v14 = vmul.f32 %v10294_v45, %v10356_v21  ;;  %vm13272_vm14 = vmmov %vm13271_vm6 }
 0x2c8   : > { %v8539_v3 = vpack.i.bf16 %v1915_v33, %v1914_v16  ;;  %v1919_v32 = vmul.f32 %v1904_v1, %v10172_v22  ;;  %v1867_v45 = vmul.f32 %v10350_v50, %v10356_v21  ;;  %v1958_v63 = vsel %vm13262_vm10, %v1952_v13, %v1954_v4  ;;  %vm13273_vm9 = vmmov %vm13271_vm6 }
 0x2c9   : > { %8500 = vrot.lane.b32.xlu1 %v8499_v27, %s13236_s30  ;;  %8485 = vrot.lane.b32.xlu0 %v8484_v55, %s13235_s26  ;;  %v1761_v27 = vmul.f32 %v10289_v37, %v10356_v21  ;;  %v1813_v55 = vmul.f32 %v10331_v59, %v10172_v22  ;;  %v1920_v37 = vmul.f32 %v1905_v11, %v10356_v21  ;;  %vm13274_vm10 = vmmov %vm13271_vm6 }
 0x2ca   : > { %v1866_v59 = vmul.f32 %v10365_v38, %v10172_v22  ;;  %v13264_v41 = vpack.i.bf16 %v10322_v42, %v10318_v52  ;;  %v1971_v38 = vmul.f32 %v10300_v20, %v10169_v2  ;;  %v1968_v50 = vmul.f32 %v1958_v63, %v10218_v54  ;;  %v10490_v2 = vld [vmem:[%s13266_s2 + $0x8] sm:$0xff]  ;;  %s13180_s2 = smov 114  }
 0x2cb   : > { %v8549_v15 = vpack.i.bf16 %v1761_v27, %v1760_v34  ;;  %v8559_v12 = vpack.i.bf16 %v1814_v14, %v1813_v55  ;;  %v1970_v35 = vmul.f32 %v10270_v36, %v10078_v62  ;;  %v1973_v52 = vmul.f32 %v1958_v63, %v10356_v21  ;;  %7162 = vmatprep.mubr.msk.f32.mxu1 %vm2374_vm0, %v10490_v2 }
 0x2cc   : > { %v8569_v53 = vpack.i.bf16 %v1867_v45, %v1866_v59  ;;  %7164 = vmatprep.mubr.msk.f32.mxu0 %vm2374_vm0, %v10490_v2  ;;  %v13169_v36 = vmov 2  }
 0x2cd   : > { %8510 = vrot.lane.b32.xlu1 %v8509_v30, %s13247_s1  ;;  %8495 = vrot.lane.b32.xlu0 %v8494_v10, %s13237_s22  ;;  %v1957_v30 = vsel %vm13265_vm15, %v10296_v61, %v1952_v13  ;;  %v8579_v10 = vpack.i.bf16 %v1920_v37, %v1919_v32  ;;  %v8584_v48 = vpack.i.bf16 %v1971_v38, %v1970_v35  ;;  %vm13275_vm15 = vmmov %vm13271_vm6 }
 0x2ce   : > { %v1967_v46 = vmul.f32 %v1957_v30, %v10134_v18  ;;  %v1972_v54 = vmul.f32 %v1957_v30, %v10172_v22  ;;  %v2362_v18 = vld [vmem:[%s13268_s27] sm:$0xff]  ;;  %v13171_v22 = vmov 1  }
 0x2cf   : > { %8599 = vset.pattern.permute.xlu1 %v13171_v22 }
 0x2d0   : > { %v8574_v61 = vpack.i.bf16 %v1968_v50, %v1967_v46  ;;  %v8589_v62 = vpack.i.bf16 %v1973_v52, %v1972_v54 }
 0x2d1   : > { %8515 = vrot.lane.b32.xlu1 %v8514_v31, %s13235_s26  ;;  %8505 = vrot.lane.b32.xlu0 %v8504_v56, %s13240_s24 }
 0x2d5   : > { %8520 = vrot.lane.b32.xlu1 %v8519_v17, %s13247_s1  ;;  %8525 = vrot.lane.b32.xlu0 %v8524_v6, %s9322_s23 }
 0x2d9   : > { %8535 = vrot.lane.b32.xlu1 %v8534_v26, %s13237_s22  ;;  %8530 = vrot.lane.b32.xlu0 %v8529_v25, %s13234_s0 }
 0x2dd   : > { %8545 = vrot.lane.b32.xlu0 %v8544_v29, %s9322_s23  ;;  %8540 = vrot.lane.b32.xlu1 %v8539_v3, %s9322_s23 }
 0x2e1   : > { %8550 = vrot.lane.b32.xlu0 %v8549_v15, %s13236_s30  ;;  %8560 = vrot.lane.b32.xlu1 %v8559_v12, %s13240_s24 }
 0x2e5   : > { %8555 = vrot.lane.b32.xlu0 %v8554_v7, %s9322_s23  ;;  %8565 = vrot.lane.b32.xlu1 %v13264_v41, %s13263_s3  ;;  %v2363_v7 = vld [vmem:[%s13268_s27 + $0x8] sm:$0xff]  ;;  %s13290_s27 = smov 24  }
 0x2e9   : > { %8570 = vrot.lane.b32.xlu0 %v8569_v53, %s13247_s1  ;;  %8580 = vrot.lane.b32.xlu1 %v8579_v10, %s9322_s23  ;;  %s13289_s1 = smov 1   ;;  %s13298_s23 = smov 13  }
 0x2ed   : > { %8585 = vrot.lane.b32.xlu1 %v8584_v48, %s13263_s3  ;;  %8575 = vrot.lane.b32.xlu0 %v8574_v61, %s13263_s3 }
 0x2f1   : > { %8595 = vrot.lane.b32.xlu1 %v8594_v60, %s13263_s3  ;;  %8590 = vrot.lane.b32.xlu0 %v8589_v62, %s13263_s3  ;;  %s13182_s3 = smov 115  }
 0x2f5   : > { %2366 = vperm.xlu0 %8398, %v2362_v18   ;;  %2621 = vperm.xlu1 %8599, %v2362_v18  }
 0x2f9   : > { %8600 = vset.pattern.permute.xlu0 %v13169_v36  ;;  %8601 = vset.pattern.permute.xlu1 %v13269_v9 }
 0x2fa   : > { %2639 = vperm.xlu0 %8600, %v2362_v18   ;;  %2371 = vperm.xlu1 %8601, %v2363_v7  }
 0x2fe   : > { %2643 = vperm.xlu0 %8600, %v2363_v7   ;;  %8602 = vset.pattern.permute.xlu1 %v13171_v22 }
 0x2ff   : > { %2625 = vperm.xlu1 %8602, %v2363_v7  }
 0x302   : > { %8718 = vset.pattern.permute.xlu0 %v13269_v9 }
 0x303   : > { %8719 = vset.pattern.permute.xlu1 %v13269_v9 }
 0x317   : > { %v8401_v20 = vpop.permute.xlu0 %8400  ;;  %v10509_v42 = vpop.permute.xlu1 %8405 }
 0x318   : > { %v8403_v40 = vunpack.i.h.bf16 %v8401_v20  ;;  %v8402_v51 = vunpack.i.l.bf16 %v8401_v20  ;;  %v8408_v5 = vunpack.i.h.bf16 %v10509_v42  ;;  %v8407_v26 = vunpack.i.l.bf16 %v10509_v42 }
 0x31b   : > { %v10515_v0 = vpop.permute.xlu0 %8410  ;;  %v10517_v21 = vpop.permute.xlu1 %8415 }
 0x31c   : > { %v8413_v34 = vunpack.i.h.bf16 %v10515_v0  ;;  %v8412_v27 = vunpack.i.l.bf16 %v10515_v0  ;;  %v8418_v55 = vunpack.i.h.bf16 %v10517_v21  ;;  %v8417_v14 = vunpack.i.l.bf16 %v10517_v21 }
 0x31f   : > { %v10520_v60 = vpop.permute.xlu0 %8420  ;;  %v10522_v24 = vpop.permute.xlu1 %8430 }
 0x320   : > { %v8433_v8 = vunpack.i.h.bf16 %v10522_v24  ;;  %v8432_v33 = vunpack.i.l.bf16 %v10522_v24  ;;  %v8423_v4 = vunpack.i.h.bf16 %v10520_v60  ;;  %v8422_v32 = vunpack.i.l.bf16 %v10520_v60 }
 0x322   : > { %v2052_v59 = vsel %vm873_vm1, %v8407_v26, %v8432_v33  ;;  %v2053_v41 = vsel %vm873_vm1, %v8432_v33, %v8433_v8 }
 0x323   : > { %v10525_v58 = vpop.permute.xlu0 %8425  ;;  %v10527_v57 = vpop.permute.xlu1 %8440 }
 0x324   : > { %v8427_v16 = vunpack.i.l.bf16 %v10525_v58  ;;  %v8428_v25 = vunpack.i.h.bf16 %v10525_v58  ;;  %v8442_v63 = vunpack.i.l.bf16 %v10527_v57 }
 0x326   : > { %v2004_v45 = vsel %vm13270_vm7, %v8402_v51, %v8427_v16  ;;  %v2005_v10 = vsel %vm13272_vm14, %v8427_v16, %v8428_v25  ;;  %v10593_v51 = vsel %vm955_vm3, %v8417_v14, %v8442_v63  ;;  %vm13276_vm7 = vmmov %vm13271_vm6 }
 0x327   : > { %v10530_v31 = vpop.permute.xlu0 %8435  ;;  %v10532_v56 = vpop.permute.xlu1 %8450  ;;  %vm13282_vm14 = vmmov %vm13271_vm6 }
 0x328   : > { %v8438_v53 = vunpack.i.h.bf16 %v10530_v31  ;;  %v8437_v35 = vunpack.i.l.bf16 %v10530_v31  ;;  %v8453_v33 = vunpack.i.h.bf16 %v10532_v56 }
 0x32a   : > { %v2101_v14 = vsel %vm914_vm2, %v8437_v35, %v8438_v53 }
 0x32b   : > { %v10534_v19 = vpop.permute.xlu0 %8445  ;;  %v10536_v43 = vpop.permute.xlu1 %8455 }
 0x32c   : > { %v8458_v54 = vunpack.i.h.bf16 %v10536_v43  ;;  %v8457_v62 = vunpack.i.l.bf16 %v10536_v43  ;;  %v8448_v26 = vunpack.i.h.bf16 %v10534_v19 }
 0x32f   : > { %v10538_v6 = vpop.permute.xlu0 %8460  ;;  %v10540_v1 = vpop.permute.xlu1 %8465 }
 0x330   : > { %v13174_v21 = vunpack.i.h.bf16 %v10540_v1  ;;  %v13277_v44 = vunpack.i.h.bf16 %v10540_v1 }
 0x333   : > { %v10542_v11 = vpop.permute.xlu0 %8470  ;;  %v10544_v47 = vpop.permute.xlu1 %8475 }
 0x337   : > { %v10546_v17 = vpop.permute.xlu0 %8480  ;;  %v10548_v28 = vpop.permute.xlu1 %8490 }
 0x338   : > { %v8493_v29 = vunpack.i.h.bf16 %v10548_v28  ;;  %v8492_v3 = vunpack.i.l.bf16 %v10548_v28 }
 0x33a   : > { %v2057_v50 = vsel %vm873_vm1, %v8492_v3, %v8493_v29  ;;  %v2056_v42 = vsel %vm873_vm1, %v8408_v5, %v8492_v3  ;;  %v8452_v5 = vunpack.i.l.bf16 %v10532_v56  ;;  %v8447_v3 = vunpack.i.l.bf16 %v10534_v19 }
 0x33b   : > { %v8486_v15 = vpop.permute.xlu0 %8485  ;;  %v10562_v12 = vpop.permute.xlu1 %8500  ;;  %v7667_v58 = vpack.c.bf16 %v2057_v50, %v2053_v41 }
 0x33c   : > { %v8488_v37 = vunpack.i.h.bf16 %v8486_v15  ;;  %v8487_v13 = vunpack.i.l.bf16 %v8486_v15  ;;  %v8503_v7 = vunpack.i.h.bf16 %v10562_v12  ;;  %v8502_v0 = vunpack.i.l.bf16 %v10562_v12 }
 0x33d   : > { %v2196_v22 = vsel %vm996_vm5, %v8422_v32, %v8447_v3  ;;  %v2197_v32 = vsel %vm996_vm5, %v8447_v3, %v8448_v26 }
 0x33e   : > { %v2008_v30 = vsel %vm13271_vm6, %v8403_v40, %v8487_v13  ;;  %v2009_v38 = vsel %vm13273_vm9, %v8487_v13, %v8488_v37  ;;  %v8443_v40 = vunpack.i.h.bf16 %v10527_v57  ;;  %vm13283_vm9 = vmmov %vm13271_vm6 }
 0x33f   : > { %v10580_v46 = vpop.permute.xlu0 %8495  ;;  %v10582_v48 = vpop.permute.xlu1 %8510  ;;  %v7663_v52 = vpack.c.bf16 %v2009_v38, %v2005_v10  ;;  %v7665_v61 = vpack.c.bf16 %v2008_v30, %v2004_v45  ;;  %v2006_v45 = vsel %vm13274_vm10, %v8428_v25, %v8457_v62  ;;  %v7669_v10 = vpack.c.bf16 %v2056_v42, %v2052_v59  ;;  %vm13284_vm10 = vmmov %vm13271_vm6 }
 0x340   : > { %v8498_v18 = vunpack.i.h.bf16 %v10580_v46  ;;  %v8497_v20 = vunpack.i.l.bf16 %v10580_v46  ;;  %v2100_v59 = vsel %vm914_vm2, %v8412_v27, %v8437_v35  ;;  %v2245_v27 = vsel %vm1037_vm11, %v8452_v5, %v8453_v33 }
 0x341   : > { %7664 = vmatprep.subr.bf16.mxu1 %v7663_v52  ;;  %v2007_v52 = vsel %vm13275_vm15, %v8457_v62, %v8458_v54  ;;  %v8463_v35 = vunpack.i.h.bf16 %v10538_v6  ;;  %vm13285_vm15 = vmmov %vm13271_vm6 }
 0x342   : > { %7666 = vmatpush1.bf16.msra.mxu1 %v7665_v61  ;;  %v2105_v16 = vsel %vm914_vm2, %v8497_v20, %v8498_v18  ;;  %v2104_v38 = vsel %vm914_vm2, %v8413_v34, %v8497_v20  ;;  %v2153_v61 = vsel %vm955_vm3, %v8502_v0, %v8503_v7 }
 0x343   : > { %v10602_v15 = vpop.permute.xlu0 %8505  ;;  %v10604_v13 = vpop.permute.xlu1 %8515  ;;  %7668 = vmatprep.subr.bf16.mxu1 %v7667_v58  ;;  %v7671_v50 = vpack.c.bf16 %v2105_v16, %v2101_v14  ;;  %v2149_v14 = vsel %vm955_vm3, %v8442_v63, %v8443_v40  ;;  %v8512_v63 = vunpack.i.l.bf16 %v10582_v48 }
 0x344   : > { %v8518_v41 = vunpack.i.h.bf16 %v10604_v13  ;;  %v8517_v30 = vunpack.i.l.bf16 %v10604_v13  ;;  %v8508_v58 = vunpack.i.h.bf16 %v10602_v15  ;;  %v8507_v25 = vunpack.i.l.bf16 %v10602_v15 }
 0x346   : > { %v2010_v36 = vsel %vm13276_vm7, %v8488_v37, %v8517_v30  ;;  %7670 = vmatpush1.bf16.msra.mxu1 %v7669_v10  ;;  %v2011_v34 = vsel %vm13271_vm6, %v8517_v30, %v8518_v41  ;;  %v2152_v37 = vsel %vm955_vm3, %v8418_v55, %v8502_v0  ;;  %v7673_v10 = vpack.c.bf16 %v2104_v38, %v2100_v59  ;;  %vm13286_vm7 = vmmov %vm13271_vm6 }
 0x347   : > { %v10626_v20 = vpop.permute.xlu0 %8525  ;;  %v8521_v62 = vpop.permute.xlu1 %8520  ;;  %7672 = vmatprep.subr.bf16.mxu1 %v7671_v50  ;;  %v7699_v42 = vpack.c.bf16 %v2011_v34, %v2007_v52  ;;  %v7701_v16 = vpack.c.bf16 %v2010_v36, %v2006_v45  ;;  %v8462_v36 = vunpack.i.l.bf16 %v10538_v6  ;;  %v7675_v45 = vpack.c.bf16 %v2153_v61, %v2149_v14 }
 0x348   : > { %v8513_v55 = vunpack.i.h.bf16 %v10582_v48  ;;  %v2201_v0 = vsel %vm996_vm5, %v8507_v25, %v8508_v58  ;;  %v2200_v30 = vsel %vm996_vm5, %v8423_v4, %v8507_v25  ;;  %v8523_v38 = vunpack.i.h.bf16 %v8521_v62 }
 0x349   : > { %7700 = vmatprep.subr.bf16.mxu0 %v7699_v42  ;;  %v8522_v50 = vunpack.i.l.bf16 %v8521_v62  ;;  %v7677_v61 = vpack.c.bf16 %v2152_v37, %v10593_v51  ;;  %v2054_v60 = vsel %vm873_vm1, %v8433_v8, %v8462_v36  ;;  %v8467_v4 = vunpack.i.l.bf16 %v10540_v1 }
 0x34a   : > { %7674 = vmatpush1.bf16.msra.mxu1 %v7673_v10  ;;  %7702 = vmatpush1.bf16.msra.mxu0 %v7701_v16  ;;  %v7679_v25 = vpack.c.bf16 %v2201_v0, %v2197_v32  ;;  %v2055_v62 = vsel %vm873_vm1, %v8462_v36, %v8463_v35  ;;  %v8528_v51 = vunpack.i.h.bf16 %v10626_v20  ;;  %v8527_v14 = vunpack.i.l.bf16 %v10626_v20 }
 0x34b   : > { %v10654_v52 = vpop.permute.xlu0 %8530  ;;  %v10656_v3 = vpop.permute.xlu1 %8535  ;;  %7676 = vmatprep.subr.bf16.mxu1 %v7675_v45  ;;  %v2249_v24 = vsel %vm1037_vm11, %v8512_v63, %v8513_v55  ;;  %v2244_v8 = vsel %vm1037_vm11, %v8522_v50, %v8452_v5  ;;  %v2248_v10 = vsel %vm1037_vm11, %v8523_v38, %v8512_v63  ;;  %v8473_v50 = vunpack.i.h.bf16 %v10542_v11 }
 0x34c   : > { %v8533_v34 = vunpack.i.h.bf16 %v10654_v52  ;;  %v8532_v59 = vunpack.i.l.bf16 %v10654_v52  ;;  %v13173_v42 = vunpack.i.h.bf16 %v10656_v3  ;;  %v8537_v16 = vunpack.i.l.bf16 %v10656_v3 }
 0x34d   : > { %v7683_v38 = vpack.c.bf16 %v2249_v24, %v2245_v27  ;;  %v7685_v24 = vpack.c.bf16 %v2248_v10, %v2244_v8  ;;  %v2102_v46 = vsel %vm914_vm2, %v8438_v53, %v8467_v4 }
 0x34e   : > { %v2058_v37 = vsel %vm873_vm1, %v8493_v29, %v8532_v59  ;;  %7678 = vmatpush1.bf16.msra.mxu1 %v7677_v61  ;;  %v2059_v28 = vsel %vm873_vm1, %v8532_v59, %v8533_v34  ;;  %v7681_v29 = vpack.c.bf16 %v2200_v30, %v2196_v22  ;;  %v2107_v5 = vsel %vm914_vm2, %v8537_v16, %v13173_v42 }
 0x34f   : > { %v10682_v36 = vpop.permute.xlu0 %8545  ;;  %v10684_v45 = vpop.permute.xlu1 %8540  ;;  %7680 = vmatprep.subr.bf16.mxu1 %v7679_v25  ;;  %v7705_v61 = vpack.c.bf16 %v2058_v37, %v2054_v60  ;;  %v7703_v63 = vpack.c.bf16 %v2059_v28, %v2055_v62  ;;  %v2103_v25 = vsel %vm914_vm2, %v8467_v4, %v13174_v21  ;;  %v2293_v22 = vsel %vm1078_vm12, %v8527_v14, %v8528_v51 }
 0x350   : > { %v8548_v32 = vunpack.i.h.bf16 %v10682_v36  ;;  %v8547_v0 = vunpack.i.l.bf16 %v10682_v36  ;;  %v8472_v59 = vunpack.i.l.bf16 %v10542_v11  ;;  %v2106_v27 = vsel %vm914_vm2, %v8498_v18, %v8537_v16 }
 0x351   : > { %7704 = vmatprep.subr.bf16.mxu0 %v7703_v63  ;;  %v7707_v37 = vpack.c.bf16 %v2107_v5, %v2103_v25  ;;  %v8478_v16 = vunpack.i.h.bf16 %v10544_v47  ;;  %v8477_v5 = vunpack.i.l.bf16 %v10544_v47  ;;  %v7709_v10 = vpack.c.bf16 %v2106_v27, %v2102_v46 }
 0x352   : > { %7682 = vmatpush1.bf16.msra.mxu1 %v7681_v29  ;;  %v2297_v30 = vsel %vm1078_vm12, %v8547_v0, %v8548_v32  ;;  %7706 = vmatpush1.bf16.msra.mxu0 %v7705_v61  ;;  %v2150_v61 = vsel %vm955_vm3, %v8443_v40, %v8472_v59  ;;  %v2151_v53 = vsel %vm955_vm3, %v8472_v59, %v8473_v50  ;;  %v8483_v25 = vunpack.i.h.bf16 %v10546_v17 }
 0x353   : > { %v10708_v60 = vpop.permute.xlu0 %8550  ;;  %v10710_v62 = vpop.permute.xlu1 %8560  ;;  %7684 = vmatprep.subr.bf16.mxu1 %v7683_v38  ;;  %7708 = vmatprep.subr.bf16.mxu0 %v7707_v37  ;;  %v7687_v18 = vpack.c.bf16 %v2297_v30, %v2293_v22  ;;  %v2199_v59 = vsel %vm996_vm5, %v8477_v5, %v8478_v16  ;;  %v8482_v27 = vunpack.i.l.bf16 %v10546_v17  ;;  %v2198_v15 = vsel %vm996_vm5, %v8448_v26, %v8477_v5 }
 0x354   : > { %v8553_v28 = vunpack.i.h.bf16 %v10708_v60  ;;  %v8552_v29 = vunpack.i.l.bf16 %v10708_v60  ;;  %v8563_v42 = vunpack.i.h.bf16 %v10710_v62  ;;  %v8562_v21 = vunpack.i.l.bf16 %v10710_v62 }
 0x355   : > { %v2246_v19 = vsel %vm1037_vm11, %v8453_v33, %v8482_v27  ;;  %v7738_v23 = vpack.c.bf16 %v8533_v34, %v8463_v35 }
 0x356   : > { %v2154_v8 = vsel %vm955_vm3, %v8503_v7, %v8552_v29  ;;  %7686 = vmatpush1.bf16.msra.mxu1 %v7685_v24  ;;  %v2155_v12 = vsel %vm955_vm3, %v8552_v29, %v8553_v28  ;;  %7710 = vmatpush1.bf16.msra.mxu0 %v7709_v10  ;;  %v2203_v57 = vsel %vm996_vm5, %v8562_v21, %v8563_v42 }
 0x357   : > { %v8556_v63 = vpop.permute.xlu0 %8555  ;;  %v10727_v31 = vpop.permute.xlu1 %8565  ;;  %7688 = vmatprep.subr.bf16.mxu1 %v7687_v18  ;;  %v7713_v38 = vpack.c.bf16 %v2154_v8, %v2150_v61  ;;  %v7711_v40 = vpack.c.bf16 %v2155_v12, %v2151_v53  ;;  %v2202_v37 = vsel %vm996_vm5, %v8508_v58, %v8562_v21  ;;  %v7715_v46 = vpack.c.bf16 %v2203_v57, %v2199_v59 }
 0x358   : > { %v8558_v7 = vunpack.i.h.bf16 %v8556_v63  ;;  %v8557_v4 = vunpack.i.l.bf16 %v8556_v63  ;;  %v8543_v58 = vunpack.i.h.bf16 %v10684_v45  ;;  %v8542_v21 = vunpack.i.l.bf16 %v10684_v45 }
 0x359   : > { %7712 = vmatprep.subr.bf16.mxu0 %v7711_v40  ;;  %v8568_v61 = vunpack.i.h.bf16 %v10727_v31  ;;  %v8567_v63 = vunpack.i.l.bf16 %v10727_v31  ;;  %v7717_v12 = vpack.c.bf16 %v2202_v37, %v2198_v15  ;;  %v7747_v6 = vpack.c.bf16 %v8563_v42, %v8478_v16 }
 0x35a   : > { %v2292_v22 = vsel %vm1078_vm12, %v8557_v4, %v8527_v14  ;;  %v2296_v30 = vsel %vm1078_vm12, %v8558_v7, %v8547_v0  ;;  %7714 = vmatpush1.bf16.msra.mxu0 %v7713_v38  ;;  %v2247_v7 = vsel %vm1037_vm11, %v8482_v27, %v8483_v25  ;;  %v2295_v57 = vsel %vm1078_vm12, %v8542_v21, %v8543_v58 }
 0x35b   : > { %v10748_v24 = vpop.permute.xlu0 %8570  ;;  %v10750_v29 = vpop.permute.xlu1 %8580  ;;  %v7689_v18 = vpack.c.bf16 %v2296_v30, %v2292_v22  ;;  %7716 = vmatprep.subr.bf16.mxu0 %v7715_v46  ;;  %v2341_v40 = vsel %vm1119_vm8, %v8567_v63, %v8568_v61  ;;  %v2294_v15 = vsel %vm1078_vm12, %v8528_v51, %v8542_v21 }
 0x35c   : > { %v8573_v14 = vunpack.i.h.bf16 %v10748_v24  ;;  %v8572_v0 = vunpack.i.l.bf16 %v10748_v24  ;;  %v8583_v8 = vunpack.i.h.bf16 %v10750_v29  ;;  %v8582_v10 = vunpack.i.l.bf16 %v10750_v29 }
 0x35d   : > { %7690 = vmatpush1.bf16.msra.mxu1 %v7689_v18 }
 0x35e   : > { %v2250_v53 = vsel %vm1037_vm11, %v8513_v55, %v8572_v0  ;;  %v2251_v31 = vsel %vm1037_vm11, %v8572_v0, %v8573_v14  ;;  %7718 = vmatpush1.bf16.msra.mxu0 %v7717_v12  ;;  %v2299_v56 = vsel %vm1078_vm12, %v8582_v10, %v8583_v8  ;;  %v2298_v38 = vsel %vm1078_vm12, %v8548_v32, %v8582_v10  ;;  %vm13281_vm12 = vmmov %vm13271_vm6 }
 0x35f   : > { %v10769_v26 = vpop.permute.xlu0 %8575  ;;  %v8586_v5 = vpop.permute.xlu1 %8585  ;;  %v7721_v55 = vpack.c.bf16 %v2250_v53, %v2246_v19  ;;  %v7719_v33 = vpack.c.bf16 %v2251_v31, %v2247_v7  ;;  %v7723_v46 = vpack.c.bf16 %v2299_v56, %v2295_v57  ;;  %v7735_v56 = vpack.c.bf16 %v8518_v41, %v8458_v54 }
 0x360   : > { %v8588_v48 = vunpack.i.h.bf16 %v8586_v5  ;;  %v8587_v4 = vunpack.i.l.bf16 %v8586_v5  ;;  %v8578_v30 = vunpack.i.h.bf16 %v10769_v26  ;;  %v8577_v59 = vunpack.i.l.bf16 %v10769_v26 }
 0x361   : > { %7720 = vmatprep.subr.bf16.mxu0 %v7719_v33  ;;  %v7725_v5 = vpack.c.bf16 %v2298_v38, %v2294_v15  ;;  %v7750_v1 = vpack.c.bf16 %v8573_v14, %v8483_v25  ;;  %v7753_v11 = vpack.c.bf16 %v8583_v8, %v8543_v58  ;;  %vm2667_vm11 = vcmask 728576  }
 0x362   : > { %v2345_v22 = vsel %vm1119_vm8, %v8587_v4, %v8588_v48  ;;  %7722 = vmatpush1.bf16.msra.mxu0 %v7721_v55  ;;  %v2342_v7 = vsel %vm1119_vm8, %v8568_v61, %v8577_v59  ;;  %v2343_v55 = vsel %vm1119_vm8, %v8577_v59, %v8578_v30  ;;  %v2361_v61 = vld [vmem:[%s13267_s21 + $0x18] sm:$0xff] }
 0x363   : > { %v8591_v27 = vpop.permute.xlu0 %8590  ;;  %v8596_v37 = vpop.permute.xlu1 %8595  ;;  %v7691_v18 = vpack.c.bf16 %v2345_v22, %v2341_v40  ;;  %7724 = vmatprep.subr.bf16.mxu0 %v7723_v46 }
 0x364   : > { %v8593_v36 = vunpack.i.h.bf16 %v8591_v27  ;;  %v8592_v32 = vunpack.i.l.bf16 %v8591_v27  ;;  %v8598_v0 = vunpack.i.h.bf16 %v8596_v37  ;;  %v8597_v10 = vunpack.i.l.bf16 %v8596_v37 }
 0x365   : > { %7692 = vmatprep.subr.bf16.mxu1 %v7691_v18 }
 0x366   : > { %v2346_v53 = vsel %vm1119_vm8, %v8588_v48, %v8592_v32  ;;  %v2340_v12 = vsel %vm1119_vm8, %v8597_v10, %v8567_v63  ;;  %v2344_v19 = vsel %vm1119_vm8, %v8598_v0, %v8587_v4  ;;  %v2347_v20 = vsel %vm1119_vm8, %v8592_v32, %v8593_v36  ;;  %7726 = vmatpush1.bf16.msra.mxu0 %v7725_v5  ;;  %v2358_v63 = vld [vmem:[%s13267_s21] sm:$0xff]  ;;  %v2360_v4 = vld [vmem:[%s13267_s21 + $0x10] sm:$0xff]  ;;  %s13184_s21 = smov 116  }
 0x367   : > { %v7693_v31 = vpack.c.bf16 %v2344_v19, %v2340_v12  ;;  %v7727_v51 = vpack.c.bf16 %v2347_v20, %v2343_v55  ;;  %v7729_v21 = vpack.c.bf16 %v2346_v53, %v2342_v7  ;;  %v9328_v48 = vmov 0.0|0.0  }
 0x368   : > { %v7756_v47 = vpack.c.bf16 %v8593_v36, %v8578_v30  ;;  %vm2660_vm8 = vcmask 523264  }
 0x369   : > { %7694 = vmatpush1.bf16.msra.mxu1 %v7693_v31  ;;  %7728 = vmatprep.subr.bf16.mxu0 %v7727_v51 }
 0x36a   : > { %7731 = vmatprep.subr.bf16.mxu1 %v9328_v48  ;;  %7730 = vmatpush1.bf16.msra.mxu0 %v7729_v21 }
 0x36c   : > { %2446 = vmatmul.mubr.f32.vlgmr.msra.gmra.mrb[6].mxu1 %v2358_v63 }
 0x36d   : > { %7733 = vmatpush1.bf16.msra.mxu1 %v7732_v49  ;;  %7163 = vmatprep.mubr.msk.f32.mxu1 %vm2374_vm0, %v2361_v61  ;;  %v13278_v49 = vunpack.i.h.bf16 %v10656_v3 }
 0x36e   : > { %7734 = vmatprep.subr.bf16.mxu1 %v9328_v48  ;;  %2523 = vmatmul.mubr.f32.vlgmr.msra.gmra.mrb[4].mxu0 %v2358_v63 }
 0x36f   : > { %7165 = vmatprep.mubr.msk.f32.mxu0 %vm2374_vm0, %v2361_v61  ;;  %v7741_v43 = vpack.c.bf16 %v13278_v49, %v13277_v44  ;;  %v2808_v49 = vld [vmem:[%s13279_s6 + $0x10] sm:$0xff] }
 0x370   : > { %2452 = vmatmul.mubr.f32.gmra.mrb[8].mxu1 %v2360_v4 }
 0x371   : > { %7736 = vmatpush1.bf16.msra.mxu1 %v7735_v56  ;;  %7166 = vmatprep.mubr.msk.f32.mxu1 %vm2374_vm0, %v10490_v2  ;;  %v7744_v2 = vpack.c.bf16 %v8553_v28, %v8473_v50  ;;  %v2809_v56 = vld [vmem:[%s13279_s6 + $0x18] sm:$0xff] }
 0x372   : > { %7737 = vmatprep.subr.bf16.mxu1 %v9328_v48  ;;  %2529 = vmatmul.mubr.f32.gmra.mrb[6].mxu0 %v2360_v4 }
 0x374   : > { %v10857_v17 = vpop.permute.xlu1 %2621  ;;  %v10859_v54 = vpop.permute.xlu0 %2366 }
 0x375   : > { %7739 = vmatpush1.bf16.msra.mxu1 %v7738_v23  ;;  %v2806_v23 = vld [vmem:[%s13279_s6] sm:$0xff] }
 0x376   : > { %7740 = vmatprep.subr.bf16.mxu1 %v9328_v48 }
 0x379   : > { %7742 = vmatpush1.bf16.msra.mxu1 %v7741_v43  ;;  %v10861_v41 = vpop.permute.xlu1 %2371  ;;  %v10865_v45 = vpop.permute.xlu0 %2639  ;;  %v2811_v43 = vld [vmem:[%s13279_s6 + $0x28] sm:$0xff] }
 0x37a   : > { %7743 = vmatprep.subr.bf16.mxu1 %v9328_v48 }
 0x37d   : > { %7745 = vmatpush1.bf16.msra.mxu1 %v7744_v2  ;;  %v10889_v10 = vpop.permute.xlu0 %2643  ;;  %v2813_v2 = vld [vmem:[%s13279_s6 + $0x38] sm:$0xff] }
 0x37e   : > { %7746 = vmatprep.subr.bf16.mxu1 %v9328_v48  ;;  %v10873_v26 = vpop.permute.xlu1 %2625 }
 0x381   : > { %7748 = vmatpush1.bf16.msra.mxu1 %v7747_v6  ;;  %v7760_v6 = vpack.c.bf16 %v2808_v49, %v2806_v23 }
 0x382   : > { %7749 = vmatprep.subr.bf16.mxu1 %v9328_v48 }
 0x385   : > { %7751 = vmatpush1.bf16.msra.mxu1 %v7750_v1  ;;  %v7762_v1 = vpack.c.bf16 %v2813_v2, %v2811_v43  ;;  %v2834_v43 = vld [vmem:[%s13279_s6 + $0xe0] sm:$0xff]  ;;  %v2836_v2 = vld [vmem:[%s13279_s6 + $0xf0] sm:$0xff] }
 0x386   : > { %7752 = vmatprep.subr.bf16.mxu1 %v9328_v48 }
 0x389   : > { %7754 = vmatpush1.bf16.msra.mxu1 %v7753_v11  ;;  %v2810_v11 = vld [vmem:[%s13279_s6 + $0x20] sm:$0xff] }
 0x38a   : > { %7755 = vmatprep.subr.bf16.mxu1 %v9328_v48 }
 0x38d   : > { %7757 = vmatpush1.bf16.msra.mxu1 %v7756_v47  ;;  %v2812_v47 = vld [vmem:[%s13279_s6 + $0x30] sm:$0xff] }
 0x390   : > { %2600 = vmatmul.mubr.f32.vlgmr.msra.gmra.mrb[10].mxu1 %v2358_v63 }
 0x391   : > { %7167 = vmatprep.mubr.msk.f32.mxu1 %vm2374_vm0, %v2361_v61 }
 0x394   : > { %2605 = vmatmul.mubr.f32.gmra.mrb[12].mxu1 %v2360_v4  ;;  %v2807_v4 = vld [vmem:[%s13279_s6 + $0x8] sm:$0xff] }
 0x395   : > { %v7758_v44 = vpack.c.bf16 %v2809_v56, %v2807_v4 }
 0x397   : > { %7759 = vmatprep.subr.bf16.mxu0 %v7758_v44 }
 0x398   : > { %7761 = vmatpush1.bf16.msra.mxu0 %v7760_v6 }
 0x399   : > { %7763 = vmatprep.subr.bf16.mxu0 %v7762_v1  ;;  %v2841_v1 = vld [vmem:[%s13279_s6 + $0x118] sm:$0xff] }
 0x43f   : > { %v2447_v13 = vpop.f32.mrb[6].mxu1 }
 0x440   : > { %v2448_v35 = vadd.f32 %v2447_v13, %v10859_v54  ;;  %v2449_v52 = vpop.f32.mrb[7].mxu1  ;;  %v2815_v13 = vld [vmem:[%s13279_s6 + $0x48] sm:$0xff] }
 0x441   : > { %v2450_v3 = vadd.f32 %v2449_v52, %v10859_v54  ;;  %v2524_v42 = vpop.f32.mrb[4].mxu0  ;;  %v7764_v52 = vpack.c.bf16 %v2812_v47, %v2810_v11  ;;  %v7788_v47 = vpack.c.bf16 %v2836_v2, %v2834_v43 }
 0x442   : > { %v2610_v34 = vmax.f32 %v2448_v35, 0.0  ;;  %v2525_v60 = vadd.f32 %v2524_v42, %v10859_v54  ;;  %v2526_v62 = vpop.f32.mrb[5].mxu0  ;;  %v2817_v35 = vld [vmem:[%s13279_s6 + $0x58] sm:$0xff]  ;;  %v2816_v42 = vld [vmem:[%s13279_s6 + $0x50] sm:$0xff] }
 0x443   : > { %v2611_v50 = vmax.f32 %v2450_v3, 0.0  ;;  %v2453_v28 = vpop.f32.mrb[8].mxu1  ;;  %v2527_v25 = vadd.f32 %v2526_v62, %v10859_v54  ;;  %v7766_v3 = vpack.c.bf16 %v2817_v35, %v2815_v13  ;;  %7765 = vmatpush1.bf16.msra.mxu0 %v7764_v52  ;;  %v13280_v13 = vmov 0.0   ;;  %v2838_v35 = vld [vmem:[%s13279_s6 + $0x100] sm:$0xff]  ;;  %v2840_v52 = vld [vmem:[%s13279_s6 + $0x110] sm:$0xff] }
 0x444   : > { %v2628_v16 = vmul.f32 %v10857_v17, %v2610_v34  ;;  %v2454_v24 = vadd.f32 %v2453_v28, %v10861_v41  ;;  %v2455_v29 = vpop.f32.mrb[9].mxu1  ;;  %v2612_v8 = vmax.f32 %v2525_v60, 0.0  ;;  %v2814_v34 = vld [vmem:[%s13279_s6 + $0x40] sm:$0xff]  ;;  %v2821_v60 = vld [vmem:[%s13279_s6 + $0x78] sm:$0xff] }
 0x445   : > { %v2629_v14 = vmul.f32 %v10857_v17, %v2611_v50  ;;  %v2456_v58 = vadd.f32 %v2455_v29, %v10861_v41  ;;  %v2613_v33 = vmax.f32 %v2527_v25, 0.0  ;;  %v2530_v40 = vpop.f32.mrb[6].mxu0  ;;  %v2819_v50 = vld [vmem:[%s13279_s6 + $0x68] sm:$0xff]  ;;  %v7768_v62 = vpack.c.bf16 %v2816_v42, %v2814_v34  ;;  %7767 = vmatprep.subr.bf16.mxu0 %v7766_v3  ;;  %v2820_v25 = vld [vmem:[%s13279_s6 + $0x70] sm:$0xff]  ;;  %v2825_v29 = vld [vmem:[%s13279_s6 + $0x98] sm:$0xff] }
 0x446   : > { %v10876_v38 = vadd.f32 %v10865_v45, %v2628_v16  ;;  %v2615_v57 = vmax.f32 %v2454_v24, 0.0  ;;  %v2630_v22 = vmul.f32 %v10857_v17, %v2612_v8  ;;  %v2531_v27 = vadd.f32 %v2530_v40, %v10861_v41  ;;  %v2532_v37 = vpop.f32.mrb[7].mxu0  ;;  %v2818_v16 = vld [vmem:[%s13279_s6 + $0x60] sm:$0xff]  ;;  %v2823_v24 = vld [vmem:[%s13279_s6 + $0x88] sm:$0xff]  ;;  %v2829_v40 = vld [vmem:[%s13279_s6 + $0xb8] sm:$0xff] }
 0x447   : > { %v10880_v30 = vadd.f32 %v10865_v45, %v2629_v14  ;;  %v2616_v59 = vmax.f32 %v2456_v58, 0.0  ;;  %v2631_v46 = vmul.f32 %v10857_v17, %v2613_v33  ;;  %v2533_v18 = vadd.f32 %v2532_v37, %v10861_v41  ;;  %7769 = vmatpush1.bf16.msra.mxu0 %v7768_v62  ;;  %v2822_v58 = vld [vmem:[%s13279_s6 + $0x80] sm:$0xff]  ;;  %v2824_v33 = vld [vmem:[%s13279_s6 + $0x90] sm:$0xff]  ;;  %v2845_v34 = vld [vmem:[%s13279_s6 + $0x138] sm:$0xff] }
 0x448   : > { %v2633_v36 = vmul.f32 %v10873_v26, %v2615_v57  ;;  %v10887_v32 = vadd.f32 %v10865_v45, %v2630_v22  ;;  %v2617_v0 = vmax.f32 %v2531_v27, 0.0  ;;  %v7770_v28 = vpack.c.bf16 %v2821_v60, %v2819_v50  ;;  %v2827_v57 = vld [vmem:[%s13279_s6 + $0xa8] sm:$0xff]  ;;  %v2826_v27 = vld [vmem:[%s13279_s6 + $0xa0] sm:$0xff]  ;;  %v2828_v37 = vld [vmem:[%s13279_s6 + $0xb0] sm:$0xff] }
 0x449   : > { %v2634_v15 = vmul.f32 %v10873_v26, %v2616_v59  ;;  %v10893_v53 = vadd.f32 %v10865_v45, %v2631_v46  ;;  %v2618_v12 = vmax.f32 %v2533_v18, 0.0  ;;  %v7772_v14 = vpack.c.bf16 %v2820_v25, %v2818_v16  ;;  %v2831_v46 = vld [vmem:[%s13279_s6 + $0xc8] sm:$0xff]  ;;  %v2833_v18 = vld [vmem:[%s13279_s6 + $0xd8] sm:$0xff]  ;;  %v2844_v60 = vld [vmem:[%s13279_s6 + $0x130] sm:$0xff] }
 0x44a   : > { %v10896_v19 = vadd.f32 %v10889_v10, %v2633_v36  ;;  %v2635_v5 = vmul.f32 %v10873_v26, %v2617_v0  ;;  %v8603_v31 = vpack.i.bf16 %v10887_v32, %v10880_v30  ;;  %7771 = vmatprep.subr.bf16.mxu0 %v7770_v28  ;;  %v7774_v8 = vpack.c.bf16 %v2825_v29, %v2823_v24  ;;  %v2847_v62 = vld [vmem:[%s13279_s6 + $0x148] sm:$0xff]  ;;  %v2849_v28 = vld [vmem:[%s13279_s6 + $0x158] sm:$0xff]  ;;  %v2846_v24 = vld [vmem:[%s13279_s6 + $0x140] sm:$0xff] }
 0x44b   : > { %v10900_v7 = vadd.f32 %v10889_v10, %v2634_v15  ;;  %v2636_v55 = vmul.f32 %v10873_v26, %v2618_v12  ;;  %v8608_v20 = vpack.i.bf16 %v10876_v38, %v10893_v53  ;;  %7773 = vmatpush1.bf16.msra.mxu0 %v7772_v14  ;;  %v7776_v22 = vpack.c.bf16 %v2824_v33, %v2822_v58  ;;  %v2848_v29 = vld [vmem:[%s13279_s6 + $0x150] sm:$0xff]  ;;  %v2851_v14 = vld [vmem:[%s13279_s6 + $0x168] sm:$0xff] }
 0x44c   : > { %v10908_v51 = vadd.f32 %v10889_v10, %v2635_v5  ;;  %8604 = vrot.lane.b32.xlu1 %v8603_v31, %s13235_s26  ;;  %7775 = vmatprep.subr.bf16.mxu0 %v7774_v8  ;;  %v7778_v59 = vpack.c.bf16 %v2829_v40, %v2827_v57  ;;  %v7780_v12 = vpack.c.bf16 %v2828_v37, %v2826_v27  ;;  %v2830_v31 = vld [vmem:[%s13279_s6 + $0xc0] sm:$0xff]  ;;  %v2853_v8 = vld [vmem:[%s13279_s6 + $0x178] sm:$0xff]  ;;  %v2852_v40 = vld [vmem:[%s13279_s6 + $0x170] sm:$0xff] }
 0x44d   : > { %v10912_v21 = vadd.f32 %v10889_v10, %v2636_v55  ;;  %8609 = vrot.lane.b32.xlu0 %v8608_v20, %s13235_s26  ;;  %v7782_v5 = vpack.c.bf16 %v2833_v18, %v2831_v46  ;;  %v2832_v55 = vld [vmem:[%s13279_s6 + $0xd0] sm:$0xff]  ;;  %v7792_v42 = vpack.c.bf16 %v2840_v52, %v2838_v35  ;;  %v7798_v25 = vpack.c.bf16 %v2849_v28, %v2847_v62  ;;  %v2850_v57 = vld [vmem:[%s13279_s6 + $0x160] sm:$0xff] }
 0x44e   : > { %v8613_v63 = vpack.i.bf16 %v10908_v51, %v10900_v7  ;;  %v7784_v44 = vpack.c.bf16 %v2832_v55, %v2830_v31  ;;  %v7800_v58 = vpack.c.bf16 %v2848_v29, %v2846_v24  ;;  %v7802_v33 = vpack.c.bf16 %v2853_v8, %v2851_v14  ;;  %v2854_v46 = vld [vmem:[%s13279_s6 + $0x180] sm:$0xff]  ;;  %v2856_v18 = vld [vmem:[%s13279_s6 + $0x190] sm:$0xff] }
 0x44f   : > { %v8618_v61 = vpack.i.bf16 %v10896_v19, %v10912_v21  ;;  %7777 = vmatpush1.bf16.msra.mxu0 %v7776_v22  ;;  %v2855_v22 = vld [vmem:[%s13279_s6 + $0x188] sm:$0xff]  ;;  %v7804_v27 = vpack.c.bf16 %v2852_v40, %v2850_v57  ;;  %v2860_v31 = vld [vmem:[%s13279_s6 + $0x1b0] sm:$0xff] }
 0x450   : > { %8614 = vrot.lane.b32.xlu1 %v8613_v63, %s13235_s26  ;;  %7779 = vmatprep.subr.bf16.mxu0 %v7778_v59  ;;  %v2835_v63 = vld [vmem:[%s13279_s6 + $0xe8] sm:$0xff]  ;;  %v2857_v59 = vld [vmem:[%s13279_s6 + $0x198] sm:$0xff] }
 0x451   : > { %8619 = vrot.lane.b32.xlu0 %v8618_v61, %s13235_s26  ;;  %v7806_v37 = vpack.c.bf16 %v2857_v59, %v2855_v22 }
 0x453   : > { %7781 = vmatpush1.bf16.msra.mxu0 %v7780_v12 }
 0x454   : > { %7783 = vmatprep.subr.bf16.mxu0 %v7782_v5  ;;  %v2858_v5 = vld [vmem:[%s13279_s6 + $0x1a0] sm:$0xff] }
 0x455   : > { %v7812_v55 = vpack.c.bf16 %v2860_v31, %v2858_v5 }
 0x457   : > { %7785 = vmatpush1.bf16.msra.mxu0 %v7784_v44  ;;  %v2869_v44 = vld [vmem:[%s13279_s6 + $0x1f8] sm:$0xff] }
 0x463   : > { %v2601_v36 = vpop.f32.mrb[10].mxu1 }
 0x464   : > { %v2602_v0 = vadd.f32 %v2601_v36, %v10859_v54  ;;  %v2603_v15 = vpop.f32.mrb[11].mxu1  ;;  %v2837_v54 = vld [vmem:[%s13279_s6 + $0xf8] sm:$0xff]  ;;  %v2859_v36 = vld [vmem:[%s13279_s6 + $0x1a8] sm:$0xff] }
 0x465   : > { %v7786_v49 = vpack.c.bf16 %v2837_v54, %v2835_v63  ;;  %v7808_v15 = vpack.c.bf16 %v2856_v18, %v2854_v46  ;;  %v2865_v63 = vld [vmem:[%s13279_s6 + $0x1d8] sm:$0xff]  ;;  %v2862_v54 = vld [vmem:[%s13279_s6 + $0x1c0] sm:$0xff]  ;;  %v2872_v46 = vld [vmem:[%s13279_s6 + $0x210] sm:$0xff] }
 0x466   : > { %v2614_v20 = vmax.f32 %v2602_v0, 0.0  ;;  %v2861_v0 = vld [vmem:[%s13279_s6 + $0x1b8] sm:$0xff]  ;;  %v2875_v18 = vld [vmem:[%s13279_s6 + $0x228] sm:$0xff] }
 0x467   : > { %v2606_v61 = vpop.f32.mrb[12].mxu1  ;;  %7787 = vmatprep.subr.bf16.mxu0 %v7786_v49  ;;  %v7810_v12 = vpack.c.bf16 %v2861_v0, %v2859_v36  ;;  %v2866_v49 = vld [vmem:[%s13279_s6 + $0x1e0] sm:$0xff]  ;;  %v2877_v36 = vld [vmem:[%s13279_s6 + $0x238] sm:$0xff] }
 0x468   : > { %v2632_v4 = vmul.f32 %v10857_v17, %v2614_v20  ;;  %v2607_v56 = vadd.f32 %v2606_v61, %v10861_v41  ;;  %v2608_v23 = vpop.f32.mrb[13].mxu1  ;;  %v2839_v41 = vld [vmem:[%s13279_s6 + $0x108] sm:$0xff]  ;;  %7789 = vmatpush1.bf16.msra.mxu0 %v7788_v47 }
 0x469   : > { %v2863_v20 = vld [vmem:[%s13279_s6 + $0x1c8] sm:$0xff] }
 0x46a   : > { %v11021_v6 = vadd.f32 %v10865_v45, %v2632_v4  ;;  %v2619_v17 = vmax.f32 %v2607_v56, 0.0  ;;  %v7790_v45 = vpack.c.bf16 %v2841_v1, %v2839_v41  ;;  %v7814_v61 = vpack.c.bf16 %v2865_v63, %v2863_v20  ;;  %v2864_v4 = vld [vmem:[%s13279_s6 + $0x1d0] sm:$0xff]  ;;  %v2867_v23 = vld [vmem:[%s13279_s6 + $0x1e8] sm:$0xff] }
 0x46b   : > { %v7816_v56 = vpack.c.bf16 %v2864_v4, %v2862_v54  ;;  %v7818_v2 = vpack.c.bf16 %v2869_v44, %v2867_v23  ;;  %v2874_v4 = vld [vmem:[%s13279_s6 + $0x220] sm:$0xff] }
 0x46c   : > { %2661 = vst.msk [vmem:[#allocation4 + $0x20] sm:$0xff] %vm2660_vm8, %v11021_v6  ;;  %v2637_v11 = vmul.f32 %v10873_v26, %v2619_v17  ;;  %v2843_v26 = vld [vmem:[%s13279_s6 + $0x128] sm:$0xff]  ;;  %7791 = vmatprep.subr.bf16.mxu0 %v7790_v45  ;;  %v2868_v17 = vld [vmem:[%s13279_s6 + $0x1f0] sm:$0xff] }
 0x46d   : > { %2668 = vst.msk [vmem:[#allocation4 + $0x20] sm:$0xff] %vm2667_vm11, %v13280_v13  ;;  %v7794_v50 = vpack.c.bf16 %v2845_v34, %v2843_v26  ;;  %7793 = vmatpush1.bf16.msra.mxu0 %v7792_v42  ;;  %v7820_v47 = vpack.c.bf16 %v2868_v17, %v2866_v49 }
 0x46e   : > { %v11040_v3 = vadd.f32 %v10889_v10, %v2637_v11  ;;  %v2842_v10 = vld [vmem:[%s13279_s6 + $0x120] sm:$0xff] }
 0x46f   : > { %v7796_v16 = vpack.c.bf16 %v2844_v60, %v2842_v10  ;;  %7795 = vmatprep.subr.bf16.mxu0 %v7794_v50 }
 0x470   : > { %2666 = vst.msk [vmem:[#allocation4 + $0x48] sm:$0xff] %vm2660_vm8, %v11040_v3 }
 0x471   : > { %2669 = vst.msk [vmem:[#allocation4 + $0x48] sm:$0xff] %vm2667_vm11, %v13280_v13  ;;  %7797 = vmatpush1.bf16.msra.mxu0 %v7796_v16  ;;  %vm13287_vm11 = vmmov %vm13271_vm6 }
 0x472   : > { %7799 = vmatprep.subr.bf16.mxu0 %v7798_v25 }
 0x474   : > { %v2674_v8 = vld [vmem:[#allocation4 + $0x20] sm:$0xff] }
 0x475   : > { %7801 = vmatpush1.bf16.msra.mxu0 %v7800_v58 }
 0x476   : > { %7803 = vmatprep.subr.bf16.mxu0 %v7802_v33 }
 0x478   : > { %v2679_v14 = vld [vmem:[#allocation4 + $0x48] sm:$0xff] }
 0x479   : > { %7805 = vmatpush1.bf16.msra.mxu0 %v7804_v27 }
 0x47a   : > { %7807 = vmatprep.subr.bf16.mxu0 %v7806_v37 }
 0x47d   : > { %7809 = vmatpush1.bf16.msra.mxu0 %v7808_v15 }
 0x47e   : > { %7811 = vmatprep.subr.bf16.mxu0 %v7810_v12 }
 0x481   : > { %7813 = vmatpush1.bf16.msra.mxu0 %v7812_v55 }
 0x482   : > { %7815 = vmatprep.subr.bf16.mxu0 %v7814_v61  ;;  %v7826_v61 = vpack.c.bf16 %v2877_v36, %v2875_v18  ;;  %v2894_v18 = vld [vmem:[%s13279_s6 + $0x2c0] sm:$0xff]  ;;  %v2896_v36 = vld [vmem:[%s13279_s6 + $0x2d0] sm:$0xff] }
 0x485   : > { %7817 = vmatpush1.bf16.msra.mxu0 %v7816_v56  ;;  %v2876_v56 = vld [vmem:[%s13279_s6 + $0x230] sm:$0xff] }
 0x486   : > { %7819 = vmatprep.subr.bf16.mxu0 %v7818_v2  ;;  %v2881_v2 = vld [vmem:[%s13279_s6 + $0x258] sm:$0xff] }
 0x489   : > { %7821 = vmatpush1.bf16.msra.mxu0 %v7820_v47 }
 0x4be   : > { %v8605_v43 = vpop.permute.xlu1 %8604 }
 0x4bf   : > { %v8607_v41 = vunpack.i.h.bf16 %v8605_v43  ;;  %v8606_v1 = vunpack.i.l.bf16 %v8605_v43  ;;  %v8610_v11 = vpop.permute.xlu0 %8609  ;;  %v2879_v43 = vld [vmem:[%s13279_s6 + $0x248] sm:$0xff] }
 0x4c0   : > { %v8612_v45 = vunpack.i.h.bf16 %v8610_v11  ;;  %v8611_v35 = vunpack.i.l.bf16 %v8610_v11 }
 0x4c1   : > { %v2711_v52 = vsel %vm13281_vm12, %v8606_v1, %v8607_v41  ;;  %vm3187_vm12 = vcmask 105472  }
 0x4c2   : > { %v2739_v26 = vmax.f32 %v10880_v30, %v2711_v52  ;;  %v2710_v34 = vsel %vm13282_vm14, %v8612_v45, %v8606_v1  ;;  %v2712_v42 = vsel %vm13283_vm9, %v8607_v41, %v8611_v35  ;;  %v8615_v50 = vpop.permute.xlu1 %8614  ;;  %v7828_v41 = vpack.c.bf16 %v2876_v56, %v2874_v4  ;;  %v2880_v52 = vld [vmem:[%s13279_s6 + $0x250] sm:$0xff]  ;;  %v2902_v56 = vld [vmem:[%s13279_s6 + $0x300] sm:$0xff]  ;;  %3188 = vst.msk [vmem:[#allocation5] sm:$0xff] %vm3187_vm12, %v13280_v13 }
 0x4c3   : > { %v2728_v10 = vmax.f32 %v10876_v38, %v2710_v34  ;;  %v11135_v60 = vmax.f32 %v10887_v32, %v2712_v42  ;;  %v8617_v62 = vunpack.i.h.bf16 %v8615_v50  ;;  %v8616_v28 = vunpack.i.l.bf16 %v8615_v50  ;;  %v8620_v16 = vpop.permute.xlu0 %8619  ;;  %v2871_v38 = vld [vmem:[%s13279_s6 + $0x208] sm:$0xff]  ;;  %v2873_v32 = vld [vmem:[%s13279_s6 + $0x218] sm:$0xff]  ;;  %3189 = vst.msk [vmem:[#allocation5 + $0x10] sm:$0xff] %vm3187_vm12, %v13280_v13  ;;  %3703 = vst.msk [vmem:[#allocation6] sm:$0xff] %vm3187_vm12, %v13280_v13 }
 0x4c4   : > { %v8621_v25 = vunpack.i.l.bf16 %v8620_v16  ;;  %v7822_v58 = vpack.c.bf16 %v2873_v32, %v2871_v38  ;;  %v8622_v22 = vunpack.i.h.bf16 %v8620_v16  ;;  %v7830_v45 = vpack.c.bf16 %v2881_v2, %v2879_v43  ;;  %v2885_v34 = vld [vmem:[%s13279_s6 + $0x278] sm:$0xff]  ;;  %v2882_v16 = vld [vmem:[%s13279_s6 + $0x260] sm:$0xff]  ;;  %v2888_v38 = vld [vmem:[%s13279_s6 + $0x290] sm:$0xff]  ;;  %3704 = vst.msk [vmem:[#allocation6 + $0x10] sm:$0xff] %vm3187_vm12, %v13280_v13 }
 0x4c5   : > { %2758 = vrot.lane.b32.xlu0 %v2728_v10, %s13237_s22  ;;  %v8623_v24 = vpack.i.bf16 %v11135_v60, %v2739_v26  ;;  %v2715_v30 = vsel %vm13284_vm10, %v8616_v28, %v8617_v62  ;;  %v2891_v32 = vld [vmem:[%s13279_s6 + $0x2a8] sm:$0xff]  ;;  %v2904_v43 = vld [vmem:[%s13279_s6 + $0x310] sm:$0xff]  ;;  %3705 = vst.msk [vmem:[#allocation6 + $0x20] sm:$0xff] %vm3187_vm12, %v13280_v13  ;;  %3706 = vst.msk [vmem:[#allocation6 + $0x30] sm:$0xff] %vm3187_vm12, %v13280_v13  ;;  %vm3190_vm14 = vcmask 343272   ;;  %vm3211_vm9 = vcmask 1047656  }
 0x4c6   : > { %v2716_v29 = vsel %vm13285_vm15, %v8617_v62, %v8621_v25  ;;  %v2744_v33 = vmax.f32 %v10900_v7, %v2715_v30  ;;  %7823 = vmatprep.subr.bf16.mxu0 %v7822_v58  ;;  %v2714_v0 = vsel %vm13286_vm7, %v8622_v22, %v8616_v28  ;;  %v2892_v22 = vld [vmem:[%s13279_s6 + $0x2b0] sm:$0xff]  ;;  %v2907_v2 = vld [vmem:[%s13279_s6 + $0x328] sm:$0xff]  ;;  %3191 = vst.msk [vmem:[#allocation5 + $0x8] sm:$0xff] %vm3190_vm14, %v13280_v13  ;;  %3192 = vst.msk [vmem:[#allocation5 + $0x18] sm:$0xff] %vm3190_vm14, %v13280_v13  ;;  %vm3213_vm10 = vcmask 236544  }
 0x4c7   : > { %8624 = vrot.lane.b32.xlu1 %v8623_v24, %s13237_s22  ;;  %v11150_v57 = vmax.f32 %v10908_v51, %v2716_v29  ;;  %v2870_v51 = vld [vmem:[%s13279_s6 + $0x200] sm:$0xff]  ;;  %v11189_v23 = vmax.f32 %v10896_v19, %v2714_v0  ;;  %v2889_v24 = vld [vmem:[%s13279_s6 + $0x298] sm:$0xff]  ;;  %v2899_v0 = vld [vmem:[%s13279_s6 + $0x2e8] sm:$0xff]  ;;  %3707 = vst.msk [vmem:[#allocation6 + $0x8] sm:$0xff] %vm3190_vm14, %v13280_v13  ;;  %vm13291_vm15 = vcmask 7168   ;;  %vm13292_vm7 = vcmask 15360  }
 0x4c8   : > { %v7824_v20 = vpack.c.bf16 %v2872_v46, %v2870_v51  ;;  %3708 = vst.msk [vmem:[#allocation6 + $0x18] sm:$0xff] %vm3190_vm14, %v13280_v13  ;;  %3709 = vst.msk [vmem:[#allocation6 + $0x28] sm:$0xff] %vm3190_vm14, %v13280_v13 }
 0x4c9   : > { %2708 = vrot.lane.b32.xlu0 %v2679_v14, %s13235_s26  ;;  %v8628_v40 = vpack.i.bf16 %v11150_v57, %v2744_v33  ;;  %3710 = vst.msk [vmem:[#allocation6 + $0x38] sm:$0xff] %vm3190_vm14, %v13280_v13  ;;  %vm13293_vm14 = vcmask 195584  }
 0x4cb   : > { %2698 = vrot.lane.b32.xlu1 %v2674_v8, %s13235_s26 }
 0x4cf   : > { %8629 = vrot.lane.b32.xlu1 %v8628_v40, %s13237_s22  ;;  %v2890_v40 = vld [vmem:[%s13279_s6 + $0x2a0] sm:$0xff] }
 0x4d0   : > { %v7844_v51 = vpack.c.bf16 %v2892_v22, %v2890_v40 }
 0x537   : > { %v2759_v59 = vpop.permute.xlu0 %2758 }
 0x539   : > { %v11156_v27 = vpop.permute.xlu1 %8624 }
 0x53a   : > { %v8627_v37 = vunpack.i.h.bf16 %v11156_v27  ;;  %v8626_v7 = vunpack.i.l.bf16 %v11156_v27  ;;  %v2938_v27 = vld [vmem:[%s13279_s6 + $0x420] sm:$0xff] }
 0x53b   : > { %v11191_v44 = vpop.permute.xlu0 %2708 }
 0x53c   : > { %v2778_v15 = vsel %vm914_vm2, %v2759_v59, %v8626_v7  ;;  %v2779_v12 = vsel %vm914_vm2, %v8626_v7, %v8627_v37  ;;  %v2747_v17 = vmax.f32 %v2679_v14, %v11191_v44  ;;  %v2717_v1 = vsel %vm13287_vm11, %v8621_v25, %v11191_v44  ;;  %v2884_v25 = vld [vmem:[%s13279_s6 + $0x270] sm:$0xff]  ;;  %v2886_v14 = vld [vmem:[%s13279_s6 + $0x280] sm:$0xff]  ;;  %v2895_v59 = vld [vmem:[%s13279_s6 + $0x2c8] sm:$0xff] }
 0x53d   : > { %v2796_v5 = vmax.f32 %v2728_v10, %v2778_v15  ;;  %v11177_v31 = vpop.permute.xlu1 %2698  ;;  %v2797_v55 = vmax.f32 %v2739_v26, %v2779_v12  ;;  %v2883_v26 = vld [vmem:[%s13279_s6 + $0x268] sm:$0xff]  ;;  %v11232_v50 = vmax.f32 %v10912_v21, %v2717_v1  ;;  %v7836_v30 = vpack.c.bf16 %v2884_v25, %v2882_v16  ;;  %v2897_v7 = vld [vmem:[%s13279_s6 + $0x2d8] sm:$0xff]  ;;  %v2906_v1 = vld [vmem:[%s13279_s6 + $0x320] sm:$0xff] }
 0x53e   : > { %v2713_v63 = vsel %vm13271_vm6, %v8611_v35, %v11177_v31  ;;  %v2742_v54 = vmax.f32 %v2674_v8, %v11177_v31  ;;  %v2878_v35 = vld [vmem:[%s13279_s6 + $0x240] sm:$0xff]  ;;  %v7834_v28 = vpack.c.bf16 %v2885_v34, %v2883_v26  ;;  %v2887_v21 = vld [vmem:[%s13279_s6 + $0x288] sm:$0xff]  ;;  %v2893_v8 = vld [vmem:[%s13279_s6 + $0x2b8] sm:$0xff]  ;;  %v7840_v58 = vpack.c.bf16 %v2888_v38, %v2886_v14 }
 0x53f   : > { %v11194_v49 = vmax.f32 %v10893_v53, %v2713_v63  ;;  %3020 = vmatprep.mubr.f32.mxu0 %v2797_v55  ;;  %v7832_v62 = vpack.c.bf16 %v2880_v52, %v2878_v35  ;;  %v7838_v29 = vpack.c.bf16 %v2889_v24, %v2887_v21  ;;  %v7846_v46 = vpack.c.bf16 %v2897_v7, %v2895_v59  ;;  %v2901_v15 = vld [vmem:[%s13279_s6 + $0x2f8] sm:$0xff]  ;;  %v2898_v55 = vld [vmem:[%s13279_s6 + $0x2e0] sm:$0xff]  ;;  %v2903_v63 = vld [vmem:[%s13279_s6 + $0x308] sm:$0xff] }
 0x540   : > { %2766 = vrot.lane.b32.xlu1 %v2742_v54, %s13237_s22  ;;  %3021 = vmatmul.mubr.f32.vlgmr.msra.gmra.mrb[8].mxu0 %v2796_v5  ;;  %v7848_v12 = vpack.c.bf16 %v2896_v36, %v2894_v18  ;;  %v7850_v5 = vpack.c.bf16 %v2901_v15, %v2899_v0  ;;  %v2905_v54 = vld [vmem:[%s13279_s6 + $0x318] sm:$0xff]  ;;  %v2911_v35 = vld [vmem:[%s13279_s6 + $0x348] sm:$0xff]  ;;  %v2914_v21 = vld [vmem:[%s13279_s6 + $0x360] sm:$0xff]  ;;  %vm3296_vm6 = vcmask 97280   ;;  %vm3341_vm11 = vcmask 113664  }
 0x541   : > { %v11204_v19 = vpop.permute.xlu1 %8629  ;;  %v8633_v53 = vpack.i.bf16 %v11194_v49, %v11189_v23  ;;  %7825 = vmatpush1.bf16.msra.mxu0 %v7824_v20  ;;  %v2900_v20 = vld [vmem:[%s13279_s6 + $0x2f0] sm:$0xff]  ;;  %v7854_v4 = vpack.c.bf16 %v2905_v54, %v2903_v63  ;;  %v2913_v52 = vld [vmem:[%s13279_s6 + $0x358] sm:$0xff]  ;;  %v2922_v59 = vld [vmem:[%s13279_s6 + $0x3a0] sm:$0xff] }
 0x542   : > { %v8632_v11 = vunpack.i.h.bf16 %v11204_v19  ;;  %v8631_v47 = vunpack.i.l.bf16 %v11204_v19  ;;  %7827 = vmatprep.subr.bf16.mxu0 %v7826_v61  ;;  %v7852_v61 = vpack.c.bf16 %v2900_v20, %v2898_v55  ;;  %v7862_v34 = vpack.c.bf16 %v2913_v52, %v2911_v35  ;;  %v2916_v24 = vld [vmem:[%s13279_s6 + $0x370] sm:$0xff]  ;;  %v2926_v0 = vld [vmem:[%s13279_s6 + $0x3c0] sm:$0xff] }
 0x543   : > { %8634 = vrot.lane.b32.xlu0 %v8633_v53, %s13237_s22  ;;  %v7856_v53 = vpack.c.bf16 %v2904_v43, %v2902_v56  ;;  %v7868_v14 = vpack.c.bf16 %v2916_v24, %v2914_v21  ;;  %v2924_v7 = vld [vmem:[%s13279_s6 + $0x3b0] sm:$0xff]  ;;  %v2930_v63 = vld [vmem:[%s13279_s6 + $0x3e0] sm:$0xff] }
 0x544   : > { %2776 = vrot.lane.b32.xlu1 %v2747_v17, %s13237_s22  ;;  %v2783_v42 = vsel %vm914_vm2, %v8631_v47, %v8632_v11  ;;  %v2909_v17 = vld [vmem:[%s13279_s6 + $0x338] sm:$0xff]  ;;  %v7876_v18 = vpack.c.bf16 %v2924_v7, %v2922_v59  ;;  %v2928_v15 = vld [vmem:[%s13279_s6 + $0x3d0] sm:$0xff]  ;;  %v2737_v7 = vmax.f32 %v11040_v3, %v11191_v44 }
 0x545   : > { %v2802_v10 = vmax.f32 %v2744_v33, %v2783_v42  ;;  %7829 = vmatpush1.bf16.msra.mxu0 %v7828_v41  ;;  %v7842_v33 = vpack.c.bf16 %v2893_v8, %v2891_v32  ;;  %v7858_v41 = vpack.c.bf16 %v2909_v17, %v2907_v2  ;;  %v2910_v42 = vld [vmem:[%s13279_s6 + $0x340] sm:$0xff]  ;;  %v2920_v8 = vld [vmem:[%s13279_s6 + $0x390] sm:$0xff]  ;;  %v7880_v55 = vpack.c.bf16 %v2928_v15, %v2926_v0 }
 0x546   : > { %7831 = vmatprep.subr.bf16.mxu0 %v7830_v45  ;;  %v2908_v45 = vld [vmem:[%s13279_s6 + $0x330] sm:$0xff]  ;;  %v2918_v32 = vld [vmem:[%s13279_s6 + $0x380] sm:$0xff] }
 0x547   : > { %2774 = vrot.lane.b32.xlu0 %v11232_v50, %s13237_s22  ;;  %3026 = vmatprep.mubr.f32.mxu0 %v2802_v10  ;;  %v7860_v26 = vpack.c.bf16 %v2908_v45, %v2906_v1  ;;  %v2912_v10 = vld [vmem:[%s13279_s6 + $0x350] sm:$0xff]  ;;  %v7872_v40 = vpack.c.bf16 %v2920_v8, %v2918_v32  ;;  %v2949_v32 = vld [vmem:[%s13279_s6 + $0x478] sm:$0xff]  ;;  %v7171_v15 = vld [vmem:[%s13105_s11 + $0x2] ss:$8 sm:$0x3] }
 0x548   : > { %v7864_v16 = vpack.c.bf16 %v2912_v10, %v2910_v42  ;;  %v2932_v54 = vld [vmem:[%s13279_s6 + $0x3f0] sm:$0xff] }
 0x549   : > { %7833 = vmatpush1.bf16.msra.mxu0 %v7832_v62  ;;  %v2915_v62 = vld [vmem:[%s13279_s6 + $0x368] sm:$0xff]  ;;  %v7884_v56 = vpack.c.bf16 %v2932_v54, %v2930_v63  ;;  %v2936_v42 = vld [vmem:[%s13279_s6 + $0x410] sm:$0xff] }
 0x54a   : > { %7835 = vmatprep.subr.bf16.mxu0 %v7834_v28  ;;  %v2917_v28 = vld [vmem:[%s13279_s6 + $0x378] sm:$0xff]  ;;  %v7173_v54 = vld [vmem:[%s13105_s11 + $0x4] ss:$8 sm:$0x3] }
 0x54b   : > { %v7866_v25 = vpack.c.bf16 %v2917_v28, %v2915_v62  ;;  %v2939_v62 = vld [vmem:[%s13279_s6 + $0x428] sm:$0xff] }
 0x54d   : > { %7837 = vmatpush1.bf16.msra.mxu0 %v7836_v30  ;;  %v2919_v30 = vld [vmem:[%s13279_s6 + $0x388] sm:$0xff] }
 0x54e   : > { %7839 = vmatprep.subr.bf16.mxu0 %v7838_v29  ;;  %v2921_v29 = vld [vmem:[%s13279_s6 + $0x398] sm:$0xff] }
 0x54f   : > { %v7870_v38 = vpack.c.bf16 %v2921_v29, %v2919_v30  ;;  %v2943_v30 = vld [vmem:[%s13279_s6 + $0x448] sm:$0xff] }
 0x551   : > { %7841 = vmatpush1.bf16.msra.mxu0 %v7840_v58  ;;  %v2923_v58 = vld [vmem:[%s13279_s6 + $0x3a8] sm:$0xff] }
 0x552   : > { %7843 = vmatprep.subr.bf16.mxu0 %v7842_v33  ;;  %v2925_v33 = vld [vmem:[%s13279_s6 + $0x3b8] sm:$0xff] }
 0x553   : > { %v7874_v22 = vpack.c.bf16 %v2925_v33, %v2923_v58  ;;  %v2946_v58 = vld [vmem:[%s13279_s6 + $0x460] sm:$0xff]  ;;  %v2948_v33 = vld [vmem:[%s13279_s6 + $0x470] sm:$0xff] }
 0x555   : > { %7845 = vmatpush1.bf16.msra.mxu0 %v7844_v51  ;;  %v2927_v51 = vld [vmem:[%s13279_s6 + $0x3c8] sm:$0xff] }
 0x556   : > { %7847 = vmatprep.subr.bf16.mxu0 %v7846_v46  ;;  %v2929_v46 = vld [vmem:[%s13279_s6 + $0x3d8] sm:$0xff] }
 0x557   : > { %v7878_v36 = vpack.c.bf16 %v2929_v46, %v2927_v51 }
 0x559   : > { %7849 = vmatpush1.bf16.msra.mxu0 %v7848_v12  ;;  %v2931_v12 = vld [vmem:[%s13279_s6 + $0x3e8] sm:$0xff] }
 0x55a   : > { %7851 = vmatprep.subr.bf16.mxu0 %v7850_v5  ;;  %v2933_v5 = vld [vmem:[%s13279_s6 + $0x3f8] sm:$0xff] }
 0x55b   : > { %v7882_v20 = vpack.c.bf16 %v2933_v5, %v2931_v12  ;;  %v3265_v12 = vrot.slane %v7171_v15, %v9546_v39 }
 0x55d   : > { %7853 = vmatpush1.bf16.msra.mxu0 %v7852_v61  ;;  %v2935_v61 = vld [vmem:[%s13279_s6 + $0x408] sm:$0xff] }
 0x55e   : > { %7855 = vmatprep.subr.bf16.mxu0 %v7854_v4  ;;  %v2937_v4 = vld [vmem:[%s13279_s6 + $0x418] sm:$0xff] }
 0x55f   : > { %v7886_v43 = vpack.c.bf16 %v2937_v4, %v2935_v61  ;;  %v3310_v61 = vrot.slane %v7173_v54, %v9546_v39 }
 0x561   : > { %7857 = vmatpush1.bf16.msra.mxu0 %v7856_v53 }
 0x562   : > { %7859 = vmatprep.subr.bf16.mxu0 %v7858_v41 }
 0x565   : > { %7861 = vmatpush1.bf16.msra.mxu0 %v7860_v26 }
 0x566   : > { %7863 = vmatprep.subr.bf16.mxu0 %v7862_v34  ;;  %v2934_v34 = vld [vmem:[%s13279_s6 + $0x400] sm:$0xff] }
 0x567   : > { %v7888_v28 = vpack.c.bf16 %v2936_v42, %v2934_v34 }
 0x569   : > { %7865 = vmatpush1.bf16.msra.mxu0 %v7864_v16 }
 0x56a   : > { %7867 = vmatprep.subr.bf16.mxu0 %v7866_v25 }
 0x56d   : > { %7869 = vmatpush1.bf16.msra.mxu0 %v7868_v14 }
 0x56e   : > { %7871 = vmatprep.subr.bf16.mxu0 %v7870_v38  ;;  %v2947_v38 = vld [vmem:[%s13279_s6 + $0x468] sm:$0xff] }
 0x56f   : > { %v7898_v8 = vpack.c.bf16 %v2949_v32, %v2947_v38 }
 0x571   : > { %7873 = vmatpush1.bf16.msra.mxu0 %v7872_v40  ;;  %v7900_v40 = vpack.c.bf16 %v2948_v33, %v2946_v58 }
 0x572   : > { %7875 = vmatprep.subr.bf16.mxu0 %v7874_v22  ;;  %v2732_v22 = vmax.f32 %v11021_v6, %v11177_v31  ;;  %v7170_v31 = vld [vmem:[%s13105_s11 + $0x1] ss:$8 sm:$0x3] }
 0x575   : > { %7877 = vmatpush1.bf16.msra.mxu0 %v7876_v18  ;;  %v3243_v18 = vrot.slane %v7170_v31, %v9546_v39 }
 0x576   : > { %7879 = vmatprep.subr.bf16.mxu0 %v7878_v36  ;;  %v13288_v36 = vld [vmem:[#allocation13_spill] sm:$0xff] }
 0x577   : > { %v3247_v0 = vrot.slane %v7170_v31, %v13288_v36  ;;  %v3269_v5 = vrot.slane %v7171_v15, %v13288_v36  ;;  %v3314_v4 = vrot.slane %v7173_v54, %v13288_v36 }
 0x579   : > { %7881 = vmatpush1.bf16.msra.mxu0 %v7880_v55  ;;  %v7172_v55 = vld [vmem:[%s13105_s11 + $0x3] ss:$8 sm:$0x3] }
 0x57a   : > { %7883 = vmatprep.subr.bf16.mxu0 %v7882_v20  ;;  %v3287_v20 = vrot.slane %v7172_v55, %v9546_v39  ;;  %v3291_v63 = vrot.slane %v7172_v55, %v13288_v36 }
 0x57d   : > { %7885 = vmatpush1.bf16.msra.mxu0 %v7884_v56  ;;  %v7174_v56 = vld [vmem:[%s13105_s11 + $0x5] ss:$8 sm:$0x3] }
 0x57e   : > { %7887 = vmatprep.subr.bf16.mxu0 %v7886_v43  ;;  %v3332_v43 = vrot.slane %v7174_v56, %v9546_v39 }
 0x5b2   : > { %v2767_v2 = vpop.permute.xlu1 %2766 }
 0x5b3   : > { %v2800_v59 = vmax.f32 %v2732_v22, %v2767_v2 }
 0x5b5   : > { %v8635_v17 = vpop.permute.xlu0 %8634 }
 0x5b6   : > { %v8637_v53 = vunpack.i.h.bf16 %v8635_v17  ;;  %v8636_v41 = vunpack.i.l.bf16 %v8635_v17  ;;  %v7175_v17 = vld [vmem:[%s13105_s11 + $0x6] ss:$8 sm:$0x3] }
 0x5b8   : > { %v2782_v1 = vsel %vm914_vm2, %v8636_v41, %v8631_v47  ;;  %v2781_v45 = vsel %vm914_vm2, %v8637_v53, %v2767_v2  ;;  %v2780_v10 = vsel %vm914_vm2, %v8627_v37, %v8637_v53  ;;  %v2777_v47 = vpop.permute.xlu1 %2776  ;;  %v2940_v37 = vld [vmem:[%s13279_s6 + $0x430] sm:$0xff]  ;;  %v3336_v2 = vrot.slane %v7174_v56, %v13288_v36 }
 0x5b9   : > { %v2775_v35 = vpop.permute.xlu0 %2774  ;;  %v2801_v52 = vmax.f32 %v11189_v23, %v2782_v1  ;;  %v2799_v26 = vmax.f32 %v11194_v49, %v2781_v45  ;;  %v2941_v23 = vld [vmem:[%s13279_s6 + $0x438] sm:$0xff]  ;;  %v2798_v16 = vmax.f32 %v11135_v60, %v2780_v10  ;;  %v7892_v29 = vpack.c.bf16 %v2940_v37, %v2938_v27  ;;  %v7176_v1 = vld [vmem:[%s13105_s11 + $0x7] ss:$8 sm:$0x3] }
 0x5ba   : > { %v2785_v49 = vsel %vm914_vm2, %v2775_v35, %v2777_v47  ;;  %v7890_v25 = vpack.c.bf16 %v2941_v23, %v2939_v62  ;;  %v2784_v21 = vsel %vm914_vm2, %v8632_v11, %v2775_v35  ;;  %v2945_v60 = vld [vmem:[%s13279_s6 + $0x458] sm:$0xff]  ;;  %v2942_v11 = vld [vmem:[%s13279_s6 + $0x440] sm:$0xff]  ;;  %v2805_v51 = vmax.f32 %v2737_v7, %v2777_v47 }
 0x5bb   : > { %3027 = vmatmul.mubr.f32.gmra.mrb[10].mxu0 %v2801_v52  ;;  %v2804_v24 = vmax.f32 %v11232_v50, %v2785_v49  ;;  %v2803_v14 = vmax.f32 %v11150_v57, %v2784_v21  ;;  %v7894_v19 = vpack.c.bf16 %v2945_v60, %v2943_v30  ;;  %v2944_v50 = vld [vmem:[%s13279_s6 + $0x450] sm:$0xff]  ;;  %v3355_v53 = vrot.slane %v7175_v17, %v9546_v39  ;;  %v3221_v21 = vld [vmem:[%s13105_s11] ss:$8 sm:$0x3]  ;;  %s13318_s6 = smov 7  }
 0x5bc   : > { %3097 = vmatprep.mubr.f32.mxu0 %v2799_v26  ;;  %v7896_v57 = vpack.c.bf16 %v2944_v50, %v2942_v11  ;;  %v3359_v41 = vrot.slane %v7175_v17, %v13288_v36  ;;  %v3377_v45 = vrot.slane %v7176_v1, %v9546_v39  ;;  %v3381_v35 = vrot.slane %v7176_v1, %v13288_v36  ;;  %v7177_v52 = vld [vmem:[%s13105_s11 + $0x10] ss:$8 sm:$0x3] }
 0x5bd   : > { %v3399_v26 = vrot.slane %v7177_v52, %v9546_v39  ;;  %v3403_v34 = vrot.slane %v7177_v52, %v13288_v36  ;;  %v3226_v50 = vrot.slane %v3221_v21, %v9546_v39 }
 0x5bf   : > { %3098 = vmatmul.mubr.f32.vlgmr.msra.gmra.mrb[8].mxu0 %v2798_v16 }
 0x5c0   : > { %7889 = vmatpush1.bf16.msra.mxu0 %v7888_v28  ;;  %3103 = vmatprep.mubr.f32.mxu0 %v2804_v24 }
 0x5c1   : > { %7891 = vmatprep.subr.bf16.mxu0 %v7890_v25 }
 0x5c3   : > { %3104 = vmatmul.mubr.f32.gmra.mrb[10].mxu0 %v2803_v14  ;;  %v3230_v14 = vrot.slane %v3221_v21, %v13288_v36 }
 0x5c4   : > { %7893 = vmatpush1.bf16.msra.mxu0 %v7892_v29  ;;  %3174 = vmatprep.mubr.f32.mxu0 %v13280_v13 }
 0x5c5   : > { %7895 = vmatprep.subr.bf16.mxu0 %v7894_v19 }
 0x5c8   : > { %7897 = vmatpush1.bf16.msra.mxu0 %v7896_v57 }
 0x5c9   : > { %7899 = vmatprep.subr.bf16.mxu0 %v7898_v8 }
 0x5cc   : > { %7901 = vmatpush1.bf16.msra.mxu0 %v7900_v40 }
 0x5cf   : > { %7168 = vmatmul.mubr.msk.f32.vlgmr.msra.gmra.mrb[8].mxu0 %vm2660_vm8, %v2800_v59 }
 0x5d0   : > { %3180 = vmatprep.mubr.f32.mxu0 %v13280_v13 }
 0x5d3   : > { %7169 = vmatmul.mubr.msk.f32.gmra.mrb[10].mxu0 %vm2660_vm8, %v2805_v51 }
 0x5d4   : > { %4473 = vmatprep.mubr.f32.mxu0 %v13280_v13 }
 0x6a2   : > { %v3176_v6 = vpop.f32.mrb[8].mxu0 }
 0x6a3   : > { %3197 = vrot.lane.b32.xlu0 %v3176_v6, %s13190_s19  ;;  %v3178_v3 = vpop.f32.mrb[9].mxu0 }
 0x6a4   : > { %3199 = vrot.lane.b32.xlu1 %v3178_v3, %s13190_s19 }
 0x6a6   : > { %v3182_v44 = vpop.f32.mrb[10].mxu0 }
 0x6a7   : > { %3201 = vrot.lane.b32.xlu0 %v3182_v44, %s13190_s19  ;;  %v3184_v46 = vpop.f32.mrb[11].mxu0 }
 0x6a8   : > { %3203 = vrot.lane.b32.xlu1 %v3184_v46, %s13190_s19 }
 0x6ab   : > { %3248 = vrot.lane.b32.xlu0 %v3243_v18, %s13289_s1 }
 0x6ac   : > { %3250 = vrot.lane.b32.xlu1 %v3247_v0, %s13289_s1 }
 0x6af   : > { %3270 = vrot.lane.b32.xlu0 %v3265_v12, %s13221_s4 }
 0x6b0   : > { %3272 = vrot.lane.b32.xlu1 %v3269_v5, %s13221_s4 }
 0x6b3   : > { %3292 = vrot.lane.b32.xlu0 %v3287_v20, %s13188_s25 }
 0x6b4   : > { %3294 = vrot.lane.b32.xlu1 %v3291_v63, %s13188_s25  ;;  %s13197_s25 = smov 6  }
 0x6b7   : > { %3315 = vrot.lane.b32.xlu0 %v3310_v61, %s13190_s19 }
 0x6b8   : > { %3317 = vrot.lane.b32.xlu1 %v3314_v4, %s13190_s19  ;;  %s13299_s19 = smov 12  }
 0x6bb   : > { %3337 = vrot.lane.b32.xlu0 %v3332_v43, %s13186_s5 }
 0x6bc   : > { %3339 = vrot.lane.b32.xlu1 %v3336_v2, %s13186_s5 }
 0x6bf   : > { %3360 = vrot.lane.b32.xlu0 %v3355_v53, %s13290_s27 }
 0x6c0   : > { %3362 = vrot.lane.b32.xlu1 %v3359_v41, %s13290_s27 }
 0x6c3   : > { %3382 = vrot.lane.b32.xlu0 %v3377_v45, %s13222_s29 }
 0x6c4   : > { %3384 = vrot.lane.b32.xlu1 %v3381_v35, %s13222_s29 }
 0x6c7   : > { %3404 = vrot.lane.b32.xlu0 %v3399_v26, %s13223_s28 }
 0x6c8   : > { %3406 = vrot.lane.b32.xlu1 %v3403_v34, %s13223_s28 }
 0x715   : > { %v3198_v42 = vpop.permute.xlu0 %3197 }
 0x716   : > { %3212 = vst.msk [vmem:[#allocation5] sm:$0xff] %vm3211_vm9, %v3198_v42  ;;  %v3200_v10 = vpop.permute.xlu1 %3199 }
 0x717   : > { %v3205_v47 = vsel %vm3187_vm12, %v3198_v42, %v3200_v10 }
 0x718   : > { %3214 = vst.msk [vmem:[#allocation5 + $0x8] sm:$0xff] %vm3213_vm10, %v3205_v47 }
 0x719   : > { %v3202_v62 = vpop.permute.xlu0 %3201 }
 0x71a   : > { %3215 = vst.msk [vmem:[#allocation5 + $0x10] sm:$0xff] %vm3211_vm9, %v3202_v62  ;;  %v3204_v23 = vpop.permute.xlu1 %3203 }
 0x71b   : > { %v3206_v49 = vsel %vm3187_vm12, %v3202_v62, %v3204_v23 }
 0x71c   : > { %3216 = vst.msk [vmem:[#allocation5 + $0x18] sm:$0xff] %vm3213_vm10, %v3206_v49 }
 0x71d   : > { %v11543_v28 = vld [vmem:[#allocation5] sm:$0xff]  ;;  %v3249_v16 = vpop.permute.xlu0 %3248 }
 0x71e   : > { %v3251_v25 = vpop.permute.xlu1 %3250  ;;  %v3255_v24 = vmul.f32 %v3249_v16, %v11543_v28  ;;  %v3233_v44 = vmul.f32 %v3226_v50, %v11543_v28 }
 0x71f   : > { %v11545_v27 = vld [vmem:[#allocation5 + $0x8] sm:$0xff]  ;;  %v3252_v37 = vsel %vm13291_vm15, %v3249_v16, %v3251_v25  ;;  %vm13294_vm15 = vcmask 211968  }
 0x720   : > { %v3256_v30 = vmul.f32 %v3252_v37, %v11545_v27  ;;  %v3234_v7 = vmul.f32 %v3230_v14, %v11545_v27 }
 0x721   : > { %v11553_v60 = vld [vmem:[#allocation5 + $0x10] sm:$0xff]  ;;  %v3271_v29 = vpop.permute.xlu0 %3270 }
 0x722   : > { %v8638_v19 = vpack.i.bf16 %v3256_v30, %v3255_v24  ;;  %v3273_v11 = vpop.permute.xlu1 %3272  ;;  %v3257_v38 = vmul.f32 %v3249_v16, %v11553_v60  ;;  %v3277_v57 = vmul.f32 %v3271_v29, %v11543_v28  ;;  %v3235_v22 = vmul.f32 %v3226_v50, %v11553_v60 }
 0x723   : > { %v11558_v32 = vld [vmem:[#allocation5 + $0x18] sm:$0xff]  ;;  %v3274_v8 = vsel %vm13292_vm7, %v3271_v29, %v3273_v11  ;;  %v3279_v46 = vmul.f32 %v3271_v29, %v11553_v60  ;;  %vm13296_vm7 = vcmask 1039360  }
 0x724   : > { %v3258_v58 = vmul.f32 %v3252_v37, %v11558_v32  ;;  %v3278_v33 = vmul.f32 %v3274_v8, %v11545_v27  ;;  %8639 = vrot.lane.b32.xlu0 %v8638_v19, %s13235_s26  ;;  %v3236_v40 = vmul.f32 %v3230_v14, %v11558_v32  ;;  %v3280_v6 = vmul.f32 %v3274_v8, %v11558_v32 }
 0x725   : > { %v3293_v59 = vpop.permute.xlu0 %3292  ;;  %v7904_v5 = vpack.c.bf16 %v3235_v22, %v3233_v44 }
 0x726   : > { %v8678_v51 = vpack.i.bf16 %v3258_v58, %v3257_v38  ;;  %v8643_v3 = vpack.i.bf16 %v3278_v33, %v3277_v57  ;;  %v3295_v31 = vpop.permute.xlu1 %3294  ;;  %v7902_v0 = vpack.c.bf16 %v3236_v40, %v3234_v7  ;;  %v3300_v15 = vmul.f32 %v3293_v59, %v11543_v28 }
 0x727   : > { %v3297_v18 = vsel %vm3296_vm6, %v3293_v59, %v3295_v31  ;;  %v8683_v20 = vpack.i.bf16 %v3280_v6, %v3279_v46  ;;  %v3302_v56 = vmul.f32 %v3293_v59, %v11553_v60  ;;  %v3563_v6 = vld [vmem:[%s13295_s7 + $0x8] sm:$0xff] }
 0x728   : > { %v3301_v12 = vmul.f32 %v3297_v18, %v11545_v27  ;;  %8679 = vrot.lane.b32.xlu1 %v8678_v51, %s13235_s26  ;;  %8644 = vrot.lane.b32.xlu0 %v8643_v3, %s13234_s0  ;;  %v3303_v63 = vmul.f32 %v3297_v18, %v11558_v32  ;;  %v3571_v18 = vld [vmem:[%s13102_s8 + $0x8] sm:$0xff] }
 0x729   : > { %7903 = vmatprep.subr.bf16.mxu1 %v7902_v0  ;;  %v3316_v55 = vpop.permute.xlu0 %3315  ;;  %7178 = vmatprep.mubr.msk.f32.mxu1 %vm2374_vm0, %v3563_v6 }
 0x72a   : > { %v8648_v54 = vpack.i.bf16 %v3301_v12, %v3300_v15  ;;  %7905 = vmatpush1.bf16.msra.mxu1 %v7904_v5  ;;  %v3318_v61 = vpop.permute.xlu1 %3317  ;;  %v3322_v43 = vmul.f32 %v3316_v55, %v11543_v28  ;;  %v8688_v53 = vpack.i.bf16 %v3303_v63, %v3302_v56  ;;  %v3324_v52 = vmul.f32 %v3316_v55, %v11553_v60 }
 0x72b   : > { %v3319_v4 = vsel %vm3187_vm12, %v3316_v55, %v3318_v61 }
 0x72c   : > { %v3323_v2 = vmul.f32 %v3319_v4, %v11545_v27  ;;  %8684 = vrot.lane.b32.xlu1 %v8683_v20, %s13234_s0  ;;  %8649 = vrot.lane.b32.xlu0 %v8648_v54, %s13184_s21  ;;  %v3325_v41 = vmul.f32 %v3319_v4, %v11558_v32 }
 0x72d   : > { %v3338_v17 = vpop.permute.xlu0 %3337 }
 0x72e   : > { %v8653_v1 = vpack.i.bf16 %v3323_v2, %v3322_v43  ;;  %v3340_v45 = vpop.permute.xlu1 %3339  ;;  %v3345_v26 = vmul.f32 %v3338_v17, %v11543_v28  ;;  %v8693_v10 = vpack.i.bf16 %v3325_v41, %v3324_v52  ;;  %v3347_v16 = vmul.f32 %v3338_v17, %v11553_v60 }
 0x72f   : > { %v3342_v35 = vsel %vm3341_vm11, %v3338_v17, %v3340_v45 }
 0x730   : > { %v3346_v34 = vmul.f32 %v3342_v35, %v11545_v27  ;;  %8689 = vrot.lane.b32.xlu1 %v8688_v53, %s13184_s21  ;;  %8654 = vrot.lane.b32.xlu0 %v8653_v1, %s13182_s3  ;;  %v3348_v47 = vmul.f32 %v3342_v35, %v11558_v32  ;;  %s13192_s21 = smov 8  }
 0x731   : > { %v3361_v42 = vpop.permute.xlu0 %3360 }
 0x732   : > { %v8658_v62 = vpack.i.bf16 %v3346_v34, %v3345_v26  ;;  %v3363_v23 = vpop.permute.xlu1 %3362  ;;  %v3367_v25 = vmul.f32 %v3361_v42, %v11543_v28  ;;  %v8698_v24 = vpack.i.bf16 %v3348_v47, %v3347_v16  ;;  %v3369_v11 = vmul.f32 %v3361_v42, %v11553_v60 }
 0x733   : > { %v3364_v49 = vsel %vm13293_vm14, %v3361_v42, %v3363_v23  ;;  %vm13297_vm14 = vmmov %vm13296_vm7 }
 0x734   : > { %v3368_v37 = vmul.f32 %v3364_v49, %v11545_v27  ;;  %8694 = vrot.lane.b32.xlu1 %v8693_v10, %s13182_s3  ;;  %8659 = vrot.lane.b32.xlu0 %v8658_v62, %s13180_s2  ;;  %v3370_v30 = vmul.f32 %v3364_v49, %v11558_v32  ;;  %s13304_s3 = smov 115  }
 0x735   : > { %v3383_v21 = vpop.permute.xlu0 %3382 }
 0x736   : > { %v8663_v29 = vpack.i.bf16 %v3368_v37, %v3367_v25  ;;  %v3385_v14 = vpop.permute.xlu1 %3384  ;;  %v3389_v50 = vmul.f32 %v3383_v21, %v11543_v28  ;;  %v8703_v8 = vpack.i.bf16 %v3370_v30, %v3369_v11  ;;  %v3391_v59 = vmul.f32 %v3383_v21, %v11553_v60 }
 0x737   : > { %v3386_v19 = vsel %vm668_vm4, %v3383_v21, %v3385_v14 }
 0x738   : > { %v3390_v38 = vmul.f32 %v3386_v19, %v11545_v27  ;;  %8699 = vrot.lane.b32.xlu1 %v8698_v24, %s13180_s2  ;;  %8664 = vrot.lane.b32.xlu0 %v8663_v29, %s13237_s22  ;;  %v3392_v58 = vmul.f32 %v3386_v19, %v11558_v32  ;;  %s13300_s2 = smov 14  }
 0x739   : > { %v3405_v57 = vpop.permute.xlu0 %3404 }
 0x73a   : > { %v8668_v33 = vpack.i.bf16 %v3390_v38, %v3389_v50  ;;  %v3407_v40 = vpop.permute.xlu1 %3406  ;;  %v3411_v7 = vmul.f32 %v3405_v57, %v11543_v28  ;;  %v8708_v3 = vpack.i.bf16 %v3392_v58, %v3391_v59  ;;  %v3413_v46 = vmul.f32 %v3405_v57, %v11553_v60  ;;  %v3573_v60 = vld [vmem:[%s13102_s8 + $0x18] sm:$0xff] }
 0x73b   : > { %v3408_v22 = vsel %vm13294_vm15, %v3405_v57, %v3407_v40  ;;  %vm3463_vm15 = vcmask 949248  }
 0x73c   : > { %v3412_v51 = vmul.f32 %v3408_v22, %v11545_v27  ;;  %8704 = vrot.lane.b32.xlu1 %v8703_v8, %s13237_s22  ;;  %8669 = vrot.lane.b32.xlu0 %v8668_v33, %s13236_s30  ;;  %v3414_v31 = vmul.f32 %v3408_v22, %v11558_v32  ;;  %v3570_v27 = vld [vmem:[%s13102_s8] sm:$0xff]  ;;  %v3572_v32 = vld [vmem:[%s13102_s8 + $0x10] sm:$0xff] }
 0x73e   : > { %v8673_v44 = vpack.i.bf16 %v3412_v51, %v3411_v7  ;;  %v8713_v28 = vpack.i.bf16 %v3414_v31, %v3413_v46 }
 0x740   : > { %8709 = vrot.lane.b32.xlu1 %v8708_v3, %s13236_s30  ;;  %8674 = vrot.lane.b32.xlu0 %v8673_v44, %s13240_s24 }
 0x744   : > { %8714 = vrot.lane.b32.xlu1 %v8713_v28, %s13240_s24  ;;  %3576 = vperm.xlu0 %8718, %v3570_v27  }
 0x748   : > { %3581 = vperm.xlu1 %8719, %v3571_v18   ;;  %3591 = vperm.xlu0 %8718, %v3573_v60  }
 0x74c   : > { %3586 = vperm.xlu1 %8719, %v3572_v32  }
 0x796   : > { %v8640_v0 = vpop.permute.xlu0 %8639 }
 0x797   : > { %v8642_v15 = vunpack.i.h.bf16 %v8640_v0  ;;  %v8641_v12 = vunpack.i.l.bf16 %v8640_v0 }
 0x799   : > { %v3427_v54 = vsel %vm13296_vm7, %v8641_v12, %v8642_v15  ;;  %vm3482_vm7 = vcmask 941056  }
 0x79a   : > { %v8645_v5 = vpop.permute.xlu0 %8644  ;;  %v8680_v55 = vpop.permute.xlu1 %8679 }
 0x79b   : > { %v8682_v20 = vunpack.i.h.bf16 %v8680_v55  ;;  %v8681_v63 = vunpack.i.l.bf16 %v8680_v55  ;;  %v8647_v61 = vunpack.i.h.bf16 %v8645_v5  ;;  %v8646_v4 = vunpack.i.l.bf16 %v8645_v5 }
 0x79d   : > { %v3428_v56 = vsel %vm13297_vm14, %v8681_v63, %v8682_v20  ;;  %v7906_v43 = vpack.c.bf16 %v8682_v20, %v8642_v15  ;;  %v3445_v52 = vsel %vm873_vm1, %v8646_v4, %v8647_v61  ;;  %vm3501_vm14 = vcmask 932864  }
 0x79e   : > { %v8650_v2 = vpop.permute.xlu0 %8649  ;;  %v8685_v17 = vpop.permute.xlu1 %8684  ;;  %v7908_v53 = vpack.c.bf16 %v3428_v56, %v3427_v54 }
 0x79f   : > { %v8687_v41 = vunpack.i.h.bf16 %v8685_v17  ;;  %v8686_v1 = vunpack.i.l.bf16 %v8685_v17  ;;  %7907 = vmatprep.subr.bf16.mxu1 %v7906_v43  ;;  %v8652_v45 = vunpack.i.h.bf16 %v8650_v2  ;;  %v8651_v35 = vunpack.i.l.bf16 %v8650_v2 }
 0x7a0   : > { %7909 = vmatpush1.bf16.msra.mxu1 %v7908_v53 }
 0x7a1   : > { %v3446_v26 = vsel %vm873_vm1, %v8686_v1, %v8687_v41  ;;  %v7910_v34 = vpack.c.bf16 %v8687_v41, %v8647_v61  ;;  %v3464_v49 = vsel %vm3463_vm15, %v8651_v35, %v8652_v45 }
 0x7a2   : > { %v8655_v42 = vpop.permute.xlu0 %8654  ;;  %v8690_v10 = vpop.permute.xlu1 %8689  ;;  %v7912_v47 = vpack.c.bf16 %v3446_v26, %v3445_v52 }
 0x7a3   : > { %v8692_v62 = vunpack.i.h.bf16 %v8690_v10  ;;  %v8691_v23 = vunpack.i.l.bf16 %v8690_v10  ;;  %7911 = vmatprep.subr.bf16.mxu1 %v7910_v34  ;;  %v8657_v16 = vunpack.i.h.bf16 %v8655_v42  ;;  %v8656_v25 = vunpack.i.l.bf16 %v8655_v42  ;;  %v3562_v34 = vld [vmem:[%s13295_s7] sm:$0xff]  ;;  %v3565_v42 = vld [vmem:[%s13295_s7 + $0x18] sm:$0xff]  ;;  %v3564_v10 = vld [vmem:[%s13295_s7 + $0x10] sm:$0xff] }
 0x7a4   : > { %7913 = vmatpush1.bf16.msra.mxu1 %v7912_v47  ;;  %v3567_v47 = vld [vmem:[%s13295_s7 + $0x28] sm:$0xff] }
 0x7a5   : > { %v3465_v37 = vsel %vm3463_vm15, %v8691_v23, %v8692_v62  ;;  %v7914_v21 = vpack.c.bf16 %v8692_v62, %v8652_v45  ;;  %v3483_v38 = vsel %vm3482_vm7, %v8656_v25, %v8657_v16  ;;  %v3566_v62 = vld [vmem:[%s13295_s7 + $0x20] sm:$0xff]  ;;  %v3569_v23 = vld [vmem:[%s13295_s7 + $0x38] sm:$0xff] }
 0x7a6   : > { %v8660_v24 = vpop.permute.xlu0 %8659  ;;  %v8695_v30 = vpop.permute.xlu1 %8694  ;;  %v7916_v29 = vpack.c.bf16 %v3465_v37, %v3464_v49  ;;  %v3568_v49 = vld [vmem:[%s13295_s7 + $0x30] sm:$0xff]  ;;  %s13319_s7 = smov 6  }
 0x7a7   : > { %v8697_v14 = vunpack.i.h.bf16 %v8695_v30  ;;  %v8696_v19 = vunpack.i.l.bf16 %v8695_v30  ;;  %7915 = vmatprep.subr.bf16.mxu1 %v7914_v21  ;;  %v8662_v11 = vunpack.i.h.bf16 %v8660_v24  ;;  %v8661_v50 = vunpack.i.l.bf16 %v8660_v24 }
 0x7a8   : > { %7917 = vmatpush1.bf16.msra.mxu1 %v7916_v29 }
 0x7a9   : > { %v3484_v57 = vsel %vm3482_vm7, %v8696_v19, %v8697_v14  ;;  %v7918_v8 = vpack.c.bf16 %v8697_v14, %v8657_v16  ;;  %v3502_v7 = vsel %vm3501_vm14, %v8661_v50, %v8662_v11 }
 0x7aa   : > { %v8665_v58 = vpop.permute.xlu0 %8664  ;;  %v8700_v33 = vpop.permute.xlu1 %8699  ;;  %v7920_v40 = vpack.c.bf16 %v3484_v57, %v3483_v38 }
 0x7ab   : > { %v8702_v22 = vunpack.i.h.bf16 %v8700_v33  ;;  %v8701_v59 = vunpack.i.l.bf16 %v8700_v33  ;;  %7919 = vmatprep.subr.bf16.mxu1 %v7918_v8  ;;  %v8667_v51 = vunpack.i.h.bf16 %v8665_v58  ;;  %v8666_v6 = vunpack.i.l.bf16 %v8665_v58 }
 0x7ac   : > { %7921 = vmatpush1.bf16.msra.mxu1 %v7920_v40 }
 0x7ad   : > { %v3503_v3 = vsel %vm3501_vm14, %v8701_v59, %v8702_v22  ;;  %v7922_v31 = vpack.c.bf16 %v8702_v22, %v8662_v11  ;;  %v3520_v0 = vsel %vm914_vm2, %v8666_v6, %v8667_v51 }
 0x7ae   : > { %v8670_v44 = vpop.permute.xlu0 %8669  ;;  %v8705_v46 = vpop.permute.xlu1 %8704  ;;  %v7924_v28 = vpack.c.bf16 %v3503_v3, %v3502_v7 }
 0x7af   : > { %v8707_v27 = vunpack.i.h.bf16 %v8705_v46  ;;  %v8706_v18 = vunpack.i.l.bf16 %v8705_v46  ;;  %7923 = vmatprep.subr.bf16.mxu1 %v7922_v31  ;;  %v8672_v60 = vunpack.i.h.bf16 %v8670_v44  ;;  %v8671_v32 = vunpack.i.l.bf16 %v8670_v44 }
 0x7b0   : > { %7925 = vmatpush1.bf16.msra.mxu1 %v7924_v28  ;;  %v7182_v28 = vld [vmem:[%s13105_s11 + $0x1] ss:$8 sm:$0x3] }
 0x7b1   : > { %v3521_v15 = vsel %vm914_vm2, %v8706_v18, %v8707_v27  ;;  %v7926_v12 = vpack.c.bf16 %v8707_v27, %v8667_v51  ;;  %v3538_v61 = vsel %vm955_vm3, %v8671_v32, %v8672_v60  ;;  %v3792_v32 = vrot.slane %v7182_v28, %v13288_v36 }
 0x7b2   : > { %v8675_v5 = vpop.permute.xlu0 %8674  ;;  %v8710_v55 = vpop.permute.xlu1 %8709  ;;  %v7928_v20 = vpack.c.bf16 %v3521_v15, %v3520_v0  ;;  %v7183_v0 = vld [vmem:[%s13105_s11 + $0x2] ss:$8 sm:$0x3] }
 0x7b3   : > { %v8712_v63 = vunpack.i.h.bf16 %v8710_v55  ;;  %v8711_v54 = vunpack.i.l.bf16 %v8710_v55  ;;  %7927 = vmatprep.subr.bf16.mxu1 %v7926_v12  ;;  %v8677_v4 = vunpack.i.h.bf16 %v8675_v5  ;;  %v8676_v56 = vunpack.i.l.bf16 %v8675_v5  ;;  %v7184_v5 = vld [vmem:[%s13105_s11 + $0x3] ss:$8 sm:$0x3] }
 0x7b4   : > { %7929 = vmatpush1.bf16.msra.mxu1 %v7928_v20  ;;  %v3813_v15 = vrot.slane %v7183_v0, %v9546_v39  ;;  %v3817_v12 = vrot.slane %v7183_v0, %v13288_v36  ;;  %v3838_v55 = vrot.slane %v7184_v5, %v9546_v39  ;;  %v3842_v20 = vrot.slane %v7184_v5, %v13288_v36 }
 0x7b5   : > { %v3539_v43 = vsel %vm955_vm3, %v8711_v54, %v8712_v63  ;;  %v7930_v2 = vpack.c.bf16 %v8712_v63, %v8672_v60  ;;  %v3556_v45 = vsel %vm996_vm5, %v8676_v56, %v8677_v4  ;;  %v3788_v60 = vrot.slane %v7182_v28, %v9546_v39  ;;  %v7185_v63 = vld [vmem:[%s13105_s11 + $0x4] ss:$8 sm:$0x3] }
 0x7b6   : > { %v8715_v17 = vpop.permute.xlu1 %8714  ;;  %v7932_v53 = vpack.c.bf16 %v3539_v43, %v3538_v61  ;;  %v3863_v54 = vrot.slane %v7185_v63, %v9546_v39  ;;  %v3867_v61 = vrot.slane %v7185_v63, %v13288_v36 }
 0x7b7   : > { %v8717_v41 = vunpack.i.h.bf16 %v8715_v17  ;;  %v8716_v1 = vunpack.i.l.bf16 %v8715_v17  ;;  %7931 = vmatprep.subr.bf16.mxu1 %v7930_v2  ;;  %v7187_v2 = vld [vmem:[%s13105_s11 + $0x6] ss:$8 sm:$0x3] }
 0x7b8   : > { %7933 = vmatpush1.bf16.msra.mxu1 %v7932_v53  ;;  %v3913_v17 = vrot.slane %v7187_v2, %v9546_v39  ;;  %v3917_v53 = vrot.slane %v7187_v2, %v13288_v36 }
 0x7b9   : > { %v3557_v35 = vsel %vm996_vm5, %v8716_v1, %v8717_v41  ;;  %v7934_v52 = vpack.c.bf16 %v8717_v41, %v8677_v4  ;;  %v7186_v4 = vld [vmem:[%s13105_s11 + $0x5] ss:$8 sm:$0x3]  ;;  %v7188_v41 = vld [vmem:[%s13105_s11 + $0x7] ss:$8 sm:$0x3] }
 0x7ba   : > { %v7936_v26 = vpack.c.bf16 %v3557_v35, %v3556_v45  ;;  %v3888_v56 = vrot.slane %v7186_v4, %v9546_v39  ;;  %v3892_v43 = vrot.slane %v7186_v4, %v13288_v36  ;;  %v3938_v1 = vrot.slane %v7188_v41, %v9546_v39  ;;  %v7189_v35 = vld [vmem:[%s13105_s11 + $0x10] ss:$8 sm:$0x3] }
 0x7bb   : > { %7935 = vmatprep.subr.bf16.mxu1 %v7934_v52  ;;  %v3942_v45 = vrot.slane %v7188_v41, %v13288_v36  ;;  %v3963_v52 = vrot.slane %v7189_v35, %v9546_v39 }
 0x7bc   : > { %7937 = vmatpush1.bf16.msra.mxu1 %v7936_v26  ;;  %v3967_v26 = vrot.slane %v7189_v35, %v13288_v36 }
 0x7bf   : > { %3671 = vmatmul.mubr.f32.vlgmr.msra.gmra.mrb[14].mxu1 %v3562_v34 }
 0x7c0   : > { %7179 = vmatprep.mubr.msk.f32.mxu1 %vm2374_vm0, %v3565_v42 }
 0x7c3   : > { %3677 = vmatmul.mubr.f32.gmra.mrb[16].mxu1 %v3564_v10  ;;  %v3577_v16 = vpop.permute.xlu0 %3576 }
 0x7c4   : > { %7180 = vmatprep.mubr.msk.f32.mxu1 %vm2374_vm0, %v3567_v47 }
 0x7c7   : > { %3683 = vmatmul.mubr.f32.gmra.mrb[18].mxu1 %v3566_v62  ;;  %v3582_v24 = vpop.permute.xlu1 %3581  ;;  %v3592_v51 = vpop.permute.xlu0 %3591 }
 0x7c8   : > { %7181 = vmatprep.mubr.msk.f32.mxu1 %vm2374_vm0, %v3569_v23 }
 0x7cb   : > { %3689 = vmatmul.mubr.f32.gmra.mrb[20].mxu1 %v3568_v49  ;;  %v3587_v8 = vpop.permute.xlu1 %3586 }
 0x892   : > { %v3672_v25 = vpop.f32.mrb[14].mxu1 }
 0x893   : > { %v3673_v37 = vadd.f32 %v3672_v25, %v3577_v16  ;;  %v3674_v21 = vpop.f32.mrb[15].mxu1  ;;  %v3763_v25 = vld [vmem:[%s13105_s11] ss:$8 sm:$0x3] }
 0x894   : > { %v3675_v30 = vadd.f32 %v3674_v21, %v3577_v16  ;;  %v3772_v21 = vrot.slane %v3763_v25, %v13288_v36 }
 0x895   : > { %v3695_v29 = vmax.f32 %v3673_v37, 0.0 }
 0x896   : > { %v3696_v14 = vmax.f32 %v3675_v30, 0.0  ;;  %v3678_v19 = vpop.f32.mrb[16].mxu1 }
 0x897   : > { %v3679_v11 = vadd.f32 %v3678_v19, %v3582_v24  ;;  %v3680_v50 = vpop.f32.mrb[17].mxu1  ;;  %3719 = vrot.lane.b32.xlu1 %v3695_v29, %s13298_s23  ;;  %v3768_v29 = vrot.slane %v3763_v25, %v9546_v39 }
 0x898   : > { %v3681_v38 = vadd.f32 %v3680_v50, %v3582_v24  ;;  %3721 = vrot.lane.b32.xlu0 %v3696_v14, %s13298_s23 }
 0x899   : > { %v3697_v57 = vmax.f32 %v3679_v11, 0.0 }
 0x89a   : > { %v3698_v58 = vmax.f32 %v3681_v38, 0.0  ;;  %v3684_v33 = vpop.f32.mrb[18].mxu1 }
 0x89b   : > { %v3685_v40 = vadd.f32 %v3684_v33, %v3587_v8  ;;  %v3686_v22 = vpop.f32.mrb[19].mxu1  ;;  %3723 = vrot.lane.b32.xlu1 %v3697_v57, %s13298_s23 }
 0x89c   : > { %v3687_v59 = vadd.f32 %v3686_v22, %v3587_v8  ;;  %3725 = vrot.lane.b32.xlu0 %v3698_v58, %s13298_s23 }
 0x89d   : > { %v3699_v7 = vmax.f32 %v3685_v40, 0.0 }
 0x89e   : > { %v3700_v6 = vmax.f32 %v3687_v59, 0.0  ;;  %v3690_v3 = vpop.f32.mrb[20].mxu1 }
 0x89f   : > { %v3691_v31 = vadd.f32 %v3690_v3, %v3592_v51  ;;  %v3692_v44 = vpop.f32.mrb[21].mxu1  ;;  %3727 = vrot.lane.b32.xlu1 %v3699_v7, %s13298_s23 }
 0x8a0   : > { %v3693_v46 = vadd.f32 %v3692_v44, %v3592_v51  ;;  %3729 = vrot.lane.b32.xlu0 %v3700_v6, %s13298_s23 }
 0x8a1   : > { %v3701_v27 = vmax.f32 %v3691_v31, 0.0 }
 0x8a2   : > { %v3702_v18 = vmax.f32 %v3693_v46, 0.0 }
 0x8a3   : > { %3731 = vrot.lane.b32.xlu1 %v3701_v27, %s13298_s23 }
 0x8a4   : > { %3733 = vrot.lane.b32.xlu0 %v3702_v18, %s13298_s23 }
 0x8a7   : > { %3793 = vrot.lane.b32.xlu1 %v3788_v60, %s13289_s1 }
 0x8a8   : > { %3795 = vrot.lane.b32.xlu0 %v3792_v32, %s13289_s1 }
 0x8ab   : > { %3818 = vrot.lane.b32.xlu1 %v3813_v15, %s13221_s4 }
 0x8ac   : > { %3820 = vrot.lane.b32.xlu0 %v3817_v12, %s13221_s4 }
 0x8af   : > { %3843 = vrot.lane.b32.xlu1 %v3838_v55, %s13299_s19 }
 0x8b0   : > { %3845 = vrot.lane.b32.xlu0 %v3842_v20, %s13299_s19 }
 0x8b3   : > { %3868 = vrot.lane.b32.xlu1 %v3863_v54, %s13298_s23 }
 0x8b4   : > { %3870 = vrot.lane.b32.xlu0 %v3867_v61, %s13298_s23 }
 0x8b7   : > { %3893 = vrot.lane.b32.xlu1 %v3888_v56, %s13300_s2 }
 0x8b8   : > { %3895 = vrot.lane.b32.xlu0 %v3892_v43, %s13300_s2 }
 0x8bb   : > { %3918 = vrot.lane.b32.xlu1 %v3913_v17, %s13290_s27 }
 0x8bc   : > { %3920 = vrot.lane.b32.xlu0 %v3917_v53, %s13290_s27  ;;  %s13303_s27 = smov 116  }
 0x8bf   : > { %3943 = vrot.lane.b32.xlu1 %v3938_v1, %s13222_s29 }
 0x8c0   : > { %3945 = vrot.lane.b32.xlu0 %v3942_v45, %s13222_s29  ;;  %s13198_s29 = smov 7  }
 0x8c3   : > { %3968 = vrot.lane.b32.xlu1 %v3963_v52, %s13223_s28 }
 0x8c4   : > { %3970 = vrot.lane.b32.xlu0 %v3967_v26, %s13223_s28  ;;  %s13193_s28 = smov 120  }
 0x909   : > { %v3720_v34 = vpop.permute.xlu1 %3719 }
 0x90a   : > { %3747 = vst.msk [vmem:[#allocation6] sm:$0xff] %vm3211_vm9, %v3720_v34  ;;  %v3722_v42 = vpop.permute.xlu0 %3721 }
 0x90b   : > { %v3735_v10 = vsel %vm3187_vm12, %v3720_v34, %v3722_v42 }
 0x90c   : > { %3748 = vst.msk [vmem:[#allocation6 + $0x8] sm:$0xff] %vm3213_vm10, %v3735_v10 }
 0x90d   : > { %v3724_v47 = vpop.permute.xlu1 %3723 }
 0x90e   : > { %3749 = vst.msk [vmem:[#allocation6 + $0x10] sm:$0xff] %vm3211_vm9, %v3724_v47  ;;  %v3726_v62 = vpop.permute.xlu0 %3725 }
 0x90f   : > { %v3736_v23 = vsel %vm3187_vm12, %v3724_v47, %v3726_v62 }
 0x910   : > { %3750 = vst.msk [vmem:[#allocation6 + $0x18] sm:$0xff] %vm3213_vm10, %v3736_v23 }
 0x911   : > { %v3728_v49 = vpop.permute.xlu1 %3727  ;;  %v11755_v11 = vld [vmem:[#allocation6] sm:$0xff] }
 0x912   : > { %3751 = vst.msk [vmem:[#allocation6 + $0x20] sm:$0xff] %vm3211_vm9, %v3728_v49  ;;  %v3730_v16 = vpop.permute.xlu0 %3729  ;;  %v3775_v58 = vmul.f32 %v3768_v29, %v11755_v11 }
 0x913   : > { %v3737_v37 = vsel %vm3187_vm12, %v3728_v49, %v3730_v16  ;;  %v11749_v30 = vld [vmem:[#allocation6 + $0x8] sm:$0xff] }
 0x914   : > { %3752 = vst.msk [vmem:[#allocation6 + $0x28] sm:$0xff] %vm3213_vm10, %v3737_v37  ;;  %v3776_v36 = vmul.f32 %v3772_v21, %v11749_v30 }
 0x915   : > { %v3732_v24 = vpop.permute.xlu1 %3731  ;;  %v11752_v14 = vld [vmem:[#allocation6 + $0x10] sm:$0xff] }
 0x916   : > { %3753 = vst.msk [vmem:[#allocation6 + $0x30] sm:$0xff] %vm3211_vm9, %v3732_v24  ;;  %v3734_v19 = vpop.permute.xlu0 %3733  ;;  %v3777_v57 = vmul.f32 %v3768_v29, %v11752_v14  ;;  %vm13301_vm9 = vcmask 7168  }
 0x917   : > { %v3738_v50 = vsel %vm3187_vm12, %v3732_v24, %v3734_v19  ;;  %v11758_v38 = vld [vmem:[#allocation6 + $0x18] sm:$0xff] }
 0x918   : > { %3754 = vst.msk [vmem:[#allocation6 + $0x38] sm:$0xff] %vm3213_vm10, %v3738_v50  ;;  %v3778_v8 = vmul.f32 %v3772_v21, %v11758_v38  ;;  %v7940_v59 = vpack.c.bf16 %v3777_v57, %v3775_v58  ;;  %vm13302_vm10 = vcmask 15360  }
 0x919   : > { %v3794_v39 = vpop.permute.xlu1 %3793  ;;  %v11778_v15 = vld [vmem:[#allocation6 + $0x20] sm:$0xff] }
 0x91a   : > { %v3796_v33 = vpop.permute.xlu0 %3795  ;;  %v7938_v40 = vpack.c.bf16 %v3778_v8, %v3776_v36  ;;  %v3802_v6 = vmul.f32 %v3794_v39, %v11752_v14  ;;  %v3800_v3 = vmul.f32 %v3794_v39, %v11755_v11  ;;  %v3779_v17 = vmul.f32 %v3768_v29, %v11778_v15 }
 0x91b   : > { %v3797_v22 = vsel %vm13301_vm9, %v3794_v39, %v3796_v33  ;;  %v11772_v46 = vld [vmem:[#allocation6 + $0x28] sm:$0xff]  ;;  %v3804_v52 = vmul.f32 %v3794_v39, %v11778_v15 }
 0x91c   : > { %v3801_v7 = vmul.f32 %v3797_v22, %v11749_v30  ;;  %v3803_v51 = vmul.f32 %v3797_v22, %v11758_v38  ;;  %7939 = vmatprep.subr.bf16.mxu1 %v7938_v40  ;;  %v3780_v54 = vmul.f32 %v3772_v21, %v11772_v46  ;;  %v3805_v53 = vmul.f32 %v3797_v22, %v11772_v46 }
 0x91d   : > { %7941 = vmatpush1.bf16.msra.mxu1 %v7940_v59  ;;  %v3819_v31 = vpop.permute.xlu1 %3818  ;;  %v11770_v44 = vld [vmem:[#allocation6 + $0x30] sm:$0xff] }
 0x91e   : > { %v3821_v28 = vpop.permute.xlu0 %3820  ;;  %v8730_v27 = vpack.i.bf16 %v3803_v51, %v3802_v6  ;;  %v8720_v18 = vpack.i.bf16 %v3801_v7, %v3800_v3  ;;  %v3827_v0 = vmul.f32 %v3819_v31, %v11752_v14  ;;  %v3825_v55 = vmul.f32 %v3819_v31, %v11755_v11 }
 0x91f   : > { %v11774_v60 = vld [vmem:[#allocation6 + $0x38] sm:$0xff]  ;;  %v3822_v32 = vsel %vm13302_vm10, %v3819_v31, %v3821_v28  ;;  %v3781_v20 = vmul.f32 %v3768_v29, %v11770_v44  ;;  %v3806_v35 = vmul.f32 %v3794_v39, %v11770_v44  ;;  %v8740_v10 = vpack.i.bf16 %v3805_v53, %v3804_v52 }
 0x920   : > { %v3826_v12 = vmul.f32 %v3822_v32, %v11749_v30  ;;  %v3828_v5 = vmul.f32 %v3822_v32, %v11758_v38  ;;  %8731 = vrot.lane.b32.xlu0 %v8730_v27, %s13235_s26  ;;  %8721 = vrot.lane.b32.xlu1 %v8720_v18, %s13235_s26  ;;  %v3782_v61 = vmul.f32 %v3772_v21, %v11774_v60 }
 0x921   : > { %v3844_v63 = vpop.permute.xlu1 %3843  ;;  %v3807_v4 = vmul.f32 %v3797_v22, %v11774_v60  ;;  %v7944_v45 = vpack.c.bf16 %v3781_v20, %v3779_v17  ;;  %v3832_v16 = vmul.f32 %v3822_v32, %v11774_v60  ;;  %v3830_v37 = vmul.f32 %v3822_v32, %v11772_v46 }
 0x922   : > { %v3846_v56 = vpop.permute.xlu0 %3845  ;;  %v8735_v43 = vpack.i.bf16 %v3828_v5, %v3827_v0  ;;  %v8725_v2 = vpack.i.bf16 %v3826_v12, %v3825_v55  ;;  %v7942_v1 = vpack.c.bf16 %v3782_v61, %v3780_v54  ;;  %v3852_v23 = vmul.f32 %v3844_v63, %v11752_v14 }
 0x923   : > { %v3847_v41 = vsel %vm3296_vm6, %v3844_v63, %v3846_v56  ;;  %v8755_v34 = vpack.i.bf16 %v3807_v4, %v3806_v35  ;;  %v3850_v49 = vmul.f32 %v3844_v63, %v11755_v11  ;;  %v3831_v29 = vmul.f32 %v3819_v31, %v11770_v44 }
 0x924   : > { %8736 = vrot.lane.b32.xlu0 %v8735_v43, %s13234_s0  ;;  %7943 = vmatprep.subr.bf16.mxu1 %v7942_v1  ;;  %v3853_v26 = vmul.f32 %v3847_v41, %v11758_v38  ;;  %v3851_v42 = vmul.f32 %v3847_v41, %v11749_v30  ;;  %v3829_v19 = vmul.f32 %v3819_v31, %v11778_v15  ;;  %vm13310_vm6 = vcmask 1039360  }
 0x925   : > { %8726 = vrot.lane.b32.xlu1 %v8725_v2, %s13234_s0  ;;  %7945 = vmatpush1.bf16.msra.mxu1 %v7944_v45  ;;  %v3869_v47 = vpop.permute.xlu1 %3868  ;;  %v8775_v57 = vpack.i.bf16 %v3832_v16, %v3831_v29  ;;  %v3855_v36 = vmul.f32 %v3847_v41, %v11772_v46  ;;  %v3854_v40 = vmul.f32 %v3844_v63, %v11778_v15  ;;  %vm13312_vm9 = vmmov %vm13310_vm6 }
 0x926   : > { %v3871_v62 = vpop.permute.xlu0 %3870  ;;  %v8760_v25 = vpack.i.bf16 %v3853_v26, %v3852_v23  ;;  %v8745_v24 = vpack.i.bf16 %v3851_v42, %v3850_v49  ;;  %v8750_v8 = vpack.i.bf16 %v3830_v37, %v3829_v19  ;;  %v3877_v33 = vmul.f32 %v3869_v47, %v11752_v14  ;;  %vm13313_vm10 = vmmov %vm13310_vm6 }
 0x927   : > { %v3872_v21 = vsel %vm3187_vm12, %v3869_v47, %v3871_v62  ;;  %v3857_v22 = vmul.f32 %v3847_v41, %v11774_v60  ;;  %v8765_v6 = vpack.i.bf16 %v3855_v36, %v3854_v40  ;;  %v3856_v3 = vmul.f32 %v3844_v63, %v11770_v44 }
 0x928   : > { %8756 = vrot.lane.b32.xlu0 %v8755_v34, %s13235_s26  ;;  %v3878_v50 = vmul.f32 %v3872_v21, %v11758_v38  ;;  %v3876_v7 = vmul.f32 %v3872_v21, %v11749_v30  ;;  %v3875_v31 = vmul.f32 %v3869_v47, %v11755_v11  ;;  %v3880_v18 = vmul.f32 %v3872_v21, %v11772_v46 }
 0x929   : > { %8741 = vrot.lane.b32.xlu1 %v8740_v10, %s13235_s26  ;;  %v3894_v39 = vpop.permute.xlu1 %3893  ;;  %v8795_v27 = vpack.i.bf16 %v3857_v22, %v3856_v3  ;;  %v3879_v55 = vmul.f32 %v3869_v47, %v11778_v15  ;;  %v3882_v20 = vmul.f32 %v3872_v21, %v11774_v60  ;;  %vm13305_vm12 = vcmask 195584  }
 0x92a   : > { %v3896_v58 = vpop.permute.xlu0 %3895  ;;  %v8780_v59 = vpack.i.bf16 %v3878_v50, %v3877_v33  ;;  %v8770_v32 = vpack.i.bf16 %v3876_v7, %v3875_v31  ;;  %v3902_v5 = vmul.f32 %v3894_v39, %v11752_v14  ;;  %v3881_v56 = vmul.f32 %v3869_v47, %v11770_v44 }
 0x92b   : > { %v3897_v51 = vsel %vm3341_vm11, %v3894_v39, %v3896_v58  ;;  %v8785_v4 = vpack.i.bf16 %v3880_v18, %v3879_v55  ;;  %v3900_v43 = vmul.f32 %v3894_v39, %v11755_v11  ;;  %v3904_v52 = vmul.f32 %v3894_v39, %v11778_v15  ;;  %vm13311_vm11 = vmmov %vm13310_vm6 }
 0x92c   : > { %8761 = vrot.lane.b32.xlu0 %v8760_v25, %s13303_s27  ;;  %v3903_v28 = vmul.f32 %v3897_v51, %v11758_v38  ;;  %v3901_v54 = vmul.f32 %v3897_v51, %v11749_v30  ;;  %v8815_v17 = vpack.i.bf16 %v3882_v20, %v3881_v56  ;;  %v3905_v53 = vmul.f32 %v3897_v51, %v11772_v46 }
 0x92d   : > { %8746 = vrot.lane.b32.xlu1 %v8745_v24, %s13303_s27  ;;  %v3919_v0 = vpop.permute.xlu1 %3918  ;;  %v3907_v26 = vmul.f32 %v3897_v51, %v11774_v60  ;;  %v3906_v62 = vmul.f32 %v3894_v39, %v11770_v44 }
 0x92e   : > { %v3921_v12 = vpop.permute.xlu0 %3920  ;;  %v8800_v63 = vpack.i.bf16 %v3903_v28, %v3902_v5  ;;  %v8790_v41 = vpack.i.bf16 %v3901_v54, %v3900_v43  ;;  %v3927_v35 = vmul.f32 %v3919_v0, %v11752_v14  ;;  %v8805_v47 = vpack.i.bf16 %v3905_v53, %v3904_v52  ;;  %v4272_v28 = vld [vmem:[%s13103_s9 + $0x8] sm:$0xff]  ;;  %v4286_v54 = vld [vmem:[%s13104_s10 + $0x18] sm:$0xff] }
 0x92f   : > { %v3922_v61 = vsel %vm13305_vm12, %v3919_v0, %v3921_v12  ;;  %v3925_v23 = vmul.f32 %v3919_v0, %v11755_v11  ;;  %v8835_v16 = vpack.i.bf16 %v3907_v26, %v3906_v62  ;;  %v3929_v19 = vmul.f32 %v3919_v0, %v11778_v15  ;;  %4384 = vmatprep.mubr.f32.mxu1 %v4272_v28 }
 0x930   : > { %8776 = vrot.lane.b32.xlu0 %v8775_v57, %s13234_s0  ;;  %v3928_v2 = vmul.f32 %v3922_v61, %v11758_v38  ;;  %v3926_v42 = vmul.f32 %v3922_v61, %v11749_v30  ;;  %v3930_v25 = vmul.f32 %v3922_v61, %v11772_v46  ;;  %v3932_v50 = vmul.f32 %v3922_v61, %v11774_v60 }
 0x931   : > { %8751 = vrot.lane.b32.xlu1 %v8750_v8, %s13234_s0  ;;  %v3944_v1 = vpop.permute.xlu1 %3943  ;;  %v3931_v58 = vmul.f32 %v3919_v0, %v11770_v44  ;;  %vm4786_vm12 = vcmask 56320  }
 0x932   : > { %v3946_v45 = vpop.permute.xlu0 %3945  ;;  %v8820_v34 = vpack.i.bf16 %v3928_v2, %v3927_v35  ;;  %v8810_v37 = vpack.i.bf16 %v3926_v42, %v3925_v23  ;;  %v3952_v29 = vmul.f32 %v3944_v1, %v11752_v14  ;;  %v8825_v39 = vpack.i.bf16 %v3930_v25, %v3929_v19  ;;  %4787 = vst.msk [vmem:[#allocation8] sm:$0xff] %vm4786_vm12, %v13280_v13 }
 0x933   : > { %v3947_v10 = vsel %vm668_vm4, %v3944_v1, %v3946_v45  ;;  %vm13307_vm4 = vcmask 211968   ;;  %v3950_v33 = vmul.f32 %v3944_v1, %v11755_v11  ;;  %v8850_v22 = vpack.i.bf16 %v3932_v50, %v3931_v58  ;;  %4788 = vst.msk [vmem:[#allocation8 + $0x8] sm:$0xff] %vm4786_vm12, %v13280_v13  ;;  %4789 = vst.msk [vmem:[#allocation8 + $0x10] sm:$0xff] %vm4786_vm12, %v13280_v13 }
 0x934   : > { %8781 = vrot.lane.b32.xlu0 %v8780_v59, %s13304_s3  ;;  %v3953_v49 = vmul.f32 %v3947_v10, %v11758_v38  ;;  %v3951_v36 = vmul.f32 %v3947_v10, %v11749_v30  ;;  %v3957_v3 = vmul.f32 %v3947_v10, %v11774_v60  ;;  %4790 = vst.msk [vmem:[#allocation8 + $0x18] sm:$0xff] %vm4786_vm12, %v13280_v13  ;;  %5376 = vst.msk [vmem:[#allocation9] sm:$0xff] %vm4786_vm12, %v13280_v13 }
 0x935   : > { %8766 = vrot.lane.b32.xlu1 %v8765_v6, %s13303_s27  ;;  %v3969_v21 = vpop.permute.xlu1 %3968  ;;  %5377 = vst.msk [vmem:[#allocation9 + $0x8] sm:$0xff] %vm4786_vm12, %v13280_v13  ;;  %5378 = vst.msk [vmem:[#allocation9 + $0x10] sm:$0xff] %vm4786_vm12, %v13280_v13 }
 0x936   : > { %v3971_v24 = vpop.permute.xlu0 %3970  ;;  %v8840_v57 = vpack.i.bf16 %v3953_v49, %v3952_v29  ;;  %v8830_v7 = vpack.i.bf16 %v3951_v36, %v3950_v33  ;;  %v3977_v51 = vmul.f32 %v3969_v21, %v11752_v14  ;;  %v3975_v6 = vmul.f32 %v3969_v21, %v11755_v11  ;;  %5379 = vst.msk [vmem:[#allocation9 + $0x18] sm:$0xff] %vm4786_vm12, %v13280_v13 }
 0x937   : > { %v3972_v8 = vsel %vm13307_vm4, %v3969_v21, %v3971_v24  ;;  %v3954_v14 = vmul.f32 %v3944_v1, %v11778_v15  ;;  %v3981_v12 = vmul.f32 %v3969_v21, %v11770_v44  ;;  %v3979_v5 = vmul.f32 %v3969_v21, %v11778_v15  ;;  %5380 = vst.msk [vmem:[#allocation9 + $0x20] sm:$0xff] %vm4786_vm12, %v13280_v13 }
 0x938   : > { %8796 = vrot.lane.b32.xlu0 %v8795_v27, %s13303_s27  ;;  %v3978_v40 = vmul.f32 %v3972_v8, %v11758_v38  ;;  %v3976_v59 = vmul.f32 %v3972_v8, %v11749_v30  ;;  %v3955_v38 = vmul.f32 %v3947_v10, %v11772_v46  ;;  %v3956_v30 = vmul.f32 %v3944_v1, %v11770_v44  ;;  %v4285_v44 = vld [vmem:[%s13104_s10 + $0x10] sm:$0xff] }
 0x939   : > { %8771 = vrot.lane.b32.xlu1 %v8770_v32, %s13304_s3  ;;  %v3982_v11 = vmul.f32 %v3972_v8, %v11774_v60  ;;  %v3980_v32 = vmul.f32 %v3972_v8, %v11772_v46  ;;  %v4284_v60 = vld [vmem:[%s13104_s10 + $0x8] sm:$0xff]  ;;  %v4283_v46 = vld [vmem:[%s13104_s10] sm:$0xff]  ;;  %v13308_v15 = vmov 1   ;;  %vm4791_vm4 = vcmask 408920   ;;  %5381 = vst.msk [vmem:[#allocation9 + $0x28] sm:$0xff] %vm4786_vm12, %v13280_v13  ;;  %5382 = vst.msk [vmem:[#allocation9 + $0x30] sm:$0xff] %vm4786_vm12, %v13280_v13 }
 0x93a   : > { %v8855_v31 = vpack.i.bf16 %v3978_v40, %v3977_v51  ;;  %v8845_v27 = vpack.i.bf16 %v3976_v59, %v3975_v6  ;;  %v8870_v18 = vpack.i.bf16 %v3957_v3, %v3956_v30  ;;  %v8860_v0 = vpack.i.bf16 %v3955_v38, %v3954_v14  ;;  %5383 = vst.msk [vmem:[#allocation9 + $0x38] sm:$0xff] %vm4786_vm12, %v13280_v13 }
 0x93b   : > { %v8875_v55 = vpack.i.bf16 %v3982_v11, %v3981_v12  ;;  %v8865_v20 = vpack.i.bf16 %v3980_v32, %v3979_v5  ;;  %4792 = vst.msk [vmem:[#allocation8] sm:$0xff] %vm4791_vm4, %v13280_v13  ;;  %4793 = vst.msk [vmem:[#allocation8 + $0x8] sm:$0xff] %vm4791_vm4, %v13280_v13 }
 0x93c   : > { %8801 = vrot.lane.b32.xlu0 %v8800_v63, %s13306_s20  ;;  %v13309_v63 = vmov 2   ;;  %4794 = vst.msk [vmem:[#allocation8 + $0x10] sm:$0xff] %vm4791_vm4, %v13280_v13  ;;  %4795 = vst.msk [vmem:[#allocation8 + $0x18] sm:$0xff] %vm4791_vm4, %v13280_v13 }
 0x93d   : > { %8786 = vrot.lane.b32.xlu1 %v8785_v4, %s13304_s3  ;;  %5384 = vst.msk [vmem:[#allocation9] sm:$0xff] %vm4791_vm4, %v13280_v13  ;;  %5385 = vst.msk [vmem:[#allocation9 + $0x8] sm:$0xff] %vm4791_vm4, %v13280_v13 }
 0x93e   : > { %5386 = vst.msk [vmem:[#allocation9 + $0x10] sm:$0xff] %vm4791_vm4, %v13280_v13  ;;  %5387 = vst.msk [vmem:[#allocation9 + $0x18] sm:$0xff] %vm4791_vm4, %v13280_v13 }
 0x93f   : > { %5388 = vst.msk [vmem:[#allocation9 + $0x20] sm:$0xff] %vm4791_vm4, %v13280_v13  ;;  %5389 = vst.msk [vmem:[#allocation9 + $0x28] sm:$0xff] %vm4791_vm4, %v13280_v13 }
 0x940   : > { %8816 = vrot.lane.b32.xlu0 %v8815_v17, %s13304_s3  ;;  %5390 = vst.msk [vmem:[#allocation9 + $0x30] sm:$0xff] %vm4791_vm4, %v13280_v13  ;;  %5391 = vst.msk [vmem:[#allocation9 + $0x38] sm:$0xff] %vm4791_vm4, %v13280_v13 }
 0x941   : > { %8791 = vrot.lane.b32.xlu1 %v8790_v41, %s13306_s20 }
 0x944   : > { %8821 = vrot.lane.b32.xlu0 %v8820_v34, %s13237_s22 }
 0x945   : > { %8806 = vrot.lane.b32.xlu1 %v8805_v47, %s13306_s20 }
 0x948   : > { %8836 = vrot.lane.b32.xlu0 %v8835_v16, %s13306_s20 }
 0x949   : > { %8811 = vrot.lane.b32.xlu1 %v8810_v37, %s13237_s22 }
 0x94c   : > { %8841 = vrot.lane.b32.xlu0 %v8840_v57, %s13236_s30 }
 0x94d   : > { %8826 = vrot.lane.b32.xlu1 %v8825_v39, %s13237_s22 }
 0x950   : > { %8851 = vrot.lane.b32.xlu0 %v8850_v22, %s13237_s22  ;;  %s13195_s22 = smov 121  }
 0x951   : > { %8831 = vrot.lane.b32.xlu1 %v8830_v7, %s13236_s30 }
 0x954   : > { %8856 = vrot.lane.b32.xlu0 %v8855_v31, %s13240_s24 }
 0x955   : > { %8846 = vrot.lane.b32.xlu1 %v8845_v27, %s13240_s24 }
 0x958   : > { %8871 = vrot.lane.b32.xlu0 %v8870_v18, %s13236_s30 }
 0x959   : > { %8861 = vrot.lane.b32.xlu1 %v8860_v0, %s13236_s30  ;;  %s13325_s30 = sld [smem:[#allocation12_spill]] }
 0x95c   : > { %8876 = vrot.lane.b32.xlu0 %v8875_v55, %s13240_s24 }
 0x95d   : > { %8866 = vrot.lane.b32.xlu1 %v8865_v20, %s13240_s24  ;;  %s13324_s24 = sld [smem:[#allocation22_spill]] }
 0x960   : > { %4294 = vperm.xlu0 %8718, %v4284_v60  }
 0x961   : > { %4289 = vperm.xlu1 %8719, %v4283_v46  }
 0x964   : > { %4299 = vperm.xlu0 %8718, %v4285_v44  }
 0x965   : > { %8880 = vset.pattern.permute.xlu1 %v13308_v15 }
 0x966   : > { %4507 = vperm.xlu1 %8880, %v4283_v46  }
 0x968   : > { %8882 = vset.pattern.permute.xlu0 %v13308_v15 }
 0x969   : > { %4511 = vperm.xlu0 %8882, %v4284_v60  }
 0x96a   : > { %8881 = vset.pattern.permute.xlu1 %v13309_v63 }
 0x96b   : > { %4531 = vperm.xlu1 %8881, %v4283_v46  }
 0x96d   : > { %4515 = vperm.xlu0 %8882, %v4285_v44  }
 0x96f   : > { %8883 = vset.pattern.permute.xlu1 %v13269_v9 }
 0x970   : > { %4304 = vperm.xlu1 %8883, %v4286_v54  }
 0x971   : > { %4519 = vperm.xlu0 %8882, %v4286_v54  }
 0x974   : > { %8884 = vset.pattern.permute.xlu1 %v13309_v63 }
 0x975   : > { %4535 = vperm.xlu1 %8884, %v4284_v60   ;;  %8965 = vset.pattern.permute.xlu0 %v13269_v9 }
 0x979   : > { %4539 = vperm.xlu1 %8884, %v4285_v44  }
 0x97d   : > { %4543 = vperm.xlu1 %8884, %v4286_v54  }
 0x981   : > { %8966 = vset.pattern.permute.xlu1 %v13269_v9 }
 0x992   : > { %v8732_v61 = vpop.permute.xlu0 %8731  ;;  %v8722_v43 = vpop.permute.xlu1 %8721 }
 0x993   : > { %v8734_v4 = vunpack.i.h.bf16 %v8732_v61  ;;  %v8733_v56 = vunpack.i.l.bf16 %v8732_v61  ;;  %v8724_v2 = vunpack.i.h.bf16 %v8722_v43  ;;  %v8723_v17 = vunpack.i.l.bf16 %v8722_v43 }
 0x995   : > { %v4008_v53 = vsel %vm13310_vm6, %v8733_v56, %v8734_v4  ;;  %v4007_v41 = vsel %vm13311_vm11, %v8723_v17, %v8724_v2  ;;  %v7946_v45 = vpack.c.bf16 %v8734_v4, %v8724_v2 }
 0x996   : > { %v8737_v1 = vpop.permute.xlu0 %8736  ;;  %v7948_v52 = vpack.c.bf16 %v4008_v53, %v4007_v41 }
 0x997   : > { %v8727_v35 = vpop.permute.xlu1 %8726  ;;  %7947 = vmatprep.subr.bf16.mxu1 %v7946_v45  ;;  %v8739_v26 = vunpack.i.h.bf16 %v8737_v1  ;;  %v8738_v34 = vunpack.i.l.bf16 %v8737_v1 }
 0x998   : > { %7949 = vmatpush1.bf16.msra.mxu1 %v7948_v52  ;;  %v8729_v10 = vunpack.i.h.bf16 %v8727_v35  ;;  %v8728_v47 = vunpack.i.l.bf16 %v8727_v35 }
 0x999   : > { %v4044_v19 = vsel %vm873_vm1, %v8738_v34, %v8739_v26 }
 0x99a   : > { %v8757_v42 = vpop.permute.xlu0 %8756  ;;  %v4043_v50 = vsel %vm873_vm1, %v8728_v47, %v8729_v10  ;;  %v7954_v8 = vpack.c.bf16 %v8739_v26, %v8729_v10 }
 0x99b   : > { %v8759_v62 = vunpack.i.h.bf16 %v8757_v42  ;;  %v8758_v23 = vunpack.i.l.bf16 %v8757_v42  ;;  %v8742_v49 = vpop.permute.xlu1 %8741  ;;  %v7956_v58 = vpack.c.bf16 %v4044_v19, %v4043_v50 }
 0x99c   : > { %v8744_v16 = vunpack.i.h.bf16 %v8742_v49  ;;  %v8743_v25 = vunpack.i.l.bf16 %v8742_v49 }
 0x99d   : > { %v4010_v37 = vsel %vm13312_vm9, %v8758_v23, %v8759_v62 }
 0x99e   : > { %v4009_v21 = vsel %vm13313_vm10, %v8743_v25, %v8744_v16  ;;  %v8762_v24 = vpop.permute.xlu0 %8761  ;;  %v7950_v29 = vpack.c.bf16 %v8759_v62, %v8744_v16 }
 0x99f   : > { %v8747_v57 = vpop.permute.xlu1 %8746  ;;  %v7952_v36 = vpack.c.bf16 %v4010_v37, %v4009_v21  ;;  %v8764_v33 = vunpack.i.h.bf16 %v8762_v24  ;;  %v8763_v40 = vunpack.i.l.bf16 %v8762_v24 }
 0x9a0   : > { %7951 = vmatprep.subr.bf16.mxu1 %v7950_v29  ;;  %v8749_v51 = vunpack.i.h.bf16 %v8747_v57  ;;  %v8748_v6 = vunpack.i.l.bf16 %v8747_v57 }
 0x9a1   : > { %7953 = vmatpush1.bf16.msra.mxu1 %v7952_v36  ;;  %v4080_v18 = vsel %vm3463_vm15, %v8763_v40, %v8764_v33 }
 0x9a2   : > { %7955 = vmatprep.subr.bf16.mxu1 %v7954_v8  ;;  %v8777_v39 = vpop.permute.xlu0 %8776  ;;  %v4079_v32 = vsel %vm3463_vm15, %v8748_v6, %v8749_v51  ;;  %v7962_v0 = vpack.c.bf16 %v8764_v33, %v8749_v51 }
 0x9a3   : > { %v8779_v22 = vunpack.i.h.bf16 %v8777_v39  ;;  %v8778_v59 = vunpack.i.l.bf16 %v8777_v39  ;;  %v8752_v7 = vpop.permute.xlu1 %8751  ;;  %v7964_v44 = vpack.c.bf16 %v4080_v18, %v4079_v32 }
 0x9a4   : > { %v8754_v3 = vunpack.i.h.bf16 %v8752_v7  ;;  %v8753_v31 = vunpack.i.l.bf16 %v8752_v7 }
 0x9a5   : > { %v4046_v28 = vsel %vm873_vm1, %v8778_v59, %v8779_v22  ;;  %7957 = vmatpush1.bf16.msra.mxu1 %v7956_v58 }
 0x9a6   : > { %v4045_v38 = vsel %vm873_vm1, %v8753_v31, %v8754_v3  ;;  %v8782_v27 = vpop.permute.xlu0 %8781  ;;  %v7958_v30 = vpack.c.bf16 %v8779_v22, %v8754_v3  ;;  %vm4307_vm1 = vcmask 261120  }
 0x9a7   : > { %v8767_v14 = vpop.permute.xlu1 %8766  ;;  %v7960_v11 = vpack.c.bf16 %v4046_v28, %v4045_v38  ;;  %v8784_v2 = vunpack.i.h.bf16 %v8782_v27  ;;  %v8783_v17 = vunpack.i.l.bf16 %v8782_v27 }
 0x9a8   : > { %7959 = vmatprep.subr.bf16.mxu1 %v7958_v30  ;;  %v8769_v12 = vunpack.i.h.bf16 %v8767_v14  ;;  %v8768_v5 = vunpack.i.l.bf16 %v8767_v14 }
 0x9a9   : > { %7961 = vmatpush1.bf16.msra.mxu1 %v7960_v11  ;;  %v4116_v34 = vsel %vm3482_vm7, %v8783_v17, %v8784_v2 }
 0x9aa   : > { %7963 = vmatprep.subr.bf16.mxu1 %v7962_v0  ;;  %v8797_v55 = vpop.permute.xlu0 %8796  ;;  %v4081_v4 = vsel %vm3463_vm15, %v8768_v5, %v8769_v12 }
 0x9ab   : > { %v8799_v20 = vunpack.i.h.bf16 %v8797_v55  ;;  %v8798_v60 = vunpack.i.l.bf16 %v8797_v55  ;;  %v8772_v46 = vpop.permute.xlu1 %8771 }
 0x9ac   : > { %v8774_v54 = vunpack.i.h.bf16 %v8772_v46  ;;  %v8773_v61 = vunpack.i.l.bf16 %v8772_v46 }
 0x9ad   : > { %v4082_v56 = vsel %vm3463_vm15, %v8798_v60, %v8799_v20  ;;  %7965 = vmatpush1.bf16.msra.mxu1 %v7964_v44  ;;  %v7966_v43 = vpack.c.bf16 %v8799_v20, %v8769_v12 }
 0x9ae   : > { %v8802_v53 = vpop.permute.xlu0 %8801  ;;  %v7968_v41 = vpack.c.bf16 %v4082_v56, %v4081_v4  ;;  %v4115_v45 = vsel %vm3482_vm7, %v8773_v61, %v8774_v54  ;;  %v7970_v35 = vpack.c.bf16 %v8784_v2, %v8774_v54 }
 0x9af   : > { %v8787_v1 = vpop.permute.xlu1 %8786  ;;  %7967 = vmatprep.subr.bf16.mxu1 %v7966_v43  ;;  %v7972_v23 = vpack.c.bf16 %v4116_v34, %v4115_v45  ;;  %v8804_v24 = vunpack.i.h.bf16 %v8802_v53  ;;  %v8803_v29 = vunpack.i.l.bf16 %v8802_v53 }
 0x9b0   : > { %v8789_v52 = vunpack.i.h.bf16 %v8787_v1  ;;  %v8788_v26 = vunpack.i.l.bf16 %v8787_v1 }
 0x9b1   : > { %7969 = vmatpush1.bf16.msra.mxu1 %v7968_v41  ;;  %v4152_v33 = vsel %vm3501_vm14, %v8803_v29, %v8804_v24 }
 0x9b2   : > { %7971 = vmatprep.subr.bf16.mxu1 %v7970_v35  ;;  %v8817_v42 = vpop.permute.xlu0 %8816  ;;  %v4117_v25 = vsel %vm3482_vm7, %v8788_v26, %v8789_v52 }
 0x9b3   : > { %v8819_v10 = vunpack.i.h.bf16 %v8817_v42  ;;  %v8818_v47 = vunpack.i.l.bf16 %v8817_v42  ;;  %v8792_v62 = vpop.permute.xlu1 %8791 }
 0x9b4   : > { %v8794_v49 = vunpack.i.h.bf16 %v8792_v62  ;;  %v8793_v16 = vunpack.i.l.bf16 %v8792_v62 }
 0x9b5   : > { %v4118_v37 = vsel %vm3482_vm7, %v8818_v47, %v8819_v10  ;;  %7973 = vmatpush1.bf16.msra.mxu1 %v7972_v23  ;;  %v7974_v21 = vpack.c.bf16 %v8819_v10, %v8789_v52 }
 0x9b6   : > { %v8822_v19 = vpop.permute.xlu0 %8821  ;;  %v7976_v50 = vpack.c.bf16 %v4118_v37, %v4117_v25  ;;  %v4151_v36 = vsel %vm3501_vm14, %v8793_v16, %v8794_v49  ;;  %v7978_v8 = vpack.c.bf16 %v8804_v24, %v8794_v49 }
 0x9b7   : > { %v8807_v57 = vpop.permute.xlu1 %8806  ;;  %7975 = vmatprep.subr.bf16.mxu1 %v7974_v21  ;;  %v7980_v51 = vpack.c.bf16 %v4152_v33, %v4151_v36  ;;  %v8824_v27 = vunpack.i.h.bf16 %v8822_v19  ;;  %v8823_v30 = vunpack.i.l.bf16 %v8822_v19 }
 0x9b8   : > { %v8809_v39 = vunpack.i.h.bf16 %v8807_v57  ;;  %v8808_v58 = vunpack.i.l.bf16 %v8807_v57 }
 0x9b9   : > { %7977 = vmatpush1.bf16.msra.mxu1 %v7976_v50  ;;  %v4188_v55 = vsel %vm914_vm2, %v8823_v30, %v8824_v27  ;;  %v4273_v30 = vld [vmem:[%s13103_s9 + $0x10] sm:$0xff] }
 0x9ba   : > { %7979 = vmatprep.subr.bf16.mxu1 %v7978_v8  ;;  %v8837_v40 = vpop.permute.xlu0 %8836  ;;  %v4153_v31 = vsel %vm3501_vm14, %v8808_v58, %v8809_v39 }
 0x9bb   : > { %v8839_v22 = vunpack.i.h.bf16 %v8837_v40  ;;  %v8838_v59 = vunpack.i.l.bf16 %v8837_v40  ;;  %v8812_v7 = vpop.permute.xlu1 %8811 }
 0x9bc   : > { %v8814_v6 = vunpack.i.h.bf16 %v8812_v7  ;;  %v8813_v3 = vunpack.i.l.bf16 %v8812_v7 }
 0x9bd   : > { %v4154_v28 = vsel %vm3501_vm14, %v8838_v59, %v8839_v22  ;;  %7981 = vmatpush1.bf16.msra.mxu1 %v7980_v51  ;;  %v7982_v38 = vpack.c.bf16 %v8839_v22, %v8809_v39 }
 0x9be   : > { %v8842_v14 = vpop.permute.xlu0 %8841  ;;  %v7984_v11 = vpack.c.bf16 %v4154_v28, %v4153_v31  ;;  %v4187_v32 = vsel %vm914_vm2, %v8813_v3, %v8814_v6  ;;  %v7986_v0 = vpack.c.bf16 %v8824_v27, %v8814_v6  ;;  %v4271_v6 = vld [vmem:[%s13103_s9] sm:$0xff]  ;;  %v4274_v27 = vld [vmem:[%s13103_s9 + $0x18] sm:$0xff] }
 0x9bf   : > { %v8827_v18 = vpop.permute.xlu1 %8826  ;;  %7983 = vmatprep.subr.bf16.mxu1 %v7982_v38  ;;  %v7988_v54 = vpack.c.bf16 %v4188_v55, %v4187_v32  ;;  %v8844_v17 = vunpack.i.h.bf16 %v8842_v14  ;;  %v8843_v53 = vunpack.i.l.bf16 %v8842_v14  ;;  %v4275_v28 = vld [vmem:[%s13103_s9 + $0x20] sm:$0xff]  ;;  %v4278_v14 = vld [vmem:[%s13103_s9 + $0x38] sm:$0xff]  ;;  %v4281_v32 = vld [vmem:[%s13103_s9 + $0x50] sm:$0xff] }
 0x9c0   : > { %v8829_v12 = vunpack.i.h.bf16 %v8827_v18  ;;  %v8828_v5 = vunpack.i.l.bf16 %v8827_v18  ;;  %v4276_v18 = vld [vmem:[%s13103_s9 + $0x28] sm:$0xff] }
 0x9c1   : > { %7985 = vmatpush1.bf16.msra.mxu1 %v7984_v11  ;;  %v4224_v62 = vsel %vm955_vm3, %v8843_v53, %v8844_v17  ;;  %v4277_v11 = vld [vmem:[%s13103_s9 + $0x30] sm:$0xff] }
 0x9c2   : > { %7987 = vmatprep.subr.bf16.mxu1 %v7986_v0  ;;  %v8852_v20 = vpop.permute.xlu0 %8851  ;;  %v4189_v56 = vsel %vm914_vm2, %v8828_v5, %v8829_v12  ;;  %v4280_v0 = vld [vmem:[%s13103_s9 + $0x48] sm:$0xff]  ;;  %v4282_v5 = vld [vmem:[%s13103_s9 + $0x58] sm:$0xff] }
 0x9c3   : > { %v8854_v60 = vunpack.i.h.bf16 %v8852_v20  ;;  %v8853_v46 = vunpack.i.l.bf16 %v8852_v20  ;;  %v8832_v44 = vpop.permute.xlu1 %8831 }
 0x9c4   : > { %v8834_v61 = vunpack.i.h.bf16 %v8832_v44  ;;  %v8833_v4 = vunpack.i.l.bf16 %v8832_v44 }
 0x9c5   : > { %v4190_v43 = vsel %vm914_vm2, %v8853_v46, %v8854_v60  ;;  %7989 = vmatpush1.bf16.msra.mxu1 %v7988_v54  ;;  %v7990_v2 = vpack.c.bf16 %v8854_v60, %v8829_v12  ;;  %v4279_v12 = vld [vmem:[%s13103_s9 + $0x40] sm:$0xff]  ;;  %vm4562_vm2 = vcmask 236672  }
 0x9c6   : > { %v8857_v41 = vpop.permute.xlu0 %8856  ;;  %v7992_v1 = vpack.c.bf16 %v4190_v43, %v4189_v56  ;;  %v4223_v26 = vsel %vm955_vm3, %v8833_v4, %v8834_v61  ;;  %v7994_v10 = vpack.c.bf16 %v8844_v17, %v8834_v61 }
 0x9c7   : > { %v8859_v45 = vunpack.i.h.bf16 %v8857_v41  ;;  %v8858_v35 = vunpack.i.l.bf16 %v8857_v41  ;;  %v8847_v52 = vpop.permute.xlu1 %8846  ;;  %7991 = vmatprep.subr.bf16.mxu1 %v7990_v2  ;;  %v7996_v24 = vpack.c.bf16 %v4224_v62, %v4223_v26 }
 0x9c8   : > { %v8849_v34 = vunpack.i.h.bf16 %v8847_v52  ;;  %v8848_v42 = vunpack.i.l.bf16 %v8847_v52 }
 0x9c9   : > { %v4260_v47 = vsel %vm996_vm5, %v8858_v35, %v8859_v45  ;;  %7993 = vmatpush1.bf16.msra.mxu1 %v7992_v1 }
 0x9ca   : > { %v4259_v23 = vsel %vm996_vm5, %v8848_v42, %v8849_v34  ;;  %7995 = vmatprep.subr.bf16.mxu1 %v7994_v10  ;;  %v8872_v49 = vpop.permute.xlu0 %8871  ;;  %v8002_v16 = vpack.c.bf16 %v8859_v45, %v8849_v34 }
 0x9cb   : > { %v8874_v25 = vunpack.i.h.bf16 %v8872_v49  ;;  %v8873_v37 = vunpack.i.l.bf16 %v8872_v49  ;;  %v8862_v21 = vpop.permute.xlu1 %8861  ;;  %v8004_v29 = vpack.c.bf16 %v4260_v47, %v4259_v23 }
 0x9cc   : > { %v8864_v19 = vunpack.i.h.bf16 %v8862_v21  ;;  %v8863_v50 = vunpack.i.l.bf16 %v8862_v21  ;;  %8003 = vmatprep.subr.bf16.mxu0 %v8002_v16 }
 0x9cd   : > { %v4226_v57 = vsel %vm955_vm3, %v8873_v37, %v8874_v25  ;;  %7997 = vmatpush1.bf16.msra.mxu1 %v7996_v24  ;;  %8005 = vmatpush1.bf16.msra.mxu0 %v8004_v29 }
 0x9ce   : > { %v4225_v36 = vsel %vm955_vm3, %v8863_v50, %v8864_v19  ;;  %v8877_v8 = vpop.permute.xlu0 %8876  ;;  %v7998_v39 = vpack.c.bf16 %v8874_v25, %v8864_v19  ;;  %vm13314_vm3 = vmmov %vm13310_vm6  ;;  %vm6369_vm6 = vcmask 351520  }
 0x9cf   : > { %v8879_v58 = vunpack.i.h.bf16 %v8877_v8  ;;  %v8878_v33 = vunpack.i.l.bf16 %v8877_v8  ;;  %v8867_v40 = vpop.permute.xlu1 %8866  ;;  %v8000_v22 = vpack.c.bf16 %v4226_v57, %v4225_v36  ;;  %vm13316_vm7 = vmmov %vm13314_vm3 }
 0x9d0   : > { %v8869_v59 = vunpack.i.h.bf16 %v8867_v40  ;;  %v8868_v7 = vunpack.i.l.bf16 %v8867_v40  ;;  %7999 = vmatprep.subr.bf16.mxu1 %v7998_v39  ;;  %vm13317_vm14 = vmmov %vm13314_vm3 }
 0x9d1   : > { %v4262_v51 = vsel %vm996_vm5, %v8878_v33, %v8879_v58  ;;  %8001 = vmatpush1.bf16.msra.mxu1 %v8000_v22 }
 0x9d2   : > { %v4261_v3 = vsel %vm996_vm5, %v8868_v7, %v8869_v59  ;;  %v8006_v31 = vpack.c.bf16 %v8879_v58, %v8869_v59  ;;  %vm13315_vm5 = vmmov %vm13314_vm3 }
 0x9d3   : > { %v8008_v38 = vpack.c.bf16 %v4262_v51, %v4261_v3 }
 0x9d4   : > { %4385 = vmatmul.mubr.f32.vlgmr.msra.gmra.mrb[22].mxu1 %v4271_v6  ;;  %8007 = vmatprep.subr.bf16.mxu0 %v8006_v31 }
 0x9d5   : > { %8009 = vmatpush1.bf16.msra.mxu0 %v8008_v38  ;;  %4390 = vmatprep.mubr.f32.mxu1 %v4275_v28 }
 0x9d6   : > { %8010 = vmatprep.subr.bf16.mxu0 %v9328_v48 }
 0x9d8   : > { %4391 = vmatmul.mubr.f32.gmra.mrb[24].mxu1 %v4274_v27  ;;  %7190 = vmatmul.mubr.msk.f32.vlgmr.msra.gmra.mrb[12].mxu0 %vm4307_vm1, %v4273_v30 }
 0x9d9   : > { %4396 = vmatprep.mubr.f32.mxu1 %v4278_v14  ;;  %4479 = vmatprep.mubr.f32.mxu0 %v13280_v13 }
 0x9dc   : > { %4397 = vmatmul.mubr.f32.gmra.mrb[26].mxu1 %v4277_v11  ;;  %7191 = vmatmul.mubr.msk.f32.gmra.mrb[14].mxu0 %vm4307_vm1, %v4276_v18 }
 0x9dd   : > { %4402 = vmatprep.mubr.f32.mxu1 %v4281_v32  ;;  %4485 = vmatprep.mubr.f32.mxu0 %v13280_v13 }
 0x9df   : > { %v4295_v60 = vpop.permute.xlu0 %4294 }
 0x9e0   : > { %4403 = vmatmul.mubr.f32.gmra.mrb[28].mxu1 %v4280_v0  ;;  %7192 = vmatmul.mubr.msk.f32.gmra.mrb[16].mxu0 %vm4307_vm1, %v4279_v12  ;;  %v4290_v55 = vpop.permute.xlu1 %4289 }
 0x9e1   : > { %4491 = vmatprep.mubr.f32.mxu0 %v13280_v13 }
 0x9e3   : > { %v4300_v61 = vpop.permute.xlu0 %4299 }
 0x9e4   : > { %7193 = vmatmul.mubr.msk.f32.gmra.mrb[18].mxu0 %vm4307_vm1, %v4282_v5 }
 0x9e5   : > { %v4508_v20 = vpop.permute.xlu1 %4507 }
 0x9e8   : > { %v4512_v26 = vpop.permute.xlu0 %4511 }
 0x9ea   : > { %v4532_v46 = vpop.permute.xlu1 %4531 }
 0x9ec   : > { %v4516_v59 = vpop.permute.xlu0 %4515 }
 0x9ef   : > { %v4305_v56 = vpop.permute.xlu1 %4304 }
 0x9f4   : > { %v4536_v37 = vpop.permute.xlu1 %4535 }
 0x9f8   : > { %v4540_v38 = vpop.permute.xlu1 %4539 }
 0xaa7   : > { %v4386_v44 = vpop.f32.mrb[22].mxu1 }
 0xaa8   : > { %v4388_v54 = vpop.f32.mrb[23].mxu1  ;;  %v4387_v4 = vadd.f32 %v4386_v44, %v4290_v55 }
 0xaa9   : > { %v4389_v43 = vadd.f32 %v4388_v54, %v4290_v55  ;;  %v4544_v54 = vpop.permute.xlu1 %4543 }
 0xaab   : > { %v4392_v2 = vpop.f32.mrb[24].mxu1  ;;  %v4475_v17 = vpop.f32.mrb[12].mxu0 }
 0xaac   : > { %v4476_v53 = vadd.f32 %v4475_v17, %v4387_v4  ;;  %v4394_v41 = vpop.f32.mrb[25].mxu1  ;;  %v4477_v1 = vpop.f32.mrb[13].mxu0  ;;  %v4393_v35 = vadd.f32 %v4392_v2, %v4295_v60  ;;  %v4671_v2 = vld [vmem:[%s13106_s12] sm:$0xff]  ;;  %v4672_v17 = vld [vmem:[%s13106_s12 + $0x8] sm:$0xff] }
 0xaad   : > { %v4478_v45 = vadd.f32 %v4477_v1, %v4389_v43  ;;  %v4395_v34 = vadd.f32 %v4394_v41, %v4295_v60  ;;  %v8011_v1 = vpack.c.bf16 %v4672_v17, %v4671_v2 }
 0xaae   : > { %v4498_v52 = vmax.f32 %v4476_v53, 0.0  ;;  %v4673_v53 = vld [vmem:[%s13106_s12 + $0x10] sm:$0xff] }
 0xaaf   : > { %v4499_v42 = vmax.f32 %v4478_v45, 0.0  ;;  %v4398_v10 = vpop.f32.mrb[26].mxu1  ;;  %v4481_v47 = vpop.f32.mrb[14].mxu0  ;;  %v4674_v45 = vld [vmem:[%s13106_s12 + $0x18] sm:$0xff]  ;;  %8012 = vmatpush1.bf16.msra.mxu0 %v8011_v1 }
 0xab0   : > { %v4522_v62 = vmul.f32 %v4508_v20, %v4498_v52  ;;  %v4482_v23 = vadd.f32 %v4481_v47, %v4393_v35  ;;  %v4400_v49 = vpop.f32.mrb[27].mxu1  ;;  %v4483_v16 = vpop.f32.mrb[15].mxu0  ;;  %v4399_v29 = vadd.f32 %v4398_v10, %v4300_v61  ;;  %v8014_v35 = vpack.c.bf16 %v4674_v45, %v4673_v53  ;;  %8013 = vmatprep.subr.bf16.mxu0 %v9328_v48  ;;  %v4675_v52 = vld [vmem:[%s13106_s12 + $0x20] sm:$0xff]  ;;  %v4677_v10 = vld [vmem:[%s13106_s12 + $0x30] sm:$0xff]  ;;  %v4678_v47 = vld [vmem:[%s13106_s12 + $0x38] sm:$0xff] }
 0xab1   : > { %v4523_v25 = vmul.f32 %v4508_v20, %v4499_v42  ;;  %v4484_v21 = vadd.f32 %v4483_v16, %v4395_v34  ;;  %v4401_v57 = vadd.f32 %v4400_v49, %v4300_v61  ;;  %v4520_v20 = vpop.permute.xlu0 %4519  ;;  %v4679_v49 = vld [vmem:[%s13106_s12 + $0x40] sm:$0xff]  ;;  %v4680_v16 = vld [vmem:[%s13106_s12 + $0x48] sm:$0xff] }
 0xab2   : > { %v11976_v24 = vadd.f32 %v4532_v46, %v4522_v62  ;;  %v4500_v19 = vmax.f32 %v4482_v23, 0.0  ;;  %v8020_v23 = vpack.c.bf16 %v4678_v47, %v4677_v10 }
 0xab3   : > { %v11978_v50 = vadd.f32 %v4532_v46, %v4523_v25  ;;  %v4501_v36 = vmax.f32 %v4484_v21, 0.0  ;;  %v4404_v8 = vpop.f32.mrb[28].mxu1  ;;  %v4487_v39 = vpop.f32.mrb[16].mxu0  ;;  %8015 = vmatpush1.bf16.msra.mxu0 %v8014_v35  ;;  %v8023_v25 = vpack.c.bf16 %v4680_v16, %v4679_v49  ;;  %v4682_v21 = vld [vmem:[%s13106_s12 + $0x58] sm:$0xff] }
 0xab4   : > { %v4524_v58 = vmul.f32 %v4512_v26, %v4500_v19  ;;  %v4488_v33 = vadd.f32 %v4487_v39, %v4399_v29  ;;  %v4406_v40 = vpop.f32.mrb[29].mxu1  ;;  %v4489_v22 = vpop.f32.mrb[17].mxu0  ;;  %4583 = vrot.lane.b32.xlu0 %v11976_v24, %s13235_s26  ;;  %v4405_v3 = vadd.f32 %v4404_v8, %v4305_v56  ;;  %8016 = vmatprep.subr.bf16.mxu0 %v9328_v48  ;;  %v4683_v19 = vld [vmem:[%s13106_s12 + $0x60] sm:$0xff]  ;;  %v4685_v8 = vld [vmem:[%s13106_s12 + $0x70] sm:$0xff]  ;;  %v4686_v39 = vld [vmem:[%s13106_s12 + $0x78] sm:$0xff] }
 0xab5   : > { %4555 = vst.msk [vmem:[#allocation7 + $0x8] sm:$0xff] %vm2374_vm0, %v11978_v50  ;;  %v4525_v7 = vmul.f32 %v4512_v26, %v4501_v36  ;;  %v4490_v51 = vadd.f32 %v4489_v22, %v4401_v57  ;;  %v4407_v27 = vadd.f32 %v4406_v40, %v4305_v56  ;;  %v4676_v26 = vld [vmem:[%s13106_s12 + $0x28] sm:$0xff] }
 0xab6   : > { %4563 = vst.msk [vmem:[#allocation7 + $0x8] sm:$0xff] %vm4562_vm2, %v13280_v13  ;;  %v11986_v6 = vadd.f32 %v4536_v37, %v4524_v58  ;;  %v4502_v31 = vmax.f32 %v4488_v33, 0.0  ;;  %v8017_v42 = vpack.c.bf16 %v4676_v26, %v4675_v52  ;;  %v4684_v57 = vld [vmem:[%s13106_s12 + $0x68] sm:$0xff]  ;;  %v8032_v58 = vpack.c.bf16 %v4686_v39, %v4685_v8  ;;  %v4687_v33 = vld [vmem:[%s13106_s12 + $0x80] sm:$0xff] }
 0xab7   : > { %v11988_v28 = vadd.f32 %v4536_v37, %v4525_v7  ;;  %v4503_v30 = vmax.f32 %v4490_v51, 0.0  ;;  %v4493_v14 = vpop.f32.mrb[18].mxu0  ;;  %v4681_v37 = vld [vmem:[%s13106_s12 + $0x50] sm:$0xff]  ;;  %v8029_v36 = vpack.c.bf16 %v4684_v57, %v4683_v19  ;;  %v4688_v40 = vld [vmem:[%s13106_s12 + $0x88] sm:$0xff]  ;;  %v12169_v8 = vld [vmem:[%s13111_s17 + $0x5] ss:$0 sm:$0xff] }
 0xab8   : > { %v4526_v11 = vmul.f32 %v4516_v59, %v4502_v31  ;;  %v4494_v18 = vadd.f32 %v4493_v14, %v4405_v3  ;;  %v4495_v32 = vpop.f32.mrb[19].mxu0  ;;  %4587 = vrot.lane.b32.xlu0 %v11986_v6, %s13235_s26  ;;  %8018 = vmatpush1.bf16.msra.mxu0 %v8017_v42  ;;  %v8026_v29 = vpack.c.bf16 %v4682_v21, %v4681_v37  ;;  %v12178_v39 = vld [vmem:[%s13111_s17 + $0x2] ss:$0 sm:$0xff] }
 0xab9   : > { %4557 = vst.msk [vmem:[#allocation7 + $0x18] sm:$0xff] %vm2374_vm0, %v11988_v28  ;;  %v4527_v0 = vmul.f32 %v4516_v59, %v4503_v30  ;;  %v4496_v12 = vadd.f32 %v4495_v32, %v4407_v27  ;;  %8019 = vmatprep.subr.bf16.mxu0 %v9328_v48  ;;  %v8035_v22 = vpack.c.bf16 %v4688_v40, %v4687_v33  ;;  %v12192_v33 = vld [vmem:[%s13111_s17 + $0x3] ss:$0 sm:$0xff]  ;;  %v12197_v40 = vld [vmem:[%s13111_s17 + $0x7] ss:$0 sm:$0xff] }
 0xaba   : > { %4564 = vst.msk [vmem:[#allocation7 + $0x18] sm:$0xff] %vm4562_vm2, %v13280_v13  ;;  %v11996_v5 = vadd.f32 %v4540_v38, %v4526_v11  ;;  %v4504_v55 = vmax.f32 %v4494_v18, 0.0 }
 0xabb   : > { %v11998_v60 = vadd.f32 %v4540_v38, %v4527_v0  ;;  %v4505_v46 = vmax.f32 %v4496_v12, 0.0 }
 0xabc   : > { %v4528_v44 = vmul.f32 %v4520_v20, %v4504_v55  ;;  %4591 = vrot.lane.b32.xlu0 %v11996_v5, %s13235_s26  ;;  %8021 = vmatpush1.bf16.msra.mxu0 %v8020_v23 }
 0xabd   : > { %4559 = vst.msk [vmem:[#allocation7 + $0x28] sm:$0xff] %vm2374_vm0, %v11998_v60  ;;  %v4529_v61 = vmul.f32 %v4520_v20, %v4505_v46  ;;  %v12004_v4 = vld [vmem:[#allocation7 + $0x8] sm:$0xff]  ;;  %8022 = vmatprep.subr.bf16.mxu0 %v9328_v48 }
 0xabe   : > { %4565 = vst.msk [vmem:[#allocation7 + $0x28] sm:$0xff] %vm4562_vm2, %v13280_v13  ;;  %v12008_v56 = vadd.f32 %v4544_v54, %v4528_v44  ;;  %4585 = vrot.lane.b32.xlu1 %v12004_v4, %s13235_s26 }
 0xabf   : > { %v12012_v43 = vadd.f32 %v4544_v54, %v4529_v61 }
 0xac0   : > { %4595 = vrot.lane.b32.xlu0 %v12008_v56, %s13235_s26  ;;  %8024 = vmatpush1.bf16.msra.mxu0 %v8023_v25 }
 0xac1   : > { %4561 = vst.msk [vmem:[#allocation7 + $0x38] sm:$0xff] %vm2374_vm0, %v12012_v43  ;;  %v4570_v41 = vld [vmem:[#allocation7 + $0x18] sm:$0xff]  ;;  %8025 = vmatprep.subr.bf16.mxu0 %v9328_v48 }
 0xac2   : > { %4566 = vst.msk [vmem:[#allocation7 + $0x38] sm:$0xff] %vm4562_vm2, %v13280_v13  ;;  %4589 = vrot.lane.b32.xlu1 %v4570_v41, %s13235_s26 }
 0xac4   : > { %8027 = vmatpush1.bf16.msra.mxu0 %v8026_v29  ;;  %v12156_v29 = vld [vmem:[%s13111_s17 + $0x4] ss:$0 sm:$0xff] }
 0xac5   : > { %v4572_v34 = vld [vmem:[#allocation7 + $0x28] sm:$0xff]  ;;  %8028 = vmatprep.subr.bf16.mxu0 %v9328_v48 }
 0xac6   : > { %4593 = vrot.lane.b32.xlu1 %v4572_v34, %s13235_s26 }
 0xac8   : > { %8030 = vmatpush1.bf16.msra.mxu0 %v8029_v36  ;;  %v12164_v36 = vld [vmem:[%s13111_s17 + $0x1] ss:$0 sm:$0xff] }
 0xac9   : > { %v4574_v62 = vld [vmem:[#allocation7 + $0x38] sm:$0xff]  ;;  %8031 = vmatprep.subr.bf16.mxu0 %v9328_v48 }
 0xaca   : > { %4597 = vrot.lane.b32.xlu1 %v4574_v62, %s13235_s26 }
 0xacc   : > { %8033 = vmatpush1.bf16.msra.mxu0 %v8032_v58  ;;  %v12183_v58 = vld [vmem:[%s13111_s17 + $0x6] ss:$0 sm:$0xff] }
 0xacd   : > { %8034 = vmatprep.subr.bf16.mxu0 %v9328_v48 }
 0xad0   : > { %8036 = vmatpush1.bf16.msra.mxu0 %v8035_v22  ;;  %v12206_v22 = vld [vmem:[%s13111_s17 + $0x8] ss:$0 sm:$0xff] }
 0xb26   : > { %v4584_v59 = vpop.permute.xlu0 %4583 }
 0xb2a   : > { %v4588_v51 = vpop.permute.xlu0 %4587 }
 0xb2e   : > { %v4592_v11 = vpop.permute.xlu0 %4591 }
 0xb30   : > { %v4586_v7 = vpop.permute.xlu1 %4585 }
 0xb31   : > { %v4599_v3 = vsel %vm13314_vm3, %v4584_v59, %v4586_v7  ;;  %v4620_v31 = vmax.f32 %v12004_v4, %v4586_v7  ;;  %v4612_v44 = vmax.f32 %v11978_v50, %v4586_v7 }
 0xb32   : > { %v4619_v38 = vmax.f32 %v11976_v24, %v4599_v3  ;;  %v4596_v12 = vpop.permute.xlu0 %4595 }
 0xb33   : > { %4637 = vrot.lane.b32.xlu1 %v4620_v31, %s13303_s27  ;;  %v12218_v31 = vld [vmem:[%s13111_s17] ss:$0 sm:$0xff] }
 0xb34   : > { %v4590_v48 = vpop.permute.xlu1 %4589  ;;  %4635 = vrot.lane.b32.xlu0 %v4619_v38, %s13303_s27 }
 0xb35   : > { %v4600_v27 = vsel %vm13315_vm5, %v4588_v51, %v4590_v48  ;;  %v4622_v30 = vmax.f32 %v4570_v41, %v4590_v48  ;;  %v4614_v17 = vmax.f32 %v11988_v28, %v4590_v48 }
 0xb36   : > { %v4621_v14 = vmax.f32 %v11986_v6, %v4600_v27 }
 0xb37   : > { %4641 = vrot.lane.b32.xlu1 %v4622_v30, %s13303_s27 }
 0xb38   : > { %v4594_v18 = vpop.permute.xlu1 %4593  ;;  %4639 = vrot.lane.b32.xlu0 %v4621_v14, %s13303_s27 }
 0xb39   : > { %v4601_v32 = vsel %vm13316_vm7, %v4592_v11, %v4594_v18  ;;  %v4624_v0 = vmax.f32 %v4572_v34, %v4594_v18  ;;  %v4616_v50 = vmax.f32 %v11998_v60, %v4594_v18 }
 0xb3a   : > { %v4623_v24 = vmax.f32 %v11996_v5, %v4601_v32 }
 0xb3b   : > { %4645 = vrot.lane.b32.xlu1 %v4624_v0, %s13303_s27 }
 0xb3c   : > { %v4598_v55 = vpop.permute.xlu1 %4597  ;;  %4643 = vrot.lane.b32.xlu0 %v4623_v24, %s13303_s27 }
 0xb3d   : > { %v4602_v20 = vsel %vm13317_vm14, %v4596_v12, %v4598_v55  ;;  %v4626_v6 = vmax.f32 %v4574_v62, %v4598_v55  ;;  %v4618_v28 = vmax.f32 %v12012_v43, %v4598_v55 }
 0xb3e   : > { %v4625_v46 = vmax.f32 %v12008_v56, %v4602_v20 }
 0xb3f   : > { %4649 = vrot.lane.b32.xlu1 %v4626_v6, %s13303_s27 }
 0xb40   : > { %4647 = vrot.lane.b32.xlu0 %v4625_v46, %s13303_s27 }
 0xba5   : > { %v4638_v54 = vpop.permute.xlu1 %4637 }
 0xba6   : > { %v4664_v61 = vmax.f32 %v4612_v44, %v4638_v54  ;;  %v4636_v5 = vpop.permute.xlu0 %4635 }
 0xba7   : > { %v4651_v4 = vsel %vm3463_vm15, %v4636_v5, %v4638_v54 }
 0xba8   : > { %v4663_v2 = vmax.f32 %v4619_v38, %v4651_v4  ;;  %7194 = vmatprep.mubr.msk.f32.mxu0 %vm2374_vm0, %v4664_v61 }
 0xba9   : > { %v4642_v53 = vpop.permute.xlu1 %4641 }
 0xbaa   : > { %v4666_v41 = vmax.f32 %v4614_v17, %v4642_v53  ;;  %4766 = vmatmul.mubr.f32.vlgmr.msra.gmra.mrb[20].mxu0 %v4663_v2  ;;  %v4640_v56 = vpop.permute.xlu0 %4639 }
 0xbab   : > { %v4652_v1 = vsel %vm3463_vm15, %v4640_v56, %v4642_v53 }
 0xbac   : > { %v4665_v45 = vmax.f32 %v4621_v14, %v4652_v1  ;;  %7195 = vmatprep.mubr.msk.f32.mxu0 %vm2374_vm0, %v4666_v41 }
 0xbad   : > { %v4646_v35 = vpop.permute.xlu1 %4645 }
 0xbae   : > { %v4668_v52 = vmax.f32 %v4616_v50, %v4646_v35  ;;  %4771 = vmatmul.mubr.f32.gmra.mrb[22].mxu0 %v4665_v45  ;;  %v4644_v26 = vpop.permute.xlu0 %4643 }
 0xbaf   : > { %v4653_v34 = vsel %vm3463_vm15, %v4644_v26, %v4646_v35 }
 0xbb0   : > { %v4667_v42 = vmax.f32 %v4623_v24, %v4653_v34  ;;  %7196 = vmatprep.mubr.msk.f32.mxu0 %vm2374_vm0, %v4668_v52 }
 0xbb1   : > { %v4650_v10 = vpop.permute.xlu1 %4649 }
 0xbb2   : > { %v4670_v47 = vmax.f32 %v4618_v28, %v4650_v10  ;;  %4776 = vmatmul.mubr.f32.gmra.mrb[24].mxu0 %v4667_v42  ;;  %v4648_v62 = vpop.permute.xlu0 %4647 }
 0xbb3   : > { %v4654_v23 = vsel %vm3463_vm15, %v4648_v62, %v4650_v10  ;;  %vm6360_vm15 = vcmask 293888  }
 0xbb4   : > { %v4669_v49 = vmax.f32 %v4625_v46, %v4654_v23  ;;  %7197 = vmatprep.mubr.msk.f32.mxu0 %vm2374_vm0, %v4670_v47  ;;  %vm4812_vm0 = vcmask 351288  }
 0xbb6   : > { %4781 = vmatmul.mubr.f32.gmra.mrb[26].mxu0 %v4669_v49 }
 0xc7d   : > { %v4767_v60 = vpop.f32.mrb[20].mxu0 }
 0xc7e   : > { %4800 = vrot.lane.b32.xlu0 %v4767_v60, %s13198_s29  ;;  %v4769_v43 = vpop.f32.mrb[21].mxu0 }
 0xc81   : > { %v4772_v16 = vpop.f32.mrb[22].mxu0 }
 0xc82   : > { %4802 = vrot.lane.b32.xlu1 %v4772_v16, %s13198_s29  ;;  %v4774_v25 = vpop.f32.mrb[23].mxu0 }
 0xc85   : > { %v4777_v37 = vpop.f32.mrb[24].mxu0 }
 0xc86   : > { %4804 = vrot.lane.b32.xlu0 %v4777_v37, %s13198_s29  ;;  %v4779_v21 = vpop.f32.mrb[25].mxu0 }
 0xc89   : > { %v4782_v19 = vpop.f32.mrb[26].mxu0 }
 0xc8a   : > { %4875 = vrot.lane.b32.xlu0 %v12156_v29, %s13198_s29  ;;  %4806 = vrot.lane.b32.xlu1 %v4782_v19, %s13198_s29  ;;  %v4784_v57 = vpop.f32.mrb[27].mxu0  ;;  %s9342_s29 = smov 123  }
 0xc8e   : > { %4836 = vrot.lane.b32.xlu0 %v12164_v36, %s13289_s1  ;;  %4888 = vrot.lane.b32.xlu1 %v12169_v8, %s13192_s21  ;;  %s13200_s21 = smov 122  }
 0xc92   : > { %4849 = vrot.lane.b32.xlu0 %v12178_v39, %s13221_s4  ;;  %4901 = vrot.lane.b32.xlu1 %v12183_v58, %s13299_s19 }
 0xc96   : > { %4862 = vrot.lane.b32.xlu0 %v12192_v33, %s13197_s25  ;;  %4914 = vrot.lane.b32.xlu1 %v12197_v40, %s13298_s23 }
 0xc9a   : > { %4927 = vrot.lane.b32.xlu1 %v12206_v22, %s13300_s2 }
 0xcf0   : > { %v4801_v59 = vpop.permute.xlu0 %4800 }
 0xcf1   : > { %4813 = vst.msk [vmem:[#allocation8] sm:$0xff] %vm4812_vm0, %v4801_v59 }
 0xcf4   : > { %v4803_v7 = vpop.permute.xlu1 %4802 }
 0xcf5   : > { %4814 = vst.msk [vmem:[#allocation8 + $0x8] sm:$0xff] %vm4812_vm0, %v4803_v7 }
 0xcf8   : > { %v4805_v51 = vpop.permute.xlu0 %4804  ;;  %v12213_v3 = vld [vmem:[#allocation8] sm:$0xff] }
 0xcf9   : > { %4815 = vst.msk [vmem:[#allocation8 + $0x10] sm:$0xff] %vm4812_vm0, %v4805_v51  ;;  %v12227_v11 = vmul.f32 %v12218_v31, %v12213_v3 }
 0xcfc   : > { %v4807_v38 = vpop.permute.xlu1 %4806  ;;  %v12220_v48 = vld [vmem:[#allocation8 + $0x8] sm:$0xff]  ;;  %v4876_v27 = vpop.permute.xlu0 %4875 }
 0xcfd   : > { %4816 = vst.msk [vmem:[#allocation8 + $0x18] sm:$0xff] %vm4812_vm0, %v4807_v38  ;;  %v4878_v30 = vmul.f32 %v4876_v27, %v12213_v3  ;;  %v4879_v14 = vmul.f32 %v4876_v27, %v12220_v48  ;;  %v12231_v18 = vmul.f32 %v12218_v31, %v12220_v48 }
 0xcff   : > { %v8885_v32 = vpack.i.bf16 %v4879_v14, %v4878_v30  ;;  %v8039_v0 = vpack.c.bf16 %v12231_v18, %v12227_v11 }
 0xd00   : > { %v4889_v24 = vpop.permute.xlu1 %4888  ;;  %v12238_v20 = vld [vmem:[#allocation8 + $0x10] sm:$0xff]  ;;  %v4837_v44 = vpop.permute.xlu0 %4836 }
 0xd01   : > { %v4891_v12 = vmul.f32 %v4889_v24, %v12213_v3  ;;  %v4892_v55 = vmul.f32 %v4889_v24, %v12220_v48  ;;  %8886 = vrot.lane.b32.xlu0 %v8885_v32, %s13195_s22  ;;  %v4880_v54 = vmul.f32 %v4876_v27, %v12238_v20  ;;  %v4893_v2 = vmul.f32 %v4889_v24, %v12238_v20 }
 0xd02   : > { %v4839_v17 = vmul.f32 %v4837_v44, %v12213_v3  ;;  %v4840_v53 = vmul.f32 %v4837_v44, %v12220_v48  ;;  %v12256_v52 = vmul.f32 %v12218_v31, %v12238_v20  ;;  %v4841_v47 = vmul.f32 %v4837_v44, %v12238_v20 }
 0xd03   : > { %v8895_v6 = vpack.i.bf16 %v4892_v55, %v4891_v12 }
 0xd04   : > { %v12240_v46 = vld [vmem:[#allocation8 + $0x18] sm:$0xff]  ;;  %v4902_v4 = vpop.permute.xlu1 %4901  ;;  %v8900_v35 = vpack.i.bf16 %v4840_v53, %v4839_v17  ;;  %v4850_v42 = vpop.permute.xlu0 %4849 }
 0xd05   : > { %v4881_v61 = vmul.f32 %v4876_v27, %v12240_v46  ;;  %v4894_v5 = vmul.f32 %v4889_v24, %v12240_v46  ;;  %8896 = vrot.lane.b32.xlu0 %v8895_v6, %s13193_s28  ;;  %v4904_v56 = vmul.f32 %v4902_v4, %v12213_v3  ;;  %v4905_v1 = vmul.f32 %v4902_v4, %v12220_v48  ;;  %v5063_v6 = vld [vmem:[%s13107_s13 + $0x8] sm:$0xff]  ;;  %v5086_v53 = vld [vmem:[%s13108_s14] sm:$0xff] }
 0xd06   : > { %v4842_v50 = vmul.f32 %v4837_v44, %v12240_v46  ;;  %v4906_v26 = vmul.f32 %v4902_v4, %v12238_v20  ;;  %v4907_v34 = vmul.f32 %v4902_v4, %v12240_v46  ;;  %v12262_v10 = vmul.f32 %v12218_v31, %v12240_v46  ;;  %5222 = vmatprep.mubr.f32.mxu1 %v5063_v6 }
 0xd07   : > { %v8890_v41 = vpack.i.bf16 %v4881_v61, %v4880_v54  ;;  %v8905_v45 = vpack.i.bf16 %v4894_v5, %v4893_v2  ;;  %v8910_v28 = vpack.i.bf16 %v4905_v1, %v4904_v56  ;;  %v4852_v49 = vmul.f32 %v4850_v42, %v12213_v3  ;;  %v5091_v56 = vld [vmem:[%s13108_s14 + $0x28] sm:$0xff]  ;;  %v5090_v1 = vld [vmem:[%s13108_s14 + $0x20] sm:$0xff] }
 0xd08   : > { %v4915_v62 = vpop.permute.xlu1 %4914  ;;  %v8043_v23 = vpack.c.bf16 %v12262_v10, %v12256_v52  ;;  %v4853_v60 = vmul.f32 %v4850_v42, %v12220_v48  ;;  %v8915_v43 = vpack.i.bf16 %v4842_v50, %v4841_v47  ;;  %v8925_v37 = vpack.i.bf16 %v4907_v34, %v4906_v26  ;;  %v4863_v51 = vpop.permute.xlu0 %4862  ;;  %v5092_v50 = vld [vmem:[%s13108_s14 + $0x30] sm:$0xff] }
 0xd09   : > { %8891 = vrot.lane.b32.xlu1 %v8890_v41, %s13195_s22  ;;  %8906 = vrot.lane.b32.xlu0 %v8905_v45, %s13193_s28  ;;  %v4917_v16 = vmul.f32 %v4915_v62, %v12213_v3  ;;  %v4918_v25 = vmul.f32 %v4915_v62, %v12220_v48  ;;  %v4854_v21 = vmul.f32 %v4850_v42, %v12238_v20  ;;  %v5087_v41 = vld [vmem:[%s13108_s14 + $0x8] sm:$0xff]  ;;  %v5093_v45 = vld [vmem:[%s13108_s14 + $0x38] sm:$0xff]  ;;  %s7245_s28 = sshll.u32 %s13325_s30, 4  ;;  %s13327_s22 = sld [smem:[#allocation24_spill]] }
 0xd0a   : > { %v4855_v19 = vmul.f32 %v4850_v42, %v12240_v46  ;;  %v8920_v57 = vpack.i.bf16 %v4853_v60, %v4852_v49  ;;  %v4919_v59 = vmul.f32 %v4915_v62, %v12238_v20  ;;  %v4920_v7 = vmul.f32 %v4915_v62, %v12240_v46 }
 0xd0b   : > { %v8930_v38 = vpack.i.bf16 %v4918_v25, %v4917_v16  ;;  %v4865_v30 = vmul.f32 %v4863_v51, %v12213_v3  ;;  %v4866_v14 = vmul.f32 %v4863_v51, %v12220_v48  ;;  %v4867_v44 = vmul.f32 %v4863_v51, %v12238_v20 }
 0xd0c   : > { %v4928_v27 = vpop.permute.xlu1 %4927  ;;  %v8935_v32 = vpack.i.bf16 %v4855_v19, %v4854_v21  ;;  %v8945_v55 = vpack.i.bf16 %v4920_v7, %v4919_v59  ;;  %v4868_v54 = vmul.f32 %v4863_v51, %v12240_v46 }
 0xd0d   : > { %8901 = vrot.lane.b32.xlu1 %v8900_v35, %s13235_s26  ;;  %8911 = vrot.lane.b32.xlu0 %v8910_v28, %s13303_s27  ;;  %v4930_v24 = vmul.f32 %v4928_v27, %v12213_v3  ;;  %v4931_v12 = vmul.f32 %v4928_v27, %v12220_v48  ;;  %v8940_v61 = vpack.i.bf16 %v4866_v14, %v4865_v30  ;;  %v5064_v3 = vld [vmem:[%s13107_s13 + $0x10] sm:$0xff] }
 0xd0e   : > { %7560 = vmatprep.mubr.msk.f32.mxu0 %vm4307_vm1, %v5064_v3  ;;  %v4932_v48 = vmul.f32 %v4928_v27, %v12238_v20  ;;  %v4933_v4 = vmul.f32 %v4928_v27, %v12240_v46  ;;  %v8950_v2 = vpack.i.bf16 %v4868_v54, %v4867_v44  ;;  %v5089_v20 = vld [vmem:[%s13108_s14 + $0x18] sm:$0xff]  ;;  %v5088_v46 = vld [vmem:[%s13108_s14 + $0x10] sm:$0xff] }
 0xd0f   : > { %v8955_v5 = vpack.i.bf16 %v4931_v12, %v4930_v24 }
 0xd10   : > { %v8960_v17 = vpack.i.bf16 %v4933_v4, %v4932_v48 }
 0xd11   : > { %8916 = vrot.lane.b32.xlu1 %v8915_v43, %s13235_s26  ;;  %8926 = vrot.lane.b32.xlu0 %v8925_v37, %s13303_s27 }
 0xd15   : > { %8921 = vrot.lane.b32.xlu1 %v8920_v57, %s13234_s0  ;;  %8931 = vrot.lane.b32.xlu0 %v8930_v38, %s13304_s3 }
 0xd19   : > { %8936 = vrot.lane.b32.xlu1 %v8935_v32, %s13234_s0  ;;  %8946 = vrot.lane.b32.xlu0 %v8945_v55, %s13304_s3 }
 0xd1d   : > { %8941 = vrot.lane.b32.xlu1 %v8940_v61, %s13200_s21  ;;  %8956 = vrot.lane.b32.xlu0 %v8955_v5, %s13306_s20 }
 0xd21   : > { %8951 = vrot.lane.b32.xlu1 %v8950_v2, %s13200_s21  ;;  %5096 = vperm.xlu0 %8965, %v5086_v53   ;;  %s9343_s21 = smov 125  }
 0xd25   : > { %8961 = vrot.lane.b32.xlu1 %v8960_v17, %s13306_s20  ;;  %5111 = vperm.xlu0 %8965, %v5089_v20  }
 0xd29   : > { %5101 = vperm.xlu1 %8966, %v5087_v41   ;;  %5121 = vperm.xlu0 %8965, %v5091_v56  }
 0xd2d   : > { %5106 = vperm.xlu1 %8966, %v5088_v46   ;;  %5131 = vperm.xlu0 %8965, %v5093_v45  }
 0xd31   : > { %5116 = vperm.xlu1 %8966, %v5090_v1  }
 0xd35   : > { %5126 = vperm.xlu1 %8966, %v5092_v50  }
 0xd39   : > { %5476 = vrot.lane.b32.xlu1 %v12178_v39, %s13221_s4  ;;  %s13320_s4 = smov 8  }
 0xd73   : > { %v8887_v35 = vpop.permute.xlu0 %8886 }
 0xd74   : > { %v8889_v26 = vunpack.i.h.bf16 %v8887_v35  ;;  %v8888_v34 = vunpack.i.l.bf16 %v8887_v35 }
 0xd76   : > { %v8037_v42 = vpack.c.bf16 %v8889_v26, %v8888_v34 }
 0xd77   : > { %v8897_v28 = vpop.permute.xlu0 %8896 }
 0xd78   : > { %8038 = vmatprep.subr.bf16.mxu1 %v8037_v42  ;;  %v8899_v47 = vunpack.i.h.bf16 %v8897_v28  ;;  %v8898_v62 = vunpack.i.l.bf16 %v8897_v28 }
 0xd79   : > { %8040 = vmatpush3.bf16.msra.mxu1 %v8039_v0 }
 0xd7a   : > { %v8045_v21 = vpack.c.bf16 %v8899_v47, %v8898_v62 }
 0xd7b   : > { %v8892_v49 = vpop.permute.xlu1 %8891  ;;  %v8907_v16 = vpop.permute.xlu0 %8906 }
 0xd7c   : > { %v8894_v60 = vunpack.i.h.bf16 %v8892_v49  ;;  %v8893_v43 = vunpack.i.l.bf16 %v8892_v49  ;;  %v8909_v39 = vunpack.i.h.bf16 %v8907_v16  ;;  %v8908_v19 = vunpack.i.l.bf16 %v8907_v16 }
 0xd7e   : > { %v8041_v25 = vpack.c.bf16 %v8894_v60, %v8893_v43  ;;  %v8049_v14 = vpack.c.bf16 %v8909_v39, %v8908_v19  ;;  %v5065_v39 = vld [vmem:[%s13107_s13 + $0x18] sm:$0xff]  ;;  %v5067_v19 = vld [vmem:[%s13107_s13 + $0x28] sm:$0xff] }
 0xd7f   : > { %v8902_v37 = vpop.permute.xlu1 %8901  ;;  %v8912_v7 = vpop.permute.xlu0 %8911 }
 0xd80   : > { %v8904_v57 = vunpack.i.h.bf16 %v8902_v37  ;;  %v8903_v59 = vunpack.i.l.bf16 %v8902_v37  ;;  %8042 = vmatprep.subr.bf16.mxu1 %v8041_v25  ;;  %v8914_v18 = vunpack.i.h.bf16 %v8912_v7  ;;  %v8913_v0 = vunpack.i.l.bf16 %v8912_v7  ;;  %v5062_v25 = vld [vmem:[%s13107_s13] sm:$0xff]  ;;  %v5068_v7 = vld [vmem:[%s13107_s13 + $0x30] sm:$0xff] }
 0xd81   : > { %8044 = vmatpush3.bf16.msra.mxu1 %v8043_v23 }
 0xd82   : > { %v8047_v11 = vpack.c.bf16 %v8904_v57, %v8903_v59  ;;  %8046 = vmatprep.subr.bf16.mxu1 %v8045_v21  ;;  %v8053_v12 = vpack.c.bf16 %v8914_v18, %v8913_v0  ;;  %v5066_v21 = vld [vmem:[%s13107_s13 + $0x20] sm:$0xff]  ;;  %v5069_v57 = vld [vmem:[%s13107_s13 + $0x38] sm:$0xff]  ;;  %v5072_v18 = vld [vmem:[%s13107_s13 + $0x50] sm:$0xff] }
 0xd83   : > { %v8917_v51 = vpop.permute.xlu1 %8916  ;;  %v8927_v30 = vpop.permute.xlu0 %8926  ;;  %v5070_v59 = vld [vmem:[%s13107_s13 + $0x40] sm:$0xff]  ;;  %v5076_v0 = vld [vmem:[%s13107_s13 + $0x70] sm:$0xff] }
 0xd84   : > { %v8919_v38 = vunpack.i.h.bf16 %v8917_v51  ;;  %v8918_v27 = vunpack.i.l.bf16 %v8917_v51  ;;  %v8929_v55 = vunpack.i.h.bf16 %v8927_v30  ;;  %v8928_v6 = vunpack.i.l.bf16 %v8927_v30  ;;  %v5071_v51 = vld [vmem:[%s13107_s13 + $0x48] sm:$0xff]  ;;  %v5082_v30 = vld [vmem:[%s13107_s13 + $0xa0] sm:$0xff] }
 0xd85   : > { %8048 = vmatpush3.bf16.msra.mxu1 %v8047_v11  ;;  %v5073_v11 = vld [vmem:[%s13107_s13 + $0x58] sm:$0xff] }
 0xd86   : > { %v8051_v32 = vpack.c.bf16 %v8919_v38, %v8918_v27  ;;  %8050 = vmatprep.subr.bf16.mxu1 %v8049_v14  ;;  %v8057_v2 = vpack.c.bf16 %v8929_v55, %v8928_v6  ;;  %v5079_v38 = vld [vmem:[%s13107_s13 + $0x88] sm:$0xff]  ;;  %v5074_v14 = vld [vmem:[%s13107_s13 + $0x60] sm:$0xff]  ;;  %v5081_v55 = vld [vmem:[%s13107_s13 + $0x98] sm:$0xff] }
 0xd87   : > { %v8922_v24 = vpop.permute.xlu1 %8921  ;;  %v8932_v52 = vpop.permute.xlu0 %8931  ;;  %v5075_v27 = vld [vmem:[%s13107_s13 + $0x68] sm:$0xff]  ;;  %v5080_v6 = vld [vmem:[%s13107_s13 + $0x90] sm:$0xff] }
 0xd88   : > { %v8924_v44 = vunpack.i.h.bf16 %v8922_v24  ;;  %v8923_v54 = vunpack.i.l.bf16 %v8922_v24  ;;  %v8934_v23 = vunpack.i.h.bf16 %v8932_v52  ;;  %v8933_v61 = vunpack.i.l.bf16 %v8932_v52  ;;  %v5078_v24 = vld [vmem:[%s13107_s13 + $0x80] sm:$0xff] }
 0xd89   : > { %8052 = vmatpush3.bf16.msra.mxu1 %v8051_v32  ;;  %v5085_v32 = vld [vmem:[%s13107_s13 + $0xb8] sm:$0xff] }
 0xd8a   : > { %v8055_v10 = vpack.c.bf16 %v8924_v44, %v8923_v54  ;;  %8054 = vmatprep.subr.bf16.mxu1 %v8053_v12  ;;  %v8061_v41 = vpack.c.bf16 %v8934_v23, %v8933_v61  ;;  %v5077_v12 = vld [vmem:[%s13107_s13 + $0x78] sm:$0xff]  ;;  %v5084_v44 = vld [vmem:[%s13107_s13 + $0xb0] sm:$0xff]  ;;  %v5083_v54 = vld [vmem:[%s13107_s13 + $0xa8] sm:$0xff] }
 0xd8b   : > { %v8937_v5 = vpop.permute.xlu1 %8936  ;;  %v8947_v4 = vpop.permute.xlu0 %8946 }
 0xd8c   : > { %v8939_v3 = vunpack.i.h.bf16 %v8937_v5  ;;  %v8938_v48 = vunpack.i.l.bf16 %v8937_v5  ;;  %v8949_v20 = vunpack.i.h.bf16 %v8947_v4  ;;  %v8948_v46 = vunpack.i.l.bf16 %v8947_v4 }
 0xd8d   : > { %8056 = vmatpush3.bf16.msra.mxu1 %v8055_v10 }
 0xd8e   : > { %v8059_v17 = vpack.c.bf16 %v8939_v3, %v8938_v48  ;;  %8058 = vmatprep.subr.bf16.mxu1 %v8057_v2  ;;  %v8065_v62 = vpack.c.bf16 %v8949_v20, %v8948_v46 }
 0xd8f   : > { %v8942_v53 = vpop.permute.xlu1 %8941  ;;  %v8957_v45 = vpop.permute.xlu0 %8956 }
 0xd90   : > { %v8944_v56 = vunpack.i.h.bf16 %v8942_v53  ;;  %v8943_v1 = vunpack.i.l.bf16 %v8942_v53  ;;  %v8959_v50 = vunpack.i.h.bf16 %v8957_v45  ;;  %v8958_v35 = vunpack.i.l.bf16 %v8957_v45 }
 0xd91   : > { %8060 = vmatpush3.bf16.msra.mxu1 %v8059_v17 }
 0xd92   : > { %v8063_v26 = vpack.c.bf16 %v8944_v56, %v8943_v1  ;;  %8062 = vmatprep.subr.bf16.mxu1 %v8061_v41  ;;  %v8069_v42 = vpack.c.bf16 %v8959_v50, %v8958_v35 }
 0xd93   : > { %v8952_v34 = vpop.permute.xlu1 %8951 }
 0xd94   : > { %v8954_v28 = vunpack.i.h.bf16 %v8952_v34  ;;  %v8953_v47 = vunpack.i.l.bf16 %v8952_v34  ;;  %8070 = vmatprep.subr.bf16.mxu0 %v8069_v42 }
 0xd95   : > { %8064 = vmatpush3.bf16.msra.mxu1 %v8063_v26  ;;  %8072 = vmatpush3.bf16.msra.mxu0 %v8069_v42 }
 0xd96   : > { %v8067_v49 = vpack.c.bf16 %v8954_v28, %v8953_v47  ;;  %8066 = vmatprep.subr.bf16.mxu1 %v8065_v62 }
 0xd97   : > { %v8962_v60 = vpop.permute.xlu1 %8961 }
 0xd98   : > { %v8964_v43 = vunpack.i.h.bf16 %v8962_v60  ;;  %v8963_v16 = vunpack.i.l.bf16 %v8962_v60 }
 0xd99   : > { %8068 = vmatpush3.bf16.msra.mxu1 %v8067_v49 }
 0xd9a   : > { %v8073_v37 = vpack.c.bf16 %v8964_v43, %v8963_v16 }
 0xd9c   : > { %5223 = vmatmul.mubr.f32.vlgmr.msra.gmra.mrb[30].mxu1 %v5062_v25  ;;  %8074 = vmatprep.subr.bf16.mxu0 %v8073_v37 }
 0xd9d   : > { %8076 = vmatpush3.bf16.msra.mxu0 %v8073_v37  ;;  %5227 = vmatprep.mubr.f32.mxu1 %v5066_v21 }
 0xda0   : > { %5228 = vmatmul.mubr.f32.gmra.mrb[32].mxu1 %v5065_v39  ;;  %7561 = vmatmul.mubr.msk.f32.vlgmr.msra.gmra.mrb[28].mxu0 %vm4307_vm1, %v5067_v19  ;;  %v5097_v61 = vpop.permute.xlu0 %5096 }
 0xda1   : > { %5232 = vmatprep.mubr.f32.mxu1 %v5069_v57  ;;  %7563 = vmatprep.mubr.msk.f32.mxu0 %vm4307_vm1, %v5070_v59 }
 0xda4   : > { %5233 = vmatmul.mubr.f32.gmra.mrb[34].mxu1 %v5068_v7  ;;  %7564 = vmatmul.mubr.msk.f32.gmra.mrb[30].mxu0 %vm4307_vm1, %v5073_v11  ;;  %v5112_v25 = vpop.permute.xlu0 %5111 }
 0xda5   : > { %5237 = vmatprep.mubr.f32.mxu1 %v5072_v18  ;;  %7566 = vmatprep.mubr.msk.f32.mxu0 %vm4307_vm1, %v5076_v0 }
 0xda8   : > { %5238 = vmatmul.mubr.f32.gmra.mrb[36].mxu1 %v5071_v51  ;;  %7567 = vmatmul.mubr.msk.f32.gmra.mrb[32].mxu0 %vm4307_vm1, %v5079_v38  ;;  %v5102_v10 = vpop.permute.xlu1 %5101 }
 0xda9   : > { %5242 = vmatprep.mubr.f32.mxu1 %v5075_v27  ;;  %7569 = vmatprep.mubr.msk.f32.mxu0 %vm4307_vm1, %v5082_v30 }
 0xdac   : > { %5243 = vmatmul.mubr.f32.gmra.mrb[38].mxu1 %v5074_v14  ;;  %7570 = vmatmul.mubr.msk.f32.gmra.mrb[34].mxu0 %vm4307_vm1, %v5085_v32  ;;  %v5107_v20 = vpop.permute.xlu1 %5106  ;;  %v5122_v32 = vpop.permute.xlu0 %5121 }
 0xdad   : > { %5247 = vmatprep.mubr.f32.mxu1 %v5078_v24 }
 0xdb0   : > { %5248 = vmatmul.mubr.f32.gmra.mrb[40].mxu1 %v5077_v12  ;;  %v5117_v18 = vpop.permute.xlu1 %5116 }
 0xdb1   : > { %5252 = vmatprep.mubr.f32.mxu1 %v5081_v55 }
 0xdb4   : > { %5253 = vmatmul.mubr.f32.gmra.mrb[42].mxu1 %v5080_v6 }
 0xdb5   : > { %5257 = vmatprep.mubr.f32.mxu1 %v5084_v44 }
 0xdb8   : > { %5258 = vmatmul.mubr.f32.gmra.mrb[44].mxu1 %v5083_v54 }
 0xe6f   : > { %v7282_v52 = vpop.f32.mrb[30].mxu1 }
 0xe70   : > { %v7283_v23 = vpop.f32.mrb[31].mxu1 }
 0xe71   : > { %v7284_v5 = vadd.f32 %v7283_v23, %v7282_v52  ;;  %v5127_v52 = vpop.permute.xlu1 %5126 }
 0xe73   : > { %v5225_v3 = vadd.f32 %v7284_v5, %v5097_v61  ;;  %v7285_v48 = vpop.f32.mrb[32].mxu1  ;;  %v7562_v4 = vpop.f32.mrb[28].mxu0 }
 0xe74   : > { %v7286_v2 = vpop.f32.mrb[33].mxu1  ;;  %v5329_v17 = vpop.f32.mrb[29].mxu0 }
 0xe75   : > { %v7287_v53 = vadd.f32 %v7286_v2, %v7285_v48  ;;  %v5330_v41 = vadd.f32 %v5329_v17, %v5225_v3 }
 0xe77   : > { %v5230_v46 = vadd.f32 %v7287_v53, %v5102_v10  ;;  %v5368_v56 = vmax.f32 %v5330_v41, 0.0  ;;  %v7288_v1 = vpop.f32.mrb[34].mxu1  ;;  %v7565_v45 = vpop.f32.mrb[30].mxu0 }
 0xe78   : > { %v7289_v50 = vpop.f32.mrb[35].mxu1  ;;  %v5339_v35 = vpop.f32.mrb[31].mxu0 }
 0xe79   : > { %v5335_v26 = vadd.f32 %v7562_v4, %v5230_v46  ;;  %v7290_v34 = vadd.f32 %v7289_v50, %v7288_v1  ;;  %5400 = vrot.lane.b32.xlu1 %v5368_v56, %s13318_s6  ;;  %v5132_v4 = vpop.permute.xlu0 %5131 }
 0xe7b   : > { %v5369_v42 = vmax.f32 %v5335_v26, 0.0  ;;  %v7291_v28 = vpop.f32.mrb[36].mxu1  ;;  %v5235_v47 = vadd.f32 %v7290_v34, %v5107_v20  ;;  %v7568_v62 = vpop.f32.mrb[32].mxu0 }
 0xe7c   : > { %v7292_v49 = vpop.f32.mrb[37].mxu1  ;;  %v5349_v60 = vpop.f32.mrb[33].mxu0 }
 0xe7d   : > { %v7293_v43 = vadd.f32 %v7292_v49, %v7291_v28  ;;  %v5340_v16 = vadd.f32 %v5339_v35, %v5235_v47  ;;  %5402 = vrot.lane.b32.xlu0 %v5369_v42, %s13318_s6 }
 0xe7f   : > { %v5240_v37 = vadd.f32 %v7293_v43, %v5112_v25  ;;  %v5370_v21 = vmax.f32 %v5340_v16, 0.0  ;;  %v7294_v39 = vpop.f32.mrb[38].mxu1  ;;  %v7571_v19 = vpop.f32.mrb[34].mxu0 }
 0xe80   : > { %v7295_v57 = vpop.f32.mrb[39].mxu1  ;;  %v5359_v59 = vpop.f32.mrb[35].mxu0 }
 0xe81   : > { %v5345_v7 = vadd.f32 %v7565_v45, %v5240_v37  ;;  %v7296_v11 = vadd.f32 %v7295_v57, %v7294_v39  ;;  %5404 = vrot.lane.b32.xlu1 %v5370_v21, %s13318_s6 }
 0xe83   : > { %v5371_v0 = vmax.f32 %v5345_v7, 0.0  ;;  %v7297_v51 = vpop.f32.mrb[40].mxu1  ;;  %v5245_v38 = vadd.f32 %v7296_v11, %v5117_v18 }
 0xe84   : > { %v7298_v27 = vpop.f32.mrb[41].mxu1 }
 0xe85   : > { %v7299_v30 = vadd.f32 %v7298_v27, %v7297_v51  ;;  %v5350_v14 = vadd.f32 %v5349_v60, %v5245_v38  ;;  %5406 = vrot.lane.b32.xlu0 %v5371_v0, %s13318_s6 }
 0xe87   : > { %v5250_v24 = vadd.f32 %v7299_v30, %v5122_v32  ;;  %v5372_v12 = vmax.f32 %v5350_v14, 0.0  ;;  %v7300_v55 = vpop.f32.mrb[42].mxu1 }
 0xe88   : > { %v7301_v6 = vpop.f32.mrb[43].mxu1 }
 0xe89   : > { %v5355_v44 = vadd.f32 %v7568_v62, %v5250_v24  ;;  %v7302_v54 = vadd.f32 %v7301_v6, %v7300_v55  ;;  %5408 = vrot.lane.b32.xlu1 %v5372_v12, %s13318_s6 }
 0xe8b   : > { %v5373_v10 = vmax.f32 %v5355_v44, 0.0  ;;  %v7303_v23 = vpop.f32.mrb[44].mxu1  ;;  %v5255_v61 = vadd.f32 %v7302_v54, %v5127_v52 }
 0xe8c   : > { %v7304_v5 = vpop.f32.mrb[45].mxu1 }
 0xe8d   : > { %v5360_v3 = vadd.f32 %v5359_v59, %v5255_v61  ;;  %v7305_v48 = vadd.f32 %v7304_v5, %v7303_v23  ;;  %5410 = vrot.lane.b32.xlu0 %v5373_v10, %s13318_s6 }
 0xe8f   : > { %v5374_v2 = vmax.f32 %v5360_v3, 0.0  ;;  %v5260_v17 = vadd.f32 %v7305_v48, %v5132_v4 }
 0xe91   : > { %v5365_v53 = vadd.f32 %v7571_v19, %v5260_v17  ;;  %5412 = vrot.lane.b32.xlu0 %v5374_v2, %s13318_s6 }
 0xe93   : > { %v5375_v41 = vmax.f32 %v5365_v53, 0.0 }
 0xe95   : > { %5544 = vrot.lane.b32.xlu0 %v12183_v58, %s13299_s19  ;;  %5414 = vrot.lane.b32.xlu1 %v5375_v41, %s13318_s6  ;;  %v12429_v58 = vpop.permute.xlu1 %5476 }
 0xe99   : > { %5493 = vrot.lane.b32.xlu0 %v12192_v33, %s13319_s7  ;;  %5510 = vrot.lane.b32.xlu1 %v12156_v29, %s13318_s6  ;;  %s653_s6 = scalar_lea.vmem %s13327_s22, %s7245_s28 }
 0xe9d   : > { %5561 = vrot.lane.b32.xlu0 %v12197_v40, %s13298_s23  ;;  %5459 = vrot.lane.b32.xlu1 %v12164_v36, %s13289_s1  ;;  %s13321_s1 = smov 122   ;;  %s13322_s23 = smov 121  }
 0xea1   : > { %5578 = vrot.lane.b32.xlu0 %v12206_v22, %s13300_s2  ;;  %5527 = vrot.lane.b32.xlu1 %v12169_v8, %s13320_s4 }
 0xeeb   : > { %v5401_v20 = vpop.permute.xlu1 %5400 }
 0xeec   : > { %5424 = vst.msk [vmem:[#allocation9] sm:$0xff] %vm4812_vm0, %v5401_v20 }
 0xeef   : > { %v5403_v33 = vpop.permute.xlu0 %5402 }
 0xef0   : > { %5425 = vst.msk [vmem:[#allocation9 + $0x8] sm:$0xff] %vm4812_vm0, %v5403_v33 }
 0xef3   : > { %v5405_v29 = vpop.permute.xlu1 %5404  ;;  %v12434_v40 = vld [vmem:[#allocation9] sm:$0xff] }
 0xef4   : > { %5426 = vst.msk [vmem:[#allocation9 + $0x10] sm:$0xff] %vm4812_vm0, %v5405_v29  ;;  %v5479_v8 = vmul.f32 %v12429_v58, %v12434_v40  ;;  %v12445_v56 = vmul.f32 %v12218_v31, %v12434_v40 }
 0xef7   : > { %v5407_v36 = vpop.permute.xlu0 %5406  ;;  %v12436_v46 = vld [vmem:[#allocation9 + $0x8] sm:$0xff] }
 0xef8   : > { %5427 = vst.msk [vmem:[#allocation9 + $0x18] sm:$0xff] %vm4812_vm0, %v5407_v36  ;;  %v5480_v22 = vmul.f32 %v12429_v58, %v12436_v46  ;;  %v12449_v1 = vmul.f32 %v12218_v31, %v12436_v46 }
 0xefa   : > { %v8967_v45 = vpack.i.bf16 %v5480_v22, %v5479_v8  ;;  %v8079_v50 = vpack.c.bf16 %v12449_v1, %v12445_v56 }
 0xefb   : > { %v5409_v35 = vpop.permute.xlu1 %5408  ;;  %v12455_v26 = vld [vmem:[#allocation9 + $0x10] sm:$0xff] }
 0xefc   : > { %5428 = vst.msk [vmem:[#allocation9 + $0x20] sm:$0xff] %vm4812_vm0, %v5409_v35  ;;  %8968 = vrot.lane.b32.xlu1 %v8967_v45, %s13234_s0  ;;  %v12462_v28 = vmul.f32 %v12218_v31, %v12455_v26  ;;  %v5481_v61 = vmul.f32 %v12429_v58, %v12455_v26 }
 0xeff   : > { %v5411_v34 = vpop.permute.xlu0 %5410  ;;  %v12457_v42 = vld [vmem:[#allocation9 + $0x18] sm:$0xff] }
 0xf00   : > { %5429 = vst.msk [vmem:[#allocation9 + $0x28] sm:$0xff] %vm4812_vm0, %v5411_v34  ;;  %v12466_v47 = vmul.f32 %v12218_v31, %v12457_v42  ;;  %v5482_v44 = vmul.f32 %v12429_v58, %v12457_v42 }
 0xf02   : > { %v8083_v62 = vpack.c.bf16 %v12466_v47, %v12462_v28  ;;  %v8992_v3 = vpack.i.bf16 %v5482_v44, %v5481_v61 }
 0xf03   : > { %v5413_v49 = vpop.permute.xlu0 %5412  ;;  %v12471_v60 = vld [vmem:[#allocation9 + $0x20] sm:$0xff] }
 0xf04   : > { %5430 = vst.msk [vmem:[#allocation9 + $0x30] sm:$0xff] %vm4812_vm0, %v5413_v49  ;;  %v12484_v39 = vmul.f32 %v12218_v31, %v12471_v60  ;;  %v5483_v23 = vmul.f32 %v12429_v58, %v12471_v60 }
 0xf07   : > { %v12473_v43 = vpop.permute.xlu0 %5544  ;;  %v5415_v16 = vpop.permute.xlu1 %5414  ;;  %v12475_v25 = vld [vmem:[#allocation9 + $0x28] sm:$0xff] }
 0xf08   : > { %5431 = vst.msk [vmem:[#allocation9 + $0x38] sm:$0xff] %vm4812_vm0, %v5415_v16  ;;  %v5547_v37 = vmul.f32 %v12473_v43, %v12434_v40  ;;  %v5548_v21 = vmul.f32 %v12473_v43, %v12436_v46  ;;  %v12488_v19 = vmul.f32 %v12218_v31, %v12475_v25  ;;  %v5549_v14 = vmul.f32 %v12473_v43, %v12455_v26 }
 0xf09   : > { %v5550_v32 = vmul.f32 %v12473_v43, %v12457_v42  ;;  %v5484_v6 = vmul.f32 %v12429_v58, %v12475_v25  ;;  %v5551_v41 = vmul.f32 %v12473_v43, %v12471_v60  ;;  %v5552_v20 = vmul.f32 %v12473_v43, %v12475_v25 }
 0xf0a   : > { %v8972_v57 = vpack.i.bf16 %v5548_v21, %v5547_v37  ;;  %v8087_v11 = vpack.c.bf16 %v12488_v19, %v12484_v39 }
 0xf0b   : > { %v12490_v59 = vpop.permute.xlu0 %5493  ;;  %v12492_v7 = vpop.permute.xlu1 %5510  ;;  %v8997_v52 = vpack.i.bf16 %v5550_v32, %v5549_v14  ;;  %v9007_v5 = vpack.i.bf16 %v5484_v6, %v5483_v23  ;;  %v12565_v16 = vld [vmem:[#allocation9 + $0x30] sm:$0xff]  ;;  %v9022_v21 = vpack.i.bf16 %v5552_v20, %v5551_v41 }
 0xf0c   : > { %8973 = vrot.lane.b32.xlu1 %v8972_v57, %s13303_s27  ;;  %v5496_v18 = vmul.f32 %v12490_v59, %v12434_v40  ;;  %v5497_v0 = vmul.f32 %v12490_v59, %v12436_v46  ;;  %v5513_v51 = vmul.f32 %v12492_v7, %v12434_v40  ;;  %v5514_v38 = vmul.f32 %v12492_v7, %v12436_v46 }
 0xf0d   : > { %v5498_v48 = vmul.f32 %v12490_v59, %v12455_v26  ;;  %v5499_v4 = vmul.f32 %v12490_v59, %v12457_v42  ;;  %v5515_v2 = vmul.f32 %v12492_v7, %v12455_v26  ;;  %v5516_v17 = vmul.f32 %v12492_v7, %v12457_v42 }
 0xf0e   : > { %v8982_v27 = vpack.i.bf16 %v5497_v0, %v5496_v18  ;;  %v8977_v30 = vpack.i.bf16 %v5514_v38, %v5513_v51  ;;  %v5500_v34 = vmul.f32 %v12490_v59, %v12471_v60  ;;  %v5501_v49 = vmul.f32 %v12490_v59, %v12475_v25 }
 0xf0f   : > { %v12509_v24 = vpop.permute.xlu1 %5459  ;;  %v12521_v54 = vpop.permute.xlu0 %5561  ;;  %v9012_v33 = vpack.i.bf16 %v5499_v4, %v5498_v48  ;;  %v9002_v29 = vpack.i.bf16 %v5516_v17, %v5515_v2  ;;  %v12549_v22 = vld [vmem:[#allocation9 + $0x38] sm:$0xff]  ;;  %v5485_v0 = vmul.f32 %v12429_v58, %v12565_v16  ;;  %v12577_v51 = vmul.f32 %v12218_v31, %v12565_v16  ;;  %v5846_v17 = vld [vmem:[%s13109_s15 + $0x8] sm:$0xff] }
 0xf10   : > { %8983 = vrot.lane.b32.xlu1 %v8982_v27, %s13321_s1  ;;  %8978 = vrot.lane.b32.xlu0 %v8977_v30, %s13322_s23  ;;  %v5462_v12 = vmul.f32 %v12509_v24, %v12434_v40  ;;  %v5463_v55 = vmul.f32 %v12509_v24, %v12436_v46  ;;  %v5464_v36 = vmul.f32 %v12509_v24, %v12455_v26 }
 0xf11   : > { %v5465_v8 = vmul.f32 %v12509_v24, %v12457_v42  ;;  %v5486_v18 = vmul.f32 %v12429_v58, %v12549_v22  ;;  %v12581_v38 = vmul.f32 %v12218_v31, %v12549_v22  ;;  %v9037_v27 = vpack.i.bf16 %v5501_v49, %v5500_v34  ;;  %6021 = vmatprep.mubr.f32.mxu1 %v5846_v17 }
 0xf12   : > { %v8987_v10 = vpack.i.bf16 %v5463_v55, %v5462_v12  ;;  %v5554_v30 = vmul.f32 %v12473_v43, %v12549_v22  ;;  %v5517_v32 = vmul.f32 %v12492_v7, %v12471_v60  ;;  %v5518_v12 = vmul.f32 %v12492_v7, %v12475_v25 }
 0xf13   : > { %v12537_v53 = vpop.permute.xlu0 %5578  ;;  %v9017_v57 = vpack.i.bf16 %v5465_v8, %v5464_v36  ;;  %v9027_v14 = vpack.i.bf16 %v5486_v18, %v5485_v0  ;;  %v8091_v58 = vpack.c.bf16 %v12581_v38, %v12577_v51  ;;  %v5553_v31 = vmul.f32 %v12473_v43, %v12565_v16 }
 0xf14   : > { %8998 = vrot.lane.b32.xlu1 %v8997_v52, %s13303_s27  ;;  %8988 = vrot.lane.b32.xlu0 %v8987_v10, %s13235_s26  ;;  %v12553_v45 = vmul.f32 %v12537_v53, %v12434_v40  ;;  %v12557_v35 = vmul.f32 %v12537_v53, %v12436_v46  ;;  %v5503_v55 = vmul.f32 %v12490_v59, %v12549_v22 }
 0xf15   : > { %v9047_v6 = vpack.i.bf16 %v5554_v30, %v5553_v31  ;;  %v9032_v44 = vpack.i.bf16 %v5518_v12, %v5517_v32  ;;  %v5466_v52 = vmul.f32 %v12509_v24, %v12471_v60  ;;  %v5467_v10 = vmul.f32 %v12509_v24, %v12475_v25  ;;  %v5848_v31 = vld [vmem:[%s13109_s15 + $0x18] sm:$0xff] }
 0xf16   : > { %v9107_v37 = vpack.i.bf16 %v12557_v35, %v12553_v45  ;;  %v5502_v23 = vmul.f32 %v12490_v59, %v12565_v16  ;;  %v5520_v48 = vmul.f32 %v12492_v7, %v12549_v22  ;;  %v5519_v59 = vmul.f32 %v12492_v7, %v12565_v16  ;;  %v5528_v7 = vpop.permute.xlu1 %5527  ;;  %6126 = vmatprep.mubr.f32.mxu0 %v5848_v31 }
 0xf17   : > { %v9042_v43 = vpack.i.bf16 %v5467_v10, %v5466_v52  ;;  %v5566_v4 = vmul.f32 %v12521_v54, %v12455_v26  ;;  %v5567_v2 = vmul.f32 %v12521_v54, %v12457_v42  ;;  %v5568_v36 = vmul.f32 %v12521_v54, %v12471_v60 }
 0xf18   : > { %9008 = vrot.lane.b32.xlu1 %v9007_v5, %s13234_s0  ;;  %8993 = vrot.lane.b32.xlu0 %v8992_v3, %s13234_s0  ;;  %v9057_v61 = vpack.i.bf16 %v5503_v55, %v5502_v23  ;;  %v5564_v5 = vmul.f32 %v12521_v54, %v12434_v40  ;;  %v5565_v3 = vmul.f32 %v12521_v54, %v12436_v46 }
 0xf19   : > { %v9052_v20 = vpack.i.bf16 %v5520_v48, %v5519_v59  ;;  %v5569_v8 = vmul.f32 %v12521_v54, %v12475_v25  ;;  %v9077_v34 = vpack.i.bf16 %v5567_v2, %v5566_v4  ;;  %v5570_v18 = vmul.f32 %v12521_v54, %v12565_v16 }
 0xf1a   : > { %v9062_v41 = vpack.i.bf16 %v5565_v3, %v5564_v5  ;;  %v5532_v30 = vmul.f32 %v5528_v7, %v12455_v26  ;;  %v5534_v32 = vmul.f32 %v5528_v7, %v12471_v60  ;;  %v5535_v12 = vmul.f32 %v5528_v7, %v12475_v25  ;;  %v5891_v5 = vld [vmem:[%s13110_s16 + $0x30] sm:$0xff]  ;;  %v5892_v3 = vld [vmem:[%s13110_s16 + $0x38] sm:$0xff] }
 0xf1b   : > { %v5537_v52 = vmul.f32 %v5528_v7, %v12549_v22  ;;  %v5583_v23 = vmul.f32 %v12537_v53, %v12455_v26  ;;  %v5587_v35 = vmul.f32 %v12537_v53, %v12565_v16  ;;  %v5887_v26 = vld [vmem:[%s13110_s16 + $0x10] sm:$0xff] }
 0xf1c   : > { %9013 = vrot.lane.b32.xlu1 %v9012_v33, %s13321_s1  ;;  %9003 = vrot.lane.b32.xlu0 %v9002_v29, %s13322_s23  ;;  %v5468_v33 = vmul.f32 %v12509_v24, %v12565_v16  ;;  %v5469_v29 = vmul.f32 %v12509_v24, %v12549_v22  ;;  %v9087_v24 = vpack.i.bf16 %v5569_v8, %v5568_v36 }
 0xf1d   : > { %v9092_v55 = vpack.i.bf16 %v5535_v12, %v5534_v32 }
 0xf1e   : > { %v9067_v49 = vpack.i.bf16 %v5469_v29, %v5468_v33 }
 0xf20   : > { %9023 = vrot.lane.b32.xlu1 %v9022_v21, %s13303_s27  ;;  %9018 = vrot.lane.b32.xlu0 %v9017_v57, %s13235_s26  ;;  %v5530_v21 = vmul.f32 %v5528_v7, %v12434_v40  ;;  %v5531_v57 = vmul.f32 %v5528_v7, %v12436_v46 }
 0xf22   : > { %v9072_v0 = vpack.i.bf16 %v5531_v57, %v5530_v21 }
 0xf24   : > { %9038 = vrot.lane.b32.xlu1 %v9037_v27, %s13321_s1  ;;  %9028 = vrot.lane.b32.xlu0 %v9027_v14, %s13234_s0  ;;  %v5571_v27 = vmul.f32 %v12521_v54, %v12549_v22  ;;  %v5533_v14 = vmul.f32 %v5528_v7, %v12457_v42  ;;  %v5585_v54 = vmul.f32 %v12537_v53, %v12471_v60 }
 0xf26   : > { %v9097_v40 = vpack.i.bf16 %v5571_v27, %v5570_v18  ;;  %v9082_v46 = vpack.i.bf16 %v5533_v14, %v5532_v30 }
 0xf28   : > { %9048 = vrot.lane.b32.xlu1 %v9047_v6, %s13303_s27  ;;  %9033 = vrot.lane.b32.xlu0 %v9032_v44, %s13322_s23  ;;  %s13323_s27 = smov 120   ;;  %v5586_v6 = vmul.f32 %v12537_v53, %v12475_v25  ;;  %v5536_v44 = vmul.f32 %v5528_v7, %v12565_v16  ;;  %v5584_v25 = vmul.f32 %v12537_v53, %v12457_v42  ;;  %v5886_v16 = vld [vmem:[%s13110_s16 + $0x8] sm:$0xff] }
 0xf2a   : > { %v9117_v60 = vpack.i.bf16 %v5586_v6, %v5585_v54  ;;  %v9102_v10 = vpack.i.bf16 %v5537_v52, %v5536_v44  ;;  %v9112_v45 = vpack.i.bf16 %v5584_v25, %v5583_v23 }
 0xf2c   : > { %9058 = vrot.lane.b32.xlu1 %v9057_v61, %s13321_s1  ;;  %9043 = vrot.lane.b32.xlu0 %v9042_v43, %s13235_s26  ;;  %v5885_v61 = vld [vmem:[%s13110_s16] sm:$0xff] }
 0xf2d   : > { %v5889_v43 = vld [vmem:[%s13110_s16 + $0x20] sm:$0xff] }
 0xf30   : > { %9063 = vrot.lane.b32.xlu1 %v9062_v41, %s13304_s3  ;;  %9053 = vrot.lane.b32.xlu0 %v9052_v20, %s13322_s23 }
 0xf34   : > { %9078 = vrot.lane.b32.xlu1 %v9077_v34, %s13304_s3  ;;  %9068 = vrot.lane.b32.xlu0 %v9067_v49, %s13235_s26 }
 0xf38   : > { %9088 = vrot.lane.b32.xlu1 %v9087_v24, %s13304_s3  ;;  %9073 = vrot.lane.b32.xlu0 %v9072_v0, %s13323_s27 }
 0xf3c   : > { %9098 = vrot.lane.b32.xlu1 %v9097_v40, %s13304_s3  ;;  %9083 = vrot.lane.b32.xlu0 %v9082_v46, %s13323_s27 }
 0xf40   : > { %9108 = vrot.lane.b32.xlu1 %v9107_v37, %s13306_s20  ;;  %9093 = vrot.lane.b32.xlu0 %v9092_v55, %s13323_s27  ;;  %v5588_v37 = vmul.f32 %v12537_v53, %v12549_v22  ;;  %v5890_v53 = vld [vmem:[%s13110_s16 + $0x28] sm:$0xff]  ;;  %v5888_v22 = vld [vmem:[%s13110_s16 + $0x18] sm:$0xff] }
 0xf42   : > { %v9122_v42 = vpack.i.bf16 %v5588_v37, %v5587_v35 }
 0xf44   : > { %9118 = vrot.lane.b32.xlu1 %v9117_v60, %s13306_s20  ;;  %9103 = vrot.lane.b32.xlu0 %v9102_v10, %s13323_s27 }
 0xf48   : > { %5895 = vperm.xlu1 %8966, %v5885_v61   ;;  %9113 = vrot.lane.b32.xlu0 %v9112_v45, %s13306_s20 }
 0xf4c   : > { %5905 = vperm.xlu1 %8966, %v5887_v26   ;;  %9123 = vrot.lane.b32.xlu0 %v9122_v42, %s13306_s20  ;;  %s9341_s20 = smov 124  }
 0xf50   : > { %5915 = vperm.xlu1 %8966, %v5889_v43   ;;  %5900 = vperm.xlu0 %8965, %v5886_v16  }
 0xf54   : > { %5920 = vperm.xlu1 %8966, %v5890_v53   ;;  %5910 = vperm.xlu0 %8965, %v5888_v22  }
 0xf58   : > { %9127 = vset.pattern.permute.xlu1 %v13308_v15  ;;  %9128 = vset.pattern.permute.xlu0 %v13309_v63 }
 0xf59   : > { %6285 = vperm.xlu1 %9127, %v5886_v16   ;;  %6321 = vperm.xlu0 %9128, %v5885_v61  }
 0xf5d   : > { %9129 = vset.pattern.permute.xlu1 %v13309_v63  ;;  %6329 = vperm.xlu0 %9128, %v5887_v26  }
 0xf5e   : > { %6325 = vperm.xlu1 %9129, %v5886_v16  }
 0xf61   : > { %9132 = vset.pattern.permute.xlu0 %v13308_v15 }
 0xf62   : > { %9130 = vset.pattern.permute.xlu1 %v13269_v9  ;;  %6281 = vperm.xlu0 %9132, %v5885_v61  }
 0xf63   : > { %5925 = vperm.xlu1 %9130, %v5891_v5  }
 0xf66   : > { %6289 = vperm.xlu0 %9132, %v5887_v26  }
 0xf67   : > { %5930 = vperm.xlu1 %9130, %v5892_v3  }
 0xf6a   : > { %6301 = vperm.xlu0 %9132, %v5890_v53  }
 0xf6b   : > { %9131 = vset.pattern.permute.xlu1 %v13308_v15 }
 0xf6c   : > { %6293 = vperm.xlu1 %9131, %v5888_v22  }
 0xf6e   : > { %v8969_v48 = vpop.permute.xlu1 %8968  ;;  %6305 = vperm.xlu0 %9132, %v5891_v5  }
 0xf6f   : > { %v8971_v59 = vunpack.i.h.bf16 %v8969_v48  ;;  %v8970_v4 = vunpack.i.l.bf16 %v8969_v48 }
 0xf70   : > { %9133 = vset.pattern.permute.xlu1 %v13309_v63 }
 0xf71   : > { %v8077_v2 = vpack.c.bf16 %v8971_v59, %v8970_v4  ;;  %6333 = vperm.xlu1 %9133, %v5888_v22  }
 0xf72   : > { %9137 = vset.pattern.permute.xlu0 %v13309_v63 }
 0xf73   : > { %8078 = vmatprep.subr.bf16.mxu1 %v8077_v2  ;;  %6345 = vperm.xlu0 %9137, %v5891_v5  }
 0xf74   : > { %8080 = vmatpush3.bf16.msra.mxu1 %v8079_v50 }
 0xf75   : > { %9134 = vset.pattern.permute.xlu1 %v13308_v15 }
 0xf76   : > { %6297 = vperm.xlu1 %9134, %v5889_v43  }
 0xf7a   : > { %9135 = vset.pattern.permute.xlu1 %v13309_v63 }
 0xf7b   : > { %6337 = vperm.xlu1 %9135, %v5889_v43  }
 0xf7e   : > { %v8974_v9 = vpop.permute.xlu1 %8973 }
 0xf7f   : > { %v8976_v17 = vunpack.i.h.bf16 %v8974_v9  ;;  %v8975_v41 = vunpack.i.l.bf16 %v8974_v9  ;;  %6341 = vperm.xlu1 %9135, %v5890_v53  }
 0xf81   : > { %v8109_v20 = vpack.c.bf16 %v8976_v17, %v8975_v41 }
 0xf82   : > { %v8979_v33 = vpop.permute.xlu0 %8978  ;;  %v8984_v29 = vpop.permute.xlu1 %8983 }
 0xf83   : > { %v8981_v7 = vunpack.i.h.bf16 %v8979_v33  ;;  %v8980_v36 = vunpack.i.l.bf16 %v8979_v33  ;;  %8110 = vmatprep.subr.bf16.mxu0 %v8109_v20  ;;  %9136 = vset.pattern.permute.xlu1 %v13308_v15  ;;  %v8986_v6 = vunpack.i.h.bf16 %v8984_v29  ;;  %v8985_v44 = vunpack.i.l.bf16 %v8984_v29 }
 0xf84   : > { %6309 = vperm.xlu1 %9136, %v5892_v3  }
 0xf85   : > { %v8111_v56 = vpack.c.bf16 %v8981_v7, %v8980_v36  ;;  %v8093_v47 = vpack.c.bf16 %v8986_v6, %v8985_v44 }
 0xf86   : > { %v8989_v1 = vpop.permute.xlu0 %8988  ;;  %v8999_v50 = vpop.permute.xlu1 %8998 }
 0xf87   : > { %v9001_v8 = vunpack.i.h.bf16 %v8999_v50  ;;  %v9000_v34 = vunpack.i.l.bf16 %v8999_v50  ;;  %8112 = vmatpush3.bf16.msra.mxu0 %v8111_v56  ;;  %v8990_v61 = vunpack.i.l.bf16 %v8989_v1 }
 0xf88   : > { %9138 = vset.pattern.permute.xlu1 %v13309_v63 }
 0xf89   : > { %v8113_v49 = vpack.c.bf16 %v9001_v8, %v9000_v34  ;;  %6349 = vperm.xlu1 %9138, %v5892_v3  }
 0xf8a   : > { %v8994_v21 = vpop.permute.xlu0 %8993  ;;  %v9009_v57 = vpop.permute.xlu1 %9008 }
 0xf8b   : > { %v8996_v24 = vunpack.i.h.bf16 %v8994_v21  ;;  %v8995_v18 = vunpack.i.l.bf16 %v8994_v21  ;;  %v9011_v0 = vunpack.i.h.bf16 %v9009_v57  ;;  %v9010_v27 = vunpack.i.l.bf16 %v9009_v57  ;;  %8114 = vmatprep.subr.bf16.mxu0 %v8113_v49 }
 0xf8d   : > { %v8081_v30 = vpack.c.bf16 %v8996_v24, %v8995_v18  ;;  %v8085_v32 = vpack.c.bf16 %v9011_v0, %v9010_v27 }
 0xf8e   : > { %v9004_v15 = vpop.permute.xlu0 %9003  ;;  %v9014_v14 = vpop.permute.xlu1 %9013 }
 0xf8f   : > { %v9006_v40 = vunpack.i.h.bf16 %v9004_v15  ;;  %v9005_v46 = vunpack.i.l.bf16 %v9004_v15  ;;  %8082 = vmatprep.subr.bf16.mxu1 %v8081_v30  ;;  %v9016_v45 = vunpack.i.h.bf16 %v9014_v14  ;;  %v9015_v35 = vunpack.i.l.bf16 %v9014_v14 }
 0xf90   : > { %8084 = vmatpush3.bf16.msra.mxu1 %v8083_v62  ;;  %v8991_v62 = vunpack.i.h.bf16 %v8989_v1 }
 0xf91   : > { %v8115_v63 = vpack.c.bf16 %v9006_v40, %v9005_v46  ;;  %8086 = vmatprep.subr.bf16.mxu1 %v8085_v32  ;;  %v8097_v2 = vpack.c.bf16 %v9016_v45, %v9015_v35  ;;  %v5845_v46 = vld [vmem:[%s13109_s15] sm:$0xff] }
 0xf92   : > { %v9019_v12 = vpop.permute.xlu0 %9018  ;;  %v9024_v54 = vpop.permute.xlu1 %9023  ;;  %v8095_v48 = vpack.c.bf16 %v8991_v62, %v8990_v61 }
 0xf93   : > { %v9026_v31 = vunpack.i.h.bf16 %v9024_v54  ;;  %v9025_v55 = vunpack.i.l.bf16 %v9024_v54  ;;  %8116 = vmatpush3.bf16.msra.mxu0 %v8115_v63  ;;  %v9020_v16 = vunpack.i.l.bf16 %v9019_v12  ;;  %v5851_v63 = vld [vmem:[%s13109_s15 + $0x30] sm:$0xff] }
 0xf94   : > { %8088 = vmatpush3.bf16.msra.mxu1 %v8087_v11  ;;  %v9021_v11 = vunpack.i.h.bf16 %v9019_v12 }
 0xf95   : > { %v8117_v52 = vpack.c.bf16 %v9026_v31, %v9025_v55 }
 0xf96   : > { %v9029_v60 = vpop.permute.xlu0 %9028  ;;  %v9039_v10 = vpop.permute.xlu1 %9038  ;;  %v8099_v9 = vpack.c.bf16 %v9021_v11, %v9020_v16  ;;  %v5861_v16 = vld [vmem:[%s13109_s15 + $0x80] sm:$0xff] }
 0xf97   : > { %v9031_v23 = vunpack.i.h.bf16 %v9029_v60  ;;  %v9030_v25 = vunpack.i.l.bf16 %v9029_v60  ;;  %8118 = vmatprep.subr.bf16.mxu0 %v8117_v52  ;;  %v9041_v53 = vunpack.i.h.bf16 %v9039_v10  ;;  %v9040_v22 = vunpack.i.l.bf16 %v9039_v10  ;;  %v5850_v60 = vld [vmem:[%s13109_s15 + $0x28] sm:$0xff] }
 0xf99   : > { %v8089_v28 = vpack.c.bf16 %v9031_v23, %v9030_v25  ;;  %v8101_v17 = vpack.c.bf16 %v9041_v53, %v9040_v22  ;;  %v5856_v23 = vld [vmem:[%s13109_s15 + $0x58] sm:$0xff] }
 0xf9a   : > { %v9034_v37 = vpop.permute.xlu0 %9033  ;;  %v9049_v26 = vpop.permute.xlu1 %9048 }
 0xf9b   : > { %v9036_v42 = vunpack.i.h.bf16 %v9034_v37  ;;  %v9035_v43 = vunpack.i.l.bf16 %v9034_v37  ;;  %v9051_v39 = vunpack.i.h.bf16 %v9049_v26  ;;  %v9050_v19 = vunpack.i.l.bf16 %v9049_v26  ;;  %8090 = vmatprep.subr.bf16.mxu1 %v8089_v28 }
 0xf9c   : > { %8092 = vmatpush3.bf16.msra.mxu1 %v8091_v58 }
 0xf9d   : > { %v8119_v5 = vpack.c.bf16 %v9036_v42, %v9035_v43  ;;  %v8121_v3 = vpack.c.bf16 %v9051_v39, %v9050_v19  ;;  %8094 = vmatprep.subr.bf16.mxu1 %v8093_v47  ;;  %v5855_v42 = vld [vmem:[%s13109_s15 + $0x50] sm:$0xff] }
 0xf9e   : > { %v9044_v59 = vpop.permute.xlu0 %9043  ;;  %v9059_v4 = vpop.permute.xlu1 %9058 }
 0xf9f   : > { %8120 = vmatpush3.bf16.msra.mxu0 %v8119_v5  ;;  %v9046_v41 = vunpack.i.h.bf16 %v9044_v59  ;;  %v9045_v20 = vunpack.i.l.bf16 %v9044_v59  ;;  %v9061_v33 = vunpack.i.h.bf16 %v9059_v4  ;;  %v9060_v51 = vunpack.i.l.bf16 %v9059_v4  ;;  %v5866_v59 = vld [vmem:[%s13109_s15 + $0xa8] sm:$0xff] }
 0xfa0   : > { %8096 = vmatpush3.bf16.msra.mxu1 %v8095_v48  ;;  %8122 = vmatprep.subr.bf16.mxu0 %v8121_v3  ;;  %v5860_v3 = vld [vmem:[%s13109_s15 + $0x78] sm:$0xff] }
 0xfa1   : > { %8098 = vmatprep.subr.bf16.mxu1 %v8097_v2  ;;  %v8103_v8 = vpack.c.bf16 %v9046_v41, %v9045_v20  ;;  %v8105_v21 = vpack.c.bf16 %v9061_v33, %v9060_v51  ;;  %v5847_v20 = vld [vmem:[%s13109_s15 + $0x10] sm:$0xff]  ;;  %v5865_v33 = vld [vmem:[%s13109_s15 + $0xa0] sm:$0xff] }
 0xfa2   : > { %v9054_v38 = vpop.permute.xlu0 %9053  ;;  %v9064_v58 = vpop.permute.xlu1 %9063 }
 0xfa3   : > { %v9056_v29 = vunpack.i.h.bf16 %v9054_v38  ;;  %v9055_v7 = vunpack.i.l.bf16 %v9054_v38  ;;  %v9066_v36 = vunpack.i.h.bf16 %v9064_v58  ;;  %v9065_v56 = vunpack.i.l.bf16 %v9064_v58  ;;  %v5853_v38 = vld [vmem:[%s13109_s15 + $0x40] sm:$0xff] }
 0xfa4   : > { %8100 = vmatpush3.bf16.msra.mxu1 %v8099_v9 }
 0xfa5   : > { %v8123_v1 = vpack.c.bf16 %v9056_v29, %v9055_v7  ;;  %v8125_v50 = vpack.c.bf16 %v9066_v36, %v9065_v56  ;;  %8102 = vmatprep.subr.bf16.mxu1 %v8101_v17  ;;  %v5871_v29 = vld [vmem:[%s13109_s15 + $0xd0] sm:$0xff] }
 0xfa6   : > { %v9069_v34 = vpop.permute.xlu0 %9068  ;;  %v9079_v49 = vpop.permute.xlu1 %9078 }
 0xfa7   : > { %v9071_v57 = vunpack.i.h.bf16 %v9069_v34  ;;  %v9070_v24 = vunpack.i.l.bf16 %v9069_v34  ;;  %8124 = vmatpush3.bf16.msra.mxu0 %v8123_v1  ;;  %v9081_v0 = vunpack.i.h.bf16 %v9079_v49  ;;  %v9080_v27 = vunpack.i.l.bf16 %v9079_v49  ;;  %v5852_v1 = vld [vmem:[%s13109_s15 + $0x38] sm:$0xff] }
 0xfa8   : > { %8104 = vmatpush3.bf16.msra.mxu1 %v8103_v8  ;;  %8126 = vmatprep.subr.bf16.mxu0 %v8125_v50  ;;  %v5870_v50 = vld [vmem:[%s13109_s15 + $0xc8] sm:$0xff]  ;;  %v5876_v34 = vld [vmem:[%s13109_s15 + $0xf8] sm:$0xff] }
 0xfa9   : > { %v8107_v18 = vpack.c.bf16 %v9071_v57, %v9070_v24  ;;  %8106 = vmatprep.subr.bf16.mxu1 %v8105_v21  ;;  %v8129_v12 = vpack.c.bf16 %v9081_v0, %v9080_v27  ;;  %v5858_v8 = vld [vmem:[%s13109_s15 + $0x68] sm:$0xff]  ;;  %v5857_v21 = vld [vmem:[%s13109_s15 + $0x60] sm:$0xff]  ;;  %v5875_v57 = vld [vmem:[%s13109_s15 + $0xf0] sm:$0xff] }
 0xfaa   : > { %v9074_v30 = vpop.permute.xlu0 %9073  ;;  %v9089_v15 = vpop.permute.xlu1 %9088  ;;  %v5863_v24 = vld [vmem:[%s13109_s15 + $0x90] sm:$0xff]  ;;  %v5862_v0 = vld [vmem:[%s13109_s15 + $0x88] sm:$0xff]  ;;  %v5880_v27 = vld [vmem:[%s13109_s15 + $0x118] sm:$0xff] }
 0xfab   : > { %v9076_v14 = vunpack.i.h.bf16 %v9074_v30  ;;  %v9075_v40 = vunpack.i.l.bf16 %v9074_v30  ;;  %v9091_v54 = vunpack.i.h.bf16 %v9089_v15  ;;  %v9090_v31 = vunpack.i.l.bf16 %v9089_v15  ;;  %v5868_v30 = vld [vmem:[%s13109_s15 + $0xb8] sm:$0xff]  ;;  %v5849_v15 = vld [vmem:[%s13109_s15 + $0x20] sm:$0xff] }
 0xfac   : > { %8108 = vmatpush3.bf16.msra.mxu1 %v8107_v18  ;;  %v5881_v18 = vld [vmem:[%s13109_s15 + $0x120] sm:$0xff] }
 0xfad   : > { %v8127_v32 = vpack.c.bf16 %v9076_v14, %v9075_v40  ;;  %v8133_v25 = vpack.c.bf16 %v9091_v54, %v9090_v31  ;;  %v5867_v14 = vld [vmem:[%s13109_s15 + $0xb0] sm:$0xff]  ;;  %v5854_v40 = vld [vmem:[%s13109_s15 + $0x48] sm:$0xff]  ;;  %v5869_v31 = vld [vmem:[%s13109_s15 + $0xc0] sm:$0xff] }
 0xfae   : > { %v9084_v55 = vpop.permute.xlu0 %9083  ;;  %v9099_v6 = vpop.permute.xlu1 %9098  ;;  %v5878_v54 = vld [vmem:[%s13109_s15 + $0x108] sm:$0xff] }
 0xfaf   : > { %v9086_v44 = vunpack.i.h.bf16 %v9084_v55  ;;  %v9085_v52 = vunpack.i.l.bf16 %v9084_v55  ;;  %6022 = vmatmul.mubr.f32.vlgmr.msra.gmra.mrb[46].mxu1 %v5845_v46  ;;  %8128 = vmatpush3.bf16.msra.mxu0 %v8127_v32  ;;  %v9101_v28 = vunpack.i.h.bf16 %v9099_v6  ;;  %v9100_v47 = vunpack.i.l.bf16 %v9099_v6  ;;  %v5873_v46 = vld [vmem:[%s13109_s15 + $0xe0] sm:$0xff]  ;;  %v5859_v32 = vld [vmem:[%s13109_s15 + $0x70] sm:$0xff]  ;;  %v5874_v6 = vld [vmem:[%s13109_s15 + $0xe8] sm:$0xff] }
 0xfb0   : > { %8130 = vmatprep.subr.bf16.mxu0 %v8129_v12  ;;  %6026 = vmatprep.mubr.f32.mxu1 %v5851_v63  ;;  %v5872_v63 = vld [vmem:[%s13109_s15 + $0xd8] sm:$0xff]  ;;  %v5877_v55 = vld [vmem:[%s13109_s15 + $0x100] sm:$0xff] }
 0xfb1   : > { %v8131_v10 = vpack.c.bf16 %v9086_v44, %v9085_v52  ;;  %v8137_v19 = vpack.c.bf16 %v9101_v28, %v9100_v47  ;;  %v5864_v12 = vld [vmem:[%s13109_s15 + $0x98] sm:$0xff]  ;;  %v5883_v44 = vld [vmem:[%s13109_s15 + $0x130] sm:$0xff] }
 0xfb2   : > { %v9094_v62 = vpop.permute.xlu0 %9093  ;;  %v9109_v61 = vpop.permute.xlu1 %9108  ;;  %v5879_v52 = vld [vmem:[%s13109_s15 + $0x110] sm:$0xff] }
 0xfb3   : > { %v9096_v45 = vunpack.i.h.bf16 %v9094_v62  ;;  %v9095_v35 = vunpack.i.l.bf16 %v9094_v62  ;;  %v9111_v37 = vunpack.i.h.bf16 %v9109_v61  ;;  %v9110_v26 = vunpack.i.l.bf16 %v9109_v61  ;;  %6027 = vmatmul.mubr.f32.gmra.mrb[48].mxu1 %v5850_v60  ;;  %8132 = vmatpush3.bf16.msra.mxu0 %v8131_v10  ;;  %v5882_v60 = vld [vmem:[%s13109_s15 + $0x128] sm:$0xff]  ;;  %v5884_v10 = vld [vmem:[%s13109_s15 + $0x138] sm:$0xff] }
 0xfb4   : > { %8134 = vmatprep.subr.bf16.mxu0 %v8133_v25  ;;  %6031 = vmatprep.mubr.f32.mxu1 %v5856_v23 }
 0xfb5   : > { %v8135_v43 = vpack.c.bf16 %v9096_v45, %v9095_v35  ;;  %v8141_v39 = vpack.c.bf16 %v9111_v37, %v9110_v26 }
 0xfb6   : > { %v9104_v11 = vpop.permute.xlu0 %9103  ;;  %v9119_v5 = vpop.permute.xlu1 %9118 }
 0xfb7   : > { %v9106_v53 = vunpack.i.h.bf16 %v9104_v11  ;;  %v9105_v22 = vunpack.i.l.bf16 %v9104_v11  ;;  %6032 = vmatmul.mubr.f32.gmra.mrb[50].mxu1 %v5855_v42  ;;  %8136 = vmatpush3.bf16.msra.mxu0 %v8135_v43  ;;  %v9121_v2 = vunpack.i.h.bf16 %v9119_v5  ;;  %v9120_v9 = vunpack.i.l.bf16 %v9119_v5 }
 0xfb8   : > { %8142 = vmatprep.subr.bf16.mxu1 %v8141_v39  ;;  %8138 = vmatprep.subr.bf16.mxu0 %v8137_v19 }
 0xfb9   : > { %v8139_v48 = vpack.c.bf16 %v9106_v53, %v9105_v22  ;;  %8144 = vmatpush3.bf16.msra.mxu1 %v8141_v39  ;;  %6036 = vmatprep.mubr.f32.mxu1 %v5861_v16  ;;  %v8149_v7 = vpack.c.bf16 %v9121_v2, %v9120_v9 }
 0xfba   : > { %v9114_v4 = vpop.permute.xlu0 %9113 }
 0xfbb   : > { %v9116_v17 = vunpack.i.h.bf16 %v9114_v4  ;;  %v9115_v41 = vunpack.i.l.bf16 %v9114_v4  ;;  %6037 = vmatmul.mubr.f32.gmra.mrb[52].mxu1 %v5860_v3  ;;  %8140 = vmatpush3.bf16.msra.mxu0 %v8139_v48 }
 0xfbc   : > { %6041 = vmatprep.mubr.f32.mxu1 %v5866_v59 }
 0xfbd   : > { %v8145_v51 = vpack.c.bf16 %v9116_v17, %v9115_v41 }
 0xfbe   : > { %v9124_v58 = vpop.permute.xlu0 %9123  ;;  %6127 = vmatmul.mubr.f32.vlgmr.msra.gmra.mrb[36].mxu0 %v5847_v20 }
 0xfbf   : > { %v9126_v36 = vunpack.i.h.bf16 %v9124_v58  ;;  %v9125_v56 = vunpack.i.l.bf16 %v9124_v58  ;;  %6042 = vmatmul.mubr.f32.gmra.mrb[54].mxu1 %v5865_v33  ;;  %8146 = vmatprep.subr.bf16.mxu1 %v8145_v51 }
 0xfc0   : > { %8148 = vmatpush3.bf16.msra.mxu1 %v8145_v51  ;;  %6131 = vmatprep.mubr.f32.mxu0 %v5853_v38 }
 0xfc1   : > { %8150 = vmatprep.subr.bf16.mxu1 %v8149_v7  ;;  %6046 = vmatprep.mubr.f32.mxu1 %v5871_v29  ;;  %v8153_v49 = vpack.c.bf16 %v9126_v36, %v9125_v56 }
 0xfc2   : > { %6132 = vmatmul.mubr.f32.gmra.mrb[38].mxu0 %v5852_v1 }
 0xfc3   : > { %6047 = vmatmul.mubr.f32.gmra.mrb[56].mxu1 %v5870_v50  ;;  %6136 = vmatprep.mubr.f32.mxu0 %v5858_v8 }
 0xfc4   : > { %8152 = vmatpush3.bf16.msra.mxu1 %v8149_v7  ;;  %6051 = vmatprep.mubr.f32.mxu1 %v5876_v34 }
 0xfc5   : > { %8154 = vmatprep.subr.bf16.mxu1 %v8153_v49 }
 0xfc6   : > { %6137 = vmatmul.mubr.f32.gmra.mrb[40].mxu0 %v5857_v21 }
 0xfc7   : > { %6052 = vmatmul.mubr.f32.gmra.mrb[58].mxu1 %v5875_v57  ;;  %6141 = vmatprep.mubr.f32.mxu0 %v5863_v24  ;;  %v5896_v23 = vpop.permute.xlu1 %5895 }
 0xfc8   : > { %8156 = vmatpush3.bf16.msra.mxu1 %v8153_v49  ;;  %6056 = vmatprep.mubr.f32.mxu1 %v5881_v18 }
 0xfca   : > { %6142 = vmatmul.mubr.f32.gmra.mrb[42].mxu0 %v5862_v0 }
 0xfcb   : > { %6057 = vmatmul.mubr.f32.gmra.mrb[60].mxu1 %v5880_v27  ;;  %6146 = vmatprep.mubr.f32.mxu0 %v5868_v30  ;;  %v5906_v25 = vpop.permute.xlu1 %5905 }
 0xfcc   : > { %7588 = vmatprep.mubr.msk.f32.mxu1 %vm2660_vm8, %v5849_v15 }
 0xfce   : > { %6147 = vmatmul.mubr.f32.gmra.mrb[44].mxu0 %v5867_v14 }
 0xfcf   : > { %7589 = vmatmul.mubr.msk.f32.vlgmr.msra.gmra.mrb[62].mxu1 %vm2660_vm8, %v5854_v40  ;;  %6151 = vmatprep.mubr.f32.mxu0 %v5873_v46  ;;  %v5916_v28 = vpop.permute.xlu1 %5915  ;;  %v5901_v37 = vpop.permute.xlu0 %5900 }
 0xfd0   : > { %7591 = vmatprep.mubr.msk.f32.mxu1 %vm2660_vm8, %v5859_v32 }
 0xfd2   : > { %6152 = vmatmul.mubr.f32.gmra.mrb[46].mxu0 %v5872_v63 }
 0xfd3   : > { %7592 = vmatmul.mubr.msk.f32.gmra.mrb[64].mxu1 %vm2660_vm8, %v5864_v12  ;;  %6156 = vmatprep.mubr.f32.mxu0 %v5878_v54  ;;  %v12844_v47 = vpop.permute.xlu1 %5920  ;;  %v5911_v11 = vpop.permute.xlu0 %5910 }
 0xfd4   : > { %7594 = vmatprep.mubr.msk.f32.mxu1 %vm2660_vm8, %v5869_v31 }
 0xfd6   : > { %6157 = vmatmul.mubr.f32.gmra.mrb[48].mxu0 %v5877_v55 }
 0xfd7   : > { %7595 = vmatmul.mubr.msk.f32.gmra.mrb[66].mxu1 %vm2660_vm8, %v5874_v6  ;;  %6161 = vmatprep.mubr.f32.mxu0 %v5883_v44 }
 0xfd8   : > { %7597 = vmatprep.mubr.msk.f32.mxu1 %vm2660_vm8, %v5879_v52  ;;  %v12846_v62 = vpop.permute.xlu1 %6285  ;;  %v12854_v59 = vpop.permute.xlu0 %6321 }
 0xfda   : > { %6162 = vmatmul.mubr.f32.gmra.mrb[50].mxu0 %v5882_v60 }
 0xfdb   : > { %7598 = vmatmul.mubr.msk.f32.gmra.mrb[68].mxu1 %vm2660_vm8, %v5884_v10 }
 0xfdc   : > { %v12858_v29 = vpop.permute.xlu0 %6329 }
 0xfdd   : > { %v12848_v61 = vpop.permute.xlu1 %6325 }
 0xfe1   : > { %v6282_v15 = vpop.permute.xlu0 %6281 }
 0xfe2   : > { %v12850_v42 = vpop.permute.xlu1 %5925 }
 0xfe5   : > { %v6290_v60 = vpop.permute.xlu0 %6289 }
 0xfe6   : > { %v12852_v22 = vpop.permute.xlu1 %5930 }
 0xfeb   : > { %v12856_v9 = vpop.permute.xlu1 %6293 }
 0xff0   : > { %v12860_v34 = vpop.permute.xlu1 %6333 }
 0xff5   : > { %v12862_v32 = vpop.permute.xlu1 %6297 }
0x1082   : > { %v7350_v45 = vpop.f32.mrb[46].mxu1 }
0x1083   : > { %v7351_v35 = vpop.f32.mrb[47].mxu1 }
0x1084   : > { %v7352_v26 = vadd.f32 %v7351_v35, %v7350_v45 }
0x1086   : > { %v7353_v43 = vpop.f32.mrb[48].mxu1  ;;  %v6024_v20 = vadd.f32 %v7352_v26, %v5896_v23  ;;  %v6338_v26 = vpop.permute.xlu1 %6337 }
0x1087   : > { %v7354_v39 = vpop.f32.mrb[49].mxu1 }
0x1088   : > { %v7355_v19 = vadd.f32 %v7354_v39, %v7353_v43 }
0x108a   : > { %v7356_v16 = vpop.f32.mrb[50].mxu1  ;;  %v6029_v1 = vadd.f32 %v7355_v19, %v5901_v37 }
0x108b   : > { %v7357_v53 = vpop.f32.mrb[51].mxu1 }
0x108c   : > { %v7358_v5 = vadd.f32 %v7357_v53, %v7356_v16 }
0x108e   : > { %v7359_v3 = vpop.f32.mrb[52].mxu1  ;;  %v6034_v0 = vadd.f32 %v7358_v5, %v5906_v25 }
0x108f   : > { %v7360_v48 = vpop.f32.mrb[53].mxu1 }
0x1090   : > { %v7361_v4 = vadd.f32 %v7360_v48, %v7359_v3 }
0x1091   : > { %v7406_v2 = vpop.f32.mrb[36].mxu0 }
0x1092   : > { %v7362_v17 = vpop.f32.mrb[54].mxu1  ;;  %v7407_v41 = vpop.f32.mrb[37].mxu0  ;;  %v6039_v54 = vadd.f32 %v7361_v4, %v5911_v11 }
0x1093   : > { %v7408_v33 = vadd.f32 %v7407_v41, %v7406_v2  ;;  %v7363_v51 = vpop.f32.mrb[55].mxu1 }
0x1094   : > { %v7364_v38 = vadd.f32 %v7363_v51, %v7362_v17 }
0x1095   : > { %v7409_v58 = vpop.f32.mrb[38].mxu0  ;;  %v6129_v7 = vadd.f32 %v7408_v33, %v6024_v20  ;;  %v6302_v20 = vpop.permute.xlu0 %6301 }
0x1096   : > { %v7365_v36 = vpop.f32.mrb[56].mxu1  ;;  %v7410_v56 = vpop.f32.mrb[39].mxu0  ;;  %v6044_v25 = vadd.f32 %v7364_v38, %v5916_v28 }
0x1097   : > { %v7411_v50 = vadd.f32 %v7410_v56, %v7409_v58  ;;  %v7366_v8 = vpop.f32.mrb[57].mxu1 }
0x1098   : > { %v7367_v49 = vadd.f32 %v7366_v8, %v7365_v36 }
0x1099   : > { %v7412_v21 = vpop.f32.mrb[40].mxu0  ;;  %v6134_v57 = vadd.f32 %v7411_v50, %v6029_v1 }
0x109a   : > { %v7413_v24 = vpop.f32.mrb[41].mxu0  ;;  %v7368_v18 = vpop.f32.mrb[58].mxu1  ;;  %v6049_v3 = vadd.f32 %v7367_v49, %v12844_v47 }
0x109b   : > { %v7414_v27 = vadd.f32 %v7413_v24, %v7412_v21  ;;  %v7369_v30 = vpop.f32.mrb[59].mxu1 }
0x109c   : > { %v7370_v14 = vadd.f32 %v7369_v30, %v7368_v18 }
0x109d   : > { %v7415_v40 = vpop.f32.mrb[42].mxu0  ;;  %v6139_v46 = vadd.f32 %v7414_v27, %v6034_v0 }
0x109e   : > { %v7416_v63 = vpop.f32.mrb[43].mxu0  ;;  %v7371_v12 = vpop.f32.mrb[60].mxu1  ;;  %v6054_v1 = vadd.f32 %v7370_v14, %v12850_v42 }
0x109f   : > { %v7417_v31 = vadd.f32 %v7416_v63, %v7415_v40  ;;  %v7372_v55 = vpop.f32.mrb[61].mxu1  ;;  %v6306_v63 = vpop.permute.xlu0 %6305 }
0x10a0   : > { %v7373_v6 = vadd.f32 %v7372_v55, %v7371_v12 }
0x10a1   : > { %v7418_v44 = vpop.f32.mrb[44].mxu0  ;;  %v6144_v52 = vadd.f32 %v7417_v31, %v6039_v54 }
0x10a2   : > { %v7419_v10 = vpop.f32.mrb[45].mxu0  ;;  %v7590_v23 = vpop.f32.mrb[62].mxu1 }
0x10a3   : > { %v7420_v45 = vadd.f32 %v7419_v10, %v7418_v44  ;;  %v6239_v35 = vadd.f32 %v7590_v23, %v6134_v57  ;;  %v6233_v37 = vpop.f32.mrb[63].mxu1 }
0x10a4   : > { %v6234_v43 = vadd.f32 %v6233_v37, %v6129_v7  ;;  %v6342_v7 = vpop.permute.xlu1 %6341 }
0x10a5   : > { %v6273_v39 = vmax.f32 %v6239_v35, 0.0  ;;  %v7421_v19 = vpop.f32.mrb[46].mxu0  ;;  %v6149_v16 = vadd.f32 %v7420_v45, %v6044_v25 }
0x10a6   : > { %v6272_v53 = vmax.f32 %v6234_v43, 0.0  ;;  %v7422_v5 = vpop.f32.mrb[47].mxu0  ;;  %v7593_v11 = vpop.f32.mrb[64].mxu1  ;;  %v6474_v43 = vld [vmem:[%s13112_s18] sm:$0xff] }
0x10a7   : > { %v6313_v48 = vmul.f32 %v12846_v62, %v6273_v39  ;;  %v7423_v4 = vadd.f32 %v7422_v5, %v7421_v19  ;;  %v6249_v2 = vadd.f32 %v7593_v11, %v6144_v52  ;;  %v6243_v17 = vpop.f32.mrb[65].mxu1  ;;  %v6346_v52 = vpop.permute.xlu0 %6345  ;;  %v6475_v39 = vld [vmem:[%s13112_s18 + $0x8] sm:$0xff]  ;;  %v6476_v19 = vld [vmem:[%s13112_s18 + $0x10] sm:$0xff] }
0x10a8   : > { %v6312_v28 = vmul.f32 %v6282_v15, %v6272_v53  ;;  %v6244_v41 = vadd.f32 %v6243_v17, %v6139_v46  ;;  %v6059_v15 = vadd.f32 %v7373_v6, %v12852_v22  ;;  %v6310_v12 = vpop.permute.xlu1 %6309  ;;  %v6477_v53 = vld [vmem:[%s13112_s18 + $0x18] sm:$0xff] }
0x10a9   : > { %v12867_v33 = vadd.f32 %v12848_v61, %v6313_v48  ;;  %v6275_v51 = vmax.f32 %v6249_v2, 0.0  ;;  %v7424_v38 = vpop.f32.mrb[48].mxu0  ;;  %v6154_v58 = vadd.f32 %v7423_v4, %v6049_v3  ;;  %v8161_v11 = vpack.c.bf16 %v6477_v53, %v6476_v19  ;;  %v6478_v2 = vld [vmem:[%s13112_s18 + $0x20] sm:$0xf]  ;;  %v6814_v53 = vld [vmem:[%s13324_s24 + $0x18] sm:$0xff] }
0x10aa   : > { %v12870_v36 = vadd.f32 %v12854_v59, %v6312_v28  ;;  %v6274_v47 = vmax.f32 %v6244_v41, 0.0  ;;  %v7425_v62 = vpop.f32.mrb[49].mxu0  ;;  %v7596_v56 = vpop.f32.mrb[66].mxu1 }
0x10ab   : > { %6362 = vst.msk [vmem:[#allocation10 + $0x8] sm:$0xff] %vm6360_vm15, %v12867_v33  ;;  %v6315_v50 = vmul.f32 %v12856_v9, %v6275_v51  ;;  %v7426_v61 = vadd.f32 %v7425_v62, %v7424_v38  ;;  %v6259_v8 = vadd.f32 %v7596_v56, %v6154_v58  ;;  %v6253_v49 = vpop.f32.mrb[67].mxu1 }
0x10ac   : > { %6371 = vst.msk [vmem:[#allocation10 + $0x8] sm:$0xff] %vm6369_vm6, %v13280_v13  ;;  %v6314_v59 = vmul.f32 %v6290_v60, %v6274_v47  ;;  %v6254_v21 = vadd.f32 %v6253_v49, %v6149_v16  ;;  %v6350_v25 = vpop.permute.xlu1 %6349  ;;  %v8157_v16 = vpack.c.bf16 %v6475_v39, %v6474_v43 }
0x10ad   : > { %6361 = vst.msk [vmem:[#allocation10] sm:$0xff] %vm6360_vm15, %v12870_v36  ;;  %v12883_v42 = vadd.f32 %v12860_v34, %v6315_v50  ;;  %v6277_v57 = vmax.f32 %v6259_v8, 0.0  ;;  %v7427_v24 = vpop.f32.mrb[50].mxu0  ;;  %v6159_v9 = vadd.f32 %v7426_v61, %v6054_v1 }
0x10ae   : > { %6370 = vst.msk [vmem:[#allocation10] sm:$0xff] %vm6369_vm6, %v13280_v13  ;;  %v12886_v18 = vadd.f32 %v12858_v29, %v6314_v59  ;;  %v6276_v0 = vmax.f32 %v6254_v21, 0.0  ;;  %v7428_v27 = vpop.f32.mrb[51].mxu0  ;;  %v7599_v30 = vpop.f32.mrb[68].mxu1  ;;  %8158 = vmatprep.subr.bf16.mxu1 %v8157_v16 }
0x10af   : > { %6364 = vst.msk [vmem:[#allocation10 + $0x18] sm:$0xff] %vm6360_vm15, %v12883_v42  ;;  %v6317_v14 = vmul.f32 %v6302_v20, %v6277_v57  ;;  %v7429_v40 = vadd.f32 %v7428_v27, %v7427_v24  ;;  %v6263_v46 = vpop.f32.mrb[69].mxu1  ;;  %8160 = vmatpush3.bf16.msra.mxu1 %v8157_v16  ;;  %v6812_v16 = vld [vmem:[%s13324_s24 + $0x8] sm:$0xff] }
0x10b0   : > { %6373 = vst.msk [vmem:[#allocation10 + $0x18] sm:$0xff] %vm6369_vm6, %v13280_v13  ;;  %v6316_v29 = vmul.f32 %v12862_v32, %v6276_v0  ;;  %v6264_v34 = vadd.f32 %v6263_v46, %v6159_v9  ;;  %8162 = vmatprep.subr.bf16.mxu1 %v8161_v11  ;;  %6893 = vmatprep.mubr.f32.mxu0 %v6812_v16 }
0x10b1   : > { %6363 = vst.msk [vmem:[#allocation10 + $0x10] sm:$0xff] %vm6360_vm15, %v12886_v18  ;;  %v6164_v22 = vadd.f32 %v7429_v40, %v6059_v15  ;;  %v12898_v54 = vadd.f32 %v6342_v7, %v6317_v14 }
0x10b2   : > { %6372 = vst.msk [vmem:[#allocation10 + $0x10] sm:$0xff] %vm6369_vm6, %v13280_v13  ;;  %v12900_v31 = vadd.f32 %v6338_v26, %v6316_v29  ;;  %v6278_v55 = vmax.f32 %v6264_v34, 0.0 }
0x10b3   : > { %v6269_v6 = vadd.f32 %v7599_v30, %v6164_v22  ;;  %6366 = vst.msk [vmem:[#allocation10 + $0x28] sm:$0xff] %vm6360_vm15, %v12898_v54  ;;  %v6379_v44 = vld [vmem:[#allocation10 + $0x8] sm:$0xff]  ;;  %8164 = vmatpush3.bf16.msra.mxu1 %v8161_v11 }
0x10b4   : > { %6365 = vst.msk [vmem:[#allocation10 + $0x20] sm:$0xff] %vm6360_vm15, %v12900_v31  ;;  %v6318_v32 = vmul.f32 %v6306_v63, %v6278_v55  ;;  %6396 = vrot.lane.b32.xlu0 %v6379_v44, %s13235_s26  ;;  %7608 = vmatprep.subr.msk.mxu1 %vm1142_vm13, %v6478_v2 }
0x10b5   : > { %6375 = vst.msk [vmem:[#allocation10 + $0x28] sm:$0xff] %vm6369_vm6, %v13280_v13  ;;  %v6378_v60 = vld [vmem:[#allocation10] sm:$0xff]  ;;  %6374 = vst.msk [vmem:[#allocation10 + $0x20] sm:$0xff] %vm6369_vm6, %v13280_v13  ;;  %v6279_v10 = vmax.f32 %v6269_v6, 0.0 }
0x10b6   : > { %6394 = vrot.lane.b32.xlu1 %v6378_v60, %s13235_s26  ;;  %v12912_v23 = vadd.f32 %v6346_v52, %v6318_v32 }
0x10b7   : > { %v6319_v45 = vmul.f32 %v6310_v12, %v6279_v10  ;;  %v6381_v35 = vld [vmem:[#allocation10 + $0x18] sm:$0xff]  ;;  %7609 = vmatpush3.msk.msra.mxu1 %vm1142_vm13, %v6478_v2  ;;  %vm7055_vm13 = vcmask 1024  }
0x10b8   : > { %6367 = vst.msk [vmem:[#allocation10 + $0x30] sm:$0xff] %vm6360_vm15, %v12912_v23  ;;  %6400 = vrot.lane.b32.xlu0 %v6381_v35, %s13235_s26 }
0x10b9   : > { %v6380_v37 = vld [vmem:[#allocation10 + $0x10] sm:$0xff]  ;;  %6376 = vst.msk [vmem:[#allocation10 + $0x30] sm:$0xff] %vm6369_vm6, %v13280_v13  ;;  %v12919_v26 = vadd.f32 %v6350_v25, %v6319_v45 }
0x10ba   : > { %6398 = vrot.lane.b32.xlu1 %v6380_v37, %s13235_s26 }
0x10bb   : > { %6368 = vst.msk [vmem:[#allocation10 + $0x38] sm:$0xff] %vm6360_vm15, %v12919_v26 }
0x10bc   : > { %v6383_v5 = vld [vmem:[#allocation10 + $0x28] sm:$0xff]  ;;  %6377 = vst.msk [vmem:[#allocation10 + $0x38] sm:$0xff] %vm6369_vm6, %v13280_v13  ;;  %v6382_v3 = vld [vmem:[#allocation10 + $0x20] sm:$0xff] }
0x10bd   : > { %6404 = vrot.lane.b32.xlu0 %v6383_v5, %s13235_s26 }
0x10be   : > { %6402 = vrot.lane.b32.xlu1 %v6382_v3, %s13235_s26 }
0x10c0   : > { %v6384_v48 = vld [vmem:[#allocation10 + $0x30] sm:$0xff] }
0x10c2   : > { %6406 = vrot.lane.b32.xlu1 %v6384_v48, %s13235_s26 }
0x10c3   : > { %v6385_v4 = vld [vmem:[#allocation10 + $0x38] sm:$0xff] }
0x10c4   : > { %6408 = vrot.lane.b32.xlu0 %v6385_v4, %s13235_s26 }
0x1126   : > { %v6397_v13 = vpop.permute.xlu0 %6396 }
0x1127   : > { %v6427_v17 = vmax.f32 %v6379_v44, %v6397_v13  ;;  %v6419_v21 = vmax.f32 %v12867_v33, %v6397_v13 }
0x1128   : > { %v6395_v28 = vpop.permute.xlu1 %6394 }
0x1129   : > { %v6426_v41 = vmax.f32 %v6378_v60, %v6395_v28  ;;  %6444 = vrot.lane.b32.xlu0 %v6427_v17, %s13321_s1  ;;  %v6418_v49 = vmax.f32 %v12870_v36, %v6395_v28 }
0x112a   : > { %v6401_v20 = vpop.permute.xlu0 %6400 }
0x112b   : > { %6442 = vrot.lane.b32.xlu1 %v6426_v41, %s13321_s1  ;;  %v6429_v51 = vmax.f32 %v6381_v35, %v6401_v20  ;;  %v6421_v30 = vmax.f32 %v12883_v42, %v6401_v20 }
0x112c   : > { %v6399_v38 = vpop.permute.xlu1 %6398 }
0x112d   : > { %v6428_v58 = vmax.f32 %v6380_v37, %v6399_v38  ;;  %6448 = vrot.lane.b32.xlu0 %v6429_v51, %s13321_s1  ;;  %v6420_v0 = vmax.f32 %v12886_v18, %v6399_v38 }
0x112f   : > { %v6405_v7 = vpop.permute.xlu0 %6404  ;;  %6446 = vrot.lane.b32.xlu1 %v6428_v58, %s13321_s1 }
0x1130   : > { %v6431_v47 = vmax.f32 %v6383_v5, %v6405_v7  ;;  %v6403_v62 = vpop.permute.xlu1 %6402  ;;  %v6423_v33 = vmax.f32 %v12898_v54, %v6405_v7 }
0x1131   : > { %v6430_v56 = vmax.f32 %v6382_v3, %v6403_v62  ;;  %v6422_v36 = vmax.f32 %v12900_v31, %v6403_v62 }
0x1132   : > { %6452 = vrot.lane.b32.xlu0 %v6431_v47, %s13321_s1 }
0x1133   : > { %6450 = vrot.lane.b32.xlu1 %v6430_v56, %s13321_s1 }
0x1134   : > { %v6407_v1 = vpop.permute.xlu1 %6406 }
0x1135   : > { %v6432_v50 = vmax.f32 %v6384_v48, %v6407_v1  ;;  %v6424_v34 = vmax.f32 %v12912_v23, %v6407_v1 }
0x1136   : > { %v6409_v61 = vpop.permute.xlu0 %6408 }
0x1137   : > { %6454 = vrot.lane.b32.xlu1 %v6432_v50, %s13321_s1  ;;  %v6433_v8 = vmax.f32 %v6385_v4, %v6409_v61  ;;  %v6425_v22 = vmax.f32 %v12919_v26, %v6409_v61 }
0x1139   : > { %6456 = vrot.lane.b32.xlu0 %v6433_v8, %s13321_s1 }
0x119b   : > { %v6445_v59 = vpop.permute.xlu0 %6444 }
0x119c   : > { %v6467_v9 = vmax.f32 %v6419_v21, %v6445_v59 }
0x119d   : > { %v6443_v57 = vpop.permute.xlu1 %6442 }
0x119e   : > { %v6466_v24 = vmax.f32 %v6418_v49, %v6443_v57 }
0x119f   : > { %v6449_v27 = vpop.permute.xlu0 %6448 }
0x11a0   : > { %7610 = vmatprep.mubr.msk.f32.mxu1 %vm6360_vm15, %v6466_v24  ;;  %v6469_v40 = vmax.f32 %v6421_v30, %v6449_v27 }
0x11a1   : > { %7611 = vmatmul.mubr.msk.f32.vlgmr.msra.gmra.mrb[70].mxu1 %vm6360_vm15, %v6467_v9  ;;  %v6447_v15 = vpop.permute.xlu1 %6446 }
0x11a2   : > { %v6468_v14 = vmax.f32 %v6420_v0, %v6447_v15 }
0x11a4   : > { %v6453_v46 = vpop.permute.xlu0 %6452  ;;  %7613 = vmatprep.mubr.msk.f32.mxu1 %vm6360_vm15, %v6468_v14 }
0x11a5   : > { %7614 = vmatmul.mubr.msk.f32.gmra.mrb[72].mxu1 %vm6360_vm15, %v6469_v40  ;;  %v6451_v18 = vpop.permute.xlu1 %6450  ;;  %v6471_v29 = vmax.f32 %v6423_v33, %v6453_v46 }
0x11a6   : > { %v6470_v63 = vmax.f32 %v6422_v36, %v6451_v18 }
0x11a8   : > { %7616 = vmatprep.mubr.msk.f32.mxu1 %vm6360_vm15, %v6470_v63 }
0x11a9   : > { %7617 = vmatmul.mubr.msk.f32.gmra.mrb[74].mxu1 %vm6360_vm15, %v6471_v29  ;;  %v6455_v42 = vpop.permute.xlu1 %6454 }
0x11aa   : > { %v6472_v12 = vmax.f32 %v6424_v34, %v6455_v42 }
0x11ab   : > { %v6457_v31 = vpop.permute.xlu0 %6456 }
0x11ac   : > { %7619 = vmatprep.mubr.msk.f32.mxu1 %vm6360_vm15, %v6472_v12  ;;  %v6473_v55 = vmax.f32 %v6425_v22, %v6457_v31 }
0x11ae   : > { %7620 = vmatmul.mubr.msk.f32.gmra.mrb[76].mxu1 %vm6360_vm15, %v6473_v55 }
0x11af   : > { %6968 = vmatprep.mubr.f32.mxu1 %v6814_v53 }
0x1274   : > { %v12971_v54 = vpop.f32.mrb[70].mxu1 }
0x1275   : > { %v12973_v6 = vpop.f32.mrb[71].mxu1 }
0x1276   : > { %v9144_v44 = vpack.i.bf16 %v12971_v54, %v12973_v6  ;;  %v8167_v32 = vpack.c.bf16 %v12971_v54, %v12973_v6 }
0x1278   : > { %9145 = vrot.lane.b32.xlu0 %v9144_v44, %s13321_s1  ;;  %9140 = vrot.lane.b32.xlu1 %v9144_v44, %s13234_s0  ;;  %v12979_v52 = vpop.f32.mrb[72].mxu1 }
0x1279   : > { %v12983_v60 = vpop.f32.mrb[73].mxu1 }
0x127a   : > { %v9174_v10 = vpack.i.bf16 %v12979_v52, %v12983_v60  ;;  %v8171_v25 = vpack.c.bf16 %v12979_v52, %v12983_v60 }
0x127c   : > { %9165 = vrot.lane.b32.xlu0 %v9144_v44, %s13322_s23  ;;  %9150 = vrot.lane.b32.xlu1 %v9144_v44, %s9341_s20  ;;  %v12989_v23 = vpop.f32.mrb[74].mxu1 }
0x127d   : > { %v12993_v45 = vpop.f32.mrb[75].mxu1 }
0x127e   : > { %v9204_v35 = vpack.i.bf16 %v12989_v23, %v12993_v45  ;;  %v8175_v37 = vpack.c.bf16 %v12989_v23, %v12993_v45 }
0x1280   : > { %9170 = vrot.lane.b32.xlu0 %v9144_v44, %s9342_s29  ;;  %9155 = vrot.lane.b32.xlu1 %v9144_v44, %s9343_s21 }
0x1281   : > { %v13000_v26 = vpop.f32.mrb[76].mxu1 }
0x1282   : > { %v13002_v43 = vpop.f32.mrb[77].mxu1 }
0x1283   : > { %v9224_v39 = vpack.i.bf16 %v13000_v26, %v13002_v43  ;;  %v8179_v19 = vpack.c.bf16 %v13000_v26, %v13002_v43 }
0x1284   : > { %9160 = vrot.lane.b32.xlu1 %v9144_v44, %s13235_s26  ;;  %9175 = vrot.lane.b32.xlu0 %v9174_v10, %s13234_s0 }
0x1288   : > { %9180 = vrot.lane.b32.xlu1 %v9174_v10, %s13321_s1  ;;  %9185 = vrot.lane.b32.xlu0 %v9174_v10, %s9341_s20 }
0x128c   : > { %9190 = vrot.lane.b32.xlu1 %v9174_v10, %s9343_s21  ;;  %9205 = vrot.lane.b32.xlu0 %v9204_v35, %s13321_s1 }
0x1290   : > { %9195 = vrot.lane.b32.xlu1 %v9174_v10, %s13235_s26  ;;  %9210 = vrot.lane.b32.xlu0 %v9204_v35, %s9341_s20 }
0x1294   : > { %9200 = vrot.lane.b32.xlu1 %v9204_v35, %s13234_s0  ;;  %9225 = vrot.lane.b32.xlu0 %v9224_v39, %s13234_s0 }
0x1298   : > { %9215 = vrot.lane.b32.xlu1 %v9204_v35, %s9343_s21  ;;  %9230 = vrot.lane.b32.xlu0 %v9174_v10, %s13322_s23 }
0x129c   : > { %9220 = vrot.lane.b32.xlu1 %v9204_v35, %s13235_s26  ;;  %9235 = vrot.lane.b32.xlu0 %v9224_v39, %s13321_s1 }
0x12a0   : > { %9250 = vrot.lane.b32.xlu1 %v9204_v35, %s13322_s23  ;;  %9240 = vrot.lane.b32.xlu0 %v9224_v39, %s9341_s20 }
0x12a4   : > { %9260 = vrot.lane.b32.xlu1 %v9224_v39, %s9343_s21  ;;  %9245 = vrot.lane.b32.xlu0 %v9174_v10, %s9342_s29 }
0x12a8   : > { %9265 = vrot.lane.b32.xlu1 %v9224_v39, %s13235_s26  ;;  %9255 = vrot.lane.b32.xlu0 %v9144_v44, %s13323_s27  ;;  %s13326_s26 = sld [smem:[#allocation23_spill]] }
0x12ac   : > { %9270 = vrot.lane.b32.xlu1 %v9204_v35, %s9342_s29  ;;  %9280 = vrot.lane.b32.xlu0 %v9224_v39, %s13322_s23 }
0x12b0   : > { %9275 = vrot.lane.b32.xlu1 %v9174_v10, %s13323_s27  ;;  %9285 = vrot.lane.b32.xlu0 %v9224_v39, %s9342_s29 }
0x12b4   : > { %9290 = vrot.lane.b32.xlu1 %v9204_v35, %s13323_s27  ;;  %9295 = vrot.lane.b32.xlu0 %v9224_v39, %s13323_s27 }
0x12ea   : > { %v9146_v5 = vpop.permute.xlu0 %9145  ;;  %v9141_v11 = vpop.permute.xlu1 %9140 }
0x12eb   : > { %v9148_v3 = vunpack.i.h.bf16 %v9146_v5  ;;  %v9147_v48 = vunpack.i.l.bf16 %v9146_v5  ;;  %v9143_v4 = vunpack.i.h.bf16 %v9141_v11  ;;  %v9142_v2 = vunpack.i.l.bf16 %v9141_v11 }
0x12ed   : > { %v8197_v13 = vpack.c.bf16 %v9148_v3, %v9147_v48  ;;  %v8165_v17 = vpack.c.bf16 %v9143_v4, %v9142_v2 }
0x12ee   : > { %v13037_v28 = vpop.permute.xlu0 %9165  ;;  %v9151_v41 = vpop.permute.xlu1 %9150 }
0x12ef   : > { %v9153_v20 = vunpack.i.h.bf16 %v9151_v41  ;;  %v9152_v51 = vunpack.i.l.bf16 %v9151_v41  ;;  %8166 = vmatprep.subr.bf16.mxu0 %v8165_v17  ;;  %8198 = vmatprep.subr.bf16.mxu1 %v8197_v13  ;;  %v9168_v11 = vunpack.i.h.bf16 %v13037_v28  ;;  %v9167_v3 = vunpack.i.l.bf16 %v13037_v28 }
0x12f0   : > { %8168 = vmatpush3.bf16.msra.mxu0 %v8167_v32 }
0x12f1   : > { %v8199_v38 = vpack.c.bf16 %v9153_v20, %v9152_v51 }
0x12f2   : > { %v13039_v58 = vpop.permute.xlu0 %9170  ;;  %v9156_v7 = vpop.permute.xlu1 %9155 }
0x12f3   : > { %8200 = vmatpush3.bf16.msra.mxu1 %v8199_v38  ;;  %v9158_v6 = vunpack.i.h.bf16 %v9156_v7  ;;  %v9157_v44 = vunpack.i.l.bf16 %v9156_v7  ;;  %v9173_v26 = vunpack.i.h.bf16 %v13039_v58  ;;  %v9172_v43 = vunpack.i.l.bf16 %v13039_v58 }
0x12f4   : > { %v8213_v7 = vpack.c.bf16 %v9168_v11, %v9167_v3  ;;  %v6816_v3 = vld [vmem:[%s13324_s24 + $0x28] sm:$0x3] }
0x12f5   : > { %v8181_v16 = vpack.c.bf16 %v9158_v6, %v9157_v44 }
0x12f6   : > { %v9176_v47 = vpop.permute.xlu0 %9175  ;;  %v9161_v62 = vpop.permute.xlu1 %9160 }
0x12f7   : > { %v9178_v56 = vunpack.i.h.bf16 %v9176_v47  ;;  %v9177_v1 = vunpack.i.l.bf16 %v9176_v47  ;;  %v9163_v32 = vunpack.i.h.bf16 %v9161_v62  ;;  %v9162_v60 = vunpack.i.l.bf16 %v9161_v62 }
0x12f9   : > { %v8169_v50 = vpack.c.bf16 %v9178_v56, %v9177_v1  ;;  %v8183_v45 = vpack.c.bf16 %v9163_v32, %v9162_v60  ;;  %v6817_v60 = vld [vmem:[%s13324_s24 + $0x30] sm:$0x3] }
0x12fa   : > { %v9186_v61 = vpop.permute.xlu0 %9185  ;;  %v9181_v8 = vpop.permute.xlu1 %9180 }
0x12fb   : > { %v9188_v49 = vunpack.i.h.bf16 %v9186_v61  ;;  %v9187_v59 = vunpack.i.l.bf16 %v9186_v61  ;;  %v9183_v21 = vunpack.i.h.bf16 %v9181_v8  ;;  %v9182_v57 = vunpack.i.l.bf16 %v9181_v8  ;;  %8170 = vmatprep.subr.bf16.mxu0 %v8169_v50 }
0x12fc   : > { %8172 = vmatpush3.bf16.msra.mxu0 %v8171_v25 }
0x12fd   : > { %v8203_v24 = vpack.c.bf16 %v9188_v49, %v9187_v59  ;;  %v8201_v9 = vpack.c.bf16 %v9183_v21, %v9182_v57  ;;  %v8215_v59 = vpack.c.bf16 %v9173_v26, %v9172_v43 }
0x12fe   : > { %v9206_v0 = vpop.permute.xlu0 %9205  ;;  %v9191_v27 = vpop.permute.xlu1 %9190 }
0x12ff   : > { %v9208_v30 = vunpack.i.h.bf16 %v9206_v0  ;;  %v9207_v15 = vunpack.i.l.bf16 %v9206_v0  ;;  %8202 = vmatprep.subr.bf16.mxu1 %v8201_v9  ;;  %v9193_v10 = vunpack.i.h.bf16 %v9191_v27  ;;  %v9192_v25 = vunpack.i.l.bf16 %v9191_v27 }
0x1300   : > { %8204 = vmatpush3.bf16.msra.mxu1 %v8203_v24 }
0x1301   : > { %v8205_v14 = vpack.c.bf16 %v9208_v30, %v9207_v15 }
0x1302   : > { %v9211_v40 = vpop.permute.xlu0 %9210  ;;  %v9196_v36 = vpop.permute.xlu1 %9195 }
0x1303   : > { %v9213_v46 = vunpack.i.h.bf16 %v9211_v40  ;;  %v9212_v33 = vunpack.i.l.bf16 %v9211_v40  ;;  %8206 = vmatprep.subr.bf16.mxu1 %v8205_v14  ;;  %v9198_v48 = vunpack.i.h.bf16 %v9196_v36  ;;  %v9197_v4 = vunpack.i.l.bf16 %v9196_v36 }
0x1305   : > { %v8207_v18 = vpack.c.bf16 %v9213_v46, %v9212_v33  ;;  %v8187_v47 = vpack.c.bf16 %v9198_v48, %v9197_v4  ;;  %v6813_v4 = vld [vmem:[%s13324_s24 + $0x10] sm:$0xff] }
0x1306   : > { %v9226_v63 = vpop.permute.xlu0 %9225  ;;  %v9201_v29 = vpop.permute.xlu1 %9200 }
0x1307   : > { %v9228_v34 = vunpack.i.h.bf16 %v9226_v63  ;;  %v9227_v42 = vunpack.i.l.bf16 %v9226_v63  ;;  %v9203_v12 = vunpack.i.h.bf16 %v9201_v29  ;;  %v9202_v22 = vunpack.i.l.bf16 %v9201_v29  ;;  %8208 = vmatpush3.bf16.msra.mxu1 %v8207_v18 }
0x1309   : > { %v8173_v31 = vpack.c.bf16 %v9203_v12, %v9202_v22  ;;  %v8177_v52 = vpack.c.bf16 %v9228_v34, %v9227_v42 }
0x130a   : > { %v9231_v55 = vpop.permute.xlu0 %9230  ;;  %v9216_v54 = vpop.permute.xlu1 %9215 }
0x130b   : > { %8174 = vmatprep.subr.bf16.mxu0 %v8173_v31  ;;  %v9218_v17 = vunpack.i.h.bf16 %v9216_v54  ;;  %v9217_v41 = vunpack.i.l.bf16 %v9216_v54  ;;  %v9232_v28 = vunpack.i.l.bf16 %v9231_v55  ;;  %v6811_v54 = vld [vmem:[%s13324_s24] sm:$0xff] }
0x130c   : > { %8176 = vmatpush3.bf16.msra.mxu0 %v8175_v37  ;;  %v8185_v37 = vpack.c.bf16 %v9193_v10, %v9192_v25 }
0x130d   : > { %8178 = vmatprep.subr.bf16.mxu0 %v8177_v52  ;;  %v8189_v61 = vpack.c.bf16 %v9218_v17, %v9217_v41 }
0x130e   : > { %v9236_v35 = vpop.permute.xlu0 %9235  ;;  %v9221_v39 = vpop.permute.xlu1 %9220 }
0x130f   : > { %v9238_v53 = vunpack.i.h.bf16 %v9236_v35  ;;  %v9237_v5 = vunpack.i.l.bf16 %v9236_v35  ;;  %v9223_v62 = vunpack.i.h.bf16 %v9221_v39  ;;  %v9222_v56 = vunpack.i.l.bf16 %v9221_v39 }
0x1310   : > { %8180 = vmatpush3.bf16.msra.mxu0 %v8179_v19  ;;  %v9233_v19 = vunpack.i.h.bf16 %v9231_v55 }
0x1311   : > { %v8209_v23 = vpack.c.bf16 %v9238_v53, %v9237_v5  ;;  %8182 = vmatprep.subr.bf16.mxu0 %v8181_v16  ;;  %v8191_v24 = vpack.c.bf16 %v9223_v62, %v9222_v56  ;;  %v6822_v56 = vld [vmem:[%s13326_s26 + $0x8] sm:$0x3] }
0x1312   : > { %v9241_v2 = vpop.permute.xlu0 %9240  ;;  %v9251_v13 = vpop.permute.xlu1 %9250  ;;  %v8217_v21 = vpack.c.bf16 %v9233_v19, %v9232_v28  ;;  %v6821_v28 = vld [vmem:[%s13326_s26] sm:$0xff] }
0x1313   : > { %v9243_v20 = vunpack.i.h.bf16 %v9241_v2  ;;  %v9242_v51 = vunpack.i.l.bf16 %v9241_v2  ;;  %8210 = vmatprep.subr.bf16.mxu1 %v8209_v23  ;;  %v9253_v9 = vunpack.i.h.bf16 %v9251_v13  ;;  %v9252_v0 = vunpack.i.l.bf16 %v9251_v13  ;;  %v6815_v2 = vld [vmem:[%s13324_s24 + $0x20] sm:$0xff] }
0x1314   : > { %8184 = vmatpush3.bf16.msra.mxu0 %v8183_v45  ;;  %v6819_v13 = vld [vmem:[%s13324_s24 + $0x40] sm:$0x3] }
0x1315   : > { %v8211_v38 = vpack.c.bf16 %v9243_v20, %v9242_v51  ;;  %8186 = vmatprep.subr.bf16.mxu0 %v8185_v37  ;;  %v8221_v63 = vpack.c.bf16 %v9253_v9, %v9252_v0  ;;  %v6818_v20 = vld [vmem:[%s13324_s24 + $0x38] sm:$0x3]  ;;  %v6820_v51 = vld [vmem:[%s13324_s24 + $0x48] sm:$0x3] }
0x1316   : > { %v9246_v1 = vpop.permute.xlu0 %9245  ;;  %v9261_v50 = vpop.permute.xlu1 %9260 }
0x1317   : > { %v9263_v8 = vunpack.i.h.bf16 %v9261_v50  ;;  %v9262_v49 = vunpack.i.l.bf16 %v9261_v50  ;;  %8212 = vmatpush3.bf16.msra.mxu1 %v8211_v38  ;;  %v9248_v57 = vunpack.i.h.bf16 %v9246_v1  ;;  %v9247_v58 = vunpack.i.l.bf16 %v9246_v1 }
0x1318   : > { %8188 = vmatpush3.bf16.msra.mxu0 %v8187_v47  ;;  %8214 = vmatprep.subr.bf16.mxu1 %v8213_v7 }
0x1319   : > { %8190 = vmatprep.subr.bf16.mxu0 %v8189_v61  ;;  %v8193_v27 = vpack.c.bf16 %v9263_v8, %v9262_v49  ;;  %v8219_v33 = vpack.c.bf16 %v9248_v57, %v9247_v58 }
0x131a   : > { %v9256_v30 = vpop.permute.xlu0 %9255  ;;  %v9266_v15 = vpop.permute.xlu1 %9265 }
0x131b   : > { %v9258_v14 = vunpack.i.h.bf16 %v9256_v30  ;;  %v9257_v40 = vunpack.i.l.bf16 %v9256_v30  ;;  %v9268_v36 = vunpack.i.h.bf16 %v9266_v15  ;;  %v9267_v46 = vunpack.i.l.bf16 %v9266_v15  ;;  %8216 = vmatpush3.bf16.msra.mxu1 %v8215_v59 }
0x131c   : > { %8192 = vmatpush3.bf16.msra.mxu0 %v8191_v24  ;;  %8218 = vmatprep.subr.bf16.mxu1 %v8217_v21 }
0x131d   : > { %v8195_v18 = vpack.c.bf16 %v9268_v36, %v9267_v46  ;;  %8194 = vmatprep.subr.bf16.mxu0 %v8193_v27  ;;  %v8229_v29 = vpack.c.bf16 %v9258_v14, %v9257_v40 }
0x131e   : > { %v9281_v34 = vpop.permute.xlu0 %9280  ;;  %v9271_v42 = vpop.permute.xlu1 %9270 }
0x131f   : > { %v9283_v12 = vunpack.i.h.bf16 %v9281_v34  ;;  %v9282_v22 = vunpack.i.l.bf16 %v9281_v34  ;;  %v9273_v31 = vunpack.i.h.bf16 %v9271_v42  ;;  %v9272_v55 = vunpack.i.l.bf16 %v9271_v42  ;;  %8220 = vmatpush3.bf16.msra.mxu1 %v8219_v33 }
0x1320   : > { %8196 = vmatpush3.bf16.msra.mxu0 %v8195_v18  ;;  %8222 = vmatprep.subr.bf16.mxu1 %v8221_v63 }
0x1321   : > { %v8225_v6 = vpack.c.bf16 %v9283_v12, %v9282_v22  ;;  %v8223_v44 = vpack.c.bf16 %v9273_v31, %v9272_v55  ;;  %8230 = vmatprep.subr.bf16.mxu0 %v8229_v29 }
0x1322   : > { %v9286_v52 = vpop.permute.xlu0 %9285  ;;  %v9276_v32 = vpop.permute.xlu1 %9275 }
0x1323   : > { %v9288_v10 = vunpack.i.h.bf16 %v9286_v52  ;;  %v9287_v25 = vunpack.i.l.bf16 %v9286_v52  ;;  %v9278_v35 = vunpack.i.h.bf16 %v9276_v32  ;;  %v9277_v39 = vunpack.i.l.bf16 %v9276_v32  ;;  %8224 = vmatpush3.bf16.msra.mxu1 %v8223_v44  ;;  %6894 = vmatmul.mubr.f32.vlgmr.msra.gmra.mrb[52].mxu0 %v6811_v54 }
0x1324   : > { %8226 = vmatprep.subr.bf16.mxu1 %v8225_v6  ;;  %8232 = vmatpush3.bf16.msra.mxu0 %v8229_v29 }
0x1325   : > { %v8227_v16 = vpack.c.bf16 %v9288_v10, %v9287_v25  ;;  %v8233_v53 = vpack.c.bf16 %v9278_v35, %v9277_v39  ;;  %6898 = vmatprep.mubr.f32.mxu0 %v6817_v60 }
0x1326   : > { %v9296_v5 = vpop.permute.xlu0 %9295  ;;  %v9291_v11 = vpop.permute.xlu1 %9290 }
0x1327   : > { %v9298_v23 = vunpack.i.h.bf16 %v9296_v5  ;;  %v9297_v45 = vunpack.i.l.bf16 %v9296_v5  ;;  %v9293_v37 = vunpack.i.h.bf16 %v9291_v11  ;;  %v9292_v48 = vunpack.i.l.bf16 %v9291_v11  ;;  %8228 = vmatpush3.bf16.msra.mxu1 %v8227_v16  ;;  %8234 = vmatprep.subr.bf16.mxu0 %v8233_v53 }
0x1328   : > { %8236 = vmatpush3.bf16.msra.mxu0 %v8233_v53 }
0x1329   : > { %v8237_v17 = vpack.c.bf16 %v9293_v37, %v9292_v48  ;;  %6899 = vmatmul.mubr.f32.gmra.mrb[54].mxu0 %v6816_v3  ;;  %v8241_v41 = vpack.c.bf16 %v9298_v23, %v9297_v45 }
0x132a   : > { %6969 = vmatmul.mubr.f32.vlgmr.msra.gmra.mrb[78].mxu1 %v6813_v4  ;;  %7638 = vmatprep.mubr.msk.f32.mxu0 %vm2660_vm8, %v6815_v2 }
0x132b   : > { %8238 = vmatprep.subr.bf16.mxu0 %v8237_v17  ;;  %6973 = vmatprep.mubr.f32.mxu1 %v6819_v13 }
0x132c   : > { %8240 = vmatpush3.bf16.msra.mxu0 %v8237_v17 }
0x132d   : > { %8242 = vmatprep.subr.bf16.mxu0 %v8241_v41 }
0x132e   : > { %6974 = vmatmul.mubr.f32.gmra.mrb[80].mxu1 %v6818_v20 }
0x1330   : > { %8244 = vmatpush3.bf16.msra.mxu0 %v8241_v41 }
0x1333   : > { %7639 = vmatmul.mubr.msk.f32.vlgmr.msra.gmra.mrb[56].mxu0 %vm2660_vm8, %v6820_v51  ;;  %vm13328_vm8 = vcmask 7168  }
0x13f6   : > { %v7491_v26 = vpop.f32.mrb[52].mxu0 }
0x13f7   : > { %v7492_v43 = vpop.f32.mrb[53].mxu0 }
0x13f8   : > { %v7493_v19 = vadd.f32 %v7492_v43, %v7491_v26 }
0x13fa   : > { %v6896_v50 = vadd.f32 %v7493_v19, %v6821_v28 }
0x13fc   : > { %v7494_v38 = vpop.f32.mrb[54].mxu0 }
0x13fd   : > { %v7529_v7 = vpop.f32.mrb[78].mxu1  ;;  %v7495_v47 = vpop.f32.mrb[55].mxu0 }
0x13fe   : > { %v7530_v62 = vpop.f32.mrb[79].mxu1  ;;  %v7496_v1 = vadd.f32 %v7495_v47, %v7494_v38 }
0x13ff   : > { %v7531_v61 = vadd.f32 %v7530_v62, %v7529_v7 }
0x1400   : > { %v6901_v8 = vadd.f32 %v7496_v1, %v6822_v56 }
0x1401   : > { %v6971_v49 = vadd.f32 %v7531_v61, %v6896_v50  ;;  %v7532_v59 = vpop.f32.mrb[80].mxu1 }
0x1402   : > { %v7533_v21 = vpop.f32.mrb[81].mxu1 }
0x1403   : > { %v7534_v57 = vadd.f32 %v7533_v21, %v7532_v59 }
0x1405   : > { %v6976_v58 = vadd.f32 %v7534_v57, %v6901_v8 }
0x1406   : > { %v7640_v24 = vpop.f32.mrb[56].mxu0 }
0x1407   : > { %v7045_v9 = vpop.f32.mrb[57].mxu0  ;;  %v7051_v0 = vadd.f32 %v7640_v24, %v6976_v58 }
0x1408   : > { %v7046_v27 = vadd.f32 %v7045_v9, %v6971_v49 }
0x1409   : > { %7056 = vst.msk [vmem:[%s653_s6 + $0x8] sm:$0x3] %vm7055_vm13, %v7051_v0 }
0x140a   : > { %7054 = vst.msk [vmem:[%s653_s6] sm:$0xff] %vm13328_vm8, %v7046_v27 }
0x140b PF: > { %s13329_s7 = sld [smem:[#allocation11_spill]] }
0x1411   : > { %s31_s2 = sadd.s32 1, %s13329_s7  }
0x1412   : > { %p28_p4 = scmp.ge.s32.totalorder %s31_s2, 4  }
0x1414   :  { %30 = sbr.rel (!%p28_p4) target bundleno = 12 (0xc), region = 150 }

</bundles_post_ra>
